<compile_context>
chip_gen: v7x
topology: tpu7x:2x2x1
jax: 0.10.0
libtpu: 0.0.40
codegen_flags: <defaults>
</compile_context>

<pallas_src>
import functools
import math

import jax
import jax.numpy as jnp
from jax.experimental import pallas as pl
from jax.experimental.pallas import tpu as pltpu

HEAD_LANES = 128                     # lane-dense head output (action_size padded)
IMG_ROWS = 140                       # 10 x 14 conv1 output positions per image
SHIFT2_MAX = 45                      # (4-1)*14 + (4-1): largest conv2 slab shift
SHIFT3_MAX = 60                      # (3-1)*28 + (3-1)*2: largest conv3 slab shift
KEPT_P = (0, 2, 4, 6, 28, 30, 32, 34)  # flat coords of the 2x4 conv3 outputs


# ---------------------------------------------------------------------------
# Fused whole-network kernel (one grid step == tb images)
# ---------------------------------------------------------------------------
def _qnet_fused_kernel(x_ref, w1_ref, b1_ref, w2_ref, b2_ref, w3_ref, b3_ref,
                       wh_ref, bh_ref, o_ref, *, tb):
    L2 = tb * IMG_ROWS - SHIFT2_MAX        # rows carried through conv2 (flat coords)
    L3 = L2 - SHIFT3_MAX                   # rows carried through conv3 (flat coords)

    # conv1 + ReLU: one (tb*140, 256) @ (256, 32) MXU matmul (1/255 folded in w1).
    h1 = jnp.dot(x_ref[0], w1_ref[...], preferred_element_type=jnp.float32)
    h1 = jnp.maximum(h1 + b1_ref[...], 0.0).astype(jnp.bfloat16)   # (tb*140, 32)

    # conv2 + ReLU: in-VMEM im2col by lane-concat of 16 shifted slabs
    # (feature order (dy, dx, c) == HWIO-flattened w2), then ONE
    # (L2, 512) @ (512, 64) matmul.
    p2 = jnp.concatenate(
        [h1[14 * dy + dx: 14 * dy + dx + L2, :]
         for dy in range(4) for dx in range(4)], axis=-1)          # (L2, 512)
    h2 = jnp.dot(p2, w2_ref[...], preferred_element_type=jnp.float32)
    h2 = jnp.maximum(h2 + b2_ref[...], 0.0).astype(jnp.bfloat16)   # (L2, 64)

    # conv3 + ReLU: conv2's stride 2 folded into the shifts (row stride 28,
    # col stride 2 in h1-flat coordinates); ONE (L3, 576) @ (576, 32) matmul.
    p3 = jnp.concatenate(
        [h2[28 * dy + 2 * dx: 28 * dy + 2 * dx + L3, :]
         for dy in range(3) for dx in range(3)], axis=-1)          # (L3, 576)
    h3 = jnp.dot(p3, w3_ref[...], preferred_element_type=jnp.float32)
    h3 = jnp.maximum(h3 + b3_ref[...], 0.0).astype(jnp.bfloat16)   # (L3, 32)

    # flatten(256) + Linear head: gather the 8 valid spatial positions per
    # image into lane-dense (tb, 256) rows (feature order p*32 + c; head
    # weight pre-permuted accordingly), then ONE (tb, 256) @ (256, 128) matmul.
    rows = []
    for b in range(tb):
        base = b * IMG_ROWS
        rows.append(jnp.concatenate(
            [h3[base + p: base + p + 1, :] for p in KEPT_P], axis=-1))   # (1, 256)
    xh = jnp.concatenate(rows, axis=0)                                   # (tb, 256)
    q = jnp.dot(xh, wh_ref[...], preferred_element_type=jnp.float32) + bh_ref[...]
    o_ref[0] = q


def _resident(shape):
    nd = len(shape)
    return pl.BlockSpec(shape, lambda i, _nd=nd: (0,) * _nd)


def _pick_batch_tile(batch):
    if batch <= 4:
        return batch          # single step; nothing to shard at tiny batch
    if batch <= 32:
        return 4              # >= 2 even grid steps -> both v7x TCs busy
    return 8                  # larger tiles at training batch: amortize step cost


# ---------------------------------------------------------------------------
# XLA glue: conv1 patch extraction (single op, feature order (c, kh, kw))
# ---------------------------------------------------------------------------
def _conv1_patches(x_nhwc):
    """(B, 44, 60, 4) -> (B, 10, 14, 256); feature order matches PyTorch flatten."""
    return jax.lax.conv_general_dilated_patches(
        x_nhwc, filter_shape=(8, 8), window_strides=(4, 4), padding="VALID",
        dimension_numbers=("NHWC", "HWIO", "NHWC"))


# ---------------------------------------------------------------------------
# Parameters (mirrors the PyTorch __init__ shapes / inits)
# ---------------------------------------------------------------------------
def make_params(action_size=4, seed=0):
    key = jax.random.PRNGKey(seed)
    k1, k2, k3, k4, k5 = jax.random.split(key, 5)
    gain = math.sqrt(2.0)                               # calculate_gain('relu')
    orth = jax.nn.initializers.orthogonal(scale=gain)

    # f32 master weights, PyTorch (O, C*kh*kw) flattening order.
    w1 = orth(k1, (32, 4 * 8 * 8), jnp.float32)         # Conv2d(4, 32, 8, stride=4)
    w2 = orth(k2, (64, 32 * 4 * 4), jnp.float32)        # Conv2d(32, 64, 4, stride=2)
    w3 = orth(k3, (32, 64 * 3 * 3), jnp.float32)        # Conv2d(64, 32, 3, stride=1)
    b1 = jnp.zeros((32,), jnp.float32)
    b2 = jnp.zeros((64,), jnp.float32)
    b3 = jnp.zeros((32,), jnp.float32)

    bound = 1.0 / math.sqrt(256.0)                      # Linear(256, action_size)
    wl = jax.random.uniform(k4, (256, action_size), jnp.float32, -bound, bound)
    bl = jax.random.uniform(k5, (action_size,), jnp.float32, -bound, bound)

    w2_4d = w2.reshape(64, 32, 4, 4)                    # (O, I, kh, kw)
    w3_4d = w3.reshape(32, 64, 3, 3)

    kp = dict(
        # conv1: XLA patches feature order (c, kh, kw) == PyTorch flatten; fold 1/255.
        w1=(w1 / 255.0).T.astype(jnp.bfloat16),                             # (256, 32)
        # conv2/conv3: in-kernel im2col feature order (kh, kw, c) -> HWIO flatten.
        w2=w2_4d.transpose(2, 3, 1, 0).reshape(512, 64).astype(jnp.bfloat16),
        w3=w3_4d.transpose(2, 3, 1, 0).reshape(576, 32).astype(jnp.bfloat16),
        b1=b1.reshape(1, -1), b2=b2.reshape(1, -1), b3=b3.reshape(1, -1),
    )
    # Head: kernel flatten order is f = p*32 + c; PyTorch flatten is f = c*8 + p.
    wh = wl.reshape(32, 8, action_size).transpose(1, 0, 2).reshape(256, action_size)
    n_pad = HEAD_LANES - action_size
    kp["wh"] = jnp.pad(wh, ((0, 0), (0, n_pad))).astype(jnp.bfloat16)
    kp["bh"] = jnp.pad(bl, (0, n_pad)).reshape(1, HEAD_LANES)

    # f32 reference params (PyTorch layouts)
    rp = dict(w1_4d=w1.reshape(32, 4, 8, 8), w2_4d=w2_4d, w3_4d=w3_4d,
              b1=b1, b2=b2, b3=b3, wl=wl, bl=bl)
    return kp, rp


# ---------------------------------------------------------------------------
# QNetwork forward (Pallas path): a single fused pallas_call
# ---------------------------------------------------------------------------
@functools.partial(jax.jit, static_argnames=("action_size",))
def qnetwork_forward(params, state, *, action_size):
    """state: (B, 4, 44, 60) NCHW raw pixels in [0, 255] (uint8 or float)."""
    B = state.shape[0]
    x = state.transpose(0, 2, 3, 1).astype(jnp.bfloat16)     # NHWC; 0..255 exact in bf16

    # TODO(synk): conv1 im2col stays in XLA; pltpu.CompilerParams(allow_input_fusion)
    # could fuse the patches producer into the pallas_call input and remove the
    # last patch-tensor HBM round trip (biggest remaining HBM cost on v5e).
    p1 = _conv1_patches(x).reshape(B, IMG_ROWS, 256)          # (B, 140, 256)

    tb = _pick_batch_tile(B)
    n_tiles = pl.cdiv(B, tb)
    b_pad = n_tiles * tb
    if b_pad != B:
        p1 = jnp.pad(p1, ((0, b_pad - B), (0, 0), (0, 0)))
    p1 = p1.reshape(n_tiles, tb * IMG_ROWS, 256)

    kern = functools.partial(_qnet_fused_kernel, tb=tb)
    out = pl.pallas_call(
        kern,
        out_shape=jax.ShapeDtypeStruct((n_tiles, tb, HEAD_LANES), jnp.float32),
        grid=(n_tiles,),
        in_specs=[
            pl.BlockSpec((1, tb * IMG_ROWS, 256), lambda i: (i, 0, 0)),  # conv1 patches
            _resident((256, 32)), _resident((1, 32)),                    # w1, b1
            _resident((512, 64)), _resident((1, 64)),                    # w2, b2
            _resident((576, 32)), _resident((1, 32)),                    # w3, b3
            _resident((256, HEAD_LANES)), _resident((1, HEAD_LANES)),    # wh, bh
        ],
        out_specs=pl.BlockSpec((1, tb, HEAD_LANES), lambda i: (i, 0, 0)),
        compiler_params=pltpu.CompilerParams(
            dimension_semantics=("parallel",)),
    )(p1, params["w1"], params["b1"], params["w2"], params["b2"],
      params["w3"], params["b3"], params["wh"], params["bh"])

    return out.reshape(b_pad, HEAD_LANES)[:B, :action_size]


# ---------------------------------------------------------------------------
# Pure-JAX f32 reference (PyTorch semantics) for validation
# ---------------------------------------------------------------------------
def reference_forward(rp, state):
    x = state.astype(jnp.float32) / 255.0                    # NCHW

    def conv(x, w4, b, stride):
        y = jax.lax.conv_general_dilated(
            x, w4, (stride, stride), "VALID",
            dimension_numbers=("NCHW", "OIHW", "NCHW"))
        return jax.nn.relu(y + b.reshape(1, -1, 1, 1))

    x = conv(x, rp["w1_4d"], rp["b1"], 4)
    x = conv(x, rp["w2_4d"], rp["b2"], 2)
    x = conv(x, rp["w3_4d"], rp["b3"], 1)
    x = x.reshape(x.shape[0], -1)                            # (B, 256), (c, h, w) order
    return x @ rp["wl"] + rp["bl"]


if __name__ == "__main__":
    action_size = 4
    kparams, rparams = make_params(action_size=action_size, seed=0)

    key = jax.random.PRNGKey(0)
    batch = 8
    # raw pixels as uint8 (HBM traffic for the biggest tensor is 1 byte/elem)
    state = jax.random.randint(key, (batch, 4, 44, 60), 0, 256,
                               dtype=jnp.int32).astype(jnp.uint8)

    q = qnetwork_forward(kparams, state, action_size=action_size)
    jax.block_until_ready(q)
    assert q.shape == (batch, action_size), q.shape
    assert bool(jnp.all(jnp.isfinite(q)))

    q_ref = jax.jit(reference_forward)(rparams, state)
    err = float(jnp.max(jnp.abs(q - q_ref)))
    assert err < 0.1, f"max |q - q_ref| = {err}"

    print("KERNEL_OK")
</pallas_src>

<mosaic_0001>
module attributes {stable_mosaic.version = 11 : i64} {
  func.func @_qnet_fused_kernel(%arg0: i32, %arg1: memref<1x560x256xbf16, #tpu.memory_space<vmem>>, %arg2: memref<256x32xbf16, #tpu.memory_space<vmem>>, %arg3: memref<1x32xf32, #tpu.memory_space<vmem>>, %arg4: memref<512x64xbf16, #tpu.memory_space<vmem>>, %arg5: memref<1x64xf32, #tpu.memory_space<vmem>>, %arg6: memref<576x32xbf16, #tpu.memory_space<vmem>>, %arg7: memref<1x32xf32, #tpu.memory_space<vmem>>, %arg8: memref<256x128xbf16, #tpu.memory_space<vmem>>, %arg9: memref<1x128xf32, #tpu.memory_space<vmem>>, %arg10: memref<1x4x128xf32, #tpu.memory_space<vmem>>) attributes {dimension_semantics = [#tpu.dimension_semantics<parallel>], iteration_bounds = array<i64: 2>, scalar_prefetch = 0 : i64, scratch_operands = 0 : i64, tpu.core_type = #tpu.core_type<tc>, window_params = [{transform_indices = @transform_0, window_bounds = array<i64: 1, 560, 256>}, {pipeline_mode = #tpu.pipeline_mode<synchronous>, transform_indices = @transform_1, window_bounds = array<i64: 256, 32>}, {pipeline_mode = #tpu.pipeline_mode<synchronous>, transform_indices = @transform_2, window_bounds = array<i64: 1, 32>}, {pipeline_mode = #tpu.pipeline_mode<synchronous>, transform_indices = @transform_3, window_bounds = array<i64: 512, 64>}, {pipeline_mode = #tpu.pipeline_mode<synchronous>, transform_indices = @transform_4, window_bounds = array<i64: 1, 64>}, {pipeline_mode = #tpu.pipeline_mode<synchronous>, transform_indices = @transform_5, window_bounds = array<i64: 576, 32>}, {pipeline_mode = #tpu.pipeline_mode<synchronous>, transform_indices = @transform_6, window_bounds = array<i64: 1, 32>}, {pipeline_mode = #tpu.pipeline_mode<synchronous>, transform_indices = @transform_7, window_bounds = array<i64: 256, 128>}, {pipeline_mode = #tpu.pipeline_mode<synchronous>, transform_indices = @transform_8, window_bounds = array<i64: 1, 128>}, {transform_indices = @transform_9, window_bounds = array<i64: 1, 4, 128>}]} {
    %c0 = arith.constant 0 : index
    %c0_0 = arith.constant 0 : index
    %c0_1 = arith.constant 0 : index
    %0 = vector.load %arg1[%c0, %c0_0, %c0_1] : memref<1x560x256xbf16, #tpu.memory_space<vmem>>, vector<1x560x256xbf16>
    %1 = vector.shape_cast %0 : vector<1x560x256xbf16> to vector<560x256xbf16>
    %c0_2 = arith.constant 0 : index
    %c0_3 = arith.constant 0 : index
    %2 = vector.load %arg2[%c0_2, %c0_3] : memref<256x32xbf16, #tpu.memory_space<vmem>>, vector<256x32xbf16>
    %cst = arith.constant dense<0.000000e+00> : vector<560x32xf32>
    %3 = tpu.matmul %1, %2, %cst {dimension_numbers = #tpu.dot_dimension_numbers<[1], [0], [0], [1], [0, 0, 1, 1], [], []>} : vector<560x256xbf16>, vector<256x32xbf16>, vector<560x32xf32> -> vector<560x32xf32>
    %c0_4 = arith.constant 0 : index
    %c0_5 = arith.constant 0 : index
    %4 = vector.load %arg3[%c0_4, %c0_5] : memref<1x32xf32, #tpu.memory_space<vmem>>, vector<1x32xf32>
    %5 = vector.broadcast %4 : vector<1x32xf32> to vector<560x32xf32>
    %6 = arith.addf %3, %5 : vector<560x32xf32>
    %cst_6 = arith.constant 0.000000e+00 : f32
    %7 = vector.broadcast %cst_6 : f32 to vector<560x32xf32>
    %8 = arith.maximumf %6, %7 : vector<560x32xf32>
    %9 = arith.truncf %8 : vector<560x32xf32> to vector<560x32xbf16>
    %10 = vector.extract_strided_slice %9 {offsets = [0, 0], sizes = [515, 32], strides = [1, 1]} : vector<560x32xbf16> to vector<515x32xbf16>
    %11 = vector.extract_strided_slice %9 {offsets = [1, 0], sizes = [515, 32], strides = [1, 1]} : vector<560x32xbf16> to vector<515x32xbf16>
    %12 = vector.extract_strided_slice %9 {offsets = [2, 0], sizes = [515, 32], strides = [1, 1]} : vector<560x32xbf16> to vector<515x32xbf16>
    %13 = vector.extract_strided_slice %9 {offsets = [3, 0], sizes = [515, 32], strides = [1, 1]} : vector<560x32xbf16> to vector<515x32xbf16>
    %14 = vector.extract_strided_slice %9 {offsets = [14, 0], sizes = [515, 32], strides = [1, 1]} : vector<560x32xbf16> to vector<515x32xbf16>
    %15 = vector.extract_strided_slice %9 {offsets = [15, 0], sizes = [515, 32], strides = [1, 1]} : vector<560x32xbf16> to vector<515x32xbf16>
    %16 = vector.extract_strided_slice %9 {offsets = [16, 0], sizes = [515, 32], strides = [1, 1]} : vector<560x32xbf16> to vector<515x32xbf16>
    %17 = vector.extract_strided_slice %9 {offsets = [17, 0], sizes = [515, 32], strides = [1, 1]} : vector<560x32xbf16> to vector<515x32xbf16>
    %18 = vector.extract_strided_slice %9 {offsets = [28, 0], sizes = [515, 32], strides = [1, 1]} : vector<560x32xbf16> to vector<515x32xbf16>
    %19 = vector.extract_strided_slice %9 {offsets = [29, 0], sizes = [515, 32], strides = [1, 1]} : vector<560x32xbf16> to vector<515x32xbf16>
    %20 = vector.extract_strided_slice %9 {offsets = [30, 0], sizes = [515, 32], strides = [1, 1]} : vector<560x32xbf16> to vector<515x32xbf16>
    %21 = vector.extract_strided_slice %9 {offsets = [31, 0], sizes = [515, 32], strides = [1, 1]} : vector<560x32xbf16> to vector<515x32xbf16>
    %22 = vector.extract_strided_slice %9 {offsets = [42, 0], sizes = [515, 32], strides = [1, 1]} : vector<560x32xbf16> to vector<515x32xbf16>
    %23 = vector.extract_strided_slice %9 {offsets = [43, 0], sizes = [515, 32], strides = [1, 1]} : vector<560x32xbf16> to vector<515x32xbf16>
    %24 = vector.extract_strided_slice %9 {offsets = [44, 0], sizes = [515, 32], strides = [1, 1]} : vector<560x32xbf16> to vector<515x32xbf16>
    %25 = vector.extract_strided_slice %9 {offsets = [45, 0], sizes = [515, 32], strides = [1, 1]} : vector<560x32xbf16> to vector<515x32xbf16>
    %26 = tpu.concatenate %10, %11, %12, %13, %14, %15, %16, %17, %18, %19, %20, %21, %22, %23, %24, %25 in 1 : vector<515x32xbf16>, vector<515x32xbf16>, vector<515x32xbf16>, vector<515x32xbf16>, vector<515x32xbf16>, vector<515x32xbf16>, vector<515x32xbf16>, vector<515x32xbf16>, vector<515x32xbf16>, vector<515x32xbf16>, vector<515x32xbf16>, vector<515x32xbf16>, vector<515x32xbf16>, vector<515x32xbf16>, vector<515x32xbf16>, vector<515x32xbf16> -> vector<515x512xbf16>
    %c0_7 = arith.constant 0 : index
    %c0_8 = arith.constant 0 : index
    %27 = vector.load %arg4[%c0_7, %c0_8] : memref<512x64xbf16, #tpu.memory_space<vmem>>, vector<512x64xbf16>
    %cst_9 = arith.constant dense<0.000000e+00> : vector<515x64xf32>
    %28 = tpu.matmul %26, %27, %cst_9 {dimension_numbers = #tpu.dot_dimension_numbers<[1], [0], [0], [1], [0, 0, 1, 1], [], []>} : vector<515x512xbf16>, vector<512x64xbf16>, vector<515x64xf32> -> vector<515x64xf32>
    %c0_10 = arith.constant 0 : index
    %c0_11 = arith.constant 0 : index
    %29 = vector.load %arg5[%c0_10, %c0_11] : memref<1x64xf32, #tpu.memory_space<vmem>>, vector<1x64xf32>
    %30 = vector.broadcast %29 : vector<1x64xf32> to vector<515x64xf32>
    %31 = arith.addf %28, %30 : vector<515x64xf32>
    %cst_12 = arith.constant 0.000000e+00 : f32
    %32 = vector.broadcast %cst_12 : f32 to vector<515x64xf32>
    %33 = arith.maximumf %31, %32 : vector<515x64xf32>
    %34 = arith.truncf %33 : vector<515x64xf32> to vector<515x64xbf16>
    %35 = vector.extract_strided_slice %34 {offsets = [0, 0], sizes = [455, 64], strides = [1, 1]} : vector<515x64xbf16> to vector<455x64xbf16>
    %36 = vector.extract_strided_slice %34 {offsets = [2, 0], sizes = [455, 64], strides = [1, 1]} : vector<515x64xbf16> to vector<455x64xbf16>
    %37 = vector.extract_strided_slice %34 {offsets = [4, 0], sizes = [455, 64], strides = [1, 1]} : vector<515x64xbf16> to vector<455x64xbf16>
    %38 = vector.extract_strided_slice %34 {offsets = [28, 0], sizes = [455, 64], strides = [1, 1]} : vector<515x64xbf16> to vector<455x64xbf16>
    %39 = vector.extract_strided_slice %34 {offsets = [30, 0], sizes = [455, 64], strides = [1, 1]} : vector<515x64xbf16> to vector<455x64xbf16>
    %40 = vector.extract_strided_slice %34 {offsets = [32, 0], sizes = [455, 64], strides = [1, 1]} : vector<515x64xbf16> to vector<455x64xbf16>
    %41 = vector.extract_strided_slice %34 {offsets = [56, 0], sizes = [455, 64], strides = [1, 1]} : vector<515x64xbf16> to vector<455x64xbf16>
    %42 = vector.extract_strided_slice %34 {offsets = [58, 0], sizes = [455, 64], strides = [1, 1]} : vector<515x64xbf16> to vector<455x64xbf16>
    %43 = vector.extract_strided_slice %34 {offsets = [60, 0], sizes = [455, 64], strides = [1, 1]} : vector<515x64xbf16> to vector<455x64xbf16>
    %44 = tpu.concatenate %35, %36, %37, %38, %39, %40, %41, %42, %43 in 1 : vector<455x64xbf16>, vector<455x64xbf16>, vector<455x64xbf16>, vector<455x64xbf16>, vector<455x64xbf16>, vector<455x64xbf16>, vector<455x64xbf16>, vector<455x64xbf16>, vector<455x64xbf16> -> vector<455x576xbf16>
    %c0_13 = arith.constant 0 : index
    %c0_14 = arith.constant 0 : index
    %45 = vector.load %arg6[%c0_13, %c0_14] : memref<576x32xbf16, #tpu.memory_space<vmem>>, vector<576x32xbf16>
    %cst_15 = arith.constant dense<0.000000e+00> : vector<455x32xf32>
    %46 = tpu.matmul %44, %45, %cst_15 {dimension_numbers = #tpu.dot_dimension_numbers<[1], [0], [0], [1], [0, 0, 1, 1], [], []>} : vector<455x576xbf16>, vector<576x32xbf16>, vector<455x32xf32> -> vector<455x32xf32>
    %c0_16 = arith.constant 0 : index
    %c0_17 = arith.constant 0 : index
    %47 = vector.load %arg7[%c0_16, %c0_17] : memref<1x32xf32, #tpu.memory_space<vmem>>, vector<1x32xf32>
    %48 = vector.broadcast %47 : vector<1x32xf32> to vector<455x32xf32>
    %49 = arith.addf %46, %48 : vector<455x32xf32>
    %cst_18 = arith.constant 0.000000e+00 : f32
    %50 = vector.broadcast %cst_18 : f32 to vector<455x32xf32>
    %51 = arith.maximumf %49, %50 : vector<455x32xf32>
    %52 = arith.truncf %51 : vector<455x32xf32> to vector<455x32xbf16>
    %53 = vector.extract_strided_slice %52 {offsets = [0, 0], sizes = [1, 32], strides = [1, 1]} : vector<455x32xbf16> to vector<1x32xbf16>
    %54 = vector.extract_strided_slice %52 {offsets = [2, 0], sizes = [1, 32], strides = [1, 1]} : vector<455x32xbf16> to vector<1x32xbf16>
    %55 = vector.extract_strided_slice %52 {offsets = [4, 0], sizes = [1, 32], strides = [1, 1]} : vector<455x32xbf16> to vector<1x32xbf16>
    %56 = vector.extract_strided_slice %52 {offsets = [6, 0], sizes = [1, 32], strides = [1, 1]} : vector<455x32xbf16> to vector<1x32xbf16>
    %57 = vector.extract_strided_slice %52 {offsets = [28, 0], sizes = [1, 32], strides = [1, 1]} : vector<455x32xbf16> to vector<1x32xbf16>
    %58 = vector.extract_strided_slice %52 {offsets = [30, 0], sizes = [1, 32], strides = [1, 1]} : vector<455x32xbf16> to vector<1x32xbf16>
    %59 = vector.extract_strided_slice %52 {offsets = [32, 0], sizes = [1, 32], strides = [1, 1]} : vector<455x32xbf16> to vector<1x32xbf16>
    %60 = vector.extract_strided_slice %52 {offsets = [34, 0], sizes = [1, 32], strides = [1, 1]} : vector<455x32xbf16> to vector<1x32xbf16>
    %61 = tpu.concatenate %53, %54, %55, %56, %57, %58, %59, %60 in 1 : vector<1x32xbf16>, vector<1x32xbf16>, vector<1x32xbf16>, vector<1x32xbf16>, vector<1x32xbf16>, vector<1x32xbf16>, vector<1x32xbf16>, vector<1x32xbf16> -> vector<1x256xbf16>
    %62 = vector.extract_strided_slice %52 {offsets = [140, 0], sizes = [1, 32], strides = [1, 1]} : vector<455x32xbf16> to vector<1x32xbf16>
    %63 = vector.extract_strided_slice %52 {offsets = [142, 0], sizes = [1, 32], strides = [1, 1]} : vector<455x32xbf16> to vector<1x32xbf16>
    %64 = vector.extract_strided_slice %52 {offsets = [144, 0], sizes = [1, 32], strides = [1, 1]} : vector<455x32xbf16> to vector<1x32xbf16>
    %65 = vector.extract_strided_slice %52 {offsets = [146, 0], sizes = [1, 32], strides = [1, 1]} : vector<455x32xbf16> to vector<1x32xbf16>
    %66 = vector.extract_strided_slice %52 {offsets = [168, 0], sizes = [1, 32], strides = [1, 1]} : vector<455x32xbf16> to vector<1x32xbf16>
    %67 = vector.extract_strided_slice %52 {offsets = [170, 0], sizes = [1, 32], strides = [1, 1]} : vector<455x32xbf16> to vector<1x32xbf16>
    %68 = vector.extract_strided_slice %52 {offsets = [172, 0], sizes = [1, 32], strides = [1, 1]} : vector<455x32xbf16> to vector<1x32xbf16>
    %69 = vector.extract_strided_slice %52 {offsets = [174, 0], sizes = [1, 32], strides = [1, 1]} : vector<455x32xbf16> to vector<1x32xbf16>
    %70 = tpu.concatenate %62, %63, %64, %65, %66, %67, %68, %69 in 1 : vector<1x32xbf16>, vector<1x32xbf16>, vector<1x32xbf16>, vector<1x32xbf16>, vector<1x32xbf16>, vector<1x32xbf16>, vector<1x32xbf16>, vector<1x32xbf16> -> vector<1x256xbf16>
    %71 = vector.extract_strided_slice %52 {offsets = [280, 0], sizes = [1, 32], strides = [1, 1]} : vector<455x32xbf16> to vector<1x32xbf16>
    %72 = vector.extract_strided_slice %52 {offsets = [282, 0], sizes = [1, 32], strides = [1, 1]} : vector<455x32xbf16> to vector<1x32xbf16>
    %73 = vector.extract_strided_slice %52 {offsets = [284, 0], sizes = [1, 32], strides = [1, 1]} : vector<455x32xbf16> to vector<1x32xbf16>
    %74 = vector.extract_strided_slice %52 {offsets = [286, 0], sizes = [1, 32], strides = [1, 1]} : vector<455x32xbf16> to vector<1x32xbf16>
    %75 = vector.extract_strided_slice %52 {offsets = [308, 0], sizes = [1, 32], strides = [1, 1]} : vector<455x32xbf16> to vector<1x32xbf16>
    %76 = vector.extract_strided_slice %52 {offsets = [310, 0], sizes = [1, 32], strides = [1, 1]} : vector<455x32xbf16> to vector<1x32xbf16>
    %77 = vector.extract_strided_slice %52 {offsets = [312, 0], sizes = [1, 32], strides = [1, 1]} : vector<455x32xbf16> to vector<1x32xbf16>
    %78 = vector.extract_strided_slice %52 {offsets = [314, 0], sizes = [1, 32], strides = [1, 1]} : vector<455x32xbf16> to vector<1x32xbf16>
    %79 = tpu.concatenate %71, %72, %73, %74, %75, %76, %77, %78 in 1 : vector<1x32xbf16>, vector<1x32xbf16>, vector<1x32xbf16>, vector<1x32xbf16>, vector<1x32xbf16>, vector<1x32xbf16>, vector<1x32xbf16>, vector<1x32xbf16> -> vector<1x256xbf16>
    %80 = vector.extract_strided_slice %52 {offsets = [420, 0], sizes = [1, 32], strides = [1, 1]} : vector<455x32xbf16> to vector<1x32xbf16>
    %81 = vector.extract_strided_slice %52 {offsets = [422, 0], sizes = [1, 32], strides = [1, 1]} : vector<455x32xbf16> to vector<1x32xbf16>
    %82 = vector.extract_strided_slice %52 {offsets = [424, 0], sizes = [1, 32], strides = [1, 1]} : vector<455x32xbf16> to vector<1x32xbf16>
    %83 = vector.extract_strided_slice %52 {offsets = [426, 0], sizes = [1, 32], strides = [1, 1]} : vector<455x32xbf16> to vector<1x32xbf16>
    %84 = vector.extract_strided_slice %52 {offsets = [448, 0], sizes = [1, 32], strides = [1, 1]} : vector<455x32xbf16> to vector<1x32xbf16>
    %85 = vector.extract_strided_slice %52 {offsets = [450, 0], sizes = [1, 32], strides = [1, 1]} : vector<455x32xbf16> to vector<1x32xbf16>
    %86 = vector.extract_strided_slice %52 {offsets = [452, 0], sizes = [1, 32], strides = [1, 1]} : vector<455x32xbf16> to vector<1x32xbf16>
    %87 = vector.extract_strided_slice %52 {offsets = [454, 0], sizes = [1, 32], strides = [1, 1]} : vector<455x32xbf16> to vector<1x32xbf16>
    %88 = tpu.concatenate %80, %81, %82, %83, %84, %85, %86, %87 in 1 : vector<1x32xbf16>, vector<1x32xbf16>, vector<1x32xbf16>, vector<1x32xbf16>, vector<1x32xbf16>, vector<1x32xbf16>, vector<1x32xbf16>, vector<1x32xbf16> -> vector<1x256xbf16>
    %89 = tpu.concatenate %61, %70, %79, %88 in 0 : vector<1x256xbf16>, vector<1x256xbf16>, vector<1x256xbf16>, vector<1x256xbf16> -> vector<4x256xbf16>
    %c0_19 = arith.constant 0 : index
    %c0_20 = arith.constant 0 : index
    %90 = vector.load %arg8[%c0_19, %c0_20] : memref<256x128xbf16, #tpu.memory_space<vmem>>, vector<256x128xbf16>
    %cst_21 = arith.constant dense<0.000000e+00> : vector<4x128xf32>
    %91 = tpu.matmul %89, %90, %cst_21 {dimension_numbers = #tpu.dot_dimension_numbers<[1], [0], [0], [1], [0, 0, 1, 1], [], []>} : vector<4x256xbf16>, vector<256x128xbf16>, vector<4x128xf32> -> vector<4x128xf32>
    %c0_22 = arith.constant 0 : index
    %c0_23 = arith.constant 0 : index
    %92 = vector.load %arg9[%c0_22, %c0_23] : memref<1x128xf32, #tpu.memory_space<vmem>>, vector<1x128xf32>
    %93 = vector.broadcast %92 : vector<1x128xf32> to vector<4x128xf32>
    %94 = arith.addf %91, %93 : vector<4x128xf32>
    %c0_24 = arith.constant 0 : index
    %c0_25 = arith.constant 0 : index
    %c0_26 = arith.constant 0 : index
    %95 = vector.load %arg10[%c0_24, %c0_25, %c0_26] : memref<1x4x128xf32, #tpu.memory_space<vmem>>, vector<1x4x128xf32>
    %96 = vector.shape_cast %95 : vector<1x4x128xf32> to vector<4x128xf32>
    %97 = vector.shape_cast %94 : vector<4x128xf32> to vector<1x4x128xf32>
    tpu.vector_store %arg10[%c0_24, %c0_25, %c0_26], %97 {strides = array<i32>} : memref<1x4x128xf32, #tpu.memory_space<vmem>>, vector<1x4x128xf32>,
    return
  }
  func.func @transform_0(%arg0: i32) -> (i32, i32, i32) {
    %c0_i32 = arith.constant 0 : i32
    %c0_i32_0 = arith.constant 0 : i32
    %c0_i32_1 = arith.constant 0 : i32
    return %arg0, %c0_i32, %c0_i32_0 : i32, i32, i32
  }
  func.func @transform_1(%arg0: i32) -> (i32, i32) {
    %c0_i32 = arith.constant 0 : i32
    %c0_i32_0 = arith.constant 0 : i32
    %c0_i32_1 = arith.constant 0 : i32
    return %c0_i32, %c0_i32_0 : i32, i32
  }
  func.func @transform_2(%arg0: i32) -> (i32, i32) {
    %c0_i32 = arith.constant 0 : i32
    %c0_i32_0 = arith.constant 0 : i32
    %c0_i32_1 = arith.constant 0 : i32
    return %c0_i32, %c0_i32_0 : i32, i32
  }
  func.func @transform_3(%arg0: i32) -> (i32, i32) {
    %c0_i32 = arith.constant 0 : i32
    %c0_i32_0 = arith.constant 0 : i32
    %c0_i32_1 = arith.constant 0 : i32
    return %c0_i32, %c0_i32_0 : i32, i32
  }
  func.func @transform_4(%arg0: i32) -> (i32, i32) {
    %c0_i32 = arith.constant 0 : i32
    %c0_i32_0 = arith.constant 0 : i32
    %c0_i32_1 = arith.constant 0 : i32
    return %c0_i32, %c0_i32_0 : i32, i32
  }
  func.func @transform_5(%arg0: i32) -> (i32, i32) {
    %c0_i32 = arith.constant 0 : i32
    %c0_i32_0 = arith.constant 0 : i32
    %c0_i32_1 = arith.constant 0 : i32
    return %c0_i32, %c0_i32_0 : i32, i32
  }
  func.func @transform_6(%arg0: i32) -> (i32, i32) {
    %c0_i32 = arith.constant 0 : i32
    %c0_i32_0 = arith.constant 0 : i32
    %c0_i32_1 = arith.constant 0 : i32
    return %c0_i32, %c0_i32_0 : i32, i32
  }
  func.func @transform_7(%arg0: i32) -> (i32, i32) {
    %c0_i32 = arith.constant 0 : i32
    %c0_i32_0 = arith.constant 0 : i32
    %c0_i32_1 = arith.constant 0 : i32
    return %c0_i32, %c0_i32_0 : i32, i32
  }
  func.func @transform_8(%arg0: i32) -> (i32, i32) {
    %c0_i32 = arith.constant 0 : i32
    %c0_i32_0 = arith.constant 0 : i32
    %c0_i32_1 = arith.constant 0 : i32
    return %c0_i32, %c0_i32_0 : i32, i32
  }
  func.func @transform_9(%arg0: i32) -> (i32, i32, i32) {
    %c0_i32 = arith.constant 0 : i32
    %c0_i32_0 = arith.constant 0 : i32
    %c0_i32_1 = arith.constant 0 : i32
    return %arg0, %c0_i32, %c0_i32_0 : i32, i32, i32
  }
}

</mosaic_0001>

<bundles_post_ra>
// kernel: qnetwork_forward.1
= control target key start
LH: loop header
LB: loop body
LE: loop exit
PB: predicated region body
PF: predicated region fallthrough
CT: control target
= control target key end

     0   :  { %s8745_s30 = smov 0   ;;  %s13963_s0 = inlined_call_operand.vmem [shape: bf16[2,560,256], index: 0, kind: input, shape index: {}]   ;;  %s13964_s1 = inlined_call_operand.vmem [shape: bf16[256,32], index: 1, kind: input, shape index: {}]   ;;  %s13965_s2 = inlined_call_operand.vmem [shape: f32[1,32], index: 2, kind: input, shape index: {}]   ;;  %s13966_s3 = inlined_call_operand.vmem [shape: bf16[512,64], index: 3, kind: input, shape index: {}]   ;;  %s13967_s4 = inlined_call_operand.vmem [shape: f32[1,64], index: 4, kind: input, shape index: {}]   ;;  %s13968_s5 = inlined_call_operand.vmem [shape: bf16[576,32], index: 5, kind: input, shape index: {}]   ;;  %s13969_s6 = inlined_call_operand.vmem [shape: f32[1,32], index: 6, kind: input, shape index: {}]   ;;  %s13970_s7 = inlined_call_operand.vmem [shape: bf16[256,128], index: 7, kind: input, shape index: {}]   ;;  %s13971_s8 = inlined_call_operand.vmem [shape: f32[1,128], index: 8, kind: input, shape index: {}]   ;;  %s13972_s9 = inlined_call_operand.vmem [shape: f32[2,4,128], index: 9, kind: output, shape index: {}]  }
   0x1 LB: > { %s7738_s10 = sadd.s32 4294967295, %s8687_s30   ;;  %p7742_p0 = scmp.ge.s32.totalorder %s8687_s30, 1  ;;  %s8687_s30 = sphi %s8745_s30, %s19_s30  }
   0x2   : > { %p287_p1 = scmp.lt.s32.totalorder %s8687_s30, 3 }
   0x4   : > { %p288_p2 = pnand %p7742_p0, %p287_p1 }
   0x6   : > { %291 = sbr.rel (%p288_p2) target bundleno = 2588 (0xa1c), region = 56 }
   0xd   : > { %v8472_v0 = vld [vmem:[%s13964_s1] sm:$0xff]   ;;  %v13977_v1 = vmov 0   ;;  %v8473_v2 = vld [vmem:[%s13964_s1 + $0x8] sm:$0xff]   ;;  %p322_p3 = scmp.lt.s32.totalorder %s7738_s10, 1  ;;  %v8474_v3 = vld [vmem:[%s13964_s1 + $0x10] sm:$0xff]   ;;  %s8690_s25 = smov 64  }
   0xe   : > { %887 = vmatprep.subr.bf16.mxu0 %v13977_v1  ;;  %8129 = vmatprep.subr.bf16.mxu1 %v13977_v1  ;;  %v8475_v4 = vld [vmem:[%s13964_s1 + $0x18] sm:$0xff]   ;;  %v8476_v5 = vld [vmem:[%s13964_s1 + $0x20] sm:$0xff]   ;;  %v8477_v7 = vld [vmem:[%s13964_s1 + $0x28] sm:$0xff]   ;;  %vm2374_vm0 = vcmask 1041408   ;;  %vm1305_vm1 = vsmask.f32 7424 }
   0xf   : > { %888 = vmatpush1.bf16.msra.mxu0 %v8472_v0  ;;  %8145 = vmatpush1.bf16.msra.mxu1 %v8472_v0  ;;  %s14830_s10 = smov (!%p322_p3, %s7738_s10), 1  ;;  %v8478_v9 = vld [vmem:[%s13964_s1 + $0x30] sm:$0xff]   ;;  %v8479_v10 = vld [vmem:[%s13964_s1 + $0x38] sm:$0xff]   ;;  %v8480_v11 = vld [vmem:[%s13964_s1 + $0x40] sm:$0xff]   ;;  %vm1668_vm2 = vcmask 1046528   ;;  %s8691_s15 = smov 32  }
  0x10   : > { %889 = vmatprep.subr.bf16.mxu0 %v13977_v1  ;;  %8130 = vmatprep.subr.bf16.mxu1 %v13977_v1  ;;  %s8457_s19 = smul.u32 560, %s14830_s10  ;;  %v8481_v12 = vld [vmem:[%s13964_s1 + $0x48] sm:$0xff]   ;;  %v8482_v13 = vld [vmem:[%s13964_s1 + $0x50] sm:$0xff]   ;;  %v8483_v14 = vld [vmem:[%s13964_s1 + $0x58] sm:$0xff]   ;;  %vm2067_vm3 = vsmask.f32 256 }
  0x11   : > { %v8484_v15 = vld [vmem:[%s13964_s1 + $0x60] sm:$0xff]   ;;  %v8485_v16 = vld [vmem:[%s13964_s1 + $0x68] sm:$0xff]   ;;  %v8486_v17 = vld [vmem:[%s13964_s1 + $0x70] sm:$0xff]   ;;  %vm1999_vm4 = vcmask 1040384   ;;  %vm1800_vm5 = vsmask.f32 6400 }
  0x12   : > { %s8782_s24 = scalar_lea.vmem %s13963_s0, %s8457_s19  ;;  %v8487_v18 = vld [vmem:[%s13964_s1 + $0x78] sm:$0xff]   ;;  %s8692_s18 = smov 96   ;;  %vm2847_vm6 = vsmask.f32 2304  ;;  %vm2440_vm7 = vsmask.f32 1280  ;;  %vm13924_vm15 = vmand %vm1999_vm4, %vm2067_vm3 }
  0x13   : > { %890 = vmatpush1.bf16.msra.mxu0 %v8473_v2  ;;  %8146 = vmatpush1.bf16.msra.mxu1 %v8473_v2  ;;  %v8490_v6 = vld [vmem:[%s8782_s24 + $0x4] ss:$8 sps:$4 sm:$0xff]   ;;  %v8488_v19 = vld [vmem:[%s8782_s24] ss:$8 sps:$4 sm:$0xff]   ;;  %v8494_v21 = vld [vmem:[%s8782_s24 + $0x14] ss:$8 sps:$4 sm:$0xff]  }
  0x14   : > { %891 = vmatprep.subr.bf16.mxu0 %v13977_v1  ;;  %8131 = vmatprep.subr.bf16.mxu1 %v13977_v1  ;;  %v8493_v8 = vld [vmem:[%s8782_s24 + $0x84] ss:$8 sps:$4 sm:$0xff]   ;;  %v8491_v20 = vld [vmem:[%s8782_s24 + $0x80] ss:$8 sps:$4 sm:$0xff]   ;;  %v8496_v22 = vld [vmem:[%s8782_s24 + $0x94] ss:$8 sps:$4 sm:$0xff]  }
  0x15   : > { %919 = vmatprep.mubr.bf16.mxu0 %v8490_v6  ;;  %983 = vmatprep.mubr.bf16.mxu1 %v8493_v8  ;;  %v8498_v23 = vld [vmem:[%s8782_s24 + $0x10] ss:$8 sps:$4 sm:$0xff]   ;;  %v8500_v25 = vld [vmem:[%s8782_s24 + $0x24] ss:$8 sps:$4 sm:$0xff]   ;;  %v8504_v27 = vld [vmem:[%s8782_s24 + $0x20] ss:$8 sps:$4 sm:$0xff]  }
  0x16   : > { %v8499_v24 = vld [vmem:[%s8782_s24 + $0x90] ss:$8 sps:$4 sm:$0xff]   ;;  %v8502_v26 = vld [vmem:[%s8782_s24 + $0xa4] ss:$8 sps:$4 sm:$0xff]   ;;  %v8505_v28 = vld [vmem:[%s8782_s24 + $0xa0] ss:$8 sps:$4 sm:$0xff]  }
  0x17   : > { %892 = vmatpush1.bf16.msra.mxu0 %v8474_v3  ;;  %8147 = vmatpush1.bf16.msra.mxu1 %v8474_v3  ;;  %v8506_v29 = vld [vmem:[%s8782_s24 + $0x34] ss:$8 sps:$4 sm:$0xff]   ;;  %v8508_v31 = vld [vmem:[%s8782_s24 + $0x30] ss:$8 sps:$4 sm:$0xff]   ;;  %v8509_v33 = vld [vmem:[%s8782_s24 + $0x44] ss:$8 sps:$4 sm:$0xff]  }
  0x18   : > { %893 = vmatprep.subr.bf16.mxu0 %v13977_v1  ;;  %8132 = vmatprep.subr.bf16.mxu1 %v13977_v1  ;;  %v8512_v30 = vld [vmem:[%s8782_s24 + $0xb4] ss:$8 sps:$4 sm:$0xff]   ;;  %v8514_v32 = vld [vmem:[%s8782_s24 + $0xb0] ss:$8 sps:$4 sm:$0xff]   ;;  %v8524_v34 = vld [vmem:[%s8782_s24 + $0xc4] ss:$8 sps:$4 sm:$0xff]  }
  0x19   : > { %v8511_v35 = vld [vmem:[%s8782_s24 + $0x40] ss:$8 sps:$4 sm:$0xff]   ;;  %v8515_v37 = vld [vmem:[%s8782_s24 + $0x54] ss:$8 sps:$4 sm:$0xff]   ;;  %v8517_v39 = vld [vmem:[%s8782_s24 + $0x50] ss:$8 sps:$4 sm:$0xff]  }
  0x1a   : > { %v8526_v36 = vld [vmem:[%s8782_s24 + $0xc0] ss:$8 sps:$4 sm:$0xff]   ;;  %v8527_v38 = vld [vmem:[%s8782_s24 + $0xd4] ss:$8 sps:$4 sm:$0xff]   ;;  %v8529_v40 = vld [vmem:[%s8782_s24 + $0xd0] ss:$8 sps:$4 sm:$0xff]  }
  0x1b   : > { %894 = vmatpush1.bf16.msra.mxu0 %v8475_v4  ;;  %8148 = vmatpush1.bf16.msra.mxu1 %v8475_v4  ;;  %v8518_v41 = vld [vmem:[%s8782_s24 + $0x64] ss:$8 sps:$4 sm:$0xff]   ;;  %v8520_v43 = vld [vmem:[%s8782_s24 + $0x60] ss:$8 sps:$4 sm:$0xff]   ;;  %v8521_v45 = vld [vmem:[%s8782_s24 + $0x74] ss:$8 sps:$4 sm:$0xff]  }
  0x1c   : > { %895 = vmatprep.subr.bf16.mxu0 %v13977_v1  ;;  %8133 = vmatprep.subr.bf16.mxu1 %v13977_v1  ;;  %v8530_v42 = vld [vmem:[%s8782_s24 + $0xe4] ss:$8 sps:$4 sm:$0xff]   ;;  %v8532_v44 = vld [vmem:[%s8782_s24 + $0xe0] ss:$8 sps:$4 sm:$0xff]   ;;  %v8533_v46 = vld [vmem:[%s8782_s24 + $0xf4] ss:$8 sps:$4 sm:$0xff]  }
  0x1d   : > { %v8523_v47 = vld [vmem:[%s8782_s24 + $0x70] ss:$8 sps:$4 sm:$0xff]   ;;  %v8536_v49 = vld [vmem:[%s8782_s24 + $0x104] ss:$8 sps:$4 sm:$0xff]   ;;  %v8538_v50 = vld [vmem:[%s8782_s24 + $0x100] ss:$8 sps:$4 sm:$0xff]  }
  0x1e   : > { %v8535_v48 = vld [vmem:[%s8782_s24 + $0xf0] ss:$8 sps:$4 sm:$0xff]   ;;  %v8539_v51 = vld [vmem:[%s8782_s24 + $0x114] ss:$8 sps:$4 sm:$0xff]   ;;  %v8542_v53 = vld [vmem:[%s8782_s24 + $0x124] ss:$8 sps:$4 sm:$0xff]  }
  0x1f   : > { %896 = vmatpush1.bf16.msra.mxu0 %v8476_v5  ;;  %8149 = vmatpush1.bf16.msra.mxu1 %v8476_v5  ;;  %v8541_v52 = vld [vmem:[%s8782_s24 + $0x110] ss:$8 sps:$4 sm:$0xff]   ;;  %v8544_v54 = vld [vmem:[%s8782_s24 + $0x120] ss:$8 sps:$4 sm:$0xff]   ;;  %v8545_v55 = vld [vmem:[%s8782_s24 + $0x134] ss:$8 sps:$4 sm:$0xff]  }
  0x20   : > { %897 = vmatprep.subr.bf16.mxu0 %v13977_v1  ;;  %8134 = vmatprep.subr.bf16.mxu1 %v13977_v1  ;;  %v8547_v56 = vld [vmem:[%s8782_s24 + $0x130] ss:$8 sps:$4 sm:$0xff]   ;;  %v8548_v57 = vld [vmem:[%s8782_s24 + $0x144] ss:$8 sps:$4 sm:$0xff]   ;;  %v8550_v58 = vld [vmem:[%s8782_s24 + $0x140] ss:$8 sps:$4 sm:$0xff]  }
  0x21   : > { %v8551_v59 = vld [vmem:[%s8782_s24 + $0x154] ss:$8 sps:$4 sm:$0xff]   ;;  %v8553_v60 = vld [vmem:[%s8782_s24 + $0x150] ss:$8 sps:$4 sm:$0xff]   ;;  %v8554_v61 = vld [vmem:[%s8782_s24 + $0x164] ss:$8 sps:$4 sm:$0xff]  }
  0x22   : > { %v8556_v62 = vld [vmem:[%s8782_s24 + $0x160] ss:$8 sps:$4 sm:$0xff]   ;;  %v8557_v63 = vld [vmem:[%s8782_s24 + $0x174] ss:$8 sps:$4 sm:$0xff]   ;;  %v8559_v0 = vld [vmem:[%s8782_s24 + $0x170] ss:$8 sps:$4 sm:$0xff]  }
  0x23   : > { %898 = vmatpush1.bf16.msra.mxu0 %v8477_v7  ;;  %8150 = vmatpush1.bf16.msra.mxu1 %v8477_v7  ;;  %v8560_v2 = vld [vmem:[%s8782_s24 + $0x184] ss:$8 sps:$4 sm:$0xff]   ;;  %v8562_v3 = vld [vmem:[%s8782_s24 + $0x180] ss:$8 sps:$4 sm:$0xff]   ;;  %v8563_v4 = vld [vmem:[%s8782_s24 + $0x194] ss:$8 sps:$4 sm:$0xff]  }
  0x24   : > { %899 = vmatprep.subr.bf16.mxu0 %v13977_v1  ;;  %8135 = vmatprep.subr.bf16.mxu1 %v13977_v1  ;;  %v8565_v5 = vld [vmem:[%s8782_s24 + $0x190] ss:$8 sps:$4 sm:$0xff]   ;;  %v8566_v6 = vld [vmem:[%s8782_s24 + $0x1a4] ss:$8 sps:$4 sm:$0xff]   ;;  %v8568_v7 = vld [vmem:[%s8782_s24 + $0x1a0] ss:$8 sps:$4 sm:$0xff]  }
  0x25   : > { %v8569_v8 = vld [vmem:[%s8782_s24 + $0x1b4] ss:$8 sps:$4 sm:$0xff]   ;;  %vm3183_vm8 = vcmask 261120   ;;  %vm3250_vm9 = vcmask 523264   ;;  %vm3317_vm10 = vcmask 785408   ;;  %vm2781_vm11 = vcmask 1042432  }
  0x26   : > { %vm5306_vm12 = vcmask 1045504   ;;  %vm5601_vm13 = vcmask 1043456   ;;  %vm8694_vm14 = vmmov 0  }
  0x27   : > { %900 = vmatpush1.bf16.msra.mxu0 %v8478_v9  ;;  %8151 = vmatpush1.bf16.msra.mxu1 %v8478_v9  ;;  %v8572_v9 = vld [vmem:[%s13966_s3] sm:$0xff]  }
  0x28   : > { %901 = vmatprep.subr.bf16.mxu0 %v13977_v1  ;;  %8136 = vmatprep.subr.bf16.mxu1 %v13977_v1 }
  0x2b   : > { %902 = vmatpush1.bf16.msra.mxu0 %v8479_v10  ;;  %8152 = vmatpush1.bf16.msra.mxu1 %v8479_v10  ;;  %v8571_v10 = vld [vmem:[%s8782_s24 + $0x1b0] ss:$8 sps:$4 sm:$0xff]  }
  0x2c   : > { %903 = vmatprep.subr.bf16.mxu0 %v13977_v1  ;;  %8137 = vmatprep.subr.bf16.mxu1 %v13977_v1 }
  0x2f   : > { %904 = vmatpush1.bf16.msra.mxu0 %v8480_v11  ;;  %8153 = vmatpush1.bf16.msra.mxu1 %v8480_v11  ;;  %v8573_v11 = vld [vmem:[%s13966_s3 + $0x8] sm:$0xff]  }
  0x30   : > { %905 = vmatprep.subr.bf16.mxu0 %v13977_v1  ;;  %8138 = vmatprep.subr.bf16.mxu1 %v13977_v1 }
  0x33   : > { %906 = vmatpush1.bf16.msra.mxu0 %v8481_v12  ;;  %8154 = vmatpush1.bf16.msra.mxu1 %v8481_v12  ;;  %v8574_v12 = vld [vmem:[%s8782_s24 + $0x1c4] ss:$8 sps:$4 sm:$0xff]  }
  0x34   : > { %907 = vmatprep.subr.bf16.mxu0 %v13977_v1  ;;  %8139 = vmatprep.subr.bf16.mxu1 %v13977_v1 }
  0x37   : > { %908 = vmatpush1.bf16.msra.mxu0 %v8482_v13  ;;  %8155 = vmatpush1.bf16.msra.mxu1 %v8482_v13  ;;  %v8577_v13 = vld [vmem:[%s13966_s3 + $0x10] sm:$0xff]  }
  0x38   : > { %909 = vmatprep.subr.bf16.mxu0 %v13977_v1  ;;  %8140 = vmatprep.subr.bf16.mxu1 %v13977_v1 }
  0x3b   : > { %910 = vmatpush1.bf16.msra.mxu0 %v8483_v14  ;;  %8156 = vmatpush1.bf16.msra.mxu1 %v8483_v14  ;;  %v8576_v14 = vld [vmem:[%s8782_s24 + $0x1c0] ss:$8 sps:$4 sm:$0xff]  }
  0x3c   : > { %911 = vmatprep.subr.bf16.mxu0 %v13977_v1  ;;  %8141 = vmatprep.subr.bf16.mxu1 %v13977_v1 }
  0x3f   : > { %912 = vmatpush1.bf16.msra.mxu0 %v8484_v15  ;;  %8157 = vmatpush1.bf16.msra.mxu1 %v8484_v15  ;;  %v8578_v15 = vld [vmem:[%s13966_s3 + $0x18] sm:$0xff]  }
  0x40   : > { %913 = vmatprep.subr.bf16.mxu0 %v13977_v1  ;;  %8142 = vmatprep.subr.bf16.mxu1 %v13977_v1 }
  0x43   : > { %914 = vmatpush1.bf16.msra.mxu0 %v8485_v16  ;;  %8158 = vmatpush1.bf16.msra.mxu1 %v8485_v16  ;;  %v8919_v16 = vld [vmem:[%s13965_s2] ss:$0 sm:$0xff] }
  0x44   : > { %915 = vmatprep.subr.bf16.mxu0 %v13977_v1  ;;  %8143 = vmatprep.subr.bf16.mxu1 %v13977_v1 }
  0x47   : > { %916 = vmatpush1.bf16.msra.mxu0 %v8486_v17  ;;  %8159 = vmatpush1.bf16.msra.mxu1 %v8486_v17  ;;  %v8579_v17 = vld [vmem:[%s8782_s24 + $0x1d4] ss:$8 sps:$4 sm:$0xff]  }
  0x48   : > { %917 = vmatprep.subr.bf16.mxu0 %v13977_v1  ;;  %8144 = vmatprep.subr.bf16.mxu1 %v13977_v1 }
  0x4b   : > { %918 = vmatpush1.bf16.msra.mxu0 %v8487_v18  ;;  %8160 = vmatpush1.bf16.msra.mxu1 %v8487_v18 }
  0x4c   : > { %4472 = vmatprep.subr.bf16.mxu1 %v13977_v1  ;;  %6627 = vmatprep.subr.bf16.mxu0 %v13977_v1 }
  0x4e   : > { %920 = vmatmul.mubr.bf16.vlgmr.msra.gmra.mrb[0].mxu0 %v8488_v19  ;;  %984 = vmatmul.mubr.bf16.vlgmr.msra.gmra.mrb[0].mxu1 %v8491_v20 }
  0x4f   : > { %927 = vmatprep.mubr.bf16.mxu0 %v8494_v21  ;;  %991 = vmatprep.mubr.bf16.mxu1 %v8496_v22 }
  0x50   : > { %4473 = vmatpush1.bf16.msra.mxu1 %v8572_v9 }
  0x51   : > { %4474 = vmatprep.subr.bf16.mxu1 %v13977_v1 }
  0x54   : > { %4475 = vmatpush1.bf16.msra.mxu1 %v8573_v11 }
  0x55   : > { %4476 = vmatprep.subr.bf16.mxu1 %v13977_v1 }
  0x56   : > { %928 = vmatmul.mubr.bf16.gmra.mrb[4].mxu0 %v8498_v23  ;;  %992 = vmatmul.mubr.bf16.gmra.mrb[4].mxu1 %v8499_v24  ;;  %v8582_v24 = vld [vmem:[%s13966_s3 + $0x20] sm:$0xff]  }
  0x57   : > { %935 = vmatprep.mubr.bf16.mxu0 %v8500_v25  ;;  %999 = vmatprep.mubr.bf16.mxu1 %v8502_v26 }
  0x58   : > { %4477 = vmatpush1.bf16.msra.mxu1 %v8577_v13 }
  0x59   : > { %4478 = vmatprep.subr.bf16.mxu1 %v13977_v1 }
  0x5c   : > { %4479 = vmatpush1.bf16.msra.mxu1 %v8578_v15 }
  0x5d   : > { %4480 = vmatprep.subr.bf16.mxu1 %v13977_v1 }
  0x5e   : > { %936 = vmatmul.mubr.bf16.gmra.mrb[8].mxu0 %v8504_v27  ;;  %1000 = vmatmul.mubr.bf16.gmra.mrb[8].mxu1 %v8505_v28 }
  0x5f   : > { %943 = vmatprep.mubr.bf16.mxu0 %v8506_v29  ;;  %1007 = vmatprep.mubr.bf16.mxu1 %v8512_v30 }
  0x60   : > { %4481 = vmatpush1.bf16.msra.mxu1 %v8582_v24  ;;  %v8592_v24 = vld [vmem:[%s13966_s3 + $0x40] sm:$0xff]  }
  0x61   : > { %4482 = vmatprep.subr.bf16.mxu1 %v13977_v1 }
  0x66   : > { %944 = vmatmul.mubr.bf16.gmra.mrb[12].mxu0 %v8508_v31  ;;  %1008 = vmatmul.mubr.bf16.gmra.mrb[12].mxu1 %v8514_v32 }
  0x67   : > { %951 = vmatprep.mubr.bf16.mxu0 %v8509_v33  ;;  %1015 = vmatprep.mubr.bf16.mxu1 %v8524_v34 }
  0x6e   : > { %952 = vmatmul.mubr.bf16.gmra.mrb[16].mxu0 %v8511_v35  ;;  %1016 = vmatmul.mubr.bf16.gmra.mrb[16].mxu1 %v8526_v36  ;;  %v8581_v35 = vld [vmem:[%s8782_s24 + $0x1d0] ss:$8 sps:$4 sm:$0xff]   ;;  %v8583_v36 = vld [vmem:[%s13966_s3 + $0x28] sm:$0xff]  }
  0x6f   : > { %959 = vmatprep.mubr.bf16.mxu0 %v8515_v37  ;;  %1023 = vmatprep.mubr.bf16.mxu1 %v8527_v38 }
  0x70   : > { %4483 = vmatpush1.bf16.msra.mxu1 %v8583_v36  ;;  %v8591_v36 = vld [vmem:[%s8782_s24 + $0x1f0] ss:$8 sps:$4 sm:$0xff]  }
  0x71   : > { %4484 = vmatprep.subr.bf16.mxu1 %v13977_v1 }
  0x76   : > { %960 = vmatmul.mubr.bf16.gmra.mrb[20].mxu0 %v8517_v39  ;;  %1024 = vmatmul.mubr.bf16.gmra.mrb[20].mxu1 %v8529_v40  ;;  %v8584_v39 = vld [vmem:[%s8782_s24 + $0x1e4] ss:$8 sps:$4 sm:$0xff]  }
  0x77   : > { %967 = vmatprep.mubr.bf16.mxu0 %v8518_v41  ;;  %1031 = vmatprep.mubr.bf16.mxu1 %v8530_v42 }
  0x7e   : > { %968 = vmatmul.mubr.bf16.gmra.mrb[24].mxu0 %v8520_v43  ;;  %1032 = vmatmul.mubr.bf16.gmra.mrb[24].mxu1 %v8532_v44 }
  0x7f   : > { %975 = vmatprep.mubr.bf16.mxu0 %v8521_v45  ;;  %1039 = vmatprep.mubr.bf16.mxu1 %v8533_v46 }
  0x86   : > { %976 = vmatmul.mubr.bf16.gmra.mrb[28].mxu0 %v8523_v47  ;;  %1040 = vmatmul.mubr.bf16.gmra.mrb[28].mxu1 %v8535_v48 }
  0x87   : > { %1047 = vmatprep.mubr.bf16.mxu1 %v8536_v49 }
  0x8e   : > { %1048 = vmatmul.mubr.bf16.gmra.mrb[32].mxu1 %v8538_v50 }
  0x8f   : > { %1055 = vmatprep.mubr.bf16.mxu1 %v8539_v51 }
  0x96   : > { %1056 = vmatmul.mubr.bf16.gmra.mrb[36].mxu1 %v8541_v52 }
  0x97   : > { %1063 = vmatprep.mubr.bf16.mxu1 %v8542_v53  ;;  %v8587_v53 = vld [vmem:[%s13966_s3 + $0x30] sm:$0xff]  }
  0x98   : > { %4485 = vmatpush1.bf16.msra.mxu1 %v8587_v53 }
  0x99   : > { %4486 = vmatprep.subr.bf16.mxu1 %v13977_v1 }
  0x9e   : > { %1064 = vmatmul.mubr.bf16.gmra.mrb[40].mxu1 %v8544_v54 }
  0x9f   : > { %1071 = vmatprep.mubr.bf16.mxu1 %v8545_v55 }
  0xa6   : > { %1072 = vmatmul.mubr.bf16.gmra.mrb[44].mxu1 %v8547_v56 }
  0xa7   : > { %1079 = vmatprep.mubr.bf16.mxu1 %v8548_v57 }
  0xae   : > { %1080 = vmatmul.mubr.bf16.gmra.mrb[48].mxu1 %v8550_v58  ;;  %v8586_v58 = vld [vmem:[%s8782_s24 + $0x1e0] ss:$8 sps:$4 sm:$0xff]  }
  0xaf   : > { %1087 = vmatprep.mubr.bf16.mxu1 %v8551_v59 }
  0xb6   : > { %1088 = vmatmul.mubr.bf16.gmra.mrb[52].mxu1 %v8553_v60 }
  0xb7   : > { %1095 = vmatprep.mubr.bf16.mxu1 %v8554_v61  ;;  %v8588_v61 = vld [vmem:[%s13966_s3 + $0x38] sm:$0xff]  }
  0xb8   : > { %4487 = vmatpush1.bf16.msra.mxu1 %v8588_v61 }
  0xb9   : > { %4488 = vmatprep.subr.bf16.mxu1 %v13977_v1 }
  0xbc   : > { %4489 = vmatpush1.bf16.msra.mxu1 %v8592_v24 }
  0xbd   : > { %4490 = vmatprep.subr.bf16.mxu1 %v13977_v1 }
  0xbe   : > { %1096 = vmatmul.mubr.bf16.gmra.mrb[56].mxu1 %v8556_v62  ;;  %v8589_v62 = vld [vmem:[%s8782_s24 + $0x1f4] ss:$8 sps:$4 sm:$0xff]  }
  0xbf   : > { %1103 = vmatprep.mubr.bf16.mxu1 %v8557_v63 }
  0xc6   : > { %1104 = vmatmul.mubr.bf16.gmra.mrb[60].mxu1 %v8559_v0 }
  0xc7   : > { %1111 = vmatprep.mubr.bf16.mxu1 %v8560_v2 }
  0xce   : > { %1112 = vmatmul.mubr.bf16.gmra.mrb[64].mxu1 %v8562_v3 }
  0xcf   : > { %1119 = vmatprep.mubr.bf16.mxu1 %v8563_v4 }
  0xd6   : > { %1120 = vmatmul.mubr.bf16.gmra.mrb[68].mxu1 %v8565_v5 }
  0xd7   : > { %1127 = vmatprep.mubr.bf16.mxu1 %v8566_v6 }
  0xde   : > { %1128 = vmatmul.mubr.bf16.gmra.mrb[72].mxu1 %v8568_v7 }
  0xdf   : > { %1135 = vmatprep.mubr.bf16.mxu1 %v8569_v8 }
  0xe6   : > { %1136 = vmatmul.mubr.bf16.gmra.mrb[76].mxu1 %v8571_v10 }
  0xe7   : > { %1143 = vmatprep.mubr.bf16.mxu1 %v8574_v12 }
  0xee   : > { %1144 = vmatmul.mubr.bf16.gmra.mrb[80].mxu1 %v8576_v14 }
  0xef   : > { %1151 = vmatprep.mubr.bf16.mxu1 %v8579_v17 }
  0xf6   : > { %1152 = vmatmul.mubr.bf16.gmra.mrb[84].mxu1 %v8581_v35 }
  0xf7   : > { %1159 = vmatprep.mubr.bf16.mxu1 %v8584_v39 }
  0xfe   : > { %1160 = vmatmul.mubr.bf16.gmra.mrb[88].mxu1 %v8586_v58 }
  0xff   : > { %1167 = vmatprep.mubr.bf16.mxu1 %v8589_v62 }
 0x106   : > { %1168 = vmatmul.mubr.bf16.gmra.mrb[92].mxu1 %v8591_v36 }
 0x121   : > { %v921_v18 = vpop.f32.mrb[0].mxu0  ;;  %v985_v19 = vpop.f32.mrb[0].mxu1 }
 0x122   : > { %v922_v20 = vadd.f32 %v8919_v16, %v921_v18  ;;  %v986_v21 = vadd.f32 %v8919_v16, %v985_v19  ;;  %v923_v22 = vpop.f32.mrb[1].mxu0  ;;  %v987_v23 = vpop.f32.mrb[1].mxu1 }
 0x123   : > { %v924_v25 = vpop.f32.mrb[2].mxu0  ;;  %v988_v26 = vpop.f32.mrb[2].mxu1 }
 0x124   : > { %v1216_v27 = vmax.f32 %v986_v21, 0.0  ;;  %v925_v28 = vadd.f32 %v8919_v16, %v924_v25  ;;  %v989_v29 = vadd.f32 %v8919_v16, %v988_v26  ;;  %v926_v30 = vpop.f32.mrb[3].mxu0  ;;  %v990_v31 = vpop.f32.mrb[3].mxu1  ;;  %v1200_v32 = vmax.f32 %v922_v20, 0.0 }
 0x126   : > { %v1201_v33 = vmax.f32 %v925_v28, 0.0  ;;  %v1217_v34 = vmax.f32 %v989_v29, 0.0 }
 0x128   : > { %v8935_v37 = vpack.c.bf16 %v1201_v33, %v1200_v32  ;;  %v8937_v38 = vpack.c.bf16 %v1217_v34, %v1216_v27 }
 0x129   : > { %v929_v40 = vpop.f32.mrb[4].mxu0  ;;  %v993_v41 = vpop.f32.mrb[4].mxu1 }
 0x12a   : > { %14243 = vst [vmem:[#allocation2_spill] sm:$0xff] %v8937_v38  ;;  %v930_v42 = vadd.f32 %v8919_v16, %v929_v40  ;;  %v994_v43 = vadd.f32 %v8919_v16, %v993_v41  ;;  %v995_v44 = vpop.f32.mrb[5].mxu1  ;;  %2253 = vrot.lane.b32.xlu0 %v8937_v38, %s8690_s25  ;;  %v931_v45 = vpop.f32.mrb[5].mxu0  ;;  %v1309_v57 = vshll.u32 %v8935_v37, 16  ;;  %v13980_v2 = vrot.slane %v8937_v38, 6 }
 0x12b   : > { %v932_v46 = vpop.f32.mrb[6].mxu0  ;;  %v996_v47 = vpop.f32.mrb[6].mxu1  ;;  %v1669_v3 = vrot.slane %v8935_v37, 1  ;;  %v8964_v4 = vshrl.u32 %v8935_v37, 16  ;;  %v8981_v17 = vshll.u32 %v8937_v38, 16  ;;  %v13981_v31 = vrot.slane %v8937_v38, 1 }
 0x12c   : > { %v1218_v48 = vmax.f32 %v994_v43, 0.0  ;;  %v933_v49 = vadd.f32 %v8919_v16, %v932_v46  ;;  %v997_v50 = vadd.f32 %v8919_v16, %v996_v47  ;;  %v934_v51 = vpop.f32.mrb[7].mxu0  ;;  %v998_v52 = vpop.f32.mrb[7].mxu1  ;;  %v1202_v54 = vmax.f32 %v930_v42, 0.0  ;;  %v8593_v43 = vld [vmem:[%s13966_s3 + $0x48] sm:$0xff]  }
 0x12d   : > { %v1311_v14 = vrot.slane %v1309_v57, 1  ;;  %v13975_v33 = vrot.slane %v8981_v17, 1  ;;  %v9022_v42 = vshrl.u32 %v8937_v38, 16  ;;  %4491 = vmatpush1.bf16.msra.mxu1 %v8593_v43  ;;  %v2068_v24 = vrot.slane %v8964_v4, 7 }
 0x12e   : > { %v1203_v55 = vmax.f32 %v933_v49, 0.0  ;;  %v1219_v56 = vmax.f32 %v997_v50, 0.0  ;;  %v13979_v50 = vrot.slane %v8937_v38, 7  ;;  %4492 = vmatprep.subr.bf16.mxu1 %v13977_v1 }
 0x12f   : > { %v1312_v32 = vor.u32 %v1311_v14, %v8964_v4 }
 0x130   : > { %v8953_v59 = vpack.c.bf16 %v1203_v55, %v1202_v54  ;;  %v8955_v60 = vpack.c.bf16 %v1219_v56, %v1218_v48  ;;  %v8594_v55 = vld [vmem:[%s8782_s24 + $0x204] ss:$8 sps:$4 sm:$0xff]   ;;  %v1376_v56 = vor.u32 %v9022_v42, %v13975_v33 }
 0x131   : > { %v937_v63 = vpop.f32.mrb[8].mxu0  ;;  %v1001_v0 = vpop.f32.mrb[8].mxu1  ;;  %1175 = vmatprep.mubr.bf16.mxu1 %v8594_v55 }
 0x132   : > { %14244 = vst [vmem:[#allocation3_spill] sm:$0xff] %v8953_v59  ;;  %14245 = vst [vmem:[#allocation4_spill] sm:$0xff] %v8955_v60  ;;  %v938_v5 = vadd.f32 %v8919_v16, %v937_v63  ;;  %v1002_v6 = vadd.f32 %v8919_v16, %v1001_v0  ;;  %v1003_v7 = vpop.f32.mrb[9].mxu1  ;;  %2255 = vrot.lane.b32.xlu0 %v8955_v60, %s8690_s25  ;;  %v939_v8 = vpop.f32.mrb[9].mxu0  ;;  %2239 = vrot.lane.b32.xlu1 %v8953_v59, %s8690_s25  ;;  %v2390_v9 = vrot.slane %v8955_v60, 6 }
 0x133   : > { %v1670_v10 = vrot.slane %v8953_v59, 1  ;;  %v940_v11 = vpop.f32.mrb[10].mxu0  ;;  %v1004_v12 = vpop.f32.mrb[10].mxu1  ;;  %v1686_v13 = vrot.slane %v8955_v60, 1  ;;  %v8978_v15 = vshll.u32 %v8953_v59, 16  ;;  %v9000_v28 = vshll.u32 %v8955_v60, 16 }
 0x134   : > { %v1204_v18 = vmax.f32 %v938_v5, 0.0  ;;  %v1220_v19 = vmax.f32 %v1002_v6, 0.0  ;;  %v941_v20 = vadd.f32 %v8919_v16, %v940_v11  ;;  %v1005_v21 = vadd.f32 %v8919_v16, %v1004_v12  ;;  %v942_v22 = vpop.f32.mrb[11].mxu0  ;;  %v1006_v23 = vpop.f32.mrb[11].mxu1  ;;  %v8597_v12 = vld [vmem:[%s13966_s3 + $0x50] sm:$0xff]  }
 0x135   : > { %v8993_v25 = vsel %vm2374_vm0, %v13980_v2, %v2390_v9  ;;  %v1671_v26 = vsel %vm1668_vm2, %v1669_v3, %v1670_v10  ;;  %v1316_v27 = vrot.slane %v8978_v15, 1  ;;  %v9010_v34 = vshrl.u32 %v8953_v59, 16  ;;  %4493 = vmatpush1.bf16.msra.mxu1 %v8597_v12 }
 0x136   : > { %14246 = vst [vmem:[#allocation5_spill] sm:$0xff] %v8993_v25  ;;  %v1205_v29 = vmax.f32 %v941_v20, 0.0  ;;  %v1221_v30 = vmax.f32 %v1005_v21, 0.0  ;;  %3059 = vrot.lane.b32.xlu0 %v8993_v25, %s8690_s25  ;;  %1734 = vrot.lane.b32.xlu1 %v1671_v26, %s8690_s25  ;;  %v9013_v35 = vshrl.u32 %v8955_v60, 16  ;;  %v13974_v41 = vrot.slane %v8955_v60, 7 }
 0x137   : > { %v1687_v44 = vsel %vm1668_vm2, %v13981_v31, %v1686_v13  ;;  %v1317_v45 = vsel %vm1305_vm1, %v1312_v32, %v1316_v27  ;;  %v1380_v46 = vrot.slane %v9000_v28, 1  ;;  %v2069_v48 = vrot.slane %v9010_v34, 7  ;;  %4494 = vmatprep.subr.bf16.mxu1 %v13977_v1 }
 0x138   : > { %v9016_v39 = vpack.c.bf16 %v1205_v29, %v1204_v18  ;;  %v9018_v40 = vpack.c.bf16 %v1221_v30, %v1220_v19  ;;  %v1804_v61 = vrot.slane %v9010_v34, 1  ;;  %v1805_v62 = vrot.slane %v8978_v15, 2  ;;  %v8596_v30 = vld [vmem:[%s8782_s24 + $0x200] ss:$8 sps:$4 sm:$0xff]  }
 0x139   : > { %v945_v47 = vpop.f32.mrb[12].mxu0  ;;  %v1009_v49 = vpop.f32.mrb[12].mxu1  ;;  %v2093_v63 = vrot.slane %v9013_v35, 7  ;;  %v9060_v14 = vsel %vm1999_vm4, %v13979_v50, %v13974_v41  ;;  %v1381_v18 = vsel %vm1305_vm1, %v1376_v56, %v1380_v46  ;;  %v2070_v19 = vor.u32 %v2069_v48, %v8978_v15  ;;  %1176 = vmatmul.mubr.bf16.gmra.mrb[96].mxu1 %v8596_v30 }
 0x13a   : > { %14247 = vst [vmem:[#allocation6_spill] sm:$0xff] %v9016_v39  ;;  %14248 = vst [vmem:[#allocation7_spill] sm:$0xff] %v9018_v40  ;;  %1750 = vrot.lane.b32.xlu1 %v1687_v44, %s8690_s25  ;;  %1569 = vrot.lane.b32.xlu0 %v1317_v45, %s8691_s15  ;;  %v946_v51 = vadd.f32 %v8919_v16, %v945_v47  ;;  %v947_v52 = vpop.f32.mrb[13].mxu0  ;;  %v1010_v53 = vadd.f32 %v8919_v16, %v1009_v49  ;;  %v1011_v54 = vpop.f32.mrb[13].mxu1  ;;  %v1801_v21 = vrot.slane %v8964_v4, 1 }
 0x13b   : > { %v948_v58 = vpop.f32.mrb[14].mxu0  ;;  %v1012_v0 = vpop.f32.mrb[14].mxu1  ;;  %14249 = vst [vmem:[#allocation8_spill] sm:$0xff] %v9060_v14  ;;  %v1802_v22 = vrot.slane %v1309_v57, 2  ;;  %v1836_v26 = vrot.slane %v9013_v35, 1  ;;  %v1837_v29 = vrot.slane %v9000_v28, 2  ;;  %v9081_v36 = vor.u32 %v1805_v62, %v1804_v61 }
 0x13c   : > { %v1206_v3 = vmax.f32 %v946_v51, 0.0  ;;  %v949_v5 = vadd.f32 %v8919_v16, %v948_v58  ;;  %v1222_v6 = vmax.f32 %v1010_v53, 0.0  ;;  %v1013_v7 = vadd.f32 %v8919_v16, %v1012_v0  ;;  %v950_v8 = vpop.f32.mrb[15].mxu0  ;;  %v1014_v11 = vpop.f32.mrb[15].mxu1  ;;  %v8598_v57 = vld [vmem:[%s13966_s3 + $0x58] sm:$0xff]  }
 0x13d   : > { %v2094_v43 = vor.u32 %v2093_v63, %v9000_v28  ;;  %v2071_v4 = vsel %vm2067_vm3, %v2068_v24, %v2070_v19  ;;  %v2875_v45 = vrot.slane %v9013_v35, 5  ;;  %v2876_v47 = vrot.slane %v9000_v28, 6  ;;  %v8599_v52 = vld [vmem:[%s8782_s24 + $0x214] ss:$8 sps:$4 sm:$0xff]   ;;  %4495 = vmatpush1.bf16.msra.mxu1 %v8598_v57 }
 0x13e   : > { %2655 = vrot.lane.b32.xlu1 %v9060_v14, %s8690_s25  ;;  %2322 = vrot.lane.b32.xlu0 %v1381_v18, %s8692_s18  ;;  %v1207_v20 = vmax.f32 %v949_v5, 0.0  ;;  %v1223_v23 = vmax.f32 %v1013_v7, 0.0  ;;  %v1803_v53 = vor.u32 %v1802_v22, %v1801_v21  ;;  %v13976_v54 = vrot.slane %v9022_v42, 7 }
 0x13f   : > { %v1832_v61 = vrot.slane %v9022_v42, 1  ;;  %v1833_v62 = vrot.slane %v8981_v17, 2  ;;  %v2871_v0 = vrot.slane %v9022_v42, 5  ;;  %1183 = vmatprep.mubr.bf16.mxu1 %v8599_v52  ;;  %v9115_v21 = vor.u32 %v1837_v29, %v1836_v26  ;;  %4496 = vmatprep.subr.bf16.mxu1 %v13977_v1  ;;  %v8604_v52 = vld [vmem:[%s8782_s24 + $0x224] ss:$8 sps:$4 sm:$0xff]  }
 0x140   : > { %v9079_v32 = vpack.c.bf16 %v1207_v20, %v1206_v3  ;;  %v9086_v44 = vpack.c.bf16 %v1223_v23, %v1222_v6  ;;  %v2872_v3 = vrot.slane %v8981_v17, 6  ;;  %v1807_v7 = vsel %vm1800_vm5, %v1803_v53, %v9081_v36  ;;  %v8602_v20 = vld [vmem:[%s13966_s3 + $0x60] sm:$0xff]  }
 0x141   : > { %v953_v49 = vpop.f32.mrb[16].mxu0  ;;  %v1017_v51 = vpop.f32.mrb[16].mxu1  ;;  %v9109_v8 = vsel %vm2067_vm3, %v13976_v54, %v2094_v43  ;;  %v9117_v22 = vor.u32 %v2876_v47, %v2875_v45  ;;  %v2472_v23 = vrot.slane %v9013_v35, 6  ;;  %v2473_v24 = vrot.slane %v9000_v28, 7  ;;  %v8601_v45 = vld [vmem:[%s8782_s24 + $0x210] ss:$8 sps:$4 sm:$0xff]   ;;  %4497 = vmatpush1.bf16.msra.mxu1 %v8602_v20 }
 0x142   : > { %14250 = vst [vmem:[#allocation9_spill] sm:$0xff] %v9079_v32  ;;  %14251 = vst [vmem:[#allocation10_spill] sm:$0xff] %v9086_v44  ;;  %1585 = vrot.lane.b32.xlu1 %v1381_v18, %s8691_s15  ;;  %2173 = vrot.lane.b32.xlu0 %v2071_v4, %s8691_s15  ;;  %v954_v55 = vadd.f32 %v8919_v16, %v953_v49  ;;  %v955_v56 = vpop.f32.mrb[17].mxu0  ;;  %v1019_v58 = vpop.f32.mrb[17].mxu1  ;;  %v1018_v43 = vadd.f32 %v8919_v16, %v1017_v51  ;;  %v2468_v57 = vrot.slane %v9022_v42, 6  ;;  %v8603_v49 = vld [vmem:[%s13966_s3 + $0x68] sm:$0xff]  }
 0x143   : > { %v956_v5 = vpop.f32.mrb[18].mxu0  ;;  %v1020_v6 = vpop.f32.mrb[18].mxu1  ;;  %14252 = vst [vmem:[#allocation11_spill] sm:$0xff] %v9109_v8  ;;  %v9126_v26 = vor.u32 %v1833_v62, %v1832_v61  ;;  %v9128_v29 = vor.u32 %v2872_v3, %v2871_v0  ;;  %v2469_v4 = vrot.slane %v8981_v17, 7  ;;  %4498 = vmatprep.subr.bf16.mxu1 %v13977_v1  ;;  %1184 = vmatmul.mubr.bf16.gmra.mrb[100].mxu1 %v8601_v45  ;;  %v8606_v45 = vld [vmem:[%s8782_s24 + $0x220] ss:$8 sps:$4 sm:$0xff]  }
 0x144   : > { %v1208_v11 = vmax.f32 %v954_v55, 0.0  ;;  %v957_v12 = vadd.f32 %v8919_v16, %v956_v5  ;;  %v958_v18 = vpop.f32.mrb[19].mxu0  ;;  %v1022_v19 = vpop.f32.mrb[19].mxu1  ;;  %v9145_v55 = vor.u32 %v2473_v24, %v2472_v23  ;;  %v1224_v0 = vmax.f32 %v1018_v43, 0.0  ;;  %1191 = vmatprep.mubr.bf16.mxu1 %v8604_v52  ;;  %v8608_v52 = vld [vmem:[%s13966_s3 + $0x78] sm:$0xff]  }
 0x145   : > { %v1839_v51 = vsel %vm1800_vm5, %v9126_v26, %v9115_v21  ;;  %v2878_v53 = vsel %vm2847_vm6, %v9128_v29, %v9117_v22  ;;  %v1021_v3 = vadd.f32 %v8919_v16, %v1020_v6  ;;  %4499 = vmatpush1.bf16.msra.mxu1 %v8603_v49  ;;  %v1672_v43 = vrot.slane %v9016_v39, 1 }
 0x146   : > { %1932 = vrot.lane.b32.xlu1 %v1807_v7, %s8692_s18  ;;  %2189 = vrot.lane.b32.xlu0 %v9109_v8, %s8691_s15  ;;  %v1209_v30 = vmax.f32 %v957_v12, 0.0  ;;  %v9152_v7 = vor.u32 %v2469_v4, %v2468_v57 }
 0x147   : > { %v1225_v23 = vmax.f32 %v1021_v3, 0.0  ;;  %4500 = vmatprep.subr.bf16.mxu1 %v13977_v1 }
 0x148   : > { %v9133_v47 = vpack.c.bf16 %v1209_v30, %v1208_v11  ;;  %v8607_v30 = vld [vmem:[%s13966_s3 + $0x70] sm:$0xff]   ;;  %v2475_v6 = vsel %vm2440_vm7, %v9152_v7, %v9145_v55 }
 0x149   : > { %v961_v56 = vpop.f32.mrb[20].mxu0  ;;  %v1025_v58 = vpop.f32.mrb[20].mxu1  ;;  %v9165_v4 = vpack.c.bf16 %v1225_v23, %v1224_v0  ;;  %4501 = vmatpush1.bf16.msra.mxu1 %v8607_v30  ;;  %v13973_v30 = vrot.slane %v9018_v40, 6 }
 0x14a   : > { %14253 = vst [vmem:[#allocation12_spill] sm:$0xff] %v9133_v47  ;;  %1948 = vrot.lane.b32.xlu1 %v1839_v51, %s8692_s18  ;;  %2991 = vrot.lane.b32.xlu0 %v2878_v53, %s8691_s15  ;;  %v962_v61 = vadd.f32 %v8919_v16, %v961_v56  ;;  %v963_v62 = vpop.f32.mrb[21].mxu0  ;;  %v1027_v5 = vpop.f32.mrb[21].mxu1  ;;  %v1673_v51 = vsel %vm1668_vm2, %v1670_v10, %v1672_v43  ;;  %v1688_v56 = vrot.slane %v9018_v40, 1 }
 0x14b   : > { %v964_v11 = vpop.f32.mrb[22].mxu0  ;;  %v1028_v12 = vpop.f32.mrb[22].mxu1  ;;  %14254 = vst [vmem:[#allocation13_spill] sm:$0xff] %v9165_v4  ;;  %4502 = vmatprep.subr.bf16.mxu1 %v13977_v1  ;;  %1192 = vmatmul.mubr.bf16.gmra.mrb[104].mxu1 %v8606_v45  ;;  %v1026_v45 = vadd.f32 %v8919_v16, %v1025_v58  ;;  %v9223_v58 = vsel %vm2374_vm0, %v2390_v9, %v13973_v30 }
 0x14c   : > { %v1210_v18 = vmax.f32 %v962_v61, 0.0  ;;  %v965_v19 = vadd.f32 %v8919_v16, %v964_v11  ;;  %v966_v20 = vpop.f32.mrb[23].mxu0  ;;  %v1030_v24 = vpop.f32.mrb[23].mxu1  ;;  %v1689_v23 = vsel %vm1668_vm2, %v1686_v13, %v1688_v56  ;;  %v13982_v13 = vrot.slane %v8953_v59, 7  ;;  %14257 = vst [vmem:[#allocation16_spill] sm:$0xff] %v9223_v58 }
 0x14d   : > { %4503 = vmatpush1.bf16.msra.mxu1 %v8608_v52  ;;  %v2003_v24 = vrot.slane %v9016_v39, 7  ;;  %v1029_v52 = vadd.f32 %v8919_v16, %v1028_v12 }
 0x14e   : > { %2586 = vrot.lane.b32.xlu1 %v2475_v6, %s8691_s15  ;;  %3129 = vrot.lane.b32.xlu0 %v2475_v6, %s8692_s18  ;;  %v1211_v57 = vmax.f32 %v965_v19, 0.0  ;;  %v9197_v6 = vshll.u32 %v9016_v39, 16 }
 0x14f   : > { %4768 = vmatprep.subr.bf16.mxu1 %v13977_v1 }
 0x150   : > { %v9168_v49 = vpack.c.bf16 %v1211_v57, %v1210_v18  ;;  %v1324_v12 = vrot.slane %v9197_v6, 1  ;;  %v1809_v30 = vrot.slane %v9197_v6, 2 }
 0x151   : > { %v969_v53 = vpop.f32.mrb[24].mxu0  ;;  %v9179_v61 = vpop.f32.mrb[24].mxu1 }
 0x152   : > { %14255 = vst [vmem:[#allocation14_spill] sm:$0xff] %v9168_v49  ;;  %1736 = vrot.lane.b32.xlu1 %v1673_v51, %s8690_s25  ;;  %2241 = vrot.lane.b32.xlu0 %v9016_v39, %s8690_s25  ;;  %v970_v62 = vadd.f32 %v8919_v16, %v969_v53  ;;  %v971_v0 = vpop.f32.mrb[25].mxu0  ;;  %v1035_v3 = vpop.f32.mrb[25].mxu1  ;;  %v9207_v51 = vshrl.u32 %v9016_v39, 16  ;;  %v14022_v14 = vrot.slane %v9168_v49, 6 }
 0x153   : > { %v972_v5 = vpop.f32.mrb[26].mxu0  ;;  %v9186_v11 = vpop.f32.mrb[26].mxu1  ;;  %v9216_v3 = vsel %vm1999_vm4, %v13982_v13, %v2003_v24 }
 0x154   : > { %v1212_v10 = vmax.f32 %v970_v62, 0.0  ;;  %v973_v18 = vadd.f32 %v8919_v16, %v972_v5  ;;  %v974_v19 = vpop.f32.mrb[27].mxu0  ;;  %v1038_v20 = vpop.f32.mrb[27].mxu1  ;;  %v1226_v62 = vmax.f32 %v1026_v45, 0.0  ;;  %v9227_v5 = vshll.u32 %v9018_v40, 16 }
 0x155   : > { %v1227_v20 = vmax.f32 %v1029_v52, 0.0  ;;  %v1808_v45 = vrot.slane %v9207_v51, 1  ;;  %v2072_v50 = vrot.slane %v9207_v51, 7 }
 0x156   : > { %1752 = vrot.lane.b32.xlu1 %v1689_v23, %s8690_s25  ;;  %2257 = vrot.lane.b32.xlu0 %v9018_v40, %s8690_s25  ;;  %v1213_v57 = vmax.f32 %v973_v18, 0.0 }
 0x157   : > { %v9245_v54 = vpack.c.bf16 %v1227_v20, %v1226_v62  ;;  %v1384_v62 = vor.u32 %v9013_v35, %v1380_v46  ;;  %v2444_v46 = vrot.slane %v9207_v51, 6 }
 0x158   : > { %v9209_v53 = vpack.c.bf16 %v1213_v57, %v1212_v10  ;;  %v1320_v57 = vor.u32 %v9010_v34, %v1316_v27  ;;  %v1388_v27 = vrot.slane %v9227_v5, 1 }
 0x159   : > { %v977_v0 = vpop.f32.mrb[28].mxu0  ;;  %v9229_v10 = vpop.f32.mrb[28].mxu1  ;;  %14258 = vst [vmem:[#allocation17_spill] sm:$0xff] %v9245_v54 }
 0x15a   : > { %14256 = vst [vmem:[#allocation15_spill] sm:$0xff] %v9209_v53  ;;  %v978_v18 = vadd.f32 %v8919_v16, %v977_v0  ;;  %v979_v19 = vpop.f32.mrb[29].mxu0  ;;  %2641 = vrot.lane.b32.xlu1 %v9216_v3, %s8690_s25  ;;  %3061 = vrot.lane.b32.xlu0 %v9223_v58, %s8690_s25  ;;  %v1043_v23 = vpop.f32.mrb[29].mxu1  ;;  %v9242_v0 = vshrl.u32 %v9018_v40, 16  ;;  %v1325_v1 = vsel %vm1305_vm1, %v1320_v57, %v1324_v12 }
 0x15b   : > { %v980_v9 = vpop.f32.mrb[30].mxu0  ;;  %v1044_v19 = vpop.f32.mrb[30].mxu1 }
 0x15c   : > { %v1214_v41 = vmax.f32 %v978_v18, 0.0  ;;  %v981_v33 = vadd.f32 %v8919_v16, %v980_v9  ;;  %v982_v52 = vpop.f32.mrb[31].mxu0  ;;  %v1046_v23 = vpop.f32.mrb[31].mxu1  ;;  %v9257_v18 = vor.u32 %v1809_v30, %v1808_v45  ;;  %v1840_v20 = vrot.slane %v9242_v0, 1 }
 0x15d   : > { %v1841_v9 = vrot.slane %v9227_v5, 2  ;;  %v2096_v52 = vrot.slane %v9242_v0, 7  ;;  %v2445_v30 = vrot.slane %v9197_v6, 7  ;;  %v1034_v45 = vadd.f32 %v8919_v16, %v9179_v61 }
 0x15e   : > { %v1215_v2 = vmax.f32 %v981_v33, 0.0  ;;  %1571 = vrot.lane.b32.xlu1 %v1325_v1, %s8691_s15  ;;  %2308 = vrot.lane.b32.xlu0 %v1325_v1, %s8692_s18  ;;  %v1389_v33 = vsel %vm1305_vm1, %v1384_v62, %v1388_v27  ;;  %v2073_v1 = vor.u32 %v2072_v50, %v9197_v6  ;;  %v1811_v28 = vsel %vm1800_vm5, %v9081_v36, %v9257_v18 }
 0x15f   : > { %v2879_v62 = vrot.slane %v9242_v0, 5  ;;  %v2880_v36 = vrot.slane %v9227_v5, 6  ;;  %v2442_v61 = vrot.slane %v8978_v15, 7 }
 0x160   : > { %v9261_v57 = vpack.c.bf16 %v1215_v2, %v1214_v41  ;;  %v9275_v2 = vor.u32 %v1841_v9, %v1840_v20  ;;  %v2097_v41 = vor.u32 %v2096_v52, %v9227_v5  ;;  %v2074_v23 = vsel %vm2067_vm3, %v2069_v48, %v2073_v1 }
 0x161   : > { %v1037_v20 = vadd.f32 %v8919_v16, %v9186_v11  ;;  %v1228_v9 = vmax.f32 %v1034_v45, 0.0  ;;  %v9303_v11 = vor.u32 %v2445_v30, %v2444_v46  ;;  %v2476_v45 = vrot.slane %v9242_v0, 6 }
 0x162   : > { %14259 = vst [vmem:[#allocation18_spill] sm:$0xff] %v9261_v57  ;;  %1587 = vrot.lane.b32.xlu1 %v1389_v33, %s8691_s15  ;;  %2324 = vrot.lane.b32.xlu0 %v1389_v33, %s8692_s18  ;;  %v2441_v33 = vrot.slane %v9010_v34, 6  ;;  %v1843_v48 = vsel %vm1800_vm5, %v9115_v21, %v9275_v2  ;;  %v9301_v1 = vsel %vm2067_vm3, %v2093_v63, %v2097_v41  ;;  %v2477_v34 = vrot.slane %v9227_v5, 7 }
 0x163   : > { %v1229_v31 = vmax.f32 %v1037_v20, 0.0  ;;  %14260 = vst [vmem:[#allocation19_spill] sm:$0xff] %v9301_v1  ;;  %v1674_v41 = vrot.slane %v9079_v32, 1  ;;  %v1042_v46 = vadd.f32 %v8919_v16, %v9229_v10  ;;  %v1045_v30 = vadd.f32 %v8919_v16, %v1044_v19 }
 0x164   : > { %v2443_v15 = vor.u32 %v2442_v61, %v2441_v33  ;;  %v9319_v21 = vor.u32 %v2477_v34, %v2476_v45  ;;  %v13989_v19 = vrot.slane %v9079_v32, 7  ;;  %v13984_v20 = vrot.slane %v9079_v32, 6 }
 0x165   : > { %v9309_v13 = vpack.c.bf16 %v1229_v31, %v1228_v9  ;;  %v13983_v9 = vrot.slane %v9016_v39, 6  ;;  %v9382_v34 = vshll.u32 %v9086_v44, 16 }
 0x166   : > { %1934 = vrot.lane.b32.xlu1 %v1811_v28, %s8692_s18  ;;  %2175 = vrot.lane.b32.xlu0 %v2074_v23, %s8691_s15  ;;  %v9305_v28 = vor.u32 %v2880_v36, %v2879_v62  ;;  %v2447_v35 = vsel %vm2440_vm7, %v2443_v15, %v9303_v11  ;;  %14263 = vst [vmem:[#allocation22_spill] sm:$0xff] %v9319_v21  ;;  %v1231_v62 = vmax.f32 %v1045_v30, 0.0  ;;  %v13990_v36 = vrot.slane %v9086_v44, 1 }
 0x167   : > { %14262 = vst [vmem:[#allocation21_spill] sm:$0xff] %v9309_v13  ;;  %v9326_v31 = vsel %vm2440_vm7, %v9145_v55, %v9319_v21  ;;  %v1675_v55 = vsel %vm1668_vm2, %v1672_v43, %v1674_v41  ;;  %v9354_v43 = vshll.u32 %v9079_v32, 16  ;;  %v9365_v33 = vsel %vm1999_vm4, %v2003_v24, %v13989_v19  ;;  %v1049_v24 = vpop.f32.mrb[32].mxu1 }
 0x168   : > { %14261 = vst [vmem:[#allocation20_spill] sm:$0xff] %v9305_v28  ;;  %v2882_v63 = vsel %vm2847_vm6, %v9117_v22, %v9305_v28  ;;  %14264 = vst [vmem:[#allocation23_spill] sm:$0xff] %v9326_v31  ;;  %v1230_v22 = vmax.f32 %v1042_v46, 0.0  ;;  %v9375_v61 = vsel %vm2374_vm0, %v13983_v9, %v13984_v20  ;;  %v1050_v30 = vadd.f32 %v8919_v16, %v1049_v24 }
 0x169   : > { %14266 = vst [vmem:[#allocation25_spill] sm:$0xff] %v9375_v61  ;;  %v13985_v45 = vrot.slane %v9354_v43, 1  ;;  %v1845_v20 = vrot.slane %v9382_v34, 2 }
 0x16a   : > { %1950 = vrot.lane.b32.xlu1 %v1843_v48, %s8692_s18  ;;  %2191 = vrot.lane.b32.xlu0 %v9301_v1, %s8691_s15  ;;  %v9344_v10 = vpack.c.bf16 %v1231_v62, %v1230_v22  ;;  %v1328_v48 = vor.u32 %v9207_v51, %v1324_v12  ;;  %v9392_v12 = vshrl.u32 %v9086_v44, 16 }
 0x16c   : > { %14265 = vst [vmem:[#allocation24_spill] sm:$0xff] %v9344_v10  ;;  %v1333_v62 = vsel %vm1305_vm1, %v1328_v48, %v13985_v45  ;;  %v1844_v24 = vrot.slane %v9392_v12, 1  ;;  %v13987_v5 = vrot.slane %v9392_v12, 7 }
 0x16e   : > { %2572 = vrot.lane.b32.xlu1 %v2447_v35, %s8691_s15  ;;  %2993 = vrot.lane.b32.xlu0 %v2882_v63, %s8691_s15  ;;  %v1813_v35 = vrot.slane %v9354_v43, 2  ;;  %v1051_v63 = vpop.f32.mrb[33].mxu1 }
 0x16f   : > { %v1052_v22 = vpop.f32.mrb[34].mxu1 }
 0x170   : > { %v1054_v9 = vpop.f32.mrb[35].mxu1  ;;  %v1053_v45 = vadd.f32 %v8919_v16, %v1052_v22  ;;  %v2449_v22 = vrot.slane %v9354_v43, 7 }
 0x172   : > { %2715 = vrot.lane.b32.xlu1 %v2074_v23, %s8692_s18  ;;  %3131 = vrot.lane.b32.xlu0 %v9326_v31, %s8692_s18  ;;  %v1691_v23 = vsel %vm1668_vm2, %v1688_v56, %v13990_v36  ;;  %v9368_v56 = vshrl.u32 %v9079_v32, 16 }
 0x174   : > { %v1812_v15 = vrot.slane %v9368_v56, 1  ;;  %v13986_v46 = vrot.slane %v9368_v56, 7 }
 0x176   : > { %1738 = vrot.lane.b32.xlu1 %v1675_v55, %s8690_s25  ;;  %2243 = vrot.lane.b32.xlu0 %v9079_v32, %s8690_s25  ;;  %v1392_v55 = vor.u32 %v9242_v0, %v1388_v27  ;;  %v9404_v63 = vor.u32 %v1813_v35, %v1812_v15  ;;  %v2076_v48 = vor.u32 %v13986_v46, %v9354_v43  ;;  %v1232_v27 = vmax.f32 %v1050_v30, 0.0 }
 0x177   : > { %v1233_v15 = vmax.f32 %v1053_v45, 0.0  ;;  %v2448_v46 = vrot.slane %v9368_v56, 6  ;;  %v2100_v30 = vor.u32 %v13987_v5, %v9382_v34  ;;  %v2848_v45 = vrot.slane %v9207_v51, 5 }
 0x178   : > { %v1815_v35 = vsel %vm1800_vm5, %v9257_v18, %v9404_v63  ;;  %v2077_v16 = vsel %vm2067_vm3, %v2072_v50, %v2076_v48  ;;  %v2849_v18 = vrot.slane %v9197_v6, 6  ;;  %v9461_v0 = vshrl.u32 %v9165_v4, 16 }
 0x179   : > { %v9439_v50 = vor.u32 %v2449_v22, %v2448_v46  ;;  %v9447_v51 = vsel %vm2067_vm3, %v2096_v52, %v2100_v30  ;;  %v9455_v46 = vshll.u32 %v9165_v4, 16  ;;  %v2883_v52 = vrot.slane %v9392_v12, 5 }
 0x17a   : > { %1754 = vrot.lane.b32.xlu1 %v1691_v23, %s8690_s25  ;;  %2259 = vrot.lane.b32.xlu0 %v9086_v44, %s8690_s25  ;;  %v13988_v23 = vrot.slane %v9382_v34, 1  ;;  %14268 = vst [vmem:[#allocation27_spill] sm:$0xff] %v9447_v51  ;;  %v2850_v6 = vor.u32 %v2849_v18, %v2848_v45  ;;  %v2480_v30 = vrot.slane %v9392_v12, 6  ;;  %v2481_v22 = vrot.slane %v9382_v34, 7 }
 0x17b   : > { %v2887_v45 = vrot.slane %v9461_v0, 5  ;;  %v2888_v18 = vrot.slane %v9455_v46, 6 }
 0x17c   : > { %v1397_v9 = vsel %vm1305_vm1, %v1392_v55, %v13988_v23  ;;  %v9431_v55 = vpack.c.bf16 %v1233_v15, %v1232_v27  ;;  %v13993_v23 = vrot.slane %v9133_v47, 1 }
 0x17d   : > { %v2889_v5 = vor.u32 %v2888_v18, %v2887_v45 }
 0x17e   : > { %2643 = vrot.lane.b32.xlu1 %v9365_v33, %s8690_s25  ;;  %3047 = vrot.lane.b32.xlu0 %v9375_v61, %s8690_s25  ;;  %14267 = vst [vmem:[#allocation26_spill] sm:$0xff] %v9431_v55  ;;  %v13997_v61 = vrot.slane %v9133_v47, 6 }
 0x182   : > { %1573 = vrot.lane.b32.xlu1 %v1333_v62, %s8691_s15  ;;  %2310 = vrot.lane.b32.xlu0 %v1333_v62, %s8692_s18  ;;  %v9421_v62 = vor.u32 %v1845_v20, %v1844_v24  ;;  %v2851_v20 = vrot.slane %v9368_v56, 5  ;;  %v2852_v24 = vrot.slane %v9354_v43, 6 }
 0x184   : > { %v1847_v48 = vsel %vm1800_vm5, %v9275_v2, %v9421_v62  ;;  %v9449_v27 = vor.u32 %v2852_v24, %v2851_v20  ;;  %v2451_v2 = vsel %vm2440_vm7, %v9303_v11, %v9439_v50  ;;  %v9479_v20 = vshrl.u32 %v9245_v54, 16 }
 0x185   : > { %v9481_v24 = vor.u32 %v2481_v22, %v2480_v30 }
 0x186   : > { %1589 = vrot.lane.b32.xlu1 %v1397_v9, %s8691_s15  ;;  %2326 = vrot.lane.b32.xlu0 %v1397_v9, %s8692_s18  ;;  %v2884_v9 = vrot.slane %v9382_v34, 6  ;;  %v2854_v15 = vsel %vm2847_vm6, %v2850_v6, %v9449_v27  ;;  %v2485_v6 = vrot.slane %v9455_v46, 7  ;;  %v2488_v18 = vrot.slane %v9479_v20, 6 }
 0x187   : > { %14270 = vst [vmem:[#allocation29_spill] sm:$0xff] %v9481_v24 }
 0x188   : > { %v9474_v11 = vor.u32 %v2884_v9, %v2883_v52  ;;  %v2891_v52 = vrot.slane %v9479_v20, 5 }
 0x18a   : > { %1936 = vrot.lane.b32.xlu1 %v1815_v35, %s8692_s18  ;;  %2177 = vrot.lane.b32.xlu0 %v2077_v16, %s8691_s15  ;;  %v9468_v35 = vshll.u32 %v9245_v54, 16  ;;  %14269 = vst [vmem:[#allocation28_spill] sm:$0xff] %v9474_v11  ;;  %v9495_v30 = vsel %vm2847_vm6, %v9474_v11, %v2889_v5 }
 0x18b   : > { %14271 = vst [vmem:[#allocation30_spill] sm:$0xff] %v9495_v30  ;;  %v1849_v30 = vrot.slane %v9455_v46, 2 }
 0x18c   : > { %v2892_v9 = vrot.slane %v9468_v35, 6 }
 0x18e   : > { %1952 = vrot.lane.b32.xlu1 %v1847_v48, %s8692_s18  ;;  %2193 = vrot.lane.b32.xlu0 %v9447_v51, %s8691_s15  ;;  %v2484_v48 = vrot.slane %v9461_v0, 6  ;;  %v2893_v45 = vor.u32 %v2892_v9, %v2891_v52 }
 0x190   : > { %v2486_v19 = vor.u32 %v2485_v6, %v2484_v48  ;;  %v2489_v48 = vrot.slane %v9468_v35, 7  ;;  %v9513_v36 = vsel %vm2847_vm6, %v2889_v5, %v2893_v45  ;;  %v13996_v5 = vrot.slane %v9133_v47, 7 }
 0x191   : > { %14273 = vst [vmem:[#allocation32_spill] sm:$0xff] %v9513_v36  ;;  %v9535_v36 = vshll.u32 %v9133_v47, 16 }
 0x192   : > { %2574 = vrot.lane.b32.xlu1 %v2451_v2, %s8691_s15  ;;  %2979 = vrot.lane.b32.xlu0 %v2854_v15, %s8691_s15  ;;  %v9491_v15 = vshll.u32 %v9309_v13, 16  ;;  %v9499_v22 = vsel %vm2440_vm7, %v9481_v24, %v2486_v19  ;;  %v2490_v58 = vor.u32 %v2489_v48, %v2488_v18  ;;  %v14275_v18 = vrot.slane %v9165_v4, 1 }
 0x193   : > { %14272 = vst [vmem:[#allocation31_spill] sm:$0xff] %v9499_v22  ;;  %v14276_v48 = vrot.slane %v9086_v44, 1 }
 0x194   : > { %v2896_v9 = vrot.slane %v9491_v15, 6  ;;  %v9521_v25 = vsel %vm2440_vm7, %v2486_v19, %v2490_v58 }
 0x195   : > { %14274 = vst [vmem:[#allocation33_spill] sm:$0xff] %v9521_v25  ;;  %v14007_v25 = vrot.slane %v9455_v46, 1 }
 0x196   : > { %2717 = vrot.lane.b32.xlu1 %v2077_v16, %s8692_s18  ;;  %3117 = vrot.lane.b32.xlu0 %v2451_v2, %s8692_s18  ;;  %v9504_v16 = vshrl.u32 %v9309_v13, 16  ;;  %v1677_v2 = vsel %vm1668_vm2, %v1674_v41, %v13993_v23  ;;  %v2493_v23 = vrot.slane %v9491_v15, 7 }
 0x198   : > { %v2895_v52 = vrot.slane %v9504_v16, 5  ;;  %v2492_v41 = vrot.slane %v9504_v16, 6 }
 0x19a   : > { %1740 = vrot.lane.b32.xlu1 %v1677_v2, %s8690_s25  ;;  %2245 = vrot.lane.b32.xlu0 %v9133_v47, %s8690_s25  ;;  %v9526_v6 = vor.u32 %v2896_v9, %v2895_v52  ;;  %v1693_v2 = vsel %vm1668_vm2, %v14276_v48, %v14275_v18  ;;  %v9537_v19 = vor.u32 %v2493_v23, %v2492_v41  ;;  %v14280_v23 = vrot.slane %v9079_v32, 7 }
 0x19b   : > { %v14281_v48 = vrot.slane %v9079_v32, 6 }
 0x19c   : > { %v9544_v52 = vsel %vm2847_vm6, %v2893_v45, %v9526_v6  ;;  %v9548_v9 = vsel %vm2440_vm7, %v2490_v58, %v9537_v19  ;;  %v9550_v18 = vpop.permute.xlu0 %2253  ;;  %v9557_v41 = vsel %vm1999_vm4, %v14280_v23, %v13996_v5 }
 0x19d   : > { %14277 = vst [vmem:[#allocation34_spill] sm:$0xff] %v9544_v52  ;;  %14278 = vst [vmem:[#allocation35_spill] sm:$0xff] %v9548_v9  ;;  %v9564_v45 = vsel %vm2374_vm0, %v14281_v48, %v13997_v61  ;;  %v14002_v9 = vrot.slane %v9535_v36, 1  ;;  %v9571_v52 = vshrl.u32 %v9133_v47, 16  ;;  %v14285_v48 = vrot.slane %v9382_v34, 1 }
 0x19e   : > { %1756 = vrot.lane.b32.xlu1 %v1693_v2, %s8690_s25  ;;  %2261 = vrot.lane.b32.xlu0 %v9165_v4, %s8690_s25  ;;  %14279 = vst [vmem:[#allocation36_spill] sm:$0xff] %v9550_v18  ;;  %14282 = vst [vmem:[#allocation37_spill] sm:$0xff] %v9564_v45  ;;  %v14283_v2 = vrot.slane %v9354_v43, 1 }
 0x19f   : > { %v1400_v43 = vor.u32 %v9392_v12, %v14285_v48  ;;  %v1816_v51 = vrot.slane %v9571_v52, 1  ;;  %v1848_v48 = vrot.slane %v9461_v0, 1  ;;  %v2855_v31 = vrot.slane %v9571_v52, 5 }
 0x1a0   : > { %v1336_v58 = vor.u32 %v9368_v56, %v14283_v2  ;;  %v1817_v2 = vrot.slane %v9535_v36, 2 }
 0x1a1   : > { %v9614_v24 = vor.u32 %v1849_v30, %v1848_v48  ;;  %v2856_v30 = vrot.slane %v9535_v36, 6 }
 0x1a2   : > { %2645 = vrot.lane.b32.xlu1 %v9557_v41, %s8690_s25  ;;  %3049 = vrot.lane.b32.xlu0 %v9564_v45, %s8690_s25  ;;  %v1341_v61 = vsel %vm1305_vm1, %v1336_v58, %v14002_v9  ;;  %v14006_v45 = vrot.slane %v9571_v52, 7  ;;  %v14009_v58 = vrot.slane %v9461_v0, 7  ;;  %v1405_v9 = vsel %vm1305_vm1, %v1400_v43, %v14007_v25 }
 0x1a3   : > { %v9603_v1 = vor.u32 %v1817_v2, %v1816_v51  ;;  %v2452_v51 = vrot.slane %v9571_v52, 6  ;;  %v2453_v2 = vrot.slane %v9535_v36, 7  ;;  %v9645_v8 = vor.u32 %v2856_v30, %v2855_v31 }
 0x1a4   : > { %v9577_v23 = vpop.permute.xlu0 %2255  ;;  %v9579_v5 = vpop.permute.xlu1 %2239  ;;  %v2103_v43 = vor.u32 %v14009_v58, %v9455_v46 }
 0x1a5   : > { %14284 = vst [vmem:[#allocation38_spill] sm:$0xff] %v9577_v23  ;;  %v14302_v23 = vrot.slane %v9165_v4, 1  ;;  %v2000_v4 = vrot.slane %v8935_v37, 7 }
 0x1a6   : > { %1575 = vrot.lane.b32.xlu1 %v1341_v61, %s8691_s15  ;;  %2312 = vrot.lane.b32.xlu0 %v1341_v61, %s8692_s18  ;;  %v2079_v61 = vor.u32 %v14006_v45, %v9535_v36  ;;  %v1819_v45 = vsel %vm1800_vm5, %v9404_v63, %v9603_v1  ;;  %v1851_v63 = vsel %vm1800_vm5, %v9421_v62, %v9614_v24 }
 0x1a8   : > { %v9593_v22 = vpop.permute.xlu0 %3059  ;;  %v9595_v34 = vpop.permute.xlu1 %1734 }
 0x1a9   : > { %14286 = vst [vmem:[#allocation39_spill] sm:$0xff] %v9593_v22 }
 0x1aa   : > { %1591 = vrot.lane.b32.xlu1 %v1405_v9, %s8691_s15  ;;  %2328 = vrot.lane.b32.xlu0 %v1405_v9, %s8692_s18  ;;  %v14288_v9 = vrot.slane %v9368_v56, 7  ;;  %v14291_v56 = vrot.slane %v9392_v12, 7 }
 0x1ac   : > { %v9610_v22 = vpop.permute.xlu1 %1750  ;;  %v9612_v21 = vpop.permute.xlu0 %1569  ;;  %v2080_v25 = vsel %vm2067_vm3, %v14288_v9, %v2079_v61  ;;  %v9641_v61 = vsel %vm2067_vm3, %v14291_v56, %v2103_v43  ;;  %v9643_v9 = vor.u32 %v2453_v2, %v2452_v51 }
 0x1ad   : > { %14287 = vst [vmem:[#allocation40_spill] sm:$0xff] %v9610_v22  ;;  %14292 = vst [vmem:[#allocation43_spill] sm:$0xff] %v9641_v61 }
 0x1ae   : > { %1938 = vrot.lane.b32.xlu1 %v1819_v45, %s8692_s18  ;;  %2179 = vrot.lane.b32.xlu0 %v2080_v25, %s8691_s15  ;;  %v1057_v45 = vpop.f32.mrb[36].mxu1  ;;  %v2455_v30 = vsel %vm2440_vm7, %v9439_v50, %v9643_v9  ;;  %v9679_v50 = vshll.u32 %v9344_v10, 16 }
 0x1af   : > { %v1059_v62 = vpop.f32.mrb[37].mxu1 }
 0x1b0   : > { %v9631_v48 = vpop.permute.xlu1 %2655  ;;  %v9633_v58 = vpop.permute.xlu0 %2322 }
 0x1b1   : > { %14289 = vst [vmem:[#allocation41_spill] sm:$0xff] %v9631_v48  ;;  %14290 = vst [vmem:[#allocation42_spill] sm:$0xff] %v9633_v58  ;;  %v9653_v48 = vld [vmem:[%s13965_s2] ss:$0 sm:$0xff]  ;;  %v1060_v43 = vpop.f32.mrb[38].mxu1 }
 0x1b2   : > { %1954 = vrot.lane.b32.xlu1 %v1851_v63, %s8692_s18  ;;  %2195 = vrot.lane.b32.xlu0 %v9641_v61, %s8691_s15  ;;  %v1058_v12 = vadd.f32 %v9653_v48, %v1057_v45  ;;  %v1061_v2 = vadd.f32 %v9653_v48, %v1060_v43  ;;  %v2858_v63 = vsel %vm2847_vm6, %v9449_v27, %v9645_v8  ;;  %v1062_v61 = vpop.f32.mrb[39].mxu1  ;;  %v14016_v43 = vrot.slane %v9168_v49, 1 }
 0x1b4   : > { %v9656_v56 = vpop.permute.xlu1 %1585  ;;  %v9658_v51 = vpop.permute.xlu0 %2173  ;;  %v1234_v31 = vmax.f32 %v1058_v12, 0.0  ;;  %v1235_v45 = vmax.f32 %v1061_v2, 0.0  ;;  %v9686_v2 = vshrl.u32 %v9344_v10, 16 }
 0x1b5   : > { %14293 = vst [vmem:[#allocation44_spill] sm:$0xff] %v9656_v56 }
 0x1b6   : > { %2576 = vrot.lane.b32.xlu1 %v2455_v30, %s8691_s15  ;;  %2981 = vrot.lane.b32.xlu0 %v2858_v63, %s8691_s15  ;;  %v9673_v12 = vpack.c.bf16 %v1235_v45, %v1234_v31  ;;  %v14298_v31 = vrot.slane %v9133_v47, 1  ;;  %v1065_v45 = vpop.f32.mrb[40].mxu1  ;;  %v2899_v11 = vrot.slane %v9686_v2, 5  ;;  %v2496_v22 = vrot.slane %v9686_v2, 6 }
 0x1b8   : > { %v9669_v62 = vpop.permute.xlu1 %1932  ;;  %v9671_v28 = vpop.permute.xlu0 %2189  ;;  %14295 = vst [vmem:[#allocation46_spill] sm:$0xff] %v9673_v12  ;;  %v1679_v63 = vsel %vm1668_vm2, %v14298_v31, %v14016_v43  ;;  %v2497_v31 = vrot.slane %v9679_v50, 7 }
 0x1b9   : > { %14294 = vst [vmem:[#allocation45_spill] sm:$0xff] %v9671_v28  ;;  %v9717_v28 = vshll.u32 %v9168_v49, 16 }
 0x1ba   : > { %2719 = vrot.lane.b32.xlu1 %v2080_v25, %s8692_s18  ;;  %3119 = vrot.lane.b32.xlu0 %v2455_v30, %s8692_s18  ;;  %v1066_v30 = vadd.f32 %v9653_v48, %v1065_v45 }
 0x1bc   : > { %v9681_v27 = vpop.permute.xlu1 %1948  ;;  %v9683_v61 = vpop.permute.xlu0 %2991  ;;  %v1236_v60 = vmax.f32 %v1066_v30, 0.0 }
 0x1bd   : > { %14296 = vst [vmem:[#allocation47_spill] sm:$0xff] %v9681_v27  ;;  %14297 = vst [vmem:[#allocation48_spill] sm:$0xff] %v9683_v61  ;;  %v1067_v61 = vpop.f32.mrb[41].mxu1  ;;  %v2900_v27 = vrot.slane %v9679_v50, 6 }
 0x1be   : > { %1742 = vrot.lane.b32.xlu1 %v1679_v63, %s8690_s25  ;;  %2247 = vrot.lane.b32.xlu0 %v9168_v49, %s8690_s25  ;;  %v1068_v44 = vpop.f32.mrb[42].mxu1  ;;  %v14023_v63 = vrot.slane %v9168_v49, 7  ;;  %v14301_v61 = vrot.slane %v9245_v54, 1 }
 0x1bf   : > { %v1069_v56 = vadd.f32 %v9653_v48, %v1068_v44  ;;  %v9708_v45 = vor.u32 %v2900_v27, %v2899_v11 }
 0x1c0   : > { %v9702_v43 = vpop.permute.xlu1 %2586  ;;  %v9704_v25 = vpop.permute.xlu0 %3129  ;;  %v1695_v40 = vsel %vm1668_vm2, %v14302_v23, %v14301_v61  ;;  %v9759_v61 = vshrl.u32 %v9168_v49, 16 }
 0x1c1   : > { %14299 = vst [vmem:[#allocation49_spill] sm:$0xff] %v9702_v43  ;;  %14300 = vst [vmem:[#allocation50_spill] sm:$0xff] %v9704_v25  ;;  %v1070_v43 = vpop.f32.mrb[43].mxu1  ;;  %v9719_v25 = vor.u32 %v2497_v31, %v2496_v22  ;;  %v1237_v44 = vmax.f32 %v1069_v56, 0.0  ;;  %v9727_v11 = vsel %vm2847_vm6, %v9526_v6, %v9708_v45  ;;  %v14307_v6 = vrot.slane %v9133_v47, 7 }
 0x1c2   : > { %1758 = vrot.lane.b32.xlu1 %v1695_v40, %s8690_s25  ;;  %2263 = vrot.lane.b32.xlu0 %v9245_v54, %s8690_s25  ;;  %14303 = vst [vmem:[#allocation51_spill] sm:$0xff] %v9727_v11  ;;  %v14305_v40 = vrot.slane %v9535_v36, 1  ;;  %v14028_v36 = vrot.slane %v9717_v28, 1  ;;  %v1073_v11 = vpop.f32.mrb[44].mxu1 }
 0x1c3   : > { %v9732_v23 = vsel %vm2440_vm7, %v9537_v19, %v9719_v25  ;;  %v9741_v30 = vpack.c.bf16 %v1237_v44, %v1236_v60  ;;  %v9748_v56 = vsel %vm1999_vm4, %v14307_v6, %v14023_v63  ;;  %v14309_v19 = vrot.slane %v9133_v47, 6 }
 0x1c4   : > { %14304 = vst [vmem:[#allocation52_spill] sm:$0xff] %v9732_v23  ;;  %v9734_v27 = vpop.permute.xlu1 %1736  ;;  %v9736_v22 = vpop.permute.xlu0 %2241  ;;  %v1344_v43 = vor.u32 %v9571_v52, %v14305_v40  ;;  %14308 = vst [vmem:[#allocation54_spill] sm:$0xff] %v9748_v56  ;;  %v14313_v40 = vrot.slane %v9455_v46, 1  ;;  %v1820_v23 = vrot.slane %v9759_v61, 1  ;;  %v1074_v46 = vadd.f32 %v9653_v48, %v1073_v11 }
 0x1c5   : > { %14306 = vst [vmem:[#allocation53_spill] sm:$0xff] %v9741_v30  ;;  %v9755_v31 = vsel %vm2374_vm0, %v14309_v19, %v14022_v14  ;;  %v1821_v19 = vrot.slane %v9717_v28, 2  ;;  %v14317_v47 = vrot.slane %v9468_v35, 1  ;;  %v14318_v30 = vrot.slane %v9759_v61, 7 }
 0x1c6   : > { %14310 = vst [vmem:[#allocation55_spill] sm:$0xff] %v9755_v31  ;;  %2647 = vrot.lane.b32.xlu1 %v9748_v56, %s8690_s25  ;;  %3051 = vrot.lane.b32.xlu0 %v9755_v31, %s8690_s25  ;;  %v1408_v6 = vor.u32 %v9461_v0, %v14313_v40  ;;  %v1349_v14 = vsel %vm1305_vm1, %v1344_v43, %v14028_v36  ;;  %v1075_v40 = vpop.f32.mrb[45].mxu1  ;;  %v1853_v43 = vrot.slane %v9468_v35, 2  ;;  %v14314_v31 = vrot.slane %v8953_v59, 7 }
 0x1c7   : > { %v1076_v63 = vpop.f32.mrb[46].mxu1  ;;  %v9799_v56 = vor.u32 %v1821_v19, %v1820_v23 }
 0x1c8   : > { %v9765_v60 = vpop.permute.xlu1 %1752  ;;  %v9767_v44 = vpop.permute.xlu0 %2257  ;;  %v1077_v11 = vadd.f32 %v9653_v48, %v1076_v63  ;;  %v1413_v36 = vsel %vm1305_vm1, %v1408_v6, %v14317_v47  ;;  %v14319_v47 = vrot.slane %v9479_v20, 7 }
 0x1c9   : > { %14311 = vst [vmem:[#allocation56_spill] sm:$0xff] %v9765_v60  ;;  %14312 = vst [vmem:[#allocation57_spill] sm:$0xff] %v9767_v44  ;;  %v1852_v60 = vrot.slane %v9479_v20, 1  ;;  %v2002_v44 = vsel %vm1999_vm4, %v2000_v4, %v14314_v31  ;;  %v2082_v4 = vor.u32 %v14318_v30, %v9717_v28  ;;  %v1078_v31 = vpop.f32.mrb[47].mxu1  ;;  %v2457_v30 = vrot.slane %v9717_v28, 7 }
 0x1ca   : > { %1577 = vrot.lane.b32.xlu1 %v1349_v14, %s8691_s15  ;;  %2314 = vrot.lane.b32.xlu0 %v1349_v14, %s8692_s18  ;;  %v1238_v14 = vmax.f32 %v1074_v46, 0.0  ;;  %v3419_v40 = vsel %vm3183_vm8, %v2002_v44, %v9658_v51  ;;  %v1239_v63 = vmax.f32 %v1077_v11, 0.0  ;;  %v3185_v51 = vsel %vm3183_vm8, %v8935_v37, %v9612_v21 }
 0x1cb   : > { %v9809_v44 = vor.u32 %v1853_v43, %v1852_v60  ;;  %v2106_v23 = vor.u32 %v14319_v47, %v9468_v35  ;;  %v3517_v46 = vsel %vm3250_vm9, %v3419_v40, %v9579_v5  ;;  %v2859_v11 = vrot.slane %v9759_v61, 5 }
 0x1cc   : > { %v9789_v58 = vpop.permute.xlu1 %2641  ;;  %v9791_v18 = vpop.permute.xlu0 %3061  ;;  %v9821_v31 = vpack.c.bf16 %v1239_v63, %v1238_v14  ;;  %v1823_v37 = vsel %vm1800_vm5, %v9603_v1, %v9799_v56  ;;  %v14321_v21 = vrot.slane %v9571_v52, 7  ;;  %v2860_v47 = vrot.slane %v9717_v28, 6 }
 0x1cd   : > { %14315 = vst [vmem:[#allocation58_spill] sm:$0xff] %v9789_v58  ;;  %14316 = vst [vmem:[#allocation59_spill] sm:$0xff] %v9791_v18  ;;  %v3252_v5 = vsel %vm3250_vm9, %v3185_v51, %v9595_v34  ;;  %v1855_v40 = vsel %vm1800_vm5, %v9614_v24, %v9809_v44 }
 0x1ce   : > { %1593 = vrot.lane.b32.xlu1 %v1413_v36, %s8691_s15  ;;  %2330 = vrot.lane.b32.xlu0 %v1413_v36, %s8692_s18  ;;  %v2456_v36 = vrot.slane %v9759_v61, 6  ;;  %14320 = vst [vmem:[#allocation60_spill] sm:$0xff] %v9821_v31  ;;  %v2083_v60 = vsel %vm2067_vm3, %v14321_v21, %v2082_v4  ;;  %v3319_v14 = vsel %vm3317_vm10, %v3252_v5, %v9669_v62  ;;  %v14323_v4 = vrot.slane %v9461_v0, 7  ;;  %v1081_v62 = vpop.f32.mrb[48].mxu1 }
 0x1cf   : > { %v9851_v51 = vor.u32 %v2860_v47, %v2859_v11 }
 0x1d0   : > { %v9815_v6 = vpop.permute.xlu1 %1571  ;;  %v2309_v19 = vpop.permute.xlu0 %2308  ;;  %v9847_v34 = vsel %vm2067_vm3, %v14323_v4, %v2106_v23  ;;  %v9849_v63 = vor.u32 %v2457_v30, %v2456_v36  ;;  %v14329_v4 = vrot.slane %v9168_v49, 1 }
 0x1d1   : > { %v3583_v43 = vsel %vm3317_vm10, %v3517_v46, %v2309_v19  ;;  %14324 = vst [vmem:[#allocation62_spill] sm:$0xff] %v9847_v34  ;;  %v1082_v19 = vadd.f32 %v9653_v48, %v1081_v62  ;;  %v1083_v46 = vpop.f32.mrb[49].mxu1  ;;  %v2862_v11 = vsel %vm2847_vm6, %v9645_v8, %v9851_v51 }
 0x1d2   : > { %1940 = vrot.lane.b32.xlu1 %v1823_v37, %s8692_s18  ;;  %2181 = vrot.lane.b32.xlu0 %v2083_v60, %s8691_s15  ;;  %v1084_v37 = vpop.f32.mrb[50].mxu1  ;;  %v2459_v36 = vsel %vm2440_vm7, %v9643_v9, %v9849_v63 }
 0x1d3   : > { %4504 = vmatprep.mubr.bf16.mxu1 %v3583_v43  ;;  %v1240_v23 = vmax.f32 %v1082_v19, 0.0  ;;  %v1085_v30 = vadd.f32 %v9653_v48, %v1084_v37  ;;  %v1086_v21 = vpop.f32.mrb[51].mxu1  ;;  %v14034_v19 = vrot.slane %v9309_v13, 1 }
 0x1d4   : > { %4505 = vmatmul.mubr.bf16.vlgmr.msra.gmra.mrb[108].mxu1 %v3319_v14  ;;  %v9837_v1 = vpop.permute.xlu1 %1587  ;;  %v9839_v52 = vpop.permute.xlu0 %2324 }
 0x1d5   : > { %14322 = vst [vmem:[#allocation61_spill] sm:$0xff] %v9837_v1  ;;  %v1241_v43 = vmax.f32 %v1085_v30, 0.0  ;;  %v1089_v46 = vpop.f32.mrb[52].mxu1  ;;  %v9895_v30 = vshll.u32 %v9431_v55, 16 }
 0x1d6   : > { %1956 = vrot.lane.b32.xlu1 %v1855_v40, %s8692_s18  ;;  %2197 = vrot.lane.b32.xlu0 %v9847_v34, %s8691_s15  ;;  %v14033_v40 = vrot.slane %v9209_v53, 1  ;;  %v1091_v37 = vpop.f32.mrb[53].mxu1 }
 0x1d7   : > { %v9874_v14 = vpack.c.bf16 %v1241_v43, %v1240_v23  ;;  %v9912_v23 = vshrl.u32 %v9431_v55, 16  ;;  %v2904_v37 = vrot.slane %v9895_v30, 6 }
 0x1d8   : > { %v9857_v24 = vpop.permute.xlu1 %1934  ;;  %v9859_v0 = vpop.permute.xlu0 %2175  ;;  %v1681_v62 = vsel %vm1668_vm2, %v14329_v4, %v14033_v40  ;;  %v9909_v40 = vshll.u32 %v9209_v53, 16 }
 0x1d9   : > { %14326 = vst [vmem:[#allocation64_spill] sm:$0xff] %v9874_v14  ;;  %v2500_v58 = vrot.slane %v9912_v23, 6 }
 0x1da   : > { %2578 = vrot.lane.b32.xlu1 %v2459_v36, %s8691_s15  ;;  %2983 = vrot.lane.b32.xlu0 %v2862_v11, %s8691_s15 }
 0x1dc   : > { %v9870_v47 = vpop.permute.xlu1 %1950  ;;  %v9872_v5 = vpop.permute.xlu0 %2191 }
 0x1dd   : > { %14325 = vst [vmem:[#allocation63_spill] sm:$0xff] %v9870_v47  ;;  %v9946_v47 = vshrl.u32 %v9209_v53, 16 }
 0x1de   : > { %2721 = vrot.lane.b32.xlu1 %v2083_v60, %s8692_s18  ;;  %3121 = vrot.lane.b32.xlu0 %v2459_v36, %s8692_s18  ;;  %v1090_v60 = vadd.f32 %v9653_v48, %v1089_v46  ;;  %v1092_v36 = vpop.f32.mrb[54].mxu1 }
 0x1df   : > { %v1093_v4 = vadd.f32 %v9653_v48, %v1092_v36  ;;  %v1094_v18 = vpop.f32.mrb[55].mxu1  ;;  %v14333_v36 = vrot.slane %v9209_v53, 7 }
 0x1e0   : > { %v9879_v9 = vpop.permute.xlu1 %2572  ;;  %v9881_v8 = vpop.permute.xlu0 %2993  ;;  %v1242_v43 = vmax.f32 %v1090_v60, 0.0 }
 0x1e1   : > { %14327 = vst [vmem:[#allocation65_spill] sm:$0xff] %v9879_v9  ;;  %14328 = vst [vmem:[#allocation66_spill] sm:$0xff] %v9881_v8  ;;  %v1243_v60 = vmax.f32 %v1093_v4, 0.0  ;;  %v2501_v9 = vrot.slane %v9895_v30, 7 }
 0x1e2   : > { %1744 = vrot.lane.b32.xlu1 %v1681_v62, %s8690_s25  ;;  %2249 = vrot.lane.b32.xlu0 %v9209_v53, %s8690_s25  ;;  %v14332_v62 = vrot.slane %v9245_v54, 1  ;;  %v14041_v54 = vrot.slane %v9909_v40, 1 }
 0x1e3   : > { %v9933_v4 = vpack.c.bf16 %v1243_v60, %v1242_v43  ;;  %v9954_v43 = vor.u32 %v2501_v9, %v2500_v58  ;;  %v1824_v9 = vrot.slane %v9946_v47, 1 }
 0x1e4   : > { %v9897_v11 = vpop.permute.xlu1 %2715  ;;  %v9899_v21 = vpop.permute.xlu0 %3131  ;;  %v1697_v46 = vsel %vm1668_vm2, %v14332_v62, %v14034_v19  ;;  %v2903_v19 = vrot.slane %v9912_v23, 5 }
 0x1e5   : > { %14330 = vst [vmem:[#allocation67_spill] sm:$0xff] %v9897_v11  ;;  %14331 = vst [vmem:[#allocation68_spill] sm:$0xff] %v9899_v21  ;;  %v14334_v21 = vrot.slane %v9168_v49, 7  ;;  %v9972_v58 = vsel %vm2440_vm7, %v9719_v25, %v9954_v43  ;;  %v1856_v25 = vrot.slane %v9504_v16, 1 }
 0x1e6   : > { %1760 = vrot.lane.b32.xlu1 %v1697_v46, %s8690_s25  ;;  %2265 = vrot.lane.b32.xlu0 %v9309_v13, %s8690_s25  ;;  %v14335_v46 = vrot.slane %v9717_v28, 1  ;;  %14336 = vst [vmem:[#allocation69_spill] sm:$0xff] %v9933_v4  ;;  %v9948_v28 = vor.u32 %v2904_v37, %v2903_v19  ;;  %14341 = vst [vmem:[#allocation72_spill] sm:$0xff] %v9954_v43  ;;  %v14345_v19 = vrot.slane %v9468_v35, 1  ;;  %v1097_v35 = vpop.f32.mrb[56].mxu1  ;;  %v1857_v43 = vrot.slane %v9491_v15, 2 }
 0x1e7   : > { %v9922_v62 = vsel %vm1999_vm4, %v14334_v21, %v14333_v36  ;;  %v14337_v21 = vrot.slane %v9209_v53, 6  ;;  %v14338_v36 = vrot.slane %v9168_v49, 6  ;;  %14346 = vst [vmem:[#allocation76_spill] sm:$0xff] %v9972_v58 }
 0x1e8   : > { %v9926_v8 = vpop.permute.xlu1 %1738  ;;  %v9928_v18 = vpop.permute.xlu0 %2243  ;;  %v1352_v11 = vor.u32 %v9759_v61, %v14335_v46  ;;  %14340 = vst [vmem:[#allocation71_spill] sm:$0xff] %v9948_v28  ;;  %v9959_v60 = vsel %vm2847_vm6, %v9708_v45, %v9948_v28  ;;  %v1416_v37 = vor.u32 %v9479_v20, %v14345_v19  ;;  %v1098_v19 = vadd.f32 %v9653_v48, %v1097_v35 }
 0x1e9   : > { %v9942_v34 = vsel %vm2374_vm0, %v14338_v36, %v14337_v21  ;;  %14342 = vst [vmem:[#allocation73_spill] sm:$0xff] %v9959_v60  ;;  %v1099_v36 = vpop.f32.mrb[57].mxu1 }
 0x1ea   : > { %14339 = vst [vmem:[#allocation70_spill] sm:$0xff] %v9942_v34  ;;  %2649 = vrot.lane.b32.xlu1 %v9922_v62, %s8690_s25  ;;  %3053 = vrot.lane.b32.xlu0 %v9942_v34, %s8690_s25  ;;  %v1357_v45 = vsel %vm1305_vm1, %v1352_v11, %v14041_v54  ;;  %v1825_v34 = vrot.slane %v9909_v40, 2  ;;  %v1100_v54 = vpop.f32.mrb[58].mxu1  ;;  %v1244_v28 = vmax.f32 %v1098_v19, 0.0  ;;  %v14349_v36 = vrot.slane %v9491_v15, 1 }
 0x1eb   : > { %v14350_v11 = vrot.slane %v9946_v47, 7 }
 0x1ec   : > { %v9961_v46 = vpop.permute.xlu1 %1754  ;;  %v9963_v21 = vpop.permute.xlu0 %2259  ;;  %v1421_v35 = vsel %vm1305_vm1, %v1416_v37, %v14349_v36  ;;  %v2863_v36 = vrot.slane %v9946_v47, 5 }
 0x1ed   : > { %14343 = vst [vmem:[#allocation74_spill] sm:$0xff] %v9961_v46  ;;  %14344 = vst [vmem:[#allocation75_spill] sm:$0xff] %v9963_v21  ;;  %v1101_v46 = vadd.f32 %v9653_v48, %v1100_v54  ;;  %v9997_v21 = vor.u32 %v1825_v34, %v1824_v9  ;;  %v2085_v1 = vor.u32 %v14350_v11, %v9909_v40  ;;  %v14351_v34 = vrot.slane %v9504_v16, 7 }
 0x1ee   : > { %1579 = vrot.lane.b32.xlu1 %v1357_v45, %s8691_s15  ;;  %2316 = vrot.lane.b32.xlu0 %v1357_v45, %s8692_s18  ;;  %v3422_v45 = vsel %vm3183_vm8, %v9216_v3, %v9859_v0  ;;  %v3187_v3 = vsel %vm3183_vm8, %v8953_v59, %v9815_v6  ;;  %v10007_v0 = vor.u32 %v1857_v43, %v1856_v25  ;;  %v2460_v9 = vrot.slane %v9946_v47, 6 }
 0x1ef   : > { %v1245_v54 = vmax.f32 %v1101_v46, 0.0  ;;  %v2109_v37 = vor.u32 %v14351_v34, %v9491_v15  ;;  %v3519_v11 = vsel %vm3250_vm9, %v3422_v45, %v9736_v22  ;;  %v2461_v46 = vrot.slane %v9909_v40, 7 }
 0x1f0   : > { %v9986_v58 = vpop.permute.xlu1 %2643  ;;  %v9988_v60 = vpop.permute.xlu0 %3047  ;;  %v1827_v6 = vsel %vm1800_vm5, %v9799_v56, %v9997_v21  ;;  %v14353_v43 = vrot.slane %v9759_v61, 7  ;;  %v3254_v22 = vsel %vm3250_vm9, %v3187_v3, %v9734_v27  ;;  %v14355_v45 = vrot.slane %v9479_v20, 7 }
 0x1f1   : > { %14347 = vst [vmem:[#allocation77_spill] sm:$0xff] %v9986_v58  ;;  %14348 = vst [vmem:[#allocation78_spill] sm:$0xff] %v9988_v60  ;;  %v1102_v58 = vpop.f32.mrb[59].mxu1  ;;  %v2864_v60 = vrot.slane %v9909_v40, 6  ;;  %v10142_v59 = vshrl.u32 %v9261_v57, 16 }
 0x1f2   : > { %1595 = vrot.lane.b32.xlu1 %v1421_v35, %s8691_s15  ;;  %2332 = vrot.lane.b32.xlu0 %v1421_v35, %s8692_s18  ;;  %v10019_v35 = vpack.c.bf16 %v1245_v54, %v1244_v28  ;;  %v2086_v25 = vsel %vm2067_vm3, %v14353_v43, %v2085_v1  ;;  %v3322_v28 = vsel %vm3317_vm10, %v3254_v22, %v9857_v24  ;;  %v1105_v3 = vpop.f32.mrb[60].mxu1 }
 0x1f3   : > { %v1859_v1 = vsel %vm1800_vm5, %v9809_v44, %v10007_v0  ;;  %v10045_v54 = vsel %vm2067_vm3, %v14355_v45, %v2109_v37  ;;  %v10049_v27 = vor.u32 %v2864_v60, %v2863_v36  ;;  %v1106_v24 = vadd.f32 %v9653_v48, %v1105_v3 }
 0x1f4   : > { %v10013_v19 = vpop.permute.xlu1 %1573  ;;  %v2311_v58 = vpop.permute.xlu0 %2310  ;;  %14352 = vst [vmem:[#allocation79_spill] sm:$0xff] %v10019_v35  ;;  %14356 = vst [vmem:[#allocation81_spill] sm:$0xff] %v10045_v54  ;;  %v14362_v45 = vrot.slane %v9209_v53, 1 }
 0x1f5   : > { %v3586_v34 = vsel %vm3317_vm10, %v3519_v11, %v2311_v58  ;;  %v10047_v58 = vor.u32 %v2461_v46, %v2460_v9  ;;  %v1107_v11 = vpop.f32.mrb[61].mxu1  ;;  %v1246_v37 = vmax.f32 %v1106_v24, 0.0  ;;  %v2866_v46 = vsel %vm2847_vm6, %v9851_v51, %v10049_v27 }
 0x1f6   : > { %1942 = vrot.lane.b32.xlu1 %v1827_v6, %s8692_s18  ;;  %2183 = vrot.lane.b32.xlu0 %v2086_v25, %s8691_s15  ;;  %v1108_v6 = vpop.f32.mrb[62].mxu1 }
 0x1f7   : > { %4512 = vmatprep.mubr.bf16.mxu1 %v3586_v34  ;;  %v1109_v9 = vadd.f32 %v9653_v48, %v1108_v6  ;;  %v2463_v60 = vsel %vm2440_vm7, %v9849_v63, %v10047_v58  ;;  %v1110_v36 = vpop.f32.mrb[63].mxu1  ;;  %v1682_v63 = vrot.slane %v9261_v57, 1 }
 0x1f8   : > { %4513 = vmatmul.mubr.bf16.gmra.mrb[112].mxu1 %v3322_v28  ;;  %v10035_v56 = vpop.permute.xlu1 %1589  ;;  %v10037_v61 = vpop.permute.xlu0 %2326  ;;  %v14365_v36 = vrot.slane %v8937_v38, 1 }
 0x1f9   : > { %14354 = vst [vmem:[#allocation80_spill] sm:$0xff] %v10035_v56  ;;  %v1247_v43 = vmax.f32 %v1109_v9, 0.0  ;;  %v1683_v3 = vsel %vm1668_vm2, %v14362_v45, %v1682_v63  ;;  %v1113_v24 = vpop.f32.mrb[64].mxu1  ;;  %v14043_v45 = vrot.slane %v9344_v10, 1  ;;  %v2087_v56 = vrot.slane %v10142_v59, 7 }
 0x1fa   : > { %1958 = vrot.lane.b32.xlu1 %v1859_v1, %s8692_s18  ;;  %2199 = vrot.lane.b32.xlu0 %v10045_v54, %s8691_s15  ;;  %v1115_v11 = vpop.f32.mrb[65].mxu1 }
 0x1fb   : > { %v10072_v28 = vpack.c.bf16 %v1247_v43, %v1246_v37  ;;  %v1116_v6 = vpop.f32.mrb[66].mxu1  ;;  %v1685_v43 = vsel %vm1668_vm2, %v1682_v63, %v14365_v36  ;;  %v2386_v11 = vrot.slane %v9261_v57, 6  ;;  %v14367_v63 = vrot.slane %v9309_v13, 1 }
 0x1fc   : > { %v10055_v44 = vpop.permute.xlu1 %1936  ;;  %v10057_v20 = vpop.permute.xlu0 %2177 }
 0x1fd   : > { %14359 = vst [vmem:[#allocation84_spill] sm:$0xff] %v10072_v28  ;;  %v1699_v36 = vsel %vm1668_vm2, %v14367_v63, %v14043_v45  ;;  %v14372_v63 = vrot.slane %v9209_v53, 7 }
 0x1fe   : > { %2580 = vrot.lane.b32.xlu1 %v2463_v60, %s8691_s15  ;;  %2985 = vrot.lane.b32.xlu0 %v2866_v46, %s8691_s15  ;;  %v1117_v46 = vadd.f32 %v9653_v48, %v1116_v6 }
 0x200   : > { %v10068_v34 = vpop.permute.xlu1 %1952  ;;  %v10070_v22 = vpop.permute.xlu0 %2193 }
 0x201   : > { %14357 = vst [vmem:[#allocation82_spill] sm:$0xff] %v10068_v34  ;;  %14358 = vst [vmem:[#allocation83_spill] sm:$0xff] %v10070_v22  ;;  %v14379_v22 = vmov 0  }
 0x202   : > { %2723 = vrot.lane.b32.xlu1 %v2086_v25, %s8692_s18  ;;  %3123 = vrot.lane.b32.xlu0 %v2463_v60, %s8692_s18  ;;  %v1114_v25 = vadd.f32 %v9653_v48, %v1113_v24  ;;  %v1249_v24 = vmax.f32 %v1117_v46, 0.0  ;;  %v2013_v46 = vrot.slane %v9261_v57, 7 }
 0x204   : > { %v10077_v1 = vpop.permute.xlu1 %2574  ;;  %v10079_v51 = vpop.permute.xlu0 %2979  ;;  %v1248_v60 = vmax.f32 %v1114_v25, 0.0  ;;  %v10131_v45 = vsel %vm1999_vm4, %v14372_v63, %v2013_v46 }
 0x205   : > { %14360 = vst [vmem:[#allocation85_spill] sm:$0xff] %v10077_v1  ;;  %14361 = vst [vmem:[#allocation86_spill] sm:$0xff] %v10079_v51 }
 0x206   : > { %1746 = vrot.lane.b32.xlu1 %v1683_v3, %s8690_s25  ;;  %2251 = vrot.lane.b32.xlu0 %v9261_v57, %s8690_s25  ;;  %v1118_v3 = vpop.f32.mrb[67].mxu1  ;;  %v10105_v6 = vpack.c.bf16 %v1249_v24, %v1248_v60  ;;  %v10122_v60 = vshll.u32 %v9261_v57, 16 }
 0x207   : > { %v1121_v51 = vpop.f32.mrb[68].mxu1 }
 0x208   : > { %v10088_v37 = vpop.permute.xlu1 %2717  ;;  %v10090_v9 = vpop.permute.xlu0 %3117  ;;  %14366 = vst [vmem:[#allocation89_spill] sm:$0xff] %v10105_v6  ;;  %v1122_v63 = vadd.f32 %v9653_v48, %v1121_v51  ;;  %v3425_v51 = vsel %vm3183_vm8, %v9365_v33, %v10057_v20  ;;  %v3189_v33 = vsel %vm3183_vm8, %v9016_v39, %v10013_v19  ;;  %v14380_v20 = vrot.slane %v9022_v42, 7 }
 0x209   : > { %14363 = vst [vmem:[#allocation87_spill] sm:$0xff] %v10088_v37  ;;  %14364 = vst [vmem:[#allocation88_spill] sm:$0xff] %v10090_v9  ;;  %v1123_v54 = vpop.f32.mrb[69].mxu1  ;;  %v14053_v39 = vrot.slane %v9679_v50, 1  ;;  %v3256_v42 = vsel %vm3250_vm9, %v3189_v33, %v9926_v8  ;;  %v1829_v33 = vrot.slane %v10122_v60, 2 }
 0x20a   : > { %1748 = vrot.lane.b32.xlu1 %v1685_v43, %s8690_s25  ;;  %2267 = vrot.lane.b32.xlu0 %v9344_v10, %s8690_s25  ;;  %v14368_v43 = vrot.slane %v9209_v53, 6  ;;  %v14378_v54 = vrot.slane %v8937_v38, 7 }
 0x20c   : > { %v10101_v37 = vpop.permute.xlu1 %1740  ;;  %v10103_v25 = vpop.permute.xlu0 %2245  ;;  %v10115_v3 = vsel %vm2374_vm0, %v14368_v43, %v2386_v11  ;;  %v14373_v43 = vrot.slane %v8937_v38, 6 }
 0x20d   : > { %14369 = vst [vmem:[#allocation90_spill] sm:$0xff] %v10115_v3 }
 0x20e   : > { %1762 = vrot.lane.b32.xlu1 %v1699_v36, %s8690_s25  ;;  %3055 = vrot.lane.b32.xlu0 %v10115_v3, %s8690_s25  ;;  %v10136_v36 = vsel %vm2374_vm0, %v2386_v11, %v14373_v43  ;;  %v14375_v3 = vrot.slane %v9909_v40, 1  ;;  %v8609_v11 = vld [vmem:[%s13966_s3 + $0x80] sm:$0xff]   ;;  %v1364_v40 = vrot.slane %v10122_v60, 1 }
 0x20f   : > { %14374 = vst [vmem:[#allocation93_spill] sm:$0xff] %v10136_v36  ;;  %4769 = vmatpush1.bf16.msra.mxu1 %v8609_v11 }
 0x210   : > { %v10124_v24 = vpop.permute.xlu1 %1756  ;;  %v10126_v1 = vpop.permute.xlu0 %2261  ;;  %v1360_v9 = vor.u32 %v9946_v47, %v14375_v3  ;;  %4770 = vmatprep.subr.bf16.mxu1 %v14379_v22 }
 0x211   : > { %14370 = vst [vmem:[#allocation91_spill] sm:$0xff] %v10124_v24  ;;  %14371 = vst [vmem:[#allocation92_spill] sm:$0xff] %v10126_v1  ;;  %v1124_v3 = vpop.f32.mrb[70].mxu1  ;;  %v1250_v24 = vmax.f32 %v1122_v63, 0.0 }
 0x212   : > { %2651 = vrot.lane.b32.xlu1 %v10131_v45, %s8690_s25  ;;  %3057 = vrot.lane.b32.xlu0 %v10136_v36, %s8690_s25  ;;  %v1125_v1 = vadd.f32 %v9653_v48, %v1124_v3  ;;  %v10164_v36 = vsel %vm1999_vm4, %v2013_v46, %v14378_v54  ;;  %v1365_v34 = vsel %vm1305_vm1, %v1360_v9, %v1364_v40 }
 0x213   : > { %v2091_v46 = vor.u32 %v14380_v20, %v8981_v17  ;;  %v3521_v3 = vsel %vm3250_vm9, %v3425_v51, %v9928_v18  ;;  %v3325_v18 = vsel %vm3317_vm10, %v3256_v42, %v10055_v44  ;;  %v1828_v44 = vrot.slane %v10142_v59, 1 }
 0x214   : > { %v10153_v43 = vpop.permute.xlu1 %2645  ;;  %v10155_v13 = vpop.permute.xlu0 %3049  ;;  %v1251_v63 = vmax.f32 %v1125_v1, 0.0  ;;  %v1368_v42 = vor.u32 %v10142_v59, %v1364_v40  ;;  %v8610_v40 = vld [vmem:[%s13966_s3 + $0x88] sm:$0xff]  }
 0x215   : > { %14376 = vst [vmem:[#allocation94_spill] sm:$0xff] %v10153_v43  ;;  %14377 = vst [vmem:[#allocation95_spill] sm:$0xff] %v10155_v13  ;;  %v1126_v43 = vpop.f32.mrb[71].mxu1  ;;  %v2092_v54 = vsel %vm2067_vm3, %v2087_v56, %v2091_v46  ;;  %v14382_v13 = vrot.slane %v9491_v15, 1  ;;  %v2088_v15 = vor.u32 %v2087_v56, %v10122_v60  ;;  %4771 = vmatpush1.bf16.msra.mxu1 %v8610_v40 }
 0x216   : > { %2653 = vrot.lane.b32.xlu1 %v10164_v36, %s8690_s25  ;;  %2318 = vrot.lane.b32.xlu0 %v1365_v34, %s8692_s18  ;;  %v10182_v43 = vpack.c.bf16 %v1251_v63, %v1250_v24 }
 0x217   : > { %v1424_v19 = vor.u32 %v9504_v16, %v14382_v13  ;;  %4772 = vmatprep.subr.bf16.mxu1 %v14379_v22 }
 0x218   : > { %v10178_v9 = vpop.permute.xlu1 %1575  ;;  %v2313_v11 = vpop.permute.xlu0 %2312  ;;  %14381 = vst [vmem:[#allocation96_spill] sm:$0xff] %v10182_v43 }
 0x219   : > { %v3589_v1 = vsel %vm3317_vm10, %v3521_v3, %v2313_v11  ;;  %v1429_v13 = vsel %vm1305_vm1, %v1424_v19, %v14053_v39  ;;  %v2464_v39 = vrot.slane %v10142_v59, 6 }
 0x21a   : > { %1581 = vrot.lane.b32.xlu1 %v1365_v34, %s8691_s15  ;;  %2187 = vrot.lane.b32.xlu0 %v2092_v54, %s8691_s15  ;;  %v1129_v34 = vpop.f32.mrb[72].mxu1 }
 0x21b   : > { %4520 = vmatprep.mubr.bf16.mxu1 %v3589_v1  ;;  %v1130_v8 = vadd.f32 %v9653_v48, %v1129_v34  ;;  %v1131_v63 = vpop.f32.mrb[73].mxu1  ;;  %v14383_v1 = vrot.slane %v9946_v47, 7 }
 0x21c   : > { %4521 = vmatmul.mubr.bf16.gmra.mrb[116].mxu1 %v3325_v18  ;;  %v10196_v24 = vpop.permute.xlu1 %1591  ;;  %v10198_v51 = vpop.permute.xlu0 %2328  ;;  %v14052_v18 = vrot.slane %v9686_v2, 7  ;;  %v1830_v63 = vor.u32 %v1829_v33, %v1828_v44  ;;  %v2867_v33 = vrot.slane %v10142_v59, 5 }
 0x21d   : > { %v1132_v20 = vpop.f32.mrb[74].mxu1  ;;  %v1252_v3 = vmax.f32 %v1130_v8, 0.0  ;;  %v10217_v19 = vsel %vm2067_vm3, %v14383_v1, %v2088_v15 }
 0x21e   : > { %1597 = vrot.lane.b32.xlu1 %v1429_v13, %s8691_s15  ;;  %2334 = vrot.lane.b32.xlu0 %v1429_v13, %s8692_s18  ;;  %v1133_v56 = vadd.f32 %v9653_v48, %v1132_v20  ;;  %v1134_v13 = vpop.f32.mrb[75].mxu1  ;;  %v1831_v15 = vsel %vm1800_vm5, %v9997_v21, %v1830_v63  ;;  %v2112_v44 = vor.u32 %v14052_v18, %v9679_v50 }
 0x21f   : > { %v1860_v13 = vrot.slane %v9686_v2, 1 }
 0x220   : > { %v10209_v46 = vpop.permute.xlu1 %1938  ;;  %v10211_v11 = vpop.permute.xlu0 %2179  ;;  %v1253_v34 = vmax.f32 %v1133_v56, 0.0 }
 0x222   : > { %2727 = vrot.lane.b32.xlu1 %v2092_v54, %s8692_s18  ;;  %2185 = vrot.lane.b32.xlu0 %v10217_v19, %s8691_s15  ;;  %v10228_v47 = vpack.c.bf16 %v1253_v34, %v1252_v3  ;;  %v14386_v54 = vrot.slane %v8981_v17, 1  ;;  %v2868_v3 = vrot.slane %v10122_v60, 6  ;;  %v14389_v17 = vrot.slane %v9504_v16, 7 }
 0x223   : > { %v1861_v34 = vrot.slane %v9679_v50, 2  ;;  %v2465_v16 = vrot.slane %v10122_v60, 7 }
 0x224   : > { %v10224_v8 = vpop.permute.xlu1 %1954  ;;  %v10226_v20 = vpop.permute.xlu0 %2195  ;;  %14385 = vst [vmem:[#allocation98_spill] sm:$0xff] %v10228_v47  ;;  %v1373_v1 = vsel %vm1305_vm1, %v1368_v42, %v14386_v54  ;;  %v10253_v42 = vsel %vm2067_vm3, %v14389_v17, %v2112_v44  ;;  %v2869_v18 = vor.u32 %v2868_v3, %v2867_v33 }
 0x225   : > { %14384 = vst [vmem:[#allocation97_spill] sm:$0xff] %v10224_v8  ;;  %14390 = vst [vmem:[#allocation101_spill] sm:$0xff] %v10253_v42  ;;  %v2466_v60 = vor.u32 %v2465_v16, %v2464_v39 }
 0x226   : > { %1944 = vrot.lane.b32.xlu1 %v1831_v15, %s8692_s18  ;;  %2320 = vrot.lane.b32.xlu0 %v1373_v1, %s8692_s18  ;;  %v1137_v15 = vpop.f32.mrb[76].mxu1 }
 0x227   : > { %v1138_v40 = vadd.f32 %v9653_v48, %v1137_v15  ;;  %v1139_v54 = vpop.f32.mrb[77].mxu1  ;;  %v2870_v15 = vsel %vm2847_vm6, %v10049_v27, %v2869_v18  ;;  %v2467_v27 = vsel %vm2440_vm7, %v10047_v58, %v2466_v60 }
 0x228   : > { %v10245_v56 = vpop.permute.xlu1 %2576  ;;  %v10247_v21 = vpop.permute.xlu0 %2981  ;;  %v10272_v54 = vor.u32 %v1861_v34, %v1860_v13 }
 0x229   : > { %14387 = vst [vmem:[#allocation99_spill] sm:$0xff] %v10245_v56  ;;  %14388 = vst [vmem:[#allocation100_spill] sm:$0xff] %v10247_v21  ;;  %v1140_v44 = vpop.f32.mrb[78].mxu1  ;;  %v1254_v21 = vmax.f32 %v1138_v40, 0.0 }
 0x22a   : > { %1583 = vrot.lane.b32.xlu1 %v1373_v1, %s8691_s15  ;;  %2201 = vrot.lane.b32.xlu0 %v10253_v42, %s8691_s15  ;;  %v1141_v8 = vadd.f32 %v9653_v48, %v1140_v44  ;;  %v1835_v1 = vsel %vm1800_vm5, %v1830_v63, %v9126_v26  ;;  %v1142_v33 = vpop.f32.mrb[79].mxu1  ;;  %v1863_v26 = vsel %vm1800_vm5, %v10007_v0, %v10272_v54 }
 0x22b   : > { %v1145_v13 = vpop.f32.mrb[80].mxu1 }
 0x22c   : > { %v10263_v17 = vpop.permute.xlu1 %2719  ;;  %v10265_v56 = vpop.permute.xlu0 %3119  ;;  %v1255_v59 = vmax.f32 %v1141_v8, 0.0  ;;  %v8611_v8 = vld [vmem:[%s13966_s3 + $0x90] sm:$0xff]   ;;  %v1146_v0 = vadd.f32 %v9653_v48, %v1145_v13 }
 0x22d   : > { %14391 = vst [vmem:[#allocation102_spill] sm:$0xff] %v10263_v17  ;;  %14392 = vst [vmem:[#allocation103_spill] sm:$0xff] %v10265_v56  ;;  %v1147_v58 = vpop.f32.mrb[81].mxu1  ;;  %4773 = vmatpush1.bf16.msra.mxu1 %v8611_v8 }
 0x22e   : > { %1946 = vrot.lane.b32.xlu1 %v1835_v1, %s8692_s18  ;;  %2987 = vrot.lane.b32.xlu0 %v2870_v15, %s8691_s15  ;;  %v10280_v44 = vpack.c.bf16 %v1255_v59, %v1254_v21  ;;  %v2874_v21 = vsel %vm2847_vm6, %v2869_v18, %v9128_v29  ;;  %v1148_v34 = vpop.f32.mrb[82].mxu1  ;;  %v1256_v15 = vmax.f32 %v1146_v0, 0.0  ;;  %v3428_v29 = vsel %vm3183_vm8, %v9557_v41, %v10211_v11 }
 0x22f   : > { %v1149_v33 = vadd.f32 %v9653_v48, %v1148_v34  ;;  %4774 = vmatprep.subr.bf16.mxu1 %v14379_v22  ;;  %v2471_v18 = vsel %vm2440_vm7, %v2466_v60, %v9152_v7  ;;  %v1150_v59 = vpop.f32.mrb[83].mxu1  ;;  %v3523_v41 = vsel %vm3250_vm9, %v3428_v29, %v10103_v25  ;;  %v1700_v11 = vrot.slane %v9431_v55, 1 }
 0x230   : > { %v10276_v3 = vpop.permute.xlu1 %1742  ;;  %v10278_v40 = vpop.permute.xlu0 %2247  ;;  %v1436_v0 = vrot.slane %v9895_v30, 1  ;;  %v14397_v29 = vrot.slane %v9344_v10, 1 }
 0x232   : > { %1960 = vrot.lane.b32.xlu1 %v1863_v26, %s8692_s18  ;;  %3125 = vrot.lane.b32.xlu0 %v2467_v27, %s8692_s18  ;;  %v1257_v26 = vmax.f32 %v1149_v33, 0.0  ;;  %v1865_v33 = vrot.slane %v9895_v30, 2 }
 0x234   : > { %v10289_v63 = vpop.permute.xlu1 %1758  ;;  %v10291_v39 = vpop.permute.xlu0 %2263  ;;  %v10323_v7 = vpack.c.bf16 %v1257_v26, %v1256_v15  ;;  %v1864_v15 = vrot.slane %v9912_v23, 1 }
 0x236   : > { %2582 = vrot.lane.b32.xlu1 %v2467_v27, %s8691_s15  ;;  %2989 = vrot.lane.b32.xlu0 %v2874_v21, %s8691_s15  ;;  %v3191_v27 = vsel %vm3183_vm8, %v9079_v32, %v10178_v9  ;;  %14395 = vst [vmem:[#allocation106_spill] sm:$0xff] %v10323_v7  ;;  %v14054_v9 = vrot.slane %v9912_v23, 7 }
 0x237   : > { %v3258_v25 = vsel %vm3250_vm9, %v3191_v27, %v10101_v37 }
 0x238   : > { %v10301_v16 = vpop.permute.xlu1 %2647  ;;  %v10303_v1 = vpop.permute.xlu0 %3051  ;;  %v3328_v58 = vsel %vm3317_vm10, %v3258_v25, %v10209_v46  ;;  %v2115_v37 = vor.u32 %v14054_v9, %v9895_v30 }
 0x239   : > { %14393 = vst [vmem:[#allocation104_spill] sm:$0xff] %v10301_v16  ;;  %14394 = vst [vmem:[#allocation105_spill] sm:$0xff] %v10303_v1  ;;  %v1153_v46 = vpop.f32.mrb[84].mxu1 }
 0x23a   : > { %2725 = vrot.lane.b32.xlu1 %v10217_v19, %s8692_s18  ;;  %3127 = vrot.lane.b32.xlu0 %v2471_v18, %s8692_s18  ;;  %v14396_v19 = vrot.slane %v9679_v50, 1  ;;  %v1154_v26 = vadd.f32 %v9653_v48, %v1153_v46  ;;  %v1155_v27 = vpop.f32.mrb[85].mxu1  ;;  %v8612_v46 = vld [vmem:[%s13966_s3 + $0x98] sm:$0xff]  }
 0x23b   : > { %4775 = vmatpush1.bf16.msra.mxu1 %v8612_v46 }
 0x23c   : > { %v10318_v8 = vpop.permute.xlu1 %1577  ;;  %v2315_v21 = vpop.permute.xlu0 %2314  ;;  %v1432_v13 = vor.u32 %v9686_v2, %v14396_v19  ;;  %v1866_v19 = vor.u32 %v1865_v33, %v1864_v15  ;;  %v1258_v25 = vmax.f32 %v1154_v26, 0.0  ;;  %4776 = vmatprep.subr.bf16.mxu1 %v14379_v22 }
 0x23d   : > { %v3592_v60 = vsel %vm3317_vm10, %v3523_v41, %v2315_v21  ;;  %v1156_v21 = vpop.f32.mrb[86].mxu1 }
 0x23e   : > { %2584 = vrot.lane.b32.xlu1 %v2471_v18, %s8691_s15  ;;  %2269 = vrot.lane.b32.xlu0 %v9431_v55, %s8690_s25  ;;  %v1701_v18 = vsel %vm1668_vm2, %v14397_v29, %v1700_v11  ;;  %v1437_v59 = vsel %vm1305_vm1, %v1432_v13, %v1436_v0  ;;  %v1157_v13 = vadd.f32 %v9653_v48, %v1156_v21  ;;  %v10365_v29 = vshll.u32 %v9673_v12, 16  ;;  %v1158_v27 = vpop.f32.mrb[87].mxu1 }
 0x23f   : > { %4528 = vmatprep.mubr.bf16.mxu1 %v3592_v60  ;;  %v1702_v21 = vrot.slane %v9673_v12, 1  ;;  %v1161_v16 = vpop.f32.mrb[88].mxu1 }
 0x240   : > { %4529 = vmatmul.mubr.bf16.gmra.mrb[120].mxu1 %v3328_v58  ;;  %v10338_v50 = vpop.permute.xlu1 %1593  ;;  %v10340_v34 = vpop.permute.xlu0 %2330  ;;  %v14398_v58 = vrot.slane %v9686_v2, 7  ;;  %14400 = vst [vmem:[#allocation108_spill] sm:$0xff] %v10365_v29  ;;  %v1259_v2 = vmax.f32 %v1157_v13, 0.0  ;;  %v1869_v27 = vrot.slane %v10365_v29, 2 }
 0x242   : > { %1764 = vrot.lane.b32.xlu1 %v1701_v18, %s8690_s25  ;;  %2336 = vrot.lane.b32.xlu0 %v1437_v59, %s8692_s18  ;;  %v10362_v30 = vsel %vm2067_vm3, %v14398_v58, %v2115_v37  ;;  %v10368_v18 = vshrl.u32 %v9673_v12, 16  ;;  %v1867_v37 = vsel %vm1800_vm5, %v10272_v54, %v1866_v19  ;;  %v10382_v26 = vpack.c.bf16 %v1259_v2, %v1258_v25 }
 0x243   : > { %14399 = vst [vmem:[#allocation107_spill] sm:$0xff] %v10362_v30  ;;  %v1444_v58 = vrot.slane %v10365_v29, 1  ;;  %v1703_v2 = vsel %vm1668_vm2, %v1700_v11, %v1702_v21 }
 0x244   : > { %v10354_v41 = vpop.permute.xlu1 %1940  ;;  %v10356_v60 = vpop.permute.xlu0 %2181  ;;  %14401 = vst [vmem:[#allocation109_spill] sm:$0xff] %v10368_v18  ;;  %14402 = vst [vmem:[#allocation110_spill] sm:$0xff] %v10382_v26  ;;  %v2117_v13 = vrot.slane %v10368_v18, 7  ;;  %v1868_v25 = vrot.slane %v10368_v18, 1  ;;  %v10472_v26 = vshll.u32 %v9821_v31, 16 }
 0x246   : > { %1599 = vrot.lane.b32.xlu1 %v1437_v59, %s8691_s15  ;;  %2203 = vrot.lane.b32.xlu0 %v10362_v30, %s8691_s15  ;;  %v1440_v59 = vor.u32 %v9912_v23, %v1436_v0  ;;  %v2118_v9 = vor.u32 %v2117_v13, %v10365_v29  ;;  %v1870_v56 = vor.u32 %v1869_v27, %v1868_v25 }
 0x247   : > { %14418 = vst [vmem:[#allocation121_spill] sm:$0xff] %v10472_v26 }
 0x248   : > { %v10376_v15 = vpop.permute.xlu1 %1956  ;;  %v10378_v33 = vpop.permute.xlu0 %2197  ;;  %v1445_v0 = vsel %vm1305_vm1, %v1440_v59, %v1444_v58  ;;  %v14407_v59 = vrot.slane %v9912_v23, 7  ;;  %v1871_v23 = vsel %vm1800_vm5, %v1866_v19, %v1870_v56 }
 0x24a   : > { %1962 = vrot.lane.b32.xlu1 %v1867_v37, %s8692_s18  ;;  %2271 = vrot.lane.b32.xlu0 %v9673_v12, %s8690_s25  ;;  %v1162_v37 = vadd.f32 %v9653_v48, %v1161_v16  ;;  %v10412_v30 = vsel %vm2067_vm3, %v14407_v59, %v2118_v9 }
 0x24b   : > { %14408 = vst [vmem:[#allocation115_spill] sm:$0xff] %v10412_v30 }
 0x24c   : > { %v10392_v46 = vpop.permute.xlu1 %2578  ;;  %v10394_v54 = vpop.permute.xlu0 %2983  ;;  %v1260_v32 = vmax.f32 %v1162_v37, 0.0  ;;  %v1448_v37 = vor.u32 %v10368_v18, %v1444_v58 }
 0x24d   : > { %14403 = vst [vmem:[#allocation111_spill] sm:$0xff] %v10392_v46  ;;  %14404 = vst [vmem:[#allocation112_spill] sm:$0xff] %v10394_v54  ;;  %v1163_v46 = vpop.f32.mrb[89].mxu1 }
 0x24e   : > { %1766 = vrot.lane.b32.xlu1 %v1703_v2, %s8690_s25  ;;  %2338 = vrot.lane.b32.xlu0 %v1445_v0, %s8692_s18  ;;  %v1164_v17 = vpop.f32.mrb[90].mxu1  ;;  %v14409_v2 = vld [vmem:[#allocation53_spill] sm:$0xff] }
 0x24f   : > { %v1165_v11 = vadd.f32 %v9653_v48, %v1164_v17  ;;  %v10415_v42 = vshll.u32 %v14409_v2, 16  ;;  %v10418_v16 = vshrl.u32 %v14409_v2, 16  ;;  %v1166_v46 = vpop.f32.mrb[91].mxu1  ;;  %v1704_v9 = vrot.slane %v14409_v2, 1 }
 0x250   : > { %v10404_v1 = vpop.permute.xlu1 %2721  ;;  %v10406_v54 = vpop.permute.xlu0 %3121 }
 0x251   : > { %14405 = vst [vmem:[#allocation113_spill] sm:$0xff] %v10404_v1  ;;  %14406 = vst [vmem:[#allocation114_spill] sm:$0xff] %v10406_v54  ;;  %v1261_v25 = vmax.f32 %v1165_v11, 0.0  ;;  %v1452_v59 = vrot.slane %v10415_v42, 1  ;;  %v8613_v11 = vld [vmem:[%s13966_s3 + $0xa0] sm:$0xff]   ;;  %v1872_v58 = vrot.slane %v10418_v16, 1 }
 0x252   : > { %14410 = vst [vmem:[#allocation116_spill] sm:$0xff] %v10415_v42  ;;  %14411 = vst [vmem:[#allocation117_spill] sm:$0xff] %v10418_v16  ;;  %1601 = vrot.lane.b32.xlu1 %v1445_v0, %s8691_s15  ;;  %2205 = vrot.lane.b32.xlu0 %v10412_v30, %s8691_s15  ;;  %v1873_v46 = vrot.slane %v10415_v42, 2  ;;  %v1169_v54 = vpop.f32.mrb[92].mxu1 }
 0x253   : > { %v10428_v17 = vpack.c.bf16 %v1261_v25, %v1260_v32  ;;  %4777 = vmatpush1.bf16.msra.mxu1 %v8613_v11  ;;  %v1705_v25 = vsel %vm1668_vm2, %v1702_v21, %v1704_v9  ;;  %v1453_v0 = vsel %vm1305_vm1, %v1448_v37, %v1452_v59  ;;  %v10457_v11 = vld [vmem:[%s13965_s2] ss:$0 sm:$0xff]  ;;  %v1171_v29 = vpop.f32.mrb[93].mxu1 }
 0x254   : > { %v10423_v27 = vpop.permute.xlu1 %1744  ;;  %v10425_v48 = vpop.permute.xlu0 %2249  ;;  %4778 = vmatprep.subr.bf16.mxu1 %v14379_v22  ;;  %v1170_v30 = vadd.f32 %v10457_v11, %v1169_v54  ;;  %v10475_v29 = vshrl.u32 %v9821_v31, 16 }
 0x255   : > { %14412 = vst [vmem:[#allocation118_spill] sm:$0xff] %v10428_v17  ;;  %v1172_v21 = vpop.f32.mrb[94].mxu1 }
 0x256   : > { %1964 = vrot.lane.b32.xlu1 %v1871_v23, %s8692_s18  ;;  %2273 = vrot.lane.b32.xlu0 %v14409_v2, %s8690_s25  ;;  %v14413_v23 = vrot.slane %v10418_v16, 7  ;;  %v1874_v2 = vor.u32 %v1873_v46, %v1872_v58  ;;  %14419 = vst [vmem:[#allocation122_spill] sm:$0xff] %v10475_v29  ;;  %v1174_v54 = vpop.f32.mrb[95].mxu1  ;;  %v14420_v58 = vld [vmem:[#allocation12_spill] sm:$0xff] }
 0x258   : > { %v10440_v32 = vpop.permute.xlu1 %1760  ;;  %v10442_v19 = vpop.permute.xlu0 %2265  ;;  %v2121_v1 = vor.u32 %v14413_v23, %v10415_v42  ;;  %v1262_v23 = vmax.f32 %v1170_v30, 0.0  ;;  %v1173_v42 = vadd.f32 %v10457_v11, %v1172_v21 }
 0x25a   : > { %1768 = vrot.lane.b32.xlu1 %v1705_v25, %s8690_s25  ;;  %2340 = vrot.lane.b32.xlu0 %v1453_v0, %s8692_s18  ;;  %v14416_v25 = vld [vmem:[#allocation54_spill] sm:$0xff]  ;;  %v10469_v12 = vsel %vm2067_vm3, %v2117_v13, %v2121_v1  ;;  %v1263_v30 = vmax.f32 %v1173_v42, 0.0  ;;  %v1875_v13 = vsel %vm1800_vm5, %v1870_v56, %v1874_v2  ;;  %v1456_v42 = vor.u32 %v10418_v16, %v1452_v59 }
 0x25b   : > { %v3431_v17 = vsel %vm3183_vm8, %v14416_v25, %v10356_v60  ;;  %14417 = vst [vmem:[#allocation54_spill] sm:$0xff] %v10469_v12  ;;  %v3193_v60 = vsel %vm3183_vm8, %v14420_v58, %v10318_v8  ;;  %v1706_v25 = vrot.slane %v9821_v31, 1  ;;  %v14070_v8 = vrot.slane %v10475_v29, 7 }
 0x25c   : > { %v10460_v18 = vpop.permute.xlu1 %2649  ;;  %v10462_v37 = vpop.permute.xlu0 %3053  ;;  %v3525_v21 = vsel %vm3250_vm9, %v3431_v17, %v10278_v40  ;;  %v10489_v54 = vpack.c.bf16 %v1263_v30, %v1262_v23  ;;  %v3260_v56 = vsel %vm3250_vm9, %v3193_v60, %v10276_v3  ;;  %v1877_v3 = vrot.slane %v10472_v26, 2 }
 0x25d   : > { %14414 = vst [vmem:[#allocation119_spill] sm:$0xff] %v10460_v18  ;;  %14415 = vst [vmem:[#allocation120_spill] sm:$0xff] %v10462_v37  ;;  %v1460_v18 = vrot.slane %v10472_v26, 1  ;;  %v3331_v40 = vsel %vm3317_vm10, %v3260_v56, %v10354_v41  ;;  %v1707_v23 = vsel %vm1668_vm2, %v1704_v9, %v1706_v25  ;;  %v1177_v60 = vpop.f32.mrb[96].mxu1  ;;  %v8614_v41 = vld [vmem:[%s13966_s3 + $0xa8] sm:$0xff]   ;;  %v14422_v37 = vrot.slane %v10418_v16, 7 }
 0x25e   : > { %1603 = vrot.lane.b32.xlu1 %v1453_v0, %s8691_s15  ;;  %2207 = vrot.lane.b32.xlu0 %v10469_v12, %s8691_s15  ;;  %14421 = vst [vmem:[#allocation123_spill] sm:$0xff] %v10489_v54  ;;  %v1178_v9 = vadd.f32 %v10457_v11, %v1177_v60  ;;  %v10531_v60 = vshll.u32 %v9874_v14, 16  ;;  %v14432_v54 = vrot.slane %v10475_v29, 7 }
 0x25f   : > { %v1461_v30 = vsel %vm1305_vm1, %v1456_v42, %v1460_v18  ;;  %4779 = vmatpush1.bf16.msra.mxu1 %v8614_v41  ;;  %v10534_v41 = vshrl.u32 %v9874_v14, 16 }
 0x260   : > { %v10483_v46 = vpop.permute.xlu1 %1579  ;;  %v2317_v1 = vpop.permute.xlu0 %2316  ;;  %4780 = vmatprep.subr.bf16.mxu1 %v14379_v22  ;;  %14424 = vst [vmem:[#allocation125_spill] sm:$0xff] %v10531_v60 }
 0x261   : > { %v3595_v0 = vsel %vm3317_vm10, %v3525_v21, %v2317_v1  ;;  %v2124_v1 = vor.u32 %v14070_v8, %v10472_v26  ;;  %v1179_v21 = vpop.f32.mrb[97].mxu1  ;;  %14425 = vst [vmem:[#allocation126_spill] sm:$0xff] %v10534_v41  ;;  %v1881_v26 = vrot.slane %v10531_v60, 2 }
 0x262   : > { %1966 = vrot.lane.b32.xlu1 %v1875_v13, %s8692_s18  ;;  %2275 = vrot.lane.b32.xlu0 %v9821_v31, %s8690_s25  ;;  %v1876_v13 = vrot.slane %v10475_v29, 1 }
 0x263   : > { %4536 = vmatprep.mubr.bf16.mxu1 %v3595_v0  ;;  %v1180_v0 = vpop.f32.mrb[98].mxu1 }
 0x264   : > { %4537 = vmatmul.mubr.bf16.gmra.mrb[124].mxu1 %v3331_v40  ;;  %v10502_v17 = vpop.permute.xlu1 %1595  ;;  %v10504_v59 = vpop.permute.xlu0 %2332  ;;  %v1264_v40 = vmax.f32 %v1178_v9, 0.0  ;;  %v1181_v8 = vadd.f32 %v10457_v11, %v1180_v0  ;;  %v1878_v58 = vor.u32 %v1877_v3, %v1876_v13  ;;  %v1464_v3 = vor.u32 %v10475_v29, %v1460_v18 }
 0x265   : > { %v1182_v21 = vpop.f32.mrb[99].mxu1  ;;  %v1880_v18 = vrot.slane %v10534_v41, 1  ;;  %v10618_v29 = vshll.u32 %v10019_v35, 16 }
 0x266   : > { %1770 = vrot.lane.b32.xlu1 %v1707_v23, %s8690_s25  ;;  %2342 = vrot.lane.b32.xlu0 %v1461_v30, %s8692_s18  ;;  %v10528_v23 = vsel %vm2067_vm3, %v14422_v37, %v2124_v1  ;;  %v1265_v9 = vmax.f32 %v1181_v8, 0.0  ;;  %v1708_v37 = vrot.slane %v9874_v14, 1  ;;  %v1879_v13 = vsel %vm1800_vm5, %v1874_v2, %v1878_v58  ;;  %v1185_v16 = vpop.f32.mrb[100].mxu1 }
 0x267   : > { %14423 = vst [vmem:[#allocation124_spill] sm:$0xff] %v10528_v23  ;;  %v1468_v21 = vrot.slane %v10531_v60, 1  ;;  %v1882_v31 = vor.u32 %v1881_v26, %v1880_v18  ;;  %14440 = vst [vmem:[#allocation140_spill] sm:$0xff] %v10618_v29 }
 0x268   : > { %v10519_v42 = vpop.permute.xlu1 %1942  ;;  %v10521_v56 = vpop.permute.xlu0 %2183  ;;  %v10544_v1 = vpack.c.bf16 %v1265_v9, %v1264_v40  ;;  %v1709_v40 = vsel %vm1668_vm2, %v1706_v25, %v1708_v37 }
 0x269   : > { %v1469_v9 = vsel %vm1305_vm1, %v1464_v3, %v1468_v21 }
 0x26a   : > { %1605 = vrot.lane.b32.xlu1 %v1461_v30, %s8691_s15  ;;  %2209 = vrot.lane.b32.xlu0 %v10528_v23, %s8691_s15  ;;  %14427 = vst [vmem:[#allocation128_spill] sm:$0xff] %v10544_v1  ;;  %v2126_v30 = vrot.slane %v10534_v41, 7 }
 0x26c   : > { %v10539_v0 = vpop.permute.xlu1 %1958  ;;  %v10541_v12 = vpop.permute.xlu0 %2199  ;;  %v2127_v2 = vor.u32 %v2126_v30, %v10531_v60 }
 0x26d   : > { %14426 = vst [vmem:[#allocation127_spill] sm:$0xff] %v10539_v0 }
 0x26e   : > { %1968 = vrot.lane.b32.xlu1 %v1879_v13, %s8692_s18  ;;  %2277 = vrot.lane.b32.xlu0 %v9874_v14, %s8690_s25  ;;  %v1186_v13 = vadd.f32 %v10457_v11, %v1185_v16  ;;  %v10573_v60 = vsel %vm2067_vm3, %v14432_v54, %v2127_v2  ;;  %v10579_v16 = vshrl.u32 %v9933_v4, 16  ;;  %v1710_v2 = vrot.slane %v9933_v4, 1 }
 0x26f   : > { %14433 = vst [vmem:[#allocation133_spill] sm:$0xff] %v10573_v60 }
 0x270   : > { %v10553_v8 = vpop.permute.xlu1 %2580  ;;  %v10555_v23 = vpop.permute.xlu0 %2985  ;;  %v1266_v3 = vmax.f32 %v1186_v13, 0.0  ;;  %14435 = vst [vmem:[#allocation135_spill] sm:$0xff] %v10579_v16  ;;  %v1883_v13 = vsel %vm1800_vm5, %v1878_v58, %v1882_v31 }
 0x271   : > { %14428 = vst [vmem:[#allocation129_spill] sm:$0xff] %v10553_v8  ;;  %14429 = vst [vmem:[#allocation130_spill] sm:$0xff] %v10555_v23  ;;  %v1187_v8 = vpop.f32.mrb[101].mxu1 }
 0x272   : > { %1772 = vrot.lane.b32.xlu1 %v1709_v40, %s8690_s25  ;;  %2344 = vrot.lane.b32.xlu0 %v1469_v9, %s8692_s18  ;;  %v1188_v1 = vpop.f32.mrb[102].mxu1  ;;  %v10576_v40 = vshll.u32 %v9933_v4, 16  ;;  %v8615_v8 = vld [vmem:[%s13966_s3 + $0xb0] sm:$0xff]  }
 0x273   : > { %v1189_v14 = vadd.f32 %v10457_v11, %v1188_v1  ;;  %4781 = vmatpush1.bf16.msra.mxu1 %v8615_v8 }
 0x274   : > { %v10565_v23 = vpop.permute.xlu1 %2723  ;;  %v10567_v25 = vpop.permute.xlu0 %3123  ;;  %14434 = vst [vmem:[#allocation134_spill] sm:$0xff] %v10576_v40  ;;  %4782 = vmatprep.subr.bf16.mxu1 %v14379_v22 }
 0x275   : > { %14430 = vst [vmem:[#allocation131_spill] sm:$0xff] %v10565_v23  ;;  %14431 = vst [vmem:[#allocation132_spill] sm:$0xff] %v10567_v25  ;;  %v1190_v23 = vpop.f32.mrb[103].mxu1  ;;  %v1267_v1 = vmax.f32 %v1189_v14, 0.0  ;;  %v2129_v25 = vrot.slane %v10579_v16, 7 }
 0x276   : > { %1607 = vrot.lane.b32.xlu1 %v1469_v9, %s8691_s15  ;;  %2211 = vrot.lane.b32.xlu0 %v10573_v60, %s8691_s15  ;;  %v1472_v23 = vor.u32 %v10534_v41, %v1468_v21  ;;  %v1476_v9 = vrot.slane %v10576_v40, 1  ;;  %v1884_v21 = vrot.slane %v10579_v16, 1  ;;  %v1885_v60 = vrot.slane %v10576_v40, 2 }
 0x277   : > { %v10592_v18 = vpack.c.bf16 %v1267_v1, %v1266_v3  ;;  %v1711_v3 = vsel %vm1668_vm2, %v1708_v37, %v1710_v2  ;;  %v2130_v58 = vor.u32 %v2129_v25, %v10576_v40 }
 0x278   : > { %v10587_v54 = vpop.permute.xlu1 %1746  ;;  %v10589_v26 = vpop.permute.xlu0 %2251  ;;  %v1477_v1 = vsel %vm1305_vm1, %v1472_v23, %v1476_v9  ;;  %v1886_v23 = vor.u32 %v1885_v60, %v1884_v21  ;;  %v1480_v60 = vor.u32 %v10579_v16, %v1476_v9 }
 0x279   : > { %14436 = vst [vmem:[#allocation136_spill] sm:$0xff] %v10592_v18  ;;  %v10621_v37 = vsel %vm2067_vm3, %v2126_v30, %v2130_v58  ;;  %v1193_v18 = vpop.f32.mrb[104].mxu1  ;;  %v1484_v58 = vrot.slane %v10618_v29, 1 }
 0x27a   : > { %1970 = vrot.lane.b32.xlu1 %v1883_v13, %s8692_s18  ;;  %2279 = vrot.lane.b32.xlu0 %v9933_v4, %s8690_s25  ;;  %14441 = vst [vmem:[#allocation141_spill] sm:$0xff] %v10621_v37  ;;  %v10624_v4 = vshrl.u32 %v10019_v35, 16  ;;  %v1195_v40 = vpop.f32.mrb[105].mxu1 }
 0x27b   : > { %v1887_v40 = vsel %vm1800_vm5, %v1882_v31, %v1886_v23 }
 0x27c   : > { %v10602_v14 = vpop.permute.xlu1 %1748  ;;  %v10604_v8 = vpop.permute.xlu0 %2267  ;;  %14442 = vst [vmem:[#allocation142_spill] sm:$0xff] %v10624_v4 }
 0x27d   : > { %14437 = vst [vmem:[#allocation137_spill] sm:$0xff] %v10604_v8 }
 0x27e   : > { %1774 = vrot.lane.b32.xlu1 %v1711_v3, %s8690_s25  ;;  %2346 = vrot.lane.b32.xlu0 %v1477_v1, %s8692_s18  ;;  %v1194_v3 = vadd.f32 %v10457_v11, %v1193_v18  ;;  %v2132_v18 = vrot.slane %v10624_v4, 7 }
 0x280   : > { %v10613_v13 = vpop.permute.xlu1 %1762  ;;  %v10615_v41 = vpop.permute.xlu0 %3055  ;;  %v1268_v21 = vmax.f32 %v1194_v3, 0.0  ;;  %v8616_v3 = vld [vmem:[%s13966_s3 + $0xb8] sm:$0xff]  }
 0x281   : > { %14438 = vst [vmem:[#allocation138_spill] sm:$0xff] %v10613_v13  ;;  %14439 = vst [vmem:[#allocation139_spill] sm:$0xff] %v10615_v41  ;;  %v1712_v41 = vrot.slane %v10019_v35, 1  ;;  %v1196_v13 = vpop.f32.mrb[106].mxu1  ;;  %4783 = vmatpush1.bf16.msra.mxu1 %v8616_v3 }
 0x282   : > { %1609 = vrot.lane.b32.xlu1 %v1477_v1, %s8691_s15  ;;  %2213 = vrot.lane.b32.xlu0 %v10621_v37, %s8691_s15  ;;  %v1197_v1 = vadd.f32 %v10457_v11, %v1196_v13  ;;  %v3434_v37 = vsel %vm3183_vm8, %v9922_v62, %v10521_v56  ;;  %v1198_v0 = vpop.f32.mrb[107].mxu1  ;;  %v3195_v11 = vsel %vm3183_vm8, %v9168_v49, %v10483_v46  ;;  %v1889_v46 = vrot.slane %v10618_v29, 2 }
 0x283   : > { %v1713_v56 = vsel %vm1668_vm2, %v1710_v2, %v1712_v41  ;;  %v1485_v0 = vsel %vm1305_vm1, %v1480_v60, %v1484_v58  ;;  %v3527_v13 = vsel %vm3250_vm9, %v3434_v37, %v10425_v48  ;;  %4784 = vmatprep.subr.bf16.mxu1 %v14379_v22  ;;  %v3262_v48 = vsel %vm3250_vm9, %v3195_v11, %v10423_v27 }
 0x284   : > { %v10631_v8 = vpop.permute.xlu1 %2651  ;;  %v10633_v30 = vpop.permute.xlu0 %3057  ;;  %v1269_v9 = vmax.f32 %v1197_v1, 0.0  ;;  %v3334_v2 = vsel %vm3317_vm10, %v3262_v48, %v10519_v42 }
 0x285   : > { %14443 = vst [vmem:[#allocation143_spill] sm:$0xff] %v10631_v8  ;;  %14444 = vst [vmem:[#allocation144_spill] sm:$0xff] %v10633_v30  ;;  %v2133_v8 = vor.u32 %v2132_v18, %v10618_v29  ;;  %v1888_v30 = vrot.slane %v10624_v4, 1 }
 0x286   : > { %1972 = vrot.lane.b32.xlu1 %v1887_v40, %s8692_s18  ;;  %2281 = vrot.lane.b32.xlu0 %v10019_v35, %s8690_s25  ;;  %v10658_v40 = vpack.c.bf16 %v1269_v9, %v1268_v21  ;;  %v10672_v21 = vshrl.u32 %v10072_v28, 16 }
 0x287   : > { %v10675_v9 = vsel %vm2067_vm3, %v2129_v25, %v2133_v8  ;;  %v1890_v3 = vor.u32 %v1889_v46, %v1888_v30  ;;  %v1714_v25 = vrot.slane %v10072_v28, 1  ;;  %v1488_v8 = vor.u32 %v10624_v4, %v1484_v58 }
 0x288   : > { %v10652_v62 = vpop.permute.xlu1 %2653  ;;  %v2319_v31 = vpop.permute.xlu0 %2318  ;;  %14446 = vst [vmem:[#allocation146_spill] sm:$0xff] %v10658_v40  ;;  %14447 = vst [vmem:[#allocation147_spill] sm:$0xff] %v10672_v21  ;;  %v14096_v11 = vrot.slane %v10672_v21, 7 }
 0x289   : > { %14445 = vst [vmem:[#allocation145_spill] sm:$0xff] %v10652_v62  ;;  %v3598_v1 = vsel %vm3317_vm10, %v3527_v13, %v2319_v31  ;;  %14448 = vst [vmem:[#allocation148_spill] sm:$0xff] %v10675_v9  ;;  %v10678_v31 = vshll.u32 %v10072_v28, 16 }
 0x28a   : > { %1776 = vrot.lane.b32.xlu1 %v1713_v56, %s8690_s25  ;;  %2348 = vrot.lane.b32.xlu0 %v1485_v0, %s8692_s18  ;;  %v1891_v56 = vsel %vm1800_vm5, %v1886_v23, %v1890_v3 }
 0x28b   : > { %4544 = vmatprep.mubr.bf16.mxu1 %v3598_v1  ;;  %14449 = vst [vmem:[#allocation149_spill] sm:$0xff] %v10678_v31  ;;  %v1492_v30 = vrot.slane %v10678_v31, 1  ;;  %v1893_v13 = vrot.slane %v10678_v31, 2  ;;  %v2136_v23 = vor.u32 %v14096_v11, %v10678_v31  ;;  %v8617_v11 = vld [vmem:[%s13966_s3 + $0xc0] sm:$0xff]  }
 0x28c   : > { %4545 = vmatmul.mubr.bf16.gmra.mrb[128].mxu1 %v3334_v2  ;;  %v1582_v37 = vpop.permute.xlu1 %1581  ;;  %v2188_v60 = vpop.permute.xlu0 %2187  ;;  %v1715_v2 = vsel %vm1668_vm2, %v1712_v41, %v1714_v25 }
 0x28d   : > { %v3197_v58 = vsel %vm3183_vm8, %v9209_v53, %v1582_v37  ;;  %v3440_v62 = vsel %vm3183_vm8, %v10164_v36, %v2188_v60  ;;  %v10725_v60 = vshll.u32 %v10105_v6, 16  ;;  %4785 = vmatpush1.bf16.msra.mxu1 %v8617_v11 }
 0x28e   : > { %1611 = vrot.lane.b32.xlu1 %v1485_v0, %s8691_s15  ;;  %2215 = vrot.lane.b32.xlu0 %v10675_v9, %s8691_s15  ;;  %v1892_v0 = vrot.slane %v10672_v21, 1  ;;  %v3264_v36 = vsel %vm3250_vm9, %v3197_v58, %v10587_v54 }
 0x28f   : > { %14452 = vst [vmem:[#allocation152_spill] sm:$0xff] %v10725_v60  ;;  %4786 = vmatprep.subr.bf16.mxu1 %v14379_v22  ;;  %v1500_v58 = vrot.slane %v10725_v60, 1 }
 0x290   : > { %v10683_v27 = vpop.permute.xlu1 %1597  ;;  %v10685_v42 = vpop.permute.xlu0 %2334 }
 0x292   : > { %1974 = vrot.lane.b32.xlu1 %v1891_v56, %s8692_s18  ;;  %2283 = vrot.lane.b32.xlu0 %v10072_v28, %s8690_s25  ;;  %v1493_v56 = vsel %vm1305_vm1, %v1488_v8, %v1492_v30 }
 0x294   : > { %v10697_v1 = vpop.permute.xlu1 %2727  ;;  %v2186_v46 = vpop.permute.xlu0 %2185 }
 0x295   : > { %14450 = vst [vmem:[#allocation150_spill] sm:$0xff] %v10697_v1  ;;  %v3437_v48 = vsel %vm3183_vm8, %v10131_v45, %v2186_v46  ;;  %v10715_v1 = vor.u32 %v1893_v13, %v1892_v0  ;;  %v10718_v45 = vsel %vm2067_vm3, %v2132_v18, %v2136_v23  ;;  %v14453_v13 = vld [vmem:[#allocation36_spill] sm:$0xff]  ;;  %v10732_v18 = vshrl.u32 %v10105_v6, 16 }
 0x296   : > { %1778 = vrot.lane.b32.xlu1 %v1715_v2, %s8690_s25  ;;  %2350 = vrot.lane.b32.xlu0 %v1493_v56, %s8692_s18  ;;  %14451 = vst [vmem:[#allocation151_spill] sm:$0xff] %v10718_v45  ;;  %v3529_v41 = vsel %vm3250_vm9, %v3437_v48, %v10589_v26  ;;  %v3531_v46 = vsel %vm3250_vm9, %v3440_v62, %v14453_v13  ;;  %v14455_v26 = vld [vmem:[#allocation42_spill] sm:$0xff]  ;;  %v1716_v62 = vrot.slane %v10105_v6, 1 }
 0x297   : > { %14454 = vst [vmem:[#allocation36_spill] sm:$0xff] %v10732_v18  ;;  %v1496_v23 = vor.u32 %v10672_v21, %v1492_v30  ;;  %v1895_v2 = vsel %vm1800_vm5, %v1890_v3, %v10715_v1 }
 0x298   : > { %v1945_v37 = vpop.permute.xlu1 %1944  ;;  %v2321_v9 = vpop.permute.xlu0 %2320 }
 0x299   : > { %v3601_v8 = vsel %vm3317_vm10, %v3529_v41, %v2321_v9  ;;  %v3337_v0 = vsel %vm3317_vm10, %v3264_v36, %v1945_v37  ;;  %v3604_v9 = vsel %vm3317_vm10, %v3531_v46, %v14455_v26  ;;  %v14456_v37 = vld [vmem:[#allocation45_spill] sm:$0xff]  ;;  %v14457_v41 = vld [vmem:[#allocation8_spill] sm:$0xff]  ;;  %v1501_v13 = vsel %vm1305_vm1, %v1496_v23, %v1500_v58  ;;  %v14460_v23 = vld [vmem:[#allocation38_spill] sm:$0xff] }
 0x29a   : > { %1613 = vrot.lane.b32.xlu1 %v1493_v56, %s8691_s15  ;;  %2217 = vrot.lane.b32.xlu0 %v10718_v45, %s8691_s15  ;;  %v14098_v56 = vrot.slane %v10732_v18, 7  ;;  %v3443_v30 = vsel %vm3183_vm8, %v14457_v41, %v14456_v37  ;;  %v1896_v26 = vrot.slane %v10732_v18, 1 }
 0x29b   : > { %4552 = vmatprep.mubr.bf16.mxu1 %v3601_v8  ;;  %v3533_v37 = vsel %vm3250_vm9, %v3443_v30, %v14460_v23  ;;  %v10788_v30 = vshrl.u32 %v10182_v43, 16 }
 0x29c   : > { %4553 = vmatmul.mubr.bf16.gmra.mrb[132].mxu1 %v3337_v0  ;;  %v1584_v54 = vpop.permute.xlu1 %1583  ;;  %v10740_v11 = vpop.permute.xlu0 %2201  ;;  %v1717_v0 = vsel %vm1668_vm2, %v1714_v25, %v1716_v62  ;;  %v14459_v25 = vld [vmem:[#allocation7_spill] sm:$0xff] }
 0x29d   : > { %v3199_v48 = vsel %vm3183_vm8, %v9261_v57, %v1584_v54  ;;  %4560 = vmatprep.mubr.bf16.mxu1 %v3604_v9  ;;  %v2139_v54 = vor.u32 %v14098_v56, %v10725_v60  ;;  %v1897_v9 = vrot.slane %v10725_v60, 2  ;;  %v10785_v56 = vshll.u32 %v10182_v43, 16  ;;  %14465 = vst [vmem:[#allocation38_spill] sm:$0xff] %v10788_v30 }
 0x29e   : > { %1976 = vrot.lane.b32.xlu1 %v1895_v2, %s8692_s18  ;;  %2285 = vrot.lane.b32.xlu0 %v10105_v6, %s8690_s25  ;;  %v3266_v3 = vsel %vm3250_vm9, %v3199_v48, %v10602_v14  ;;  %v2019_v2 = vrot.slane %v14459_v25, 7  ;;  %v3607_v48 = vsel %vm3317_vm10, %v3533_v37, %v9839_v52  ;;  %v8618_v52 = vld [vmem:[%s13966_s3 + $0xc8] sm:$0xff]   ;;  %v14494_v29 = vrot.slane %v10788_v30, 7 }
 0x29f   : > { %14464 = vst [vmem:[#allocation7_spill] sm:$0xff] %v10785_v56  ;;  %4787 = vmatpush1.bf16.msra.mxu1 %v8618_v52  ;;  %v1508_v45 = vrot.slane %v10785_v56, 1  ;;  %v14472_v52 = vld [vmem:[#allocation10_spill] sm:$0xff] }
 0x2a0   : > { %v1947_v36 = vpop.permute.xlu1 %1946  ;;  %v10756_v8 = vpop.permute.xlu0 %2987  ;;  %4788 = vmatprep.subr.bf16.mxu1 %v14379_v22 }
 0x2a1   : > { %14458 = vst [vmem:[#allocation42_spill] sm:$0xff] %v10756_v8  ;;  %v3340_v46 = vsel %vm3317_vm10, %v3266_v3, %v1947_v36  ;;  %v14462_v36 = vrot.slane %v10672_v21, 7  ;;  %v1898_v3 = vor.u32 %v1897_v9, %v1896_v26  ;;  %v14467_v26 = vld [vmem:[#allocation4_spill] sm:$0xff] }
 0x2a2   : > { %1780 = vrot.lane.b32.xlu1 %v1717_v0, %s8690_s25  ;;  %2352 = vrot.lane.b32.xlu0 %v1501_v13, %s8692_s18  ;;  %v14468_v9 = vrot.slane %v14467_v26, 7  ;;  %v14493_v21 = vld [vmem:[#allocation92_spill] sm:$0xff] }
 0x2a3   : > { %v10782_v0 = vsel %vm2067_vm3, %v14462_v36, %v2139_v54  ;;  %v1718_v36 = vrot.slane %v10182_v43, 1 }
 0x2a4   : > { %4561 = vmatmul.mubr.bf16.gmra.mrb[136].mxu1 %v3340_v46  ;;  %v10773_v14 = vpop.permute.xlu1 %1960  ;;  %v10777_v41 = vpop.permute.xlu0 %3125  ;;  %14463 = vst [vmem:[#allocation8_spill] sm:$0xff] %v10782_v0  ;;  %v14466_v46 = vld [vmem:[#allocation44_spill] sm:$0xff]  ;;  %v10802_v23 = vsel %vm1999_vm4, %v14468_v9, %v2019_v2 }
 0x2a5   : > { %14461 = vst [vmem:[#allocation45_spill] sm:$0xff] %v10777_v41  ;;  %4568 = vmatprep.mubr.bf16.mxu1 %v3607_v48  ;;  %v3201_v54 = vsel %vm3183_vm8, %v8937_v38, %v14466_v46  ;;  %v1504_v46 = vor.u32 %v10732_v18, %v1500_v58  ;;  %v14473_v38 = vld [vmem:[#allocation47_spill] sm:$0xff]  ;;  %v14474_v58 = vld [vmem:[#allocation57_spill] sm:$0xff]  ;;  %v1719_v60 = vsel %vm1668_vm2, %v1716_v62, %v1718_v36 }
 0x2a6   : > { %1615 = vrot.lane.b32.xlu1 %v1501_v13, %s8691_s15  ;;  %2219 = vrot.lane.b32.xlu0 %v10782_v0, %s8691_s15  ;;  %v3446_v13 = vsel %vm3183_vm8, %v10802_v23, %v9872_v5  ;;  %v1899_v0 = vsel %vm1800_vm5, %v10715_v1, %v1898_v3  ;;  %v14471_v5 = vld [vmem:[#allocation40_spill] sm:$0xff] }
 0x2a7   : > { %v3535_v41 = vsel %vm3250_vm9, %v3446_v13, %v14474_v58  ;;  %v1901_v13 = vrot.slane %v10785_v56, 2 }
 0x2a8   : > { %v10807_v37 = vpop.permute.xlu1 %2582  ;;  %v10809_v48 = vpop.permute.xlu0 %2989 }
 0x2a9   : > { %14469 = vst [vmem:[#allocation44_spill] sm:$0xff] %v10807_v37  ;;  %14470 = vst [vmem:[#allocation153_spill] sm:$0xff] %v10809_v48  ;;  %v3268_v37 = vsel %vm3250_vm9, %v3201_v54, %v14471_v5  ;;  %v2021_v48 = vrot.slane %v14472_v52, 7  ;;  %v1509_v54 = vsel %vm1305_vm1, %v1504_v46, %v1508_v45  ;;  %v14477_v5 = vrot.slane %v10788_v30, 7  ;;  %v14479_v46 = vld [vmem:[#allocation83_spill] sm:$0xff] }
 0x2aa   : > { %1978 = vrot.lane.b32.xlu1 %v1899_v0, %s8692_s18  ;;  %2287 = vrot.lane.b32.xlu0 %v10182_v43, %s8690_s25  ;;  %v3343_v1 = vsel %vm3317_vm10, %v3268_v37, %v14473_v38  ;;  %v3610_v0 = vsel %vm3317_vm10, %v3535_v41, %v10037_v61  ;;  %v1900_v37 = vrot.slane %v10788_v30, 1  ;;  %v14478_v61 = vld [vmem:[#allocation61_spill] sm:$0xff] }
 0x2ab   : > { %v2142_v38 = vor.u32 %v14477_v5, %v10785_v56  ;;  %v3203_v41 = vsel %vm3183_vm8, %v14467_v26, %v14478_v61  ;;  %v10847_v62 = vsel %vm1999_vm4, %v2019_v2, %v2021_v48  ;;  %v14481_v5 = vrot.slane %v10732_v18, 7  ;;  %v14485_v61 = vld [vmem:[#allocation56_spill] sm:$0xff]  ;;  %v14487_v56 = vld [vmem:[#allocation63_spill] sm:$0xff] }
 0x2ac   : > { %4569 = vmatmul.mubr.bf16.gmra.mrb[140].mxu1 %v3343_v1  ;;  %v10828_v9 = vpop.permute.xlu1 %2725  ;;  %v10832_v8 = vpop.permute.xlu0 %3127  ;;  %v3449_v1 = vsel %vm3183_vm8, %v10847_v62, %v14479_v46  ;;  %v10865_v2 = vshrl.u32 %v10228_v47, 16  ;;  %v3270_v46 = vsel %vm3250_vm9, %v3203_v41, %v14485_v61  ;;  %v1512_v61 = vor.u32 %v10788_v30, %v1508_v45 }
 0x2ad   : > { %14475 = vst [vmem:[#allocation40_spill] sm:$0xff] %v10828_v9  ;;  %14476 = vst [vmem:[#allocation10_spill] sm:$0xff] %v10832_v8  ;;  %4576 = vmatprep.mubr.bf16.mxu1 %v3610_v0  ;;  %v1902_v9 = vor.u32 %v1901_v13, %v1900_v37  ;;  %v10862_v8 = vshll.u32 %v10228_v47, 16  ;;  %v14488_v37 = vld [vmem:[#allocation75_spill] sm:$0xff] }
 0x2ae   : > { %1782 = vrot.lane.b32.xlu1 %v1719_v60, %s8690_s25  ;;  %2354 = vrot.lane.b32.xlu0 %v1509_v54, %s8692_s18  ;;  %v10859_v60 = vsel %vm2067_vm3, %v14481_v5, %v2142_v38  ;;  %14484 = vst [vmem:[#allocation83_spill] sm:$0xff] %v10865_v2  ;;  %v3346_v38 = vsel %vm3317_vm10, %v3270_v46, %v14487_v56  ;;  %v14116_v46 = vrot.slane %v10865_v2, 7 }
 0x2af   : > { %14482 = vst [vmem:[#allocation57_spill] sm:$0xff] %v10859_v60  ;;  %14483 = vst [vmem:[#allocation61_spill] sm:$0xff] %v10862_v8  ;;  %v3537_v13 = vsel %vm3250_vm9, %v3449_v1, %v14488_v37  ;;  %v1903_v41 = vsel %vm1800_vm5, %v1898_v3, %v1902_v9  ;;  %v1516_v56 = vrot.slane %v10862_v8, 1  ;;  %v14489_v1 = vld [vmem:[#allocation80_spill] sm:$0xff]  ;;  %v1905_v57 = vrot.slane %v10862_v8, 2 }
 0x2b0   : > { %v10852_v58 = vpop.permute.xlu1 %2584  ;;  %v10854_v0 = vpop.permute.xlu0 %2269 }
 0x2b1   : > { %14480 = vst [vmem:[#allocation47_spill] sm:$0xff] %v10852_v58  ;;  %v14486_v58 = vld [vmem:[#allocation13_spill] sm:$0xff] }
 0x2b2   : > { %1617 = vrot.lane.b32.xlu1 %v1509_v54, %s8691_s15  ;;  %2221 = vrot.lane.b32.xlu0 %v10859_v60, %s8691_s15  ;;  %v2023_v26 = vrot.slane %v14486_v58, 7  ;;  %v3613_v54 = vsel %vm3317_vm10, %v3537_v13, %v10198_v51  ;;  %v1720_v60 = vrot.slane %v10228_v47, 1  ;;  %v8619_v51 = vld [vmem:[%s13966_s3 + $0xd0] sm:$0xff]  }
 0x2b3   : > { %4789 = vmatpush1.bf16.msra.mxu1 %v8619_v51  ;;  %v14491_v51 = vld [vmem:[#allocation17_spill] sm:$0xff] }
 0x2b4   : > { %4577 = vmatmul.mubr.bf16.gmra.mrb[144].mxu1 %v3346_v38  ;;  %v10877_v5 = vpop.permute.xlu1 %1764  ;;  %v10881_v18 = vpop.permute.xlu0 %2336  ;;  %v3205_v38 = vsel %vm3183_vm8, %v14459_v25, %v14489_v1  ;;  %v10898_v3 = vsel %vm1999_vm4, %v2021_v48, %v2023_v26  ;;  %v2145_v1 = vor.u32 %v14116_v46, %v10862_v8  ;;  %v1904_v48 = vrot.slane %v10865_v2, 1  ;;  %4790 = vmatprep.subr.bf16.mxu1 %v14379_v22 }
 0x2b5   : > { %4584 = vmatprep.mubr.bf16.mxu1 %v3613_v54  ;;  %v3452_v45 = vsel %vm3183_vm8, %v10898_v3, %v10226_v20  ;;  %v1721_v54 = vsel %vm1668_vm2, %v1718_v36, %v1720_v60  ;;  %v14490_v20 = vld [vmem:[#allocation74_spill] sm:$0xff]  ;;  %v2025_v53 = vrot.slane %v14491_v51, 7 }
 0x2b6   : > { %1980 = vrot.lane.b32.xlu1 %v1903_v41, %s8692_s18  ;;  %2289 = vrot.lane.b32.xlu0 %v10228_v47, %s8690_s25  ;;  %v1517_v41 = vsel %vm1305_vm1, %v1512_v61, %v1516_v56  ;;  %v3272_v36 = vsel %vm3250_vm9, %v3205_v38, %v14490_v20  ;;  %v14492_v61 = vld [vmem:[#allocation82_spill] sm:$0xff]  ;;  %v3539_v46 = vsel %vm3250_vm9, %v3452_v45, %v14493_v21  ;;  %v10939_v21 = vshrl.u32 %v10280_v44, 16 }
 0x2b7   : > { %v3349_v31 = vsel %vm3317_vm10, %v3272_v36, %v14492_v61  ;;  %v3616_v8 = vsel %vm3317_vm10, %v3539_v46, %v10340_v34  ;;  %v10933_v38 = vsel %vm2067_vm3, %v14494_v29, %v2145_v1  ;;  %v1906_v20 = vor.u32 %v1905_v57, %v1904_v48  ;;  %v14500_v48 = vld [vmem:[#allocation21_spill] sm:$0xff] }
 0x2b8   : > { %v10903_v37 = vpop.permute.xlu1 %1599  ;;  %v10905_v13 = vpop.permute.xlu0 %2203  ;;  %14495 = vst [vmem:[#allocation56_spill] sm:$0xff] %v10933_v38  ;;  %v10936_v36 = vshll.u32 %v10280_v44, 16  ;;  %14497 = vst [vmem:[#allocation63_spill] sm:$0xff] %v10939_v21  ;;  %v3207_v34 = vsel %vm3183_vm8, %v14472_v52, %v10196_v24  ;;  %v1722_v46 = vrot.slane %v10280_v44, 1  ;;  %v2027_v61 = vrot.slane %v14500_v48, 7 }
 0x2b9   : > { %v1907_v45 = vsel %vm1800_vm5, %v1902_v9, %v1906_v20  ;;  %v14511_v16 = vrot.slane %v10939_v21, 7 }
 0x2ba   : > { %1784 = vrot.lane.b32.xlu1 %v1721_v54, %s8690_s25  ;;  %2356 = vrot.lane.b32.xlu0 %v1517_v41, %s8692_s18  ;;  %14496 = vst [vmem:[#allocation13_spill] sm:$0xff] %v10936_v36  ;;  %v1524_v1 = vrot.slane %v10936_v36, 1  ;;  %v1723_v4 = vsel %vm1668_vm2, %v1720_v60, %v1722_v46 }
 0x2bc   : > { %4585 = vmatmul.mubr.bf16.gmra.mrb[148].mxu1 %v3349_v31  ;;  %v10924_v49 = vpop.permute.xlu1 %1962  ;;  %v10928_v54 = vpop.permute.xlu0 %2271  ;;  %v10948_v31 = vsel %vm1999_vm4, %v2023_v26, %v2025_v53 }
 0x2bd   : > { %4592 = vmatprep.mubr.bf16.mxu1 %v3616_v8  ;;  %14498 = vst [vmem:[#allocation75_spill] sm:$0xff] %v10948_v31  ;;  %v3455_v57 = vsel %vm3183_vm8, %v10948_v31, %v10378_v33  ;;  %v14499_v33 = vld [vmem:[#allocation91_spill] sm:$0xff] }
 0x2be   : > { %1619 = vrot.lane.b32.xlu1 %v1517_v41, %s8691_s15  ;;  %2223 = vrot.lane.b32.xlu0 %v10933_v38, %s8691_s15  ;;  %v1520_v41 = vor.u32 %v10865_v2, %v1516_v56  ;;  %v3274_v26 = vsel %vm3250_vm9, %v3207_v34, %v14499_v33  ;;  %v14501_v38 = vld [vmem:[#allocation97_spill] sm:$0xff]  ;;  %v3541_v9 = vsel %vm3250_vm9, %v3455_v57, %v10291_v39  ;;  %v14502_v33 = vrot.slane %v10939_v21, 7 }
 0x2bf   : > { %v3352_v30 = vsel %vm3317_vm10, %v3274_v26, %v14501_v38  ;;  %v1908_v26 = vrot.slane %v10939_v21, 1  ;;  %v1909_v39 = vrot.slane %v10936_v36, 2 }
 0x2c0   : > { %v10953_v29 = vpop.permute.xlu1 %1766  ;;  %v10955_v8 = vpop.permute.xlu0 %2338  ;;  %v1525_v34 = vsel %vm1305_vm1, %v1520_v41, %v1524_v1  ;;  %v2148_v38 = vor.u32 %v14502_v33, %v10936_v36  ;;  %v11006_v33 = vshll.u32 %v10323_v7, 16 }
 0x2c2   : > { %1982 = vrot.lane.b32.xlu1 %v1907_v45, %s8692_s18  ;;  %2291 = vrot.lane.b32.xlu0 %v10280_v44, %s8690_s25  ;;  %v3619_v45 = vsel %vm3317_vm10, %v3541_v9, %v10504_v59  ;;  %v3209_v59 = vsel %vm3183_vm8, %v14486_v58, %v10338_v50  ;;  %v14504_v9 = vrot.slane %v10865_v2, 7  ;;  %14506 = vst [vmem:[#allocation17_spill] sm:$0xff] %v11006_v33 }
 0x2c3   : > { %v3276_v50 = vsel %vm3250_vm9, %v3209_v59, %v10289_v63 }
 0x2c4   : > { %4593 = vmatmul.mubr.bf16.gmra.mrb[152].mxu1 %v3352_v30  ;;  %v10972_v56 = vpop.permute.xlu1 %1601  ;;  %v10976_v24 = vpop.permute.xlu0 %2205  ;;  %v10991_v30 = vsel %vm1999_vm4, %v2025_v53, %v2027_v61  ;;  %v11009_v53 = vshrl.u32 %v10323_v7, 16 }
 0x2c5   : > { %4600 = vmatprep.mubr.bf16.mxu1 %v3619_v45  ;;  %14503 = vst [vmem:[#allocation80_spill] sm:$0xff] %v10991_v30  ;;  %v3458_v60 = vsel %vm3183_vm8, %v10991_v30, %v10541_v12  ;;  %v1910_v45 = vor.u32 %v1909_v39, %v1908_v26  ;;  %v8620_v12 = vld [vmem:[%s13966_s3 + $0xd8] sm:$0xff]   ;;  %v3355_v26 = vsel %vm3317_vm10, %v3276_v50, %v10376_v15 }
 0x2c6   : > { %1786 = vrot.lane.b32.xlu1 %v1723_v4, %s8690_s25  ;;  %2358 = vrot.lane.b32.xlu0 %v1525_v34, %s8692_s18  ;;  %v11003_v4 = vsel %vm2067_vm3, %v14504_v9, %v2148_v38  ;;  %14507 = vst [vmem:[#allocation82_spill] sm:$0xff] %v11009_v53  ;;  %v2029_v38 = vrot.slane %v9344_v10, 7  ;;  %v3543_v39 = vsel %vm3250_vm9, %v3458_v60, %v10442_v19  ;;  %v1532_v19 = vrot.slane %v11006_v33, 1 }
 0x2c7   : > { %14505 = vst [vmem:[#allocation74_spill] sm:$0xff] %v11003_v4  ;;  %4791 = vmatpush1.bf16.msra.mxu1 %v8620_v12  ;;  %v1911_v63 = vsel %vm1800_vm5, %v1906_v20, %v1910_v45  ;;  %v1528_v15 = vor.u32 %v10939_v21, %v1524_v1  ;;  %v14132_v59 = vrot.slane %v11009_v53, 7 }
 0x2c8   : > { %v10996_v57 = vpop.permute.xlu1 %1964  ;;  %v10998_v41 = vpop.permute.xlu0 %2273  ;;  %4792 = vmatprep.subr.bf16.mxu1 %v14379_v22  ;;  %v11043_v60 = vsel %vm1999_vm4, %v2027_v61, %v2029_v38  ;;  %v1913_v61 = vrot.slane %v11006_v33, 2 }
 0x2c9   : > { %14508 = vst [vmem:[#allocation92_spill] sm:$0xff] %v11043_v60  ;;  %v3461_v20 = vsel %vm3183_vm8, %v11043_v60, %v10740_v11 }
 0x2ca   : > { %1621 = vrot.lane.b32.xlu1 %v1525_v34, %s8691_s15  ;;  %2225 = vrot.lane.b32.xlu0 %v11003_v4, %s8691_s15  ;;  %v3622_v34 = vsel %vm3317_vm10, %v3543_v39, %v10685_v42  ;;  %v1724_v4 = vrot.slane %v10323_v7, 1  ;;  %v3211_v42 = vsel %vm3183_vm8, %v14491_v51, %v10502_v17  ;;  %v2151_v39 = vor.u32 %v14132_v59, %v11006_v33 }
 0x2cb   : > { %v1912_v17 = vrot.slane %v11009_v53, 1  ;;  %v3278_v11 = vsel %vm3250_vm9, %v3211_v42, %v10440_v32 }
 0x2cc   : > { %4601 = vmatmul.mubr.bf16.gmra.mrb[156].mxu1 %v3355_v26  ;;  %v11024_v9 = vpop.permute.xlu1 %1768  ;;  %v11028_v36 = vpop.permute.xlu0 %2340  ;;  %v1725_v50 = vsel %vm1668_vm2, %v1722_v46, %v1724_v4  ;;  %v1533_v26 = vsel %vm1305_vm1, %v1528_v15, %v1532_v19  ;;  %v14509_v46 = vld [vmem:[#allocation127_spill] sm:$0xff]  ;;  %v14510_v15 = vld [vmem:[#allocation137_spill] sm:$0xff]  ;;  %v11077_v32 = vsel %vm2067_vm3, %v14511_v16, %v2151_v39 }
 0x2cd   : > { %4608 = vmatprep.mubr.bf16.mxu1 %v3622_v34  ;;  %v2031_v34 = vrot.slane %v9431_v55, 7  ;;  %v3545_v2 = vsel %vm3250_vm9, %v3461_v20, %v14510_v15  ;;  %14512 = vst [vmem:[#allocation91_spill] sm:$0xff] %v11077_v32  ;;  %v11079_v42 = vor.u32 %v1913_v61, %v1912_v17  ;;  %v8621_v17 = vld [vmem:[%s13966_s3 + $0xe0] sm:$0xff]  }
 0x2ce   : > { %1984 = vrot.lane.b32.xlu1 %v1911_v63, %s8692_s18  ;;  %2293 = vrot.lane.b32.xlu0 %v10323_v7, %s8690_s25  ;;  %v3358_v63 = vsel %vm3317_vm10, %v3278_v11, %v14509_v46  ;;  %v3625_v33 = vsel %vm3317_vm10, %v3545_v2, %v10881_v18  ;;  %v14513_v11 = vld [vmem:[#allocation110_spill] sm:$0xff]  ;;  %v3213_v18 = vsel %vm3183_vm8, %v14500_v48, %v10683_v27  ;;  %v14534_v7 = vld [vmem:[#allocation60_spill] sm:$0xff] }
 0x2cf   : > { %v11082_v46 = vshll.u32 %v14513_v11, 16  ;;  %v11085_v20 = vshrl.u32 %v14513_v11, 16  ;;  %v11094_v16 = vsel %vm1999_vm4, %v2029_v38, %v2031_v34  ;;  %v1915_v27 = vsel %vm1800_vm5, %v1910_v45, %v11079_v42  ;;  %4793 = vmatpush1.bf16.msra.mxu1 %v8621_v17 }
 0x2d0   : > { %v11048_v1 = vpop.permute.xlu1 %1603  ;;  %v11050_v12 = vpop.permute.xlu0 %2207  ;;  %14515 = vst [vmem:[#allocation97_spill] sm:$0xff] %v11094_v16  ;;  %v3464_v2 = vsel %vm3183_vm8, %v11094_v16, %v10905_v13  ;;  %v1536_v38 = vor.u32 %v11009_v53, %v1532_v19  ;;  %v14516_v13 = vld [vmem:[#allocation138_spill] sm:$0xff]  ;;  %4794 = vmatprep.subr.bf16.mxu1 %v14379_v22 }
 0x2d1   : > { %14514 = vst [vmem:[#allocation21_spill] sm:$0xff] %v11082_v46  ;;  %v1540_v61 = vrot.slane %v11082_v46, 1  ;;  %v3280_v15 = vsel %vm3250_vm9, %v3213_v18, %v14516_v13  ;;  %v3547_v45 = vsel %vm3250_vm9, %v3464_v2, %v10854_v0  ;;  %v1917_v2 = vrot.slane %v11082_v46, 2 }
 0x2d2   : > { %1788 = vrot.lane.b32.xlu1 %v1725_v50, %s8690_s25  ;;  %2360 = vrot.lane.b32.xlu0 %v1533_v26, %s8692_s18  ;;  %v3361_v16 = vsel %vm3317_vm10, %v3280_v15, %v10773_v14  ;;  %v14518_v14 = vrot.slane %v11085_v20, 7 }
 0x2d3   : > { %v1541_v18 = vsel %vm1305_vm1, %v1536_v38, %v1540_v61 }
 0x2d4   : > { %4609 = vmatmul.mubr.bf16.gmra.mrb[160].mxu1 %v3358_v63  ;;  %v11068_v59 = vpop.permute.xlu1 %1966  ;;  %v11072_v50 = vpop.permute.xlu0 %2275  ;;  %v2154_v0 = vor.u32 %v14518_v14, %v11082_v46  ;;  %v14524_v46 = vrot.slane %v11009_v53, 7  ;;  %v8622_v53 = vld [vmem:[%s13966_s3 + $0xe8] sm:$0xff]  }
 0x2d5   : > { %4616 = vmatprep.mubr.bf16.mxu1 %v3625_v33  ;;  %4795 = vmatpush1.bf16.msra.mxu1 %v8622_v53 }
 0x2d6   : > { %1623 = vrot.lane.b32.xlu1 %v1533_v26, %s8691_s15  ;;  %2227 = vrot.lane.b32.xlu0 %v11077_v32, %s8691_s15  ;;  %v1726_v26 = vrot.slane %v14513_v11, 1  ;;  %v14517_v32 = vld [vmem:[#allocation46_spill] sm:$0xff] }
 0x2d7   : > { %v2033_v21 = vrot.slane %v14517_v32, 7  ;;  %4796 = vmatprep.subr.bf16.mxu1 %v14379_v22 }
 0x2d8   : > { %v11099_v33 = vpop.permute.xlu1 %1770  ;;  %v11101_v39 = vpop.permute.xlu0 %2342  ;;  %v1727_v60 = vsel %vm1668_vm2, %v1724_v4, %v1726_v26  ;;  %v3215_v4 = vsel %vm3183_vm8, %v9344_v10, %v10903_v37  ;;  %v11161_v37 = vsel %vm2067_vm3, %v14524_v46, %v2154_v0 }
 0x2d9   : > { %v11145_v38 = vsel %vm1999_vm4, %v2031_v34, %v2033_v21  ;;  %14525 = vst [vmem:[#allocation154_spill] sm:$0xff] %v11161_v37 }
 0x2da   : > { %1986 = vrot.lane.b32.xlu1 %v1915_v27, %s8692_s18  ;;  %2295 = vrot.lane.b32.xlu0 %v14513_v11, %s8690_s25  ;;  %v3628_v27 = vsel %vm3317_vm10, %v3547_v45, %v10955_v8  ;;  %v14519_v8 = vld [vmem:[#allocation118_spill] sm:$0xff]  ;;  %14521 = vst [vmem:[#allocation137_spill] sm:$0xff] %v11145_v38  ;;  %v3467_v13 = vsel %vm3183_vm8, %v11145_v38, %v10976_v24 }
 0x2db   : > { %v11139_v17 = vshll.u32 %v14519_v8, 16  ;;  %v3282_v24 = vsel %vm3250_vm9, %v3215_v4, %v10877_v5  ;;  %v1544_v38 = vor.u32 %v11085_v20, %v1540_v61  ;;  %v3549_v0 = vsel %vm3250_vm9, %v3467_v13, %v10928_v54 }
 0x2dc   : > { %4617 = vmatmul.mubr.bf16.gmra.mrb[164].mxu1 %v3361_v16  ;;  %v11122_v19 = vpop.permute.xlu1 %1605  ;;  %v11126_v63 = vpop.permute.xlu0 %2209  ;;  %v1916_v16 = vrot.slane %v11085_v20, 1  ;;  %v3364_v46 = vsel %vm3317_vm10, %v3282_v24, %v10924_v49  ;;  %v3631_v11 = vsel %vm3317_vm10, %v3549_v0, %v11028_v36  ;;  %v14531_v24 = vrot.slane %v14519_v8, 1 }
 0x2dd   : > { %4624 = vmatprep.mubr.bf16.mxu1 %v3628_v27  ;;  %14520 = vst [vmem:[#allocation127_spill] sm:$0xff] %v11139_v17  ;;  %v14523_v27 = vld [vmem:[#allocation53_spill] sm:$0xff]  ;;  %v14146_v14 = vrot.slane %v11139_v17, 1 }
 0x2de   : > { %1790 = vrot.lane.b32.xlu1 %v1727_v60, %s8690_s25  ;;  %2362 = vrot.lane.b32.xlu0 %v1541_v18, %s8692_s18  ;;  %v11155_v60 = vshrl.u32 %v14519_v8, 16  ;;  %v11163_v34 = vor.u32 %v1917_v2, %v1916_v16  ;;  %v14526_v16 = vld [vmem:[#allocation136_spill] sm:$0xff]  ;;  %v14529_v49 = vrot.slane %v14523_v27, 7  ;;  %v1729_v36 = vsel %vm1668_vm2, %v1726_v26, %v14531_v24 }
 0x2df   : > { %v11178_v2 = vshll.u32 %v14526_v16, 16  ;;  %v11188_v4 = vshrl.u32 %v14526_v16, 16  ;;  %v11214_v26 = vshrl.u32 %v10658_v40, 16 }
 0x2e0   : > { %v11150_v15 = vpop.permute.xlu1 %1968  ;;  %v11152_v45 = vpop.permute.xlu0 %2277  ;;  %14522 = vst [vmem:[#allocation138_spill] sm:$0xff] %v11155_v60  ;;  %v14158_v61 = vrot.slane %v11155_v60, 7  ;;  %v11193_v54 = vsel %vm1999_vm4, %v2033_v21, %v14529_v49  ;;  %v1919_v13 = vsel %vm1800_vm5, %v11079_v42, %v11163_v34  ;;  %v1549_v21 = vsel %vm1305_vm1, %v1544_v38, %v14146_v14 }
 0x2e1   : > { %14527 = vst [vmem:[#allocation155_spill] sm:$0xff] %v11178_v2  ;;  %14528 = vst [vmem:[#allocation156_spill] sm:$0xff] %v11188_v4  ;;  %v2971_v42 = vrot.slane %v11188_v4, 5  ;;  %v2972_v0 = vrot.slane %v11178_v2, 6  ;;  %v2639_v49 = vrot.slane %v10658_v40, 7 }
 0x2e2   : > { %1625 = vrot.lane.b32.xlu1 %v1541_v18, %s8691_s15  ;;  %2229 = vrot.lane.b32.xlu0 %v11161_v37, %s8691_s15  ;;  %14530 = vst [vmem:[#allocation157_spill] sm:$0xff] %v11193_v54  ;;  %14532 = vst [vmem:[#allocation158_spill] sm:$0xff] %v11214_v26  ;;  %v2157_v14 = vor.u32 %v14158_v61, %v11139_v17  ;;  %v1921_v37 = vrot.slane %v11139_v17, 2  ;;  %v2037_v61 = vrot.slane %v14534_v7, 7 }
 0x2e4   : > { %4625 = vmatmul.mubr.bf16.gmra.mrb[168].mxu1 %v3364_v46  ;;  %v11180_v18 = vpop.permute.xlu1 %1772  ;;  %v11184_v5 = vpop.permute.xlu0 %2344  ;;  %v3217_v46 = vsel %vm3183_vm8, %v9431_v55, %v10972_v56  ;;  %v11217_v56 = vshll.u32 %v10658_v40, 16 }
 0x2e5   : > { %4632 = vmatprep.mubr.bf16.mxu1 %v3631_v11  ;;  %v1920_v11 = vrot.slane %v11155_v60, 1  ;;  %v3284_v30 = vsel %vm3250_vm9, %v3217_v46, %v10953_v29  ;;  %v11248_v46 = vor.u32 %v2972_v0, %v2971_v42  ;;  %v14544_v42 = vld [vmem:[#allocation123_spill] sm:$0xff]  ;;  %v14548_v0 = vrot.slane %v14523_v27, 7 }
 0x2e6   : > { %1988 = vrot.lane.b32.xlu1 %v1919_v13, %s8692_s18  ;;  %2297 = vrot.lane.b32.xlu0 %v14519_v8, %s8690_s25  ;;  %14533 = vst [vmem:[#allocation159_spill] sm:$0xff] %v11217_v56  ;;  %v3470_v13 = vsel %vm3183_vm8, %v11193_v54, %v11050_v12  ;;  %v2975_v54 = vrot.slane %v11214_v26, 5  ;;  %v2976_v10 = vrot.slane %v11217_v56, 6  ;;  %v3367_v31 = vsel %vm3317_vm10, %v3284_v30, %v10996_v57 }
 0x2e7   : > { %v3551_v29 = vsel %vm3250_vm9, %v3470_v13, %v10998_v41  ;;  %14535 = vst [vmem:[#allocation160_spill] sm:$0xff] %v11248_v46  ;;  %v14537_v56 = vrot.slane %v14526_v16, 7  ;;  %v1922_v55 = vor.u32 %v1921_v37, %v1920_v11  ;;  %v14539_v41 = vrot.slane %v10658_v40, 5 }
 0x2e8   : > { %v11223_v24 = vpop.permute.xlu1 %1607  ;;  %v11225_v38 = vpop.permute.xlu0 %2211  ;;  %v11250_v12 = vor.u32 %v2976_v10, %v2975_v54  ;;  %v3634_v30 = vsel %vm3317_vm10, %v3551_v29, %v11101_v39  ;;  %v14540_v10 = vrot.slane %v14526_v16, 5  ;;  %v11277_v39 = vshll.u32 %v14544_v42, 16 }
 0x2e9   : > { %v11255_v26 = vsel %vm1999_vm4, %v14537_v56, %v2639_v49  ;;  %v11280_v37 = vshrl.u32 %v14544_v42, 16  ;;  %v11296_v56 = vsel %vm1999_vm4, %v14548_v0, %v2037_v61  ;;  %v14550_v0 = vld [vmem:[#allocation64_spill] sm:$0xff] }
 0x2ea   : > { %1792 = vrot.lane.b32.xlu1 %v1729_v36, %s8690_s25  ;;  %2364 = vrot.lane.b32.xlu0 %v1549_v21, %s8692_s18  ;;  %14536 = vst [vmem:[#allocation161_spill] sm:$0xff] %v11250_v12  ;;  %14538 = vst [vmem:[#allocation162_spill] sm:$0xff] %v11255_v26  ;;  %v11269_v53 = vsel %vm2781_vm11, %v14540_v10, %v14539_v41  ;;  %v11285_v11 = vsel %vm2847_vm6, %v11248_v46, %v11250_v12  ;;  %v14549_v41 = vrot.slane %v11139_v17, 1 }
 0x2eb   : > { %14541 = vst [vmem:[#allocation163_spill] sm:$0xff] %v11269_v53  ;;  %14545 = vst [vmem:[#allocation165_spill] sm:$0xff] %v11277_v39  ;;  %v3473_v49 = vsel %vm3183_vm8, %v11296_v56, %v11126_v63  ;;  %v1556_v10 = vrot.slane %v11277_v39, 1  ;;  %v14551_v12 = vrot.slane %v14544_v42, 1  ;;  %v14552_v26 = vrot.slane %v14519_v8, 1 }
 0x2ec   : > { %4633 = vmatmul.mubr.bf16.gmra.mrb[172].mxu1 %v3367_v31  ;;  %v11257_v36 = vpop.permute.xlu1 %1970  ;;  %v11261_v57 = vpop.permute.xlu0 %2279  ;;  %v14542_v31 = vrot.slane %v11085_v20, 7  ;;  %14546 = vst [vmem:[#allocation166_spill] sm:$0xff] %v11280_v37  ;;  %14547 = vst [vmem:[#allocation167_spill] sm:$0xff] %v11285_v11 }
 0x2ed   : > { %4640 = vmatprep.mubr.bf16.mxu1 %v3634_v30  ;;  %v1923_v30 = vsel %vm1800_vm5, %v11163_v34, %v1922_v55 }
 0x2ee   : > { %v11274_v54 = vsel %vm2067_vm3, %v14542_v31, %v2157_v14  ;;  %1627 = vrot.lane.b32.xlu1 %v1549_v21, %s8691_s15  ;;  %v3219_v14 = vsel %vm3183_vm8, %v14517_v32, %v11048_v1  ;;  %v1552_v1 = vor.u32 %v11155_v60, %v14549_v41  ;;  %v2039_v21 = vrot.slane %v14550_v0, 7 }
 0x2ef   : > { %14543 = vst [vmem:[#allocation164_spill] sm:$0xff] %v11274_v54  ;;  %2231 = vrot.lane.b32.xlu0 %v11274_v54, %s8691_s15  ;;  %v3286_v63 = vsel %vm3250_vm9, %v3219_v14, %v11024_v9  ;;  %v3553_v41 = vsel %vm3250_vm9, %v3473_v49, %v11072_v50  ;;  %v1731_v9 = vsel %vm1668_vm2, %v14552_v26, %v14551_v12  ;;  %v1924_v49 = vrot.slane %v11280_v37, 1 }
 0x2f0   : > { %v11301_v13 = vpop.permute.xlu1 %1774  ;;  %v2347_v29 = vpop.permute.xlu0 %2346  ;;  %v3370_v34 = vsel %vm3317_vm10, %v3286_v63, %v11068_v59  ;;  %v1557_v14 = vsel %vm1305_vm1, %v1552_v1, %v1556_v10  ;;  %v14553_v59 = vrot.slane %v11280_v37, 7  ;;  %v1925_v63 = vrot.slane %v11277_v39, 2 }
 0x2f1   : > { %v11342_v26 = vsel %vm1999_vm4, %v2037_v61, %v2039_v21  ;;  %v8623_v61 = vld [vmem:[%s13966_s3 + $0xf0] sm:$0xff]  }
 0x2f2   : > { %1990 = vrot.lane.b32.xlu1 %v1923_v30, %s8692_s18  ;;  %v3637_v30 = vsel %vm3317_vm10, %v3553_v41, %v11184_v5  ;;  %v2160_v50 = vor.u32 %v14553_v59, %v11277_v39  ;;  %v3221_v5 = vsel %vm3183_vm8, %v14523_v27, %v11122_v19  ;;  %v3476_v12 = vsel %vm3183_vm8, %v11342_v26, %v11225_v38  ;;  %v14556_v59 = vld [vmem:[#allocation128_spill] sm:$0xff] }
 0x2f3   : > { %2299 = vrot.lane.b32.xlu0 %v14544_v42, %s8690_s25  ;;  %v14554_v41 = vrot.slane %v11155_v60, 7  ;;  %v11355_v40 = vshll.u32 %v14556_v59, 16  ;;  %v11358_v19 = vshrl.u32 %v14556_v59, 16  ;;  %v3288_v38 = vsel %vm3250_vm9, %v3221_v5, %v11099_v33  ;;  %4797 = vmatpush1.bf16.msra.mxu1 %v8623_v61  ;;  %v14601_v39 = vld [vmem:[#allocation92_spill] sm:$0xff] }
 0x2f4   : > { %4641 = vmatmul.mubr.bf16.gmra.mrb[176].mxu1 %v3370_v34  ;;  %v11321_v53 = vpop.permute.xlu1 %1609  ;;  %v2214_v31 = vpop.permute.xlu0 %2213  ;;  %4798 = vmatprep.subr.bf16.mxu1 %v14379_v22  ;;  %v1560_v5 = vor.u32 %v11280_v37, %v1556_v10  ;;  %v1732_v61 = vrot.slane %v14556_v59, 1  ;;  %v14560_v22 = vrot.slane %v14544_v42, 1 }
 0x2f5   : > { %4648 = vmatprep.mubr.bf16.mxu1 %v3637_v30  ;;  %v11350_v30 = vsel %vm2067_vm3, %v14554_v41, %v2160_v50  ;;  %14557 = vst [vmem:[#allocation169_spill] sm:$0xff] %v11355_v40  ;;  %14558 = vst [vmem:[#allocation170_spill] sm:$0xff] %v11358_v19  ;;  %v14559_v50 = vld [vmem:[#allocation69_spill] sm:$0xff]  ;;  %v3555_v41 = vsel %vm3250_vm9, %v3476_v12, %v11152_v45  ;;  %v3223_v45 = vsel %vm3183_vm8, %v14534_v7, %v11223_v24 }
 0x2f6   : > { %1794 = vrot.lane.b32.xlu1 %v1731_v9, %s8690_s25  ;;  %14555 = vst [vmem:[#allocation168_spill] sm:$0xff] %v11350_v30  ;;  %v11352_v9 = vor.u32 %v1925_v63, %v1924_v49  ;;  %v2041_v49 = vrot.slane %v14559_v50, 7  ;;  %v3373_v63 = vsel %vm3317_vm10, %v3288_v38, %v11150_v15  ;;  %v1564_v15 = vrot.slane %v11355_v40, 1 }
 0x2f7   : > { %2366 = vrot.lane.b32.xlu0 %v1557_v14, %s8692_s18  ;;  %v14168_v38 = vrot.slane %v11358_v19, 7  ;;  %v3290_v24 = vsel %vm3250_vm9, %v3223_v45, %v11180_v18  ;;  %v14561_v18 = vrot.slane %v11280_v37, 7  ;;  %v14602_v37 = vld [vmem:[#allocation76_spill] sm:$0xff] }
 0x2f8   : > { %v1973_v1 = vpop.permute.xlu1 %1972  ;;  %v2282_v34 = vpop.permute.xlu0 %2281  ;;  %v1927_v33 = vsel %vm1800_vm5, %v1922_v55, %v11352_v9 }
 0x2fa   : > { %1629 = vrot.lane.b32.xlu1 %v1557_v14, %s8691_s15  ;;  %v3640_v14 = vsel %vm3317_vm10, %v3555_v41, %v2347_v29  ;;  %v11389_v29 = vsel %vm1999_vm4, %v2039_v21, %v2041_v49  ;;  %v2163_v41 = vor.u32 %v14168_v38, %v11355_v40  ;;  %v2043_v21 = vrot.slane %v10019_v35, 7 }
 0x2fb   : > { %2233 = vrot.lane.b32.xlu0 %v11350_v30, %s8691_s15  ;;  %v3479_v55 = vsel %vm3183_vm8, %v11389_v29, %v2214_v31  ;;  %v3376_v31 = vsel %vm3317_vm10, %v3290_v24, %v11257_v36  ;;  %v1733_v30 = vsel %vm1668_vm2, %v14560_v22, %v1732_v61 }
 0x2fc   : > { %4649 = vmatmul.mubr.bf16.gmra.mrb[180].mxu1 %v3373_v63  ;;  %v11373_v11 = vpop.permute.xlu1 %1776  ;;  %v2349_v46 = vpop.permute.xlu0 %2348  ;;  %v1565_v63 = vsel %vm1305_vm1, %v1560_v5, %v1564_v15  ;;  %v11414_v45 = vsel %vm2067_vm3, %v14561_v18, %v2163_v41  ;;  %v11423_v36 = vsel %vm1999_vm4, %v2041_v49, %v2043_v21  ;;  %v14564_v41 = vld [vmem:[#allocation20_spill] sm:$0xff]  ;;  %v1568_v18 = vor.u32 %v11358_v19, %v1564_v15 }
 0x2fd   : > { %4656 = vmatprep.mubr.bf16.mxu1 %v3640_v14  ;;  %v3557_v14 = vsel %vm3250_vm9, %v3479_v55, %v11261_v57  ;;  %14562 = vst [vmem:[#allocation171_spill] sm:$0xff] %v11414_v45 }
 0x2fe   : > { %1992 = vrot.lane.b32.xlu1 %v1927_v33, %s8692_s18  ;;  %v3643_v5 = vsel %vm3317_vm10, %v3557_v14, %v2349_v46  ;;  %v3225_v46 = vsel %vm3183_vm8, %v14550_v0, %v11321_v53  ;;  %v8624_v53 = vld [vmem:[%s13966_s3 + $0xf8] sm:$0xff]  }
 0x2ff   : > { %2301 = vrot.lane.b32.xlu0 %v14556_v59, %s8690_s25  ;;  %4799 = vmatpush1.bf16.msra.mxu1 %v8624_v53 }
 0x300   : > { %v1612_v10 = vpop.permute.xlu1 %1611  ;;  %v2216_v12 = vpop.permute.xlu0 %2215 }
 0x301   : > { %v3482_v22 = vsel %vm3183_vm8, %v11423_v36, %v2216_v12 }
 0x302   : > { %1798 = vrot.lane.b32.xlu1 %v1732_v61, %s8690_s25  ;;  %v14563_v61 = vld [vmem:[#allocation28_spill] sm:$0xff]  ;;  %v3559_v12 = vsel %vm3250_vm9, %v3482_v22, %v2282_v34 }
 0x303   : > { %2368 = vrot.lane.b32.xlu0 %v1565_v63, %s8692_s18  ;;  %v2886_v24 = vsel %vm2847_vm6, %v14564_v41, %v14563_v61  ;;  %v1928_v61 = vrot.slane %v11358_v19, 1 }
 0x304   : > { %4657 = vmatmul.mubr.bf16.gmra.mrb[184].mxu1 %v3376_v31  ;;  %v1975_v33 = vpop.permute.xlu1 %1974  ;;  %v2284_v38 = vpop.permute.xlu0 %2283  ;;  %v2045_v31 = vrot.slane %v10072_v28, 7 }
 0x305   : > { %4664 = vmatprep.mubr.bf16.mxu1 %v3643_v5 }
 0x306   : > { %1796 = vrot.lane.b32.xlu1 %v1733_v30, %s8690_s25  ;;  %v3292_v30 = vsel %vm3250_vm9, %v3225_v46, %v11301_v13  ;;  %v1929_v13 = vrot.slane %v11355_v40, 2  ;;  %v2305_v46 = vrot.slane %v11178_v2, 1  ;;  %v11451_v34 = vsel %vm1999_vm4, %v2043_v21, %v2045_v31  ;;  %v14594_v40 = vld [vmem:[#allocation26_spill] sm:$0xff] }
 0x307   : > { %2235 = vrot.lane.b32.xlu0 %v11414_v45, %s8691_s15  ;;  %v3379_v49 = vsel %vm3317_vm10, %v3292_v30, %v1973_v1  ;;  %v3227_v1 = vsel %vm3183_vm8, %v14559_v50, %v1612_v10  ;;  %v14171_v30 = vrot.slane %v11188_v4, 7  ;;  %v14586_v45 = vld [vmem:[#allocation24_spill] sm:$0xff] }
 0x308   : > { %v1779_v57 = vpop.permute.xlu1 %1778  ;;  %v2351_v55 = vpop.permute.xlu0 %2350  ;;  %v3294_v10 = vsel %vm3250_vm9, %v3227_v1, %v11373_v11  ;;  %v2394_v1 = vrot.slane %v14472_v52, 6 }
 0x309   : > { %v3646_v5 = vsel %vm3317_vm10, %v3559_v12, %v2351_v55  ;;  %v1930_v55 = vor.u32 %v1929_v13, %v1928_v61  ;;  %v3382_v21 = vsel %vm3317_vm10, %v3294_v10, %v1975_v33  ;;  %v2307_v12 = vor.u32 %v2305_v46, %v11188_v4 }
 0x30a   : > { %1631 = vrot.lane.b32.xlu1 %v1565_v63, %s8691_s15  ;;  %v2171_v61 = vor.u32 %v11178_v2, %v14171_v30 }
 0x30b   : > { %2995 = vrot.lane.b32.xlu0 %v2886_v24, %s8691_s15  ;;  %v2306_v24 = vsel %vm1305_vm1, %v1568_v18, %v2305_v46  ;;  %vm13936_vm1 = vmand %vm2374_vm0, %vm2440_vm7 }
 0x30c   : > { %4665 = vmatmul.mubr.bf16.gmra.mrb[188].mxu1 %v3379_v49  ;;  %v1614_v14 = vpop.permute.xlu1 %1613  ;;  %v2218_v63 = vpop.permute.xlu0 %2217 }
 0x30d   : > { %4672 = vmatprep.mubr.bf16.mxu1 %v3646_v5  ;;  %v3485_v41 = vsel %vm3183_vm8, %v11451_v34, %v2218_v63  ;;  %v1931_v63 = vsel %vm1800_vm5, %v11352_v9, %v1930_v55  ;;  %v3229_v11 = vsel %vm3183_vm8, %v10019_v35, %v1614_v14  ;;  %v14565_v9 = vrot.slane %v11358_v19, 7 }
 0x30e   : > { %1633 = vrot.lane.b32.xlu1 %v1568_v18, %s8691_s15  ;;  %v3561_v5 = vsel %vm3250_vm9, %v3485_v41, %v2284_v38  ;;  %v2047_v38 = vrot.slane %v10105_v6, 7  ;;  %v3296_v14 = vsel %vm3250_vm9, %v3229_v11, %v1779_v57  ;;  %v14571_v11 = vld [vmem:[#allocation22_spill] sm:$0xff] }
 0x30f   : > { %2303 = vrot.lane.b32.xlu0 %v14526_v16, %s8690_s25  ;;  %v11478_v46 = vsel %vm2067_vm3, %v14565_v9, %v2171_v61  ;;  %v14570_v61 = vld [vmem:[#allocation29_spill] sm:$0xff] }
 0x310   : > { %v1977_v15 = vpop.permute.xlu1 %1976  ;;  %v2286_v22 = vpop.permute.xlu0 %2285  ;;  %14566 = vst [vmem:[#allocation28_spill] sm:$0xff] %v11478_v46 }
 0x311   : > { %v3385_v41 = vsel %vm3317_vm10, %v3296_v14, %v1977_v15 }
 0x312   : > { %1996 = vrot.lane.b32.xlu1 %v1930_v55, %s8692_s18  ;;  %v14567_v55 = vld [vmem:[#allocation11_spill] sm:$0xff] }
 0x313   : > { %2370 = vrot.lane.b32.xlu0 %v2306_v24, %s8692_s18  ;;  %v11488_v24 = vsel %vm1999_vm4, %v2045_v31, %v2047_v38 }
 0x314   : > { %4673 = vmatmul.mubr.bf16.gmra.mrb[192].mxu1 %v3382_v21  ;;  %v1781_v53 = vpop.permute.xlu1 %1780  ;;  %v2353_v49 = vpop.permute.xlu0 %2352 }
 0x315   : > { %v3649_v18 = vsel %vm3317_vm10, %v3561_v5, %v2353_v49 }
 0x316   : > { %1994 = vrot.lane.b32.xlu1 %v1931_v63, %s8692_s18  ;;  %4680 = vmatprep.mubr.bf16.mxu1 %v3649_v18  ;;  %v14569_v63 = vld [vmem:[#allocation23_spill] sm:$0xff] }
 0x317   : > { %2372 = vrot.lane.b32.xlu0 %v2307_v12, %s8692_s18  ;;  %v14568_v12 = vrot.slane %v14459_v25, 6 }
 0x318   : > { %v1616_v33 = vpop.permute.xlu1 %1615  ;;  %v2220_v13 = vpop.permute.xlu0 %2219 }
 0x319   : > { %v3488_v49 = vsel %vm3183_vm8, %v11488_v24, %v2220_v13  ;;  %v11495_v5 = vsel %vm2374_vm0, %v14568_v12, %v2394_v1  ;;  %v3231_v57 = vsel %vm3183_vm8, %v10072_v28, %v1616_v33  ;;  %v2483_v13 = vsel %vm2440_vm7, %v14571_v11, %v14570_v61  ;;  %v14572_v12 = vld [vmem:[#allocation19_spill] sm:$0xff] }
 0x31a   : > { %2729 = vrot.lane.b32.xlu1 %v14567_v55, %s8692_s18  ;;  %v3563_v18 = vsel %vm3250_vm9, %v3488_v49, %v2286_v22  ;;  %v3298_v55 = vsel %vm3250_vm9, %v3231_v57, %v1781_v53  ;;  %v2049_v22 = vrot.slane %v10182_v43, 7  ;;  %v2396_v49 = vrot.slane %v14486_v58, 6 }
 0x31b   : > { %2237 = vrot.lane.b32.xlu0 %v11478_v46, %s8691_s15 }
 0x31c   : > { %4681 = vmatmul.mubr.bf16.gmra.mrb[196].mxu1 %v3385_v41  ;;  %v1979_v10 = vpop.permute.xlu1 %1978  ;;  %v2288_v21 = vpop.permute.xlu0 %2287 }
 0x31d   : > { %v3388_v33 = vsel %vm3317_vm10, %v3298_v55, %v1979_v10 }
 0x31e   : > { %2588 = vrot.lane.b32.xlu1 %v14569_v63, %s8691_s15  ;;  %v14573_v63 = vld [vmem:[#allocation30_spill] sm:$0xff] }
 0x31f   : > { %3063 = vrot.lane.b32.xlu0 %v11495_v5, %s8690_s25 }
 0x320   : > { %v1783_v31 = vpop.permute.xlu1 %1782  ;;  %v2355_v15 = vpop.permute.xlu0 %2354 }
 0x321   : > { %v3652_v9 = vsel %vm3317_vm10, %v3563_v18, %v2355_v15  ;;  %v11525_v15 = vsel %vm2374_vm0, %v2394_v1, %v2396_v49  ;;  %v14574_v1 = vld [vmem:[#allocation31_spill] sm:$0xff] }
 0x322   : > { %2657 = vrot.lane.b32.xlu1 %v10802_v23, %s8690_s25  ;;  %4688 = vmatprep.mubr.bf16.mxu1 %v3652_v9  ;;  %v11520_v23 = vsel %vm1999_vm4, %v2047_v38, %v2049_v22 }
 0x323   : > { %3133 = vrot.lane.b32.xlu0 %v2483_v13, %s8692_s18 }
 0x324   : > { %4689 = vmatmul.mubr.bf16.gmra.mrb[200].mxu1 %v3388_v33  ;;  %v1618_v14 = vpop.permute.xlu1 %1617  ;;  %v2222_v41 = vpop.permute.xlu0 %2221 }
 0x325   : > { %v3491_v10 = vsel %vm3183_vm8, %v11520_v23, %v2222_v41  ;;  %v3233_v18 = vsel %vm3183_vm8, %v10105_v6, %v1618_v14  ;;  %v2051_v14 = vrot.slane %v10228_v47, 7 }
 0x326   : > { %2731 = vrot.lane.b32.xlu1 %v14572_v12, %s8692_s18  ;;  %v3565_v38 = vsel %vm3250_vm9, %v3491_v10, %v2288_v21  ;;  %v2398_v21 = vrot.slane %v14491_v51, 6  ;;  %v14575_v12 = vld [vmem:[#allocation27_spill] sm:$0xff] }
 0x327   : > { %2997 = vrot.lane.b32.xlu0 %v14573_v63, %s8691_s15  ;;  %v11547_v63 = vsel %vm1999_vm4, %v2049_v22, %v2051_v14 }
 0x328   : > { %v1981_v53 = vpop.permute.xlu1 %1980  ;;  %v2290_v57 = vpop.permute.xlu0 %2289 }
 0x32a   : > { %2590 = vrot.lane.b32.xlu1 %v2483_v13, %s8691_s15  ;;  %v3300_v13 = vsel %vm3250_vm9, %v3233_v18, %v1783_v31  ;;  %v11552_v18 = vsel %vm2374_vm0, %v2396_v49, %v2398_v21  ;;  %v14578_v49 = vld [vmem:[#allocation33_spill] sm:$0xff] }
 0x32b   : > { %3065 = vrot.lane.b32.xlu0 %v11525_v15, %s8690_s25  ;;  %v3391_v55 = vsel %vm3317_vm10, %v3300_v13, %v1981_v53  ;;  %14577 = vst [vmem:[#allocation20_spill] sm:$0xff] %v11552_v18 }
 0x32c   : > { %v1785_v61 = vpop.permute.xlu1 %1784  ;;  %v2357_v11 = vpop.permute.xlu0 %2356 }
 0x32d   : > { %v3655_v9 = vsel %vm3317_vm10, %v3565_v38, %v2357_v11 }
 0x32e   : > { %2659 = vrot.lane.b32.xlu1 %v10847_v62, %s8690_s25  ;;  %4696 = vmatprep.mubr.bf16.mxu1 %v3655_v9  ;;  %v14576_v62 = vld [vmem:[#allocation32_spill] sm:$0xff] }
 0x32f   : > { %3135 = vrot.lane.b32.xlu0 %v14574_v1, %s8692_s18  ;;  %4697 = vmatmul.mubr.bf16.gmra.mrb[204].mxu1 %v3391_v55 }
 0x330   : > { %v1620_v33 = vpop.permute.xlu1 %1619  ;;  %v2224_v41 = vpop.permute.xlu0 %2223 }
 0x331   : > { %v3494_v53 = vsel %vm3183_vm8, %v11547_v63, %v2224_v41  ;;  %v3235_v11 = vsel %vm3183_vm8, %v10182_v43, %v1620_v33  ;;  %v2053_v33 = vrot.slane %v10280_v44, 7 }
 0x332   : > { %2733 = vrot.lane.b32.xlu1 %v14575_v12, %s8692_s18  ;;  %v3567_v9 = vsel %vm3250_vm9, %v3494_v53, %v2290_v57  ;;  %v2400_v57 = vrot.slane %v14500_v48, 6 }
 0x333   : > { %2999 = vrot.lane.b32.xlu0 %v14576_v62, %s8691_s15  ;;  %v14579_v62 = vld [vmem:[#allocation43_spill] sm:$0xff]  ;;  %v11575_v53 = vsel %vm1999_vm4, %v2051_v14, %v2053_v33 }
 0x334   : > { %v1983_v31 = vpop.permute.xlu1 %1982  ;;  %v2292_v10 = vpop.permute.xlu0 %2291  ;;  %14581 = vst [vmem:[#allocation11_spill] sm:$0xff] %v11575_v53 }
 0x336   : > { %2592 = vrot.lane.b32.xlu1 %v14574_v1, %s8691_s15  ;;  %v3302_v1 = vsel %vm3250_vm9, %v3235_v11, %v1785_v61 }
 0x337   : > { %3067 = vrot.lane.b32.xlu0 %v11552_v18, %s8690_s25  ;;  %v3394_v55 = vsel %vm3317_vm10, %v3302_v1, %v1983_v31  ;;  %v14690_v18 = vld [vmem:[#allocation4_spill] sm:$0xff] }
 0x338   : > { %v1787_v38 = vpop.permute.xlu1 %1786  ;;  %v2359_v22 = vpop.permute.xlu0 %2358 }
 0x339   : > { %v3658_v13 = vsel %vm3317_vm10, %v3567_v9, %v2359_v22  ;;  %v11580_v22 = vsel %vm2374_vm0, %v2398_v21, %v2400_v57  ;;  %v14584_v21 = vld [vmem:[#allocation35_spill] sm:$0xff] }
 0x33a   : > { %2661 = vrot.lane.b32.xlu1 %v10898_v3, %s8690_s25  ;;  %4704 = vmatprep.mubr.bf16.mxu1 %v3658_v13  ;;  %v14580_v3 = vld [vmem:[#allocation34_spill] sm:$0xff]  ;;  %14582 = vst [vmem:[#allocation23_spill] sm:$0xff] %v11580_v22 }
 0x33b   : > { %3137 = vrot.lane.b32.xlu0 %v14578_v49, %s8692_s18  ;;  %4705 = vmatmul.mubr.bf16.gmra.mrb[208].mxu1 %v3394_v55 }
 0x33c   : > { %v1622_v41 = vpop.permute.xlu1 %1621  ;;  %v2226_v12 = vpop.permute.xlu0 %2225 }
 0x33d   : > { %v3497_v31 = vsel %vm3183_vm8, %v11575_v53, %v2226_v12  ;;  %v3237_v9 = vsel %vm3183_vm8, %v10228_v47, %v1622_v41  ;;  %v14583_v12 = vld [vmem:[#allocation75_spill] sm:$0xff]  ;;  %v14585_v41 = vld [vmem:[#allocation106_spill] sm:$0xff] }
 0x33e   : > { %2735 = vrot.lane.b32.xlu1 %v14579_v62, %s8692_s18  ;;  %v3569_v1 = vsel %vm3250_vm9, %v3497_v31, %v2292_v10  ;;  %v2055_v30 = vrot.slane %v14585_v41, 7  ;;  %v2402_v10 = vrot.slane %v14586_v45, 6  ;;  %v14587_v31 = vld [vmem:[#allocation62_spill] sm:$0xff] }
 0x33f   : > { %3001 = vrot.lane.b32.xlu0 %v14580_v3, %s8691_s15  ;;  %v14695_v53 = vld [vmem:[#allocation90_spill] sm:$0xff] }
 0x340   : > { %v1985_v61 = vpop.permute.xlu1 %1984  ;;  %v2294_v11 = vpop.permute.xlu0 %2293 }
 0x342   : > { %2594 = vrot.lane.b32.xlu1 %v14578_v49, %s8691_s15  ;;  %v3304_v49 = vsel %vm3250_vm9, %v3237_v9, %v1787_v38 }
 0x343   : > { %3069 = vrot.lane.b32.xlu0 %v11580_v22, %s8690_s25  ;;  %v3397_v62 = vsel %vm3317_vm10, %v3304_v49, %v1985_v61 }
 0x344   : > { %v1789_v13 = vpop.permute.xlu1 %1788  ;;  %v2361_v14 = vpop.permute.xlu0 %2360 }
 0x345   : > { %v3661_v55 = vsel %vm3317_vm10, %v3569_v1, %v2361_v14  ;;  %v14588_v14 = vld [vmem:[#allocation51_spill] sm:$0xff]  ;;  %v11603_v1 = vsel %vm1999_vm4, %v2053_v33, %v2055_v30 }
 0x346   : > { %2663 = vrot.lane.b32.xlu1 %v14583_v12, %s8690_s25  ;;  %4712 = vmatprep.mubr.bf16.mxu1 %v3661_v55  ;;  %14589 = vst [vmem:[#allocation29_spill] sm:$0xff] %v11603_v1  ;;  %v11608_v55 = vsel %vm2374_vm0, %v2400_v57, %v2402_v10  ;;  %v14592_v57 = vld [vmem:[#allocation52_spill] sm:$0xff] }
 0x347   : > { %3139 = vrot.lane.b32.xlu0 %v14584_v21, %s8692_s18  ;;  %4713 = vmatmul.mubr.bf16.gmra.mrb[212].mxu1 %v3397_v62  ;;  %14590 = vst [vmem:[#allocation22_spill] sm:$0xff] %v11608_v55 }
 0x348   : > { %v1624_v3 = vpop.permute.xlu1 %1623  ;;  %v2228_v46 = vpop.permute.xlu0 %2227 }
 0x349   : > { %v3500_v61 = vsel %vm3183_vm8, %v11603_v1, %v2228_v46  ;;  %v3239_v12 = vsel %vm3183_vm8, %v10280_v44, %v1624_v3  ;;  %v14591_v46 = vld [vmem:[#allocation80_spill] sm:$0xff]  ;;  %v14593_v3 = vld [vmem:[#allocation110_spill] sm:$0xff] }
 0x34a   : > { %2737 = vrot.lane.b32.xlu1 %v14587_v31, %s8692_s18  ;;  %v3571_v62 = vsel %vm3250_vm9, %v3500_v61, %v2294_v11  ;;  %v2057_v4 = vrot.slane %v14593_v3, 7  ;;  %v2404_v11 = vrot.slane %v14594_v40, 6  ;;  %v14595_v61 = vld [vmem:[#allocation81_spill] sm:$0xff] }
 0x34b   : > { %3003 = vrot.lane.b32.xlu0 %v14588_v14, %s8691_s15 }
 0x34c   : > { %v1987_v38 = vpop.permute.xlu1 %1986  ;;  %v2296_v9 = vpop.permute.xlu0 %2295 }
 0x34e   : > { %2596 = vrot.lane.b32.xlu1 %v14584_v21, %s8691_s15  ;;  %v3306_v21 = vsel %vm3250_vm9, %v3239_v12, %v1789_v13 }
 0x34f   : > { %3071 = vrot.lane.b32.xlu0 %v11608_v55, %s8690_s25  ;;  %v3400_v14 = vsel %vm3317_vm10, %v3306_v21, %v1987_v38  ;;  %v2059_v55 = vrot.slane %v14519_v8, 7 }
 0x350   : > { %v1791_v49 = vpop.permute.xlu1 %1790  ;;  %v2363_v33 = vpop.permute.xlu0 %2362 }
 0x351   : > { %v3664_v31 = vsel %vm3317_vm10, %v3571_v62, %v2363_v33  ;;  %v14596_v33 = vld [vmem:[#allocation73_spill] sm:$0xff]  ;;  %v11631_v62 = vsel %vm1999_vm4, %v2055_v30, %v2057_v4 }
 0x352   : > { %2665 = vrot.lane.b32.xlu1 %v14591_v46, %s8690_s25  ;;  %4720 = vmatprep.mubr.bf16.mxu1 %v3664_v31  ;;  %14597 = vst [vmem:[#allocation19_spill] sm:$0xff] %v11631_v62  ;;  %v11636_v31 = vsel %vm2374_vm0, %v2402_v10, %v2404_v11  ;;  %v14599_v46 = vld [vmem:[#allocation109_spill] sm:$0xff] }
 0x353   : > { %3141 = vrot.lane.b32.xlu0 %v14592_v57, %s8692_s18  ;;  %4721 = vmatmul.mubr.bf16.gmra.mrb[216].mxu1 %v3400_v14  ;;  %14598 = vst [vmem:[#allocation30_spill] sm:$0xff] %v11636_v31  ;;  %v2907_v21 = vrot.slane %v14599_v46, 5  ;;  %v14600_v14 = vld [vmem:[#allocation108_spill] sm:$0xff] }
 0x354   : > { %v1626_v2 = vpop.permute.xlu1 %1625  ;;  %v2230_v54 = vpop.permute.xlu0 %2229  ;;  %v2908_v19 = vrot.slane %v14600_v14, 6 }
 0x355   : > { %v3503_v38 = vsel %vm3183_vm8, %v11631_v62, %v2230_v54  ;;  %v3241_v30 = vsel %vm3183_vm8, %v14585_v41, %v1626_v2 }
 0x356   : > { %2739 = vrot.lane.b32.xlu1 %v14595_v61, %s8692_s18  ;;  %v3573_v54 = vsel %vm3250_vm9, %v3503_v38, %v2296_v9  ;;  %v2909_v62 = vor.u32 %v2908_v19, %v2907_v21  ;;  %v2406_v9 = vrot.slane %v14517_v32, 6  ;;  %v14603_v38 = vld [vmem:[#allocation71_spill] sm:$0xff]  ;;  %v2505_v21 = vrot.slane %v14600_v14, 7  ;;  %v14608_v14 = vld [vmem:[#allocation116_spill] sm:$0xff] }
 0x357   : > { %3005 = vrot.lane.b32.xlu0 %v14596_v33, %s8691_s15  ;;  %v14609_v32 = vld [vmem:[#allocation72_spill] sm:$0xff] }
 0x358   : > { %v1989_v13 = vpop.permute.xlu1 %1988  ;;  %v2298_v12 = vpop.permute.xlu0 %2297  ;;  %v2910_v19 = vsel %vm2847_vm6, %v14603_v38, %v2909_v62  ;;  %v2912_v38 = vrot.slane %v14608_v14, 6 }
 0x35a   : > { %2598 = vrot.lane.b32.xlu1 %v14592_v57, %s8691_s15  ;;  %v3308_v57 = vsel %vm3250_vm9, %v3241_v30, %v1791_v49  ;;  %v11664_v49 = vsel %vm1999_vm4, %v2057_v4, %v2059_v55  ;;  %v11667_v30 = vsel %vm2374_vm0, %v2404_v11, %v2406_v9 }
 0x35b   : > { %3073 = vrot.lane.b32.xlu0 %v11636_v31, %s8690_s25  ;;  %v3403_v31 = vsel %vm3317_vm10, %v3308_v57, %v1989_v13  ;;  %14605 = vst [vmem:[#allocation31_spill] sm:$0xff] %v11664_v49  ;;  %14606 = vst [vmem:[#allocation27_spill] sm:$0xff] %v11667_v30 }
 0x35c   : > { %v1793_v61 = vpop.permute.xlu1 %1792  ;;  %v2365_v33 = vpop.permute.xlu0 %2364 }
 0x35d   : > { %v3667_v10 = vsel %vm3317_vm10, %v3573_v54, %v2365_v33  ;;  %v14604_v33 = vld [vmem:[#allocation101_spill] sm:$0xff] }
 0x35e   : > { %2667 = vrot.lane.b32.xlu1 %v14601_v39, %s8690_s25  ;;  %4728 = vmatprep.mubr.bf16.mxu1 %v3667_v10  ;;  %v2504_v39 = vrot.slane %v14599_v46, 6  ;;  %v14607_v46 = vld [vmem:[#allocation117_spill] sm:$0xff] }
 0x35f   : > { %3143 = vrot.lane.b32.xlu0 %v14602_v37, %s8692_s18  ;;  %4729 = vmatmul.mubr.bf16.gmra.mrb[220].mxu1 %v3403_v31  ;;  %v2911_v57 = vrot.slane %v14607_v46, 5 }
 0x360   : > { %v1628_v2 = vpop.permute.xlu1 %1627  ;;  %v2506_v10 = vor.u32 %v2505_v21, %v2504_v39 }
 0x361   : > { %v2232_v1 = vpop.permute.xlu0 %2231  ;;  %v3243_v4 = vsel %vm3183_vm8, %v14593_v3, %v1628_v2  ;;  %v2913_v21 = vor.u32 %v2912_v38, %v2911_v57  ;;  %v2508_v57 = vrot.slane %v14607_v46, 6  ;;  %v14611_v38 = vld [vmem:[#allocation107_spill] sm:$0xff]  ;;  %v14614_v46 = vld [vmem:[#allocation122_spill] sm:$0xff] }
 0x362   : > { %2741 = vrot.lane.b32.xlu1 %v14604_v33, %s8692_s18  ;;  %v3506_v54 = vsel %vm3183_vm8, %v11664_v49, %v2232_v1  ;;  %v2507_v1 = vsel %vm2440_vm7, %v14609_v32, %v2506_v10  ;;  %v14610_v49 = vld [vmem:[#allocation97_spill] sm:$0xff]  ;;  %v2408_v32 = vrot.slane %v14523_v27, 6  ;;  %v14689_v3 = vld [vmem:[#allocation7_spill] sm:$0xff] }
 0x363   : > { %3007 = vrot.lane.b32.xlu0 %v2910_v19, %s8691_s15  ;;  %v3575_v33 = vsel %vm3250_vm9, %v3506_v54, %v2298_v12  ;;  %v2061_v12 = vrot.slane %v14544_v42, 7 }
 0x364   : > { %v1991_v13 = vpop.permute.xlu1 %1990 }
 0x365   : > { %v2300_v31 = vpop.permute.xlu0 %2299 }
 0x366   : > { %2600 = vrot.lane.b32.xlu1 %v14602_v37, %s8691_s15  ;;  %v3310_v37 = vsel %vm3250_vm9, %v3243_v4, %v1793_v61  ;;  %v11697_v61 = vsel %vm1999_vm4, %v2059_v55, %v2061_v12 }
 0x367   : > { %3075 = vrot.lane.b32.xlu0 %v11667_v30, %s8690_s25  ;;  %v3406_v2 = vsel %vm3317_vm10, %v3310_v37, %v1991_v13  ;;  %14612 = vst [vmem:[#allocation32_spill] sm:$0xff] %v11697_v61  ;;  %v2915_v37 = vrot.slane %v14614_v46, 5 }
 0x368   : > { %v1795_v19 = vpop.permute.xlu1 %1794 }
 0x369   : > { %v2367_v11 = vpop.permute.xlu0 %2366 }
 0x36a   : > { %v3670_v39 = vsel %vm3317_vm10, %v3575_v33, %v2367_v11  ;;  %2669 = vrot.lane.b32.xlu1 %v14610_v49, %s8690_s25  ;;  %v2914_v11 = vsel %vm2847_vm6, %v2909_v62, %v2913_v21  ;;  %v2509_v49 = vrot.slane %v14608_v14, 7  ;;  %v11700_v33 = vsel %vm2374_vm0, %v2406_v9, %v2408_v32  ;;  %v14615_v14 = vld [vmem:[#allocation121_spill] sm:$0xff] }
 0x36b   : > { %3145 = vrot.lane.b32.xlu0 %v2507_v1, %s8692_s18  ;;  %4736 = vmatprep.mubr.bf16.mxu1 %v3670_v39  ;;  %14613 = vst [vmem:[#allocation33_spill] sm:$0xff] %v11700_v33 }
 0x36c   : > { %4737 = vmatmul.mubr.bf16.gmra.mrb[224].mxu1 %v3406_v2  ;;  %v1630_v30 = vpop.permute.xlu1 %1629  ;;  %v2510_v39 = vor.u32 %v2509_v49, %v2508_v57  ;;  %v2916_v2 = vrot.slane %v14615_v14, 6 }
 0x36d   : > { %v2234_v54 = vpop.permute.xlu0 %2233  ;;  %v3245_v55 = vsel %vm3183_vm8, %v14519_v8, %v1630_v30 }
 0x36e   : > { %2743 = vrot.lane.b32.xlu1 %v14611_v38, %s8692_s18  ;;  %v3509_v62 = vsel %vm3183_vm8, %v11697_v61, %v2234_v54  ;;  %v2511_v54 = vsel %vm2440_vm7, %v2506_v10, %v2510_v39  ;;  %v2917_v49 = vor.u32 %v2916_v2, %v2915_v37  ;;  %v14616_v61 = vld [vmem:[#allocation137_spill] sm:$0xff]  ;;  %v2410_v10 = vrot.slane %v14534_v7, 6 }
 0x36f   : > { %3009 = vrot.lane.b32.xlu0 %v2914_v11, %s8691_s15  ;;  %v3577_v38 = vsel %vm3250_vm9, %v3509_v62, %v2300_v31  ;;  %v2512_v62 = vrot.slane %v14614_v46, 6  ;;  %v2513_v37 = vrot.slane %v14615_v14, 7 }
 0x370   : > { %v1993_v13 = vpop.permute.xlu1 %1992  ;;  %v2918_v31 = vsel %vm2847_vm6, %v2913_v21, %v2917_v49 }
 0x371   : > { %v2302_v4 = vpop.permute.xlu0 %2301  ;;  %v2514_v21 = vor.u32 %v2513_v37, %v2512_v62  ;;  %v14622_v37 = vld [vmem:[#allocation157_spill] sm:$0xff] }
 0x372   : > { %2602 = vrot.lane.b32.xlu1 %v2507_v1, %s8691_s15  ;;  %v3312_v1 = vsel %vm3250_vm9, %v3245_v55, %v1795_v19  ;;  %v2063_v19 = vrot.slane %v14556_v59, 7  ;;  %v11732_v55 = vsel %vm2374_vm0, %v2408_v32, %v2410_v10 }
 0x373   : > { %3077 = vrot.lane.b32.xlu0 %v11700_v33, %s8690_s25  ;;  %v3409_v30 = vsel %vm3317_vm10, %v3312_v1, %v1993_v13  ;;  %14618 = vst [vmem:[#allocation43_spill] sm:$0xff] %v11732_v55  ;;  %v2515_v32 = vsel %vm2440_vm7, %v2510_v39, %v2514_v21 }
 0x374   : > { %v11711_v11 = vpop.permute.xlu1 %1798  ;;  %v11740_v14 = vsel %vm1999_vm4, %v2061_v12, %v2063_v19  ;;  %v2412_v12 = vrot.slane %v14550_v0, 6  ;;  %v14627_v0 = vld [vmem:[#allocation6_spill] sm:$0xff] }
 0x375   : > { %v2369_v9 = vpop.permute.xlu0 %2368  ;;  %14621 = vst [vmem:[#allocation34_spill] sm:$0xff] %v11740_v14 }
 0x376   : > { %v3673_v57 = vsel %vm3317_vm10, %v3577_v38, %v2369_v9  ;;  %2671 = vrot.lane.b32.xlu1 %v14616_v61, %s8690_s25  ;;  %v14617_v61 = vld [vmem:[#allocation115_spill] sm:$0xff]  ;;  %v14619_v9 = vld [vmem:[#allocation126_spill] sm:$0xff] }
 0x377   : > { %3147 = vrot.lane.b32.xlu0 %v2511_v54, %s8692_s18  ;;  %4744 = vmatprep.mubr.bf16.mxu1 %v3673_v57  ;;  %v2919_v38 = vrot.slane %v14619_v9, 5  ;;  %v14620_v57 = vld [vmem:[#allocation125_spill] sm:$0xff]  ;;  %v2516_v7 = vrot.slane %v14619_v9, 6 }
 0x378   : > { %4745 = vmatmul.mubr.bf16.gmra.mrb[228].mxu1 %v3409_v30  ;;  %v1797_v33 = vpop.permute.xlu1 %1796  ;;  %v2920_v46 = vrot.slane %v14620_v57, 6 }
 0x379   : > { %v2236_v27 = vpop.permute.xlu0 %2235 }
 0x37a   : > { %2745 = vrot.lane.b32.xlu1 %v14617_v61, %s8692_s18  ;;  %v2921_v62 = vor.u32 %v2920_v46, %v2919_v38  ;;  %v2517_v38 = vrot.slane %v14620_v57, 7  ;;  %v14623_v46 = vld [vmem:[#allocation54_spill] sm:$0xff] }
 0x37b   : > { %3011 = vrot.lane.b32.xlu0 %v2918_v31, %s8691_s15  ;;  %v3512_v31 = vsel %vm3183_vm8, %v11740_v14, %v2236_v27  ;;  %v14625_v14 = vld [vmem:[#allocation135_spill] sm:$0xff] }
 0x37c   : > { %v1632_v2 = vpop.permute.xlu1 %1631  ;;  %v2922_v27 = vsel %vm2847_vm6, %v2917_v49, %v2921_v62  ;;  %v2518_v49 = vor.u32 %v2517_v38, %v2516_v7 }
 0x37d   : > { %v11729_v13 = vpop.permute.xlu0 %2995  ;;  %v3247_v8 = vsel %vm3183_vm8, %v14544_v42, %v1632_v2  ;;  %v2782_v42 = vrot.slane %v14627_v0, 5 }
 0x37e   : > { %2604 = vrot.lane.b32.xlu1 %v2511_v54, %s8691_s15  ;;  %v3314_v9 = vsel %vm3250_vm9, %v3247_v8, %v1797_v33  ;;  %v14629_v8 = vrot.slane %v14526_v16, 7  ;;  %v14658_v16 = vld [vmem:[#allocation105_spill] sm:$0xff] }
 0x37f   : > { %3079 = vrot.lane.b32.xlu0 %v11732_v55, %s8690_s25  ;;  %v3579_v55 = vsel %vm3250_vm9, %v3512_v31, %v2302_v4 }
 0x380   : > { %v1634_v1 = vpop.permute.xlu1 %1633  ;;  %v11776_v7 = vsel %vm1999_vm4, %v2063_v19, %v14629_v8 }
 0x381   : > { %v2304_v30 = vpop.permute.xlu0 %2303  ;;  %14630 = vst [vmem:[#allocation35_spill] sm:$0xff] %v11776_v7 }
 0x382   : > { %2673 = vrot.lane.b32.xlu1 %v14622_v37, %s8690_s25  ;;  %v11760_v37 = vsel %vm2374_vm0, %v2410_v10, %v2412_v12 }
 0x383   : > { %3149 = vrot.lane.b32.xlu0 %v2515_v32, %s8692_s18  ;;  %14624 = vst [vmem:[#allocation75_spill] sm:$0xff] %v11760_v37 }
 0x384   : > { %v1997_v54 = vpop.permute.xlu1 %1996 }
 0x385   : > { %v2371_v61 = vpop.permute.xlu0 %2370 }
 0x386   : > { %v3676_v39 = vsel %vm3317_vm10, %v3579_v55, %v2371_v61  ;;  %2747 = vrot.lane.b32.xlu1 %v14623_v46, %s8692_s18  ;;  %v2923_v55 = vrot.slane %v14625_v14, 5  ;;  %v14626_v61 = vld [vmem:[#allocation134_spill] sm:$0xff]  ;;  %v14628_v46 = vld [vmem:[#allocation9_spill] sm:$0xff] }
 0x387   : > { %3013 = vrot.lane.b32.xlu0 %v2922_v27, %s8691_s15  ;;  %4752 = vmatprep.mubr.bf16.mxu1 %v3676_v39  ;;  %v2924_v57 = vrot.slane %v14626_v61, 6  ;;  %v2783_v22 = vrot.slane %v14628_v46, 5  ;;  %v2519_v39 = vsel %vm2440_vm7, %v2514_v21, %v2518_v49 }
 0x388   : > { %v1995_v4 = vpop.permute.xlu1 %1994 }
 0x389   : > { %v2373_v31 = vpop.permute.xlu0 %2372  ;;  %v3412_v2 = vsel %vm3317_vm10, %v3314_v9, %v1995_v4  ;;  %v2925_v38 = vor.u32 %v2924_v57, %v2923_v55  ;;  %v3249_v4 = vsel %vm3183_vm8, %v14556_v59, %v1634_v1  ;;  %v14631_v9 = vld [vmem:[#allocation86_spill] sm:$0xff]  ;;  %v2520_v55 = vrot.slane %v14625_v14, 6  ;;  %v14632_v57 = vld [vmem:[#allocation3_spill] sm:$0xff] }
 0x38a   : > { %2606 = vrot.lane.b32.xlu1 %v2515_v32, %s8691_s15  ;;  %4753 = vmatmul.mubr.bf16.gmra.mrb[232].mxu1 %v3412_v2  ;;  %v2784_v32 = vsel %vm2781_vm11, %v2782_v42, %v2783_v22  ;;  %v2414_v42 = vrot.slane %v14559_v50, 6 }
 0x38b   : > { %3081 = vrot.lane.b32.xlu0 %v11760_v37, %s8690_s25  ;;  %v3947_v2 = vsel %vm3183_vm8, %v2784_v32, %v14631_v9  ;;  %v2926_v1 = vsel %vm2847_vm6, %v2921_v62, %v2925_v38  ;;  %v14634_v32 = vld [vmem:[#allocation124_spill] sm:$0xff]  ;;  %v14635_v9 = vld [vmem:[#allocation78_spill] sm:$0xff]  ;;  %v14655_v37 = vld [vmem:[#allocation149_spill] sm:$0xff] }
 0x38c   : > { %v11771_v10 = vpop.permute.xlu1 %2729  ;;  %v4045_v62 = vsel %vm3250_vm9, %v3947_v2, %v14635_v9  ;;  %v14640_v2 = vld [vmem:[#allocation140_spill] sm:$0xff] }
 0x38d   : > { %v2238_v33 = vpop.permute.xlu0 %2237 }
 0x38e   : > { %v3515_v27 = vsel %vm3183_vm8, %v11776_v7, %v2238_v33  ;;  %2675 = vrot.lane.b32.xlu1 %v11296_v56, %s8690_s25  ;;  %v3316_v56 = vsel %vm3250_vm9, %v3249_v4, %v11711_v11  ;;  %v2375_v33 = vrot.slane %v14632_v57, 6  ;;  %v14636_v11 = vld [vmem:[#allocation88_spill] sm:$0xff]  ;;  %v14647_v7 = vld [vmem:[#allocation103_spill] sm:$0xff] }
 0x38f   : > { %3151 = vrot.lane.b32.xlu0 %v2519_v39, %s8692_s18  ;;  %v3581_v19 = vsel %vm3250_vm9, %v3515_v27, %v2304_v30  ;;  %v2521_v30 = vrot.slane %v14626_v61, 7  ;;  %v14633_v27 = vld [vmem:[#allocation12_spill] sm:$0xff]  ;;  %v4111_v14 = vsel %vm3317_vm10, %v4045_v62, %v14636_v11  ;;  %v14637_v61 = vrot.slane %v14627_v0, 6 }
 0x390   : > { %v3679_v46 = vsel %vm3317_vm10, %v3581_v19, %v2373_v31  ;;  %v11791_v8 = vpop.permute.xlu1 %2588  ;;  %v2785_v31 = vrot.slane %v14633_v27, 5  ;;  %v3415_v19 = vsel %vm3317_vm10, %v3316_v56, %v1997_v54  ;;  %v14639_v56 = vld [vmem:[#allocation142_spill] sm:$0xff] }
 0x391   : > { %4760 = vmatprep.mubr.bf16.mxu1 %v3679_v46  ;;  %v11793_v21 = vpop.permute.xlu0 %3063  ;;  %v2377_v4 = vsel %vm2374_vm0, %v2375_v33, %v14637_v61  ;;  %v2522_v54 = vor.u32 %v2521_v30, %v2520_v55  ;;  %v2927_v27 = vrot.slane %v14639_v56, 5  ;;  %v14642_v33 = vld [vmem:[#allocation100_spill] sm:$0xff]  ;;  %v14643_v30 = vld [vmem:[#allocation58_spill] sm:$0xff] }
 0x392   : > { %2749 = vrot.lane.b32.xlu1 %v14634_v32, %s8692_s18  ;;  %4761 = vmatmul.mubr.bf16.gmra.mrb[236].mxu1 %v3415_v19  ;;  %v2928_v32 = vrot.slane %v14640_v2, 6  ;;  %v14641_v19 = vld [vmem:[#allocation65_spill] sm:$0xff]  ;;  %v2786_v0 = vsel %vm2781_vm11, %v2783_v22, %v2785_v31 }
 0x393   : > { %3015 = vrot.lane.b32.xlu0 %v2926_v1, %s8691_s15  ;;  %4800 = vmatprep.mubr.bf16.mxu1 %v4111_v14  ;;  %v11819_v1 = vsel %vm2374_vm0, %v2412_v12, %v2414_v42  ;;  %v3683_v9 = vsel %vm3183_vm8, %v2377_v4, %v14641_v19  ;;  %v3950_v62 = vsel %vm3183_vm8, %v2786_v0, %v14642_v33  ;;  %v14644_v4 = vld [vmem:[#allocation67_spill] sm:$0xff] }
 0x394   : > { %v11814_v46 = vpop.permute.xlu1 %2657  ;;  %14638 = vst [vmem:[#allocation106_spill] sm:$0xff] %v11819_v1  ;;  %v3781_v11 = vsel %vm3250_vm9, %v3683_v9, %v14643_v30  ;;  %v2523_v14 = vsel %vm2440_vm7, %v2518_v49, %v2522_v54  ;;  %v2929_v61 = vor.u32 %v2928_v32, %v2927_v27  ;;  %v14646_v0 = vld [vmem:[#allocation95_spill] sm:$0xff]  ;;  %v14648_v30 = vld [vmem:[#allocation85_spill] sm:$0xff] }
 0x395   : > { %v11816_v57 = vpop.permute.xlu0 %3133  ;;  %v3847_v22 = vsel %vm3317_vm10, %v3781_v11, %v14644_v4  ;;  %v4047_v33 = vsel %vm3250_vm9, %v3950_v62, %v14646_v0  ;;  %v14649_v49 = vld [vmem:[#allocation25_spill] sm:$0xff]  ;;  %v2416_v4 = vrot.slane %v10019_v35, 6  ;;  %v2525_v62 = vrot.slane %v14640_v2, 7  ;;  %v14651_v0 = vld [vmem:[#allocation112_spill] sm:$0xff]  ;;  %v14656_v35 = vld [vmem:[#allocation15_spill] sm:$0xff] }
 0x396   : > { %2608 = vrot.lane.b32.xlu1 %v2519_v39, %s8691_s15  ;;  %v14645_v39 = vld [vmem:[#allocation14_spill] sm:$0xff]  ;;  %v4114_v9 = vsel %vm3317_vm10, %v4047_v33, %v14647_v7  ;;  %v3686_v27 = vsel %vm3183_vm8, %v14649_v49, %v14648_v30  ;;  %v14650_v7 = vld [vmem:[#allocation133_spill] sm:$0xff] }
 0x397   : > { %3083 = vrot.lane.b32.xlu0 %v11819_v1, %s8690_s25  ;;  %v2787_v19 = vrot.slane %v14645_v39, 5  ;;  %v2524_v39 = vrot.slane %v14639_v56, 6  ;;  %v11872_v56 = vsel %vm2374_vm0, %v2414_v42, %v2416_v4  ;;  %v14659_v42 = vld [vmem:[#allocation114_spill] sm:$0xff] }
 0x398   : > { %v11831_v12 = vpop.permute.xlu1 %2731  ;;  %14653 = vst [vmem:[#allocation24_spill] sm:$0xff] %v11872_v56 }
 0x399   : > { %v11833_v55 = vpop.permute.xlu0 %2997  ;;  %v2526_v2 = vor.u32 %v2525_v62, %v2524_v39 }
 0x39a   : > { %2677 = vrot.lane.b32.xlu1 %v11342_v26, %s8690_s25  ;;  %4801 = vmatmul.mubr.bf16.vlgmr.msra.gmra.mrb[108].mxu1 %v3847_v22  ;;  %v2930_v26 = vsel %vm2847_vm6, %v2925_v38, %v2929_v61  ;;  %v2788_v22 = vsel %vm2781_vm11, %v2785_v31, %v2787_v19  ;;  %v14652_v38 = vld [vmem:[#allocation77_spill] sm:$0xff]  ;;  %v14654_v31 = vld [vmem:[#allocation147_spill] sm:$0xff] }
 0x39b   : > { %3153 = vrot.lane.b32.xlu0 %v2523_v14, %s8692_s18  ;;  %4808 = vmatprep.mubr.bf16.mxu1 %v4114_v9  ;;  %v3953_v33 = vsel %vm3183_vm8, %v2788_v22, %v14651_v0  ;;  %v3783_v49 = vsel %vm3250_vm9, %v3686_v27, %v14652_v38  ;;  %v2931_v1 = vrot.slane %v14654_v31, 5  ;;  %v14657_v22 = vld [vmem:[#allocation87_spill] sm:$0xff] }
 0x39c   : > { %v11851_v32 = vpop.permute.xlu1 %2590  ;;  %v3850_v0 = vsel %vm3317_vm10, %v3783_v49, %v14657_v22  ;;  %v4049_v27 = vsel %vm3250_vm9, %v3953_v33, %v14658_v16  ;;  %v14662_v16 = vld [vmem:[#allocation130_spill] sm:$0xff] }
 0x39d   : > { %v11853_v11 = vpop.permute.xlu0 %3065  ;;  %v4117_v39 = vsel %vm3317_vm10, %v4049_v27, %v14659_v42  ;;  %v14663_v27 = vld [vmem:[#allocation94_spill] sm:$0xff] }
 0x39e   : > { %2751 = vrot.lane.b32.xlu1 %v14650_v7, %s8692_s18  ;;  %v2932_v7 = vrot.slane %v14655_v37, 6 }
 0x39f   : > { %3017 = vrot.lane.b32.xlu0 %v2930_v26, %s8691_s15  ;;  %v2789_v26 = vrot.slane %v14656_v35, 5  ;;  %v14660_v35 = vld [vmem:[#allocation99_spill] sm:$0xff] }
 0x3a0   : > { %v11865_v9 = vpop.permute.xlu1 %2659  ;;  %v2933_v59 = vor.u32 %v2932_v7, %v2931_v1  ;;  %v2418_v1 = vrot.slane %v10072_v28, 6  ;;  %v14664_v7 = vld [vmem:[#allocation141_spill] sm:$0xff]  ;;  %v14670_v28 = vld [vmem:[#allocation36_spill] sm:$0xff] }
 0x3a1   : > { %v11867_v30 = vpop.permute.xlu0 %3135  ;;  %v2790_v49 = vsel %vm2781_vm11, %v2787_v19, %v2789_v26  ;;  %v2528_v19 = vrot.slane %v14654_v31, 6 }
 0x3a2   : > { %2610 = vrot.lane.b32.xlu1 %v2523_v14, %s8691_s15  ;;  %4809 = vmatmul.mubr.bf16.gmra.mrb[112].mxu1 %v3850_v0  ;;  %v14661_v14 = vld [vmem:[#allocation37_spill] sm:$0xff]  ;;  %v3956_v33 = vsel %vm3183_vm8, %v2790_v49, %v14662_v16  ;;  %v14668_v16 = vld [vmem:[#allocation18_spill] sm:$0xff] }
 0x3a3   : > { %3085 = vrot.lane.b32.xlu0 %v11872_v56, %s8690_s25  ;;  %4816 = vmatprep.mubr.bf16.mxu1 %v4117_v39  ;;  %v3689_v50 = vsel %vm3183_vm8, %v14661_v14, %v14660_v35  ;;  %v2527_v56 = vsel %vm2440_vm7, %v2522_v54, %v2526_v2  ;;  %v2934_v54 = vsel %vm2847_vm6, %v2929_v61, %v2933_v59  ;;  %v14665_v39 = vld [vmem:[#allocation102_spill] sm:$0xff]  ;;  %v14666_v14 = vld [vmem:[#allocation120_spill] sm:$0xff] }
 0x3a4   : > { %v11886_v62 = vpop.permute.xlu1 %2733  ;;  %v3785_v42 = vsel %vm3250_vm9, %v3689_v50, %v14663_v27  ;;  %v4051_v49 = vsel %vm3250_vm9, %v3956_v33, %v14666_v14  ;;  %v14667_v50 = vld [vmem:[#allocation132_spill] sm:$0xff]  ;;  %v2791_v27 = vrot.slane %v14668_v16, 5  ;;  %v14672_v33 = vld [vmem:[#allocation111_spill] sm:$0xff] }
 0x3a5   : > { %v11888_v38 = vpop.permute.xlu0 %2999  ;;  %v3853_v35 = vsel %vm3317_vm10, %v3785_v42, %v14665_v39  ;;  %v4120_v61 = vsel %vm3317_vm10, %v4051_v49, %v14667_v50  ;;  %v2935_v42 = vrot.slane %v14670_v28, 5  ;;  %v14671_v39 = vld [vmem:[#allocation152_spill] sm:$0xff]  ;;  %v14674_v50 = vld [vmem:[#allocation42_spill] sm:$0xff] }
 0x3a6   : > { %2679 = vrot.lane.b32.xlu1 %v11389_v29, %s8690_s25  ;;  %v2529_v29 = vrot.slane %v14655_v37, 7  ;;  %v2936_v17 = vrot.slane %v14671_v39, 6  ;;  %v2792_v49 = vsel %vm2781_vm11, %v2789_v26, %v2791_v27  ;;  %v14675_v16 = vld [vmem:[#allocation104_spill] sm:$0xff] }
 0x3a7   : > { %3155 = vrot.lane.b32.xlu0 %v2527_v56, %s8692_s18 }
 0x3a8   : > { %v11900_v22 = vpop.permute.xlu1 %2592 }
 0x3a9   : > { %v11902_v0 = vpop.permute.xlu0 %3067 }
 0x3aa   : > { %2753 = vrot.lane.b32.xlu1 %v14664_v7, %s8692_s18  ;;  %4817 = vmatmul.mubr.bf16.gmra.mrb[116].mxu1 %v3853_v35  ;;  %v11925_v7 = vsel %vm2374_vm0, %v2416_v4, %v2418_v1  ;;  %v14673_v35 = vld [vmem:[#allocation55_spill] sm:$0xff]  ;;  %v3959_v4 = vsel %vm3183_vm8, %v2792_v49, %v14674_v50  ;;  %v14678_v50 = vld [vmem:[#allocation45_spill] sm:$0xff] }
 0x3ab   : > { %3019 = vrot.lane.b32.xlu0 %v2934_v54, %s8691_s15  ;;  %4824 = vmatprep.mubr.bf16.mxu1 %v4120_v61  ;;  %14669 = vst [vmem:[#allocation62_spill] sm:$0xff] %v11925_v7  ;;  %v2530_v54 = vor.u32 %v2529_v29, %v2528_v19  ;;  %v3692_v14 = vsel %vm3183_vm8, %v14673_v35, %v14672_v33  ;;  %v14677_v35 = vld [vmem:[#allocation139_spill] sm:$0xff] }
 0x3ac   : > { %v11920_v31 = vpop.permute.xlu1 %2661  ;;  %v3787_v60 = vsel %vm3250_vm9, %v3692_v14, %v14675_v16  ;;  %v2937_v33 = vor.u32 %v2936_v17, %v2935_v42  ;;  %v4053_v49 = vsel %vm3250_vm9, %v3959_v4, %v14677_v35  ;;  %v2533_v16 = vrot.slane %v14671_v39, 7  ;;  %v14681_v4 = vld [vmem:[#allocation129_spill] sm:$0xff]  ;;  %v14687_v39 = vld [vmem:[#allocation119_spill] sm:$0xff] }
 0x3ad   : > { %v11922_v37 = vpop.permute.xlu0 %3137  ;;  %v2531_v29 = vsel %vm2440_vm7, %v2526_v2, %v2530_v54  ;;  %v14679_v2 = vld [vmem:[#allocation2_spill] sm:$0xff] }
 0x3ae   : > { %2612 = vrot.lane.b32.xlu1 %v2527_v56, %s8691_s15  ;;  %v14676_v56 = vld [vmem:[#allocation113_spill] sm:$0xff]  ;;  %v2793_v40 = vrot.slane %v14679_v2, 5  ;;  %v2938_v42 = vsel %vm2847_vm6, %v2933_v59, %v2937_v33 }
 0x3af   : > { %3087 = vrot.lane.b32.xlu0 %v11925_v7, %s8690_s25  ;;  %v3856_v26 = vsel %vm3317_vm10, %v3787_v60, %v14676_v56  ;;  %v4123_v7 = vsel %vm3317_vm10, %v4053_v49, %v14678_v50  ;;  %v2532_v60 = vrot.slane %v14670_v28, 6  ;;  %v14682_v56 = vld [vmem:[#allocation70_spill] sm:$0xff]  ;;  %v14684_v49 = vld [vmem:[#allocation153_spill] sm:$0xff] }
 0x3b0   : > { %v11938_v61 = vpop.permute.xlu1 %2735  ;;  %v2794_v35 = vsel %vm2781_vm11, %v2791_v27, %v2793_v40  ;;  %v14688_v27 = vld [vmem:[#allocation38_spill] sm:$0xff] }
 0x3b1   : > { %v11940_v19 = vpop.permute.xlu0 %3001  ;;  %v3962_v50 = vsel %vm3183_vm8, %v2794_v35, %v14684_v49  ;;  %v14691_v35 = vld [vmem:[#allocation131_spill] sm:$0xff] }
 0x3b2   : > { %2681 = vrot.lane.b32.xlu1 %v11423_v36, %s8690_s25  ;;  %4825 = vmatmul.mubr.bf16.gmra.mrb[120].mxu1 %v3856_v26  ;;  %v2420_v36 = vrot.slane %v10105_v6, 6  ;;  %v3695_v26 = vsel %vm3183_vm8, %v14682_v56, %v14681_v4  ;;  %v2534_v56 = vor.u32 %v2533_v16, %v2532_v60  ;;  %v2939_v6 = vrot.slane %v14688_v27, 5 }
 0x3b3   : > { %3157 = vrot.lane.b32.xlu0 %v2531_v29, %s8692_s18  ;;  %4832 = vmatprep.mubr.bf16.mxu1 %v4123_v7  ;;  %v14683_v7 = vld [vmem:[#allocation148_spill] sm:$0xff]  ;;  %v3789_v4 = vsel %vm3250_vm9, %v3695_v26, %v14687_v39  ;;  %v14693_v26 = vld [vmem:[#allocation10_spill] sm:$0xff] }
 0x3b4   : > { %v11955_v14 = vpop.permute.xlu1 %2594  ;;  %v11977_v28 = vsel %vm2374_vm0, %v2418_v1, %v2420_v36  ;;  %v3859_v49 = vsel %vm3317_vm10, %v3789_v4, %v14691_v35  ;;  %v14692_v1 = vld [vmem:[#allocation144_spill] sm:$0xff] }
 0x3b5   : > { %14680 = vst [vmem:[#allocation51_spill] sm:$0xff] %v11955_v14  ;;  %v11957_v17 = vpop.permute.xlu0 %3069  ;;  %14686 = vst [vmem:[#allocation52_spill] sm:$0xff] %v11977_v28  ;;  %v14694_v14 = vld [vmem:[#allocation44_spill] sm:$0xff] }
 0x3b6   : > { %2755 = vrot.lane.b32.xlu1 %v14683_v7, %s8692_s18  ;;  %v2940_v7 = vrot.slane %v14689_v3, 6  ;;  %v3698_v4 = vsel %vm3183_vm8, %v14695_v53, %v14694_v14  ;;  %v2536_v53 = vrot.slane %v14688_v27, 6  ;;  %v2797_v14 = vrot.slane %v14459_v25, 5  ;;  %v14702_v27 = vld [vmem:[#allocation47_spill] sm:$0xff] }
 0x3b7   : > { %3021 = vrot.lane.b32.xlu0 %v2938_v42, %s8691_s15  ;;  %v2795_v42 = vrot.slane %v14690_v18, 5  ;;  %v2535_v18 = vsel %vm2440_vm7, %v2530_v54, %v2534_v56  ;;  %v14697_v54 = vld [vmem:[#allocation143_spill] sm:$0xff] }
 0x3b8   : > { %v11972_v2 = vpop.permute.xlu1 %2663 }
 0x3b9   : > { %14685 = vst [vmem:[#allocation80_spill] sm:$0xff] %v11972_v2  ;;  %v11974_v59 = vpop.permute.xlu0 %3139  ;;  %v4055_v2 = vsel %vm3250_vm9, %v3962_v50, %v14692_v1  ;;  %v14696_v50 = vld [vmem:[#allocation48_spill] sm:$0xff]  ;;  %v14698_v1 = vld [vmem:[#allocation151_spill] sm:$0xff] }
 0x3ba   : > { %2614 = vrot.lane.b32.xlu1 %v2531_v29, %s8691_s15  ;;  %4833 = vmatmul.mubr.bf16.gmra.mrb[124].mxu1 %v3859_v49  ;;  %v4126_v60 = vsel %vm3317_vm10, %v4055_v2, %v14693_v26  ;;  %v2941_v29 = vor.u32 %v2940_v7, %v2939_v6  ;;  %v2422_v6 = vrot.slane %v10182_v43, 6  ;;  %v3791_v7 = vsel %vm3250_vm9, %v3698_v4, %v14697_v54  ;;  %v14703_v54 = vld [vmem:[#allocation93_spill] sm:$0xff] }
 0x3bb   : > { %3089 = vrot.lane.b32.xlu0 %v11977_v28, %s8690_s25  ;;  %4840 = vmatprep.mubr.bf16.mxu1 %v4126_v60  ;;  %v2796_v28 = vsel %vm2781_vm11, %v2793_v40, %v2795_v42  ;;  %v14700_v60 = vld [vmem:[#allocation39_spill] sm:$0xff] }
 0x3bc   : > { %v11993_v16 = vpop.permute.xlu1 %2737  ;;  %v3965_v2 = vsel %vm3183_vm8, %v2796_v28, %v14696_v50  ;;  %v2942_v40 = vsel %vm2847_vm6, %v2937_v33, %v2941_v29  ;;  %v14699_v28 = vld [vmem:[#allocation40_spill] sm:$0xff]  ;;  %v14701_v50 = vld [vmem:[#allocation50_spill] sm:$0xff] }
 0x3bd   : > { %v11995_v39 = vpop.permute.xlu0 %3003  ;;  %v3862_v26 = vsel %vm3317_vm10, %v3791_v7, %v14699_v28  ;;  %v4057_v33 = vsel %vm3250_vm9, %v3965_v2, %v14700_v60  ;;  %v14705_v28 = vld [vmem:[#allocation83_spill] sm:$0xff]  ;;  %v14706_v2 = vld [vmem:[#allocation61_spill] sm:$0xff]  ;;  %v2798_v60 = vsel %vm2781_vm11, %v2795_v42, %v2797_v14  ;;  %v14710_v42 = vld [vmem:[#allocation150_spill] sm:$0xff] }
 0x3be   : > { %2683 = vrot.lane.b32.xlu1 %v11451_v34, %s8690_s25  ;;  %v2537_v34 = vrot.slane %v14689_v3, 7  ;;  %v4129_v4 = vsel %vm3317_vm10, %v4057_v33, %v14701_v50  ;;  %v3701_v3 = vsel %vm3183_vm8, %v14703_v54, %v14702_v27  ;;  %v2943_v43 = vrot.slane %v14705_v28, 5  ;;  %v14707_v33 = vld [vmem:[#allocation66_spill] sm:$0xff] }
 0x3bf   : > { %3159 = vrot.lane.b32.xlu0 %v2535_v18, %s8692_s18  ;;  %v3968_v50 = vsel %vm3183_vm8, %v2798_v60, %v14707_v33 }
 0x3c0   : > { %v12007_v35 = vpop.permute.xlu1 %2596  ;;  %v2538_v7 = vor.u32 %v2537_v34, %v2536_v53 }
 0x3c1   : > { %v12009_v49 = vpop.permute.xlu0 %3071 }
 0x3c2   : > { %2757 = vrot.lane.b32.xlu1 %v14698_v1, %s8692_s18  ;;  %4841 = vmatmul.mubr.bf16.gmra.mrb[128].mxu1 %v3862_v26  ;;  %v2944_v26 = vrot.slane %v14706_v2, 6  ;;  %v2539_v34 = vsel %vm2440_vm7, %v2534_v56, %v2538_v7 }
 0x3c3   : > { %3023 = vrot.lane.b32.xlu0 %v2942_v40, %s8691_s15  ;;  %4848 = vmatprep.mubr.bf16.mxu1 %v4129_v4  ;;  %v12035_v40 = vsel %vm2374_vm0, %v2420_v36, %v2422_v6  ;;  %v14708_v4 = vld [vmem:[#allocation145_spill] sm:$0xff] }
 0x3c4   : > { %v12030_v25 = vpop.permute.xlu1 %2665  ;;  %14704 = vst [vmem:[#allocation81_spill] sm:$0xff] %v12035_v40  ;;  %v3793_v27 = vsel %vm3250_vm9, %v3701_v3, %v14708_v4  ;;  %v2945_v54 = vor.u32 %v2944_v26, %v2943_v43  ;;  %v14712_v3 = vld [vmem:[#allocation68_spill] sm:$0xff]  ;;  %v2799_v4 = vrot.slane %v14472_v52, 5  ;;  %v14713_v26 = vld [vmem:[#allocation49_spill] sm:$0xff] }
 0x3c5   : > { %v12032_v1 = vpop.permute.xlu0 %3141 }
 0x3c6   : > { %2616 = vrot.lane.b32.xlu1 %v2535_v18, %s8691_s15  ;;  %v3865_v18 = vsel %vm3317_vm10, %v3793_v27, %v14710_v42  ;;  %v2946_v42 = vsel %vm2847_vm6, %v2941_v29, %v2945_v54  ;;  %v2800_v52 = vsel %vm2781_vm11, %v2797_v14, %v2799_v4 }
 0x3c7   : > { %3091 = vrot.lane.b32.xlu0 %v12035_v40, %s8690_s25  ;;  %v14711_v40 = vld [vmem:[#allocation59_spill] sm:$0xff] }
 0x3c8   : > { %v12047_v36 = vpop.permute.xlu1 %2739  ;;  %v4059_v60 = vsel %vm3250_vm9, %v3968_v50, %v14711_v40  ;;  %v2540_v40 = vrot.slane %v14705_v28, 6  ;;  %v2541_v50 = vrot.slane %v14706_v2, 7  ;;  %v3971_v28 = vsel %vm3183_vm8, %v2800_v52, %v11729_v13 }
 0x3c9   : > { %14709 = vst [vmem:[#allocation73_spill] sm:$0xff] %v12047_v36  ;;  %v12049_v53 = vpop.permute.xlu0 %3005  ;;  %v4132_v33 = vsel %vm3317_vm10, %v4059_v60, %v14712_v3  ;;  %v14714_v36 = vld [vmem:[#allocation5_spill] sm:$0xff]  ;;  %v4061_v14 = vsel %vm3250_vm9, %v3971_v28, %v11793_v21 }
 0x3ca   : > { %2685 = vrot.lane.b32.xlu1 %v11488_v24, %s8690_s25  ;;  %4849 = vmatmul.mubr.bf16.gmra.mrb[132].mxu1 %v3865_v18  ;;  %v2424_v24 = vrot.slane %v10228_v47, 6  ;;  %v3704_v27 = vsel %vm3183_vm8, %v14714_v36, %v14713_v26  ;;  %v14715_v18 = vld [vmem:[#allocation8_spill] sm:$0xff]  ;;  %v14716_v36 = vld [vmem:[#allocation41_spill] sm:$0xff]  ;;  %v2542_v2 = vor.u32 %v2541_v50, %v2540_v40  ;;  %v14717_v26 = vld [vmem:[#allocation63_spill] sm:$0xff]  ;;  %v4135_v13 = vsel %vm3317_vm10, %v4061_v14, %v11816_v57 }
 0x3cb   : > { %3161 = vrot.lane.b32.xlu0 %v2539_v34, %s8692_s18  ;;  %4856 = vmatprep.mubr.bf16.mxu1 %v4132_v33  ;;  %v3795_v29 = vsel %vm3250_vm9, %v3704_v27, %v14716_v36  ;;  %v14718_v47 = vld [vmem:[#allocation13_spill] sm:$0xff]  ;;  %v2801_v27 = vrot.slane %v14486_v58, 5 }
 0x3cc   : > { %v12062_v56 = vpop.permute.xlu1 %2598  ;;  %v12082_v33 = vsel %vm2374_vm0, %v2422_v6, %v2424_v24  ;;  %v3868_v6 = vsel %vm3317_vm10, %v3795_v29, %v11771_v10  ;;  %v2543_v21 = vsel %vm2440_vm7, %v2538_v7, %v2542_v2  ;;  %v14719_v10 = vld [vmem:[#allocation16_spill] sm:$0xff]  ;;  %v2426_v29 = vrot.slane %v10280_v44, 6 }
 0x3cd   : > { %v12064_v43 = vpop.permute.xlu0 %3073  ;;  %v3707_v52 = vsel %vm3183_vm8, %v14719_v10, %v11791_v8  ;;  %v2802_v57 = vsel %vm2781_vm11, %v2799_v4, %v2801_v27  ;;  %v2544_v7 = vrot.slane %v14717_v26, 6  ;;  %v2545_v8 = vrot.slane %v14718_v47, 7  ;;  %v14722_v10 = vld [vmem:[#allocation17_spill] sm:$0xff] }
 0x3ce   : > { %2759 = vrot.lane.b32.xlu1 %v14715_v18, %s8692_s18  ;;  %v2947_v18 = vrot.slane %v14717_v26, 5  ;;  %v3797_v28 = vsel %vm3250_vm9, %v3707_v52, %v11814_v46  ;;  %v2952_v52 = vrot.slane %v14722_v10, 6 }
 0x3cf   : > { %3025 = vrot.lane.b32.xlu0 %v2946_v42, %s8691_s15  ;;  %v2948_v42 = vrot.slane %v14718_v47, 6  ;;  %v3871_v26 = vsel %vm3317_vm10, %v3797_v28, %v11831_v12  ;;  %v2546_v14 = vor.u32 %v2545_v8, %v2544_v7 }
 0x3d0   : > { %v12077_v60 = vpop.permute.xlu1 %2667 }
 0x3d1   : > { %v12079_v3 = vpop.permute.xlu0 %3143 }
 0x3d2   : > { %2618 = vrot.lane.b32.xlu1 %v2539_v34, %s8691_s15  ;;  %4857 = vmatmul.mubr.bf16.gmra.mrb[136].mxu1 %v3868_v6  ;;  %v2949_v34 = vor.u32 %v2948_v42, %v2947_v18  ;;  %v14720_v42 = vld [vmem:[#allocation57_spill] sm:$0xff]  ;;  %v14721_v6 = vld [vmem:[#allocation82_spill] sm:$0xff] }
 0x3d3   : > { %3093 = vrot.lane.b32.xlu0 %v12082_v33, %s8690_s25  ;;  %4864 = vmatprep.mubr.bf16.mxu1 %v4135_v13  ;;  %v2951_v13 = vrot.slane %v14721_v6, 5 }
 0x3d4   : > { %v12100_v40 = vpop.permute.xlu1 %2741  ;;  %v2950_v18 = vsel %vm2847_vm6, %v2945_v54, %v2949_v34 }
 0x3d5   : > { %v12102_v50 = vpop.permute.xlu0 %3007  ;;  %v2953_v28 = vor.u32 %v2952_v52, %v2951_v13  ;;  %v14724_v13 = vld [vmem:[#allocation21_spill] sm:$0xff] }
 0x3d6   : > { %2687 = vrot.lane.b32.xlu1 %v11520_v23, %s8690_s25  ;;  %v3974_v23 = vsel %vm3183_vm8, %v2802_v57, %v11833_v55  ;;  %v2803_v55 = vrot.slane %v14491_v51, 5  ;;  %v3710_v51 = vsel %vm3183_vm8, %v11495_v5, %v11851_v32 }
 0x3d7   : > { %3163 = vrot.lane.b32.xlu0 %v2543_v21, %s8692_s18  ;;  %v4063_v4 = vsel %vm3250_vm9, %v3974_v23, %v11853_v11  ;;  %v12139_v11 = vsel %vm2374_vm0, %v2424_v24, %v2426_v29  ;;  %v3799_v57 = vsel %vm3250_vm9, %v3710_v51, %v11865_v9  ;;  %v2805_v9 = vrot.slane %v14500_v48, 5  ;;  %v14725_v51 = vld [vmem:[#allocation11_spill] sm:$0xff] }
 0x3d8   : > { %v12112_v58 = vpop.permute.xlu1 %2600  ;;  %v4138_v46 = vsel %vm3317_vm10, %v4063_v4, %v11867_v30  ;;  %v2804_v12 = vsel %vm2781_vm11, %v2801_v27, %v2803_v55  ;;  %v3874_v5 = vsel %vm3317_vm10, %v3799_v57, %v11886_v62  ;;  %v2549_v27 = vrot.slane %v14722_v10, 7  ;;  %v14723_v62 = vld [vmem:[#allocation56_spill] sm:$0xff] }
 0x3d9   : > { %v12114_v36 = vpop.permute.xlu0 %3075  ;;  %v3977_v7 = vsel %vm3183_vm8, %v2804_v12, %v11888_v38  ;;  %v3713_v48 = vsel %vm3183_vm8, %v11525_v15, %v11900_v22  ;;  %v2956_v15 = vrot.slane %v14724_v13, 6  ;;  %v14727_v12 = vld [vmem:[#allocation20_spill] sm:$0xff] }
 0x3da   : > { %2761 = vrot.lane.b32.xlu1 %v14720_v42, %s8692_s18  ;;  %4865 = vmatmul.mubr.bf16.gmra.mrb[140].mxu1 %v3871_v26  ;;  %v4065_v23 = vsel %vm3250_vm9, %v3977_v7, %v11902_v0  ;;  %v2428_v0 = vrot.slane %v14585_v41, 6 }
 0x3db   : > { %3027 = vrot.lane.b32.xlu0 %v2950_v18, %s8691_s15  ;;  %4872 = vmatprep.mubr.bf16.mxu1 %v4138_v46  ;;  %v4141_v32 = vsel %vm3317_vm10, %v4065_v23, %v11922_v37  ;;  %v2954_v18 = vsel %vm2847_vm6, %v2949_v34, %v2953_v28  ;;  %v2806_v37 = vsel %vm2781_vm11, %v2803_v55, %v2805_v9 }
 0x3dc   : > { %v12134_v54 = vpop.permute.xlu1 %2669  ;;  %v12189_v42 = vsel %vm2374_vm0, %v2426_v29, %v2428_v0  ;;  %v3801_v34 = vsel %vm3250_vm9, %v3713_v48, %v11920_v31  ;;  %v3980_v46 = vsel %vm3183_vm8, %v2806_v37, %v11940_v19  ;;  %v2807_v19 = vrot.slane %v14586_v45, 5 }
 0x3dd   : > { %v12136_v47 = vpop.permute.xlu0 %3145  ;;  %v4067_v22 = vsel %vm3250_vm9, %v3980_v46, %v11957_v17  ;;  %v3877_v29 = vsel %vm3317_vm10, %v3801_v34, %v11938_v61  ;;  %v14726_v61 = vld [vmem:[#allocation51_spill] sm:$0xff] }
 0x3de   : > { %2620 = vrot.lane.b32.xlu1 %v2543_v21, %s8691_s15  ;;  %v2547_v21 = vsel %vm2440_vm7, %v2542_v2, %v2546_v14  ;;  %v4144_v31 = vsel %vm3317_vm10, %v4067_v22, %v11974_v59  ;;  %v3716_v57 = vsel %vm3183_vm8, %v14727_v12, %v14726_v61  ;;  %v2808_v59 = vsel %vm2781_vm11, %v2805_v9, %v2807_v19 }
 0x3df   : > { %3095 = vrot.lane.b32.xlu0 %v12139_v11, %s8690_s25 }
 0x3e0   : > { %v12150_v30 = vpop.permute.xlu1 %2743 }
 0x3e1   : > { %v12152_v24 = vpop.permute.xlu0 %3009 }
 0x3e2   : > { %2689 = vrot.lane.b32.xlu1 %v11547_v63, %s8690_s25  ;;  %4873 = vmatmul.mubr.bf16.gmra.mrb[144].mxu1 %v3874_v5  ;;  %v2548_v63 = vrot.slane %v14721_v6, 6  ;;  %v2955_v6 = vrot.slane %v11085_v20, 5  ;;  %v14729_v5 = vld [vmem:[#allocation80_spill] sm:$0xff] }
 0x3e3   : > { %3165 = vrot.lane.b32.xlu0 %v2547_v21, %s8692_s18  ;;  %4880 = vmatprep.mubr.bf16.mxu1 %v4141_v32  ;;  %v3803_v32 = vsel %vm3250_vm9, %v3716_v57, %v14729_v5 }
 0x3e4   : > { %v12169_v38 = vpop.permute.xlu1 %2602  ;;  %v2550_v26 = vor.u32 %v2549_v27, %v2548_v63  ;;  %v2957_v52 = vor.u32 %v2956_v15, %v2955_v6  ;;  %v3983_v63 = vsel %vm3183_vm8, %v2808_v59, %v11995_v39  ;;  %v14731_v39 = vld [vmem:[#allocation26_spill] sm:$0xff]  ;;  %v14733_v15 = vld [vmem:[#allocation127_spill] sm:$0xff] }
 0x3e5   : > { %v12171_v2 = vpop.permute.xlu0 %3077  ;;  %v4069_v9 = vsel %vm3250_vm9, %v3983_v63, %v12009_v49  ;;  %v2809_v37 = vrot.slane %v14731_v39, 5  ;;  %v14732_v6 = vld [vmem:[#allocation138_spill] sm:$0xff]  ;;  %v2960_v22 = vrot.slane %v14733_v15, 6 }
 0x3e6   : > { %2763 = vrot.lane.b32.xlu1 %v14723_v62, %s8692_s18  ;;  %v2551_v17 = vsel %vm2440_vm7, %v2546_v14, %v2550_v26  ;;  %v2552_v14 = vrot.slane %v11085_v20, 6  ;;  %v2958_v27 = vsel %vm2847_vm6, %v2953_v28, %v2957_v52  ;;  %v14730_v62 = vld [vmem:[#allocation74_spill] sm:$0xff]  ;;  %v3880_v20 = vsel %vm3317_vm10, %v3803_v32, %v11993_v16  ;;  %v14734_v16 = vld [vmem:[#allocation23_spill] sm:$0xff] }
 0x3e7   : > { %3029 = vrot.lane.b32.xlu0 %v2954_v18, %s8691_s15  ;;  %v2553_v18 = vrot.slane %v14724_v13, 7  ;;  %v4147_v48 = vsel %vm3317_vm10, %v4069_v9, %v12032_v1  ;;  %v2959_v13 = vrot.slane %v14732_v6, 5  ;;  %v3719_v1 = vsel %vm3183_vm8, %v14734_v16, %v12007_v35  ;;  %v14735_v35 = vld [vmem:[#allocation29_spill] sm:$0xff]  ;;  %v14739_v9 = vld [vmem:[#allocation91_spill] sm:$0xff] }
 0x3e8   : > { %v12184_v8 = vpop.permute.xlu1 %2671  ;;  %v2556_v63 = vrot.slane %v14732_v6, 6 }
 0x3e9   : > { %v12186_v4 = vpop.permute.xlu0 %3147  ;;  %v2554_v46 = vor.u32 %v2553_v18, %v2552_v14  ;;  %v2961_v12 = vor.u32 %v2960_v22, %v2959_v13  ;;  %v14737_v14 = vld [vmem:[#allocation46_spill] sm:$0xff] }
 0x3ea   : > { %2622 = vrot.lane.b32.xlu1 %v2547_v21, %s8691_s15  ;;  %4881 = vmatmul.mubr.bf16.gmra.mrb[148].mxu1 %v3877_v29  ;;  %v14728_v21 = vld [vmem:[#allocation110_spill] sm:$0xff]  ;;  %v2810_v29 = vsel %vm2781_vm11, %v2807_v19, %v2809_v37  ;;  %v14736_v19 = vld [vmem:[#allocation73_spill] sm:$0xff] }
 0x3eb   : > { %3097 = vrot.lane.b32.xlu0 %v12189_v42, %s8690_s25  ;;  %4888 = vmatprep.mubr.bf16.mxu1 %v4144_v31  ;;  %v2430_v23 = vrot.slane %v14728_v21, 6  ;;  %v3986_v61 = vsel %vm3183_vm8, %v2810_v29, %v12049_v53  ;;  %v2811_v53 = vrot.slane %v14737_v14, 5  ;;  %v2962_v18 = vsel %vm2847_vm6, %v2957_v52, %v2961_v12  ;;  %v14741_v22 = vld [vmem:[#allocation166_spill] sm:$0xff] }
 0x3ec   : > { %v12207_v55 = vpop.permute.xlu1 %2745  ;;  %v4071_v57 = vsel %vm3250_vm9, %v3986_v61, %v12064_v43  ;;  %v14738_v43 = vld [vmem:[#allocation118_spill] sm:$0xff]  ;;  %v2963_v16 = vrot.slane %v14741_v22, 5 }
 0x3ed   : > { %v12209_v10 = vpop.permute.xlu0 %3011  ;;  %v12246_v49 = vsel %vm2374_vm0, %v2428_v0, %v2430_v23  ;;  %v2432_v32 = vrot.slane %v14738_v43, 6 }
 0x3ee   : > { %2691 = vrot.lane.b32.xlu1 %v14725_v51, %s8690_s25  ;;  %v3805_v51 = vsel %vm3250_vm9, %v3719_v1, %v12030_v25  ;;  %v4150_v25 = vsel %vm3317_vm10, %v4071_v57, %v12079_v3  ;;  %v14740_v3 = vld [vmem:[#allocation22_spill] sm:$0xff]  ;;  %v14742_v1 = vld [vmem:[#allocation165_spill] sm:$0xff]  ;;  %v14744_v57 = vld [vmem:[#allocation19_spill] sm:$0xff] }
 0x3ef   : > { %3167 = vrot.lane.b32.xlu0 %v2551_v17, %s8692_s18  ;;  %v3883_v59 = vsel %vm3317_vm10, %v3805_v51, %v14736_v19  ;;  %v12296_v6 = vsel %vm2374_vm0, %v2430_v23, %v2432_v32 }
 0x3f0   : > { %v12219_v45 = vpop.permute.xlu1 %2604 }
 0x3f1   : > { %v12221_v7 = vpop.permute.xlu0 %3079 }
 0x3f2   : > { %2765 = vrot.lane.b32.xlu1 %v14730_v62, %s8692_s18  ;;  %4889 = vmatmul.mubr.bf16.gmra.mrb[152].mxu1 %v3880_v20  ;;  %v3722_v62 = vsel %vm3183_vm8, %v14740_v3, %v12062_v56  ;;  %v2812_v20 = vsel %vm2781_vm11, %v2809_v37, %v2811_v53  ;;  %v2964_v56 = vrot.slane %v14742_v1, 6 }
 0x3f3   : > { %3031 = vrot.lane.b32.xlu0 %v2958_v27, %s8691_s15  ;;  %4896 = vmatprep.mubr.bf16.mxu1 %v4147_v48  ;;  %v2557_v27 = vrot.slane %v14733_v15, 7  ;;  %v3807_v52 = vsel %vm3250_vm9, %v3722_v62, %v12077_v60  ;;  %v3989_v15 = vsel %vm3183_vm8, %v2812_v20, %v12102_v50  ;;  %v14743_v50 = vld [vmem:[#allocation53_spill] sm:$0xff] }
 0x3f4   : > { %v12241_v28 = vpop.permute.xlu1 %2673  ;;  %v4073_v37 = vsel %vm3250_vm9, %v3989_v15, %v12114_v36  ;;  %v3886_v23 = vsel %vm3317_vm10, %v3807_v52, %v12100_v40  ;;  %v2813_v29 = vrot.slane %v14743_v50, 5  ;;  %v14745_v40 = vld [vmem:[#allocation30_spill] sm:$0xff] }
 0x3f5   : > { %v12243_v34 = vpop.permute.xlu0 %3149  ;;  %v2558_v13 = vor.u32 %v2557_v27, %v2556_v63  ;;  %v4153_v60 = vsel %vm3317_vm10, %v4073_v37, %v12136_v47  ;;  %v14749_v15 = vld [vmem:[#allocation170_spill] sm:$0xff] }
 0x3f6   : > { %2624 = vrot.lane.b32.xlu1 %v2551_v17, %s8691_s15  ;;  %v2555_v17 = vsel %vm2440_vm7, %v2550_v26, %v2554_v46  ;;  %v2814_v47 = vsel %vm2781_vm11, %v2811_v53, %v2813_v29 }
 0x3f7   : > { %3099 = vrot.lane.b32.xlu0 %v12246_v49, %s8690_s25  ;;  %v2559_v36 = vsel %vm2440_vm7, %v2554_v46, %v2558_v13  ;;  %v2560_v46 = vrot.slane %v14741_v22, 6  ;;  %v3992_v27 = vsel %vm3183_vm8, %v2814_v47, %v12152_v24  ;;  %v14748_v24 = vld [vmem:[#allocation60_spill] sm:$0xff]  ;;  %v2967_v22 = vrot.slane %v14749_v15, 5 }
 0x3f8   : > { %v12257_v31 = vpop.permute.xlu1 %2747  ;;  %v4075_v53 = vsel %vm3250_vm9, %v3992_v27, %v12171_v2  ;;  %v2815_v62 = vrot.slane %v14748_v24, 5  ;;  %v14754_v47 = vld [vmem:[#allocation128_spill] sm:$0xff] }
 0x3f9   : > { %v12259_v0 = vpop.permute.xlu0 %3013 }
 0x3fa   : > { %2693 = vrot.lane.b32.xlu1 %v14735_v35, %s8690_s25  ;;  %4897 = vmatmul.mubr.bf16.gmra.mrb[156].mxu1 %v3883_v59  ;;  %v3725_v35 = vsel %vm3183_vm8, %v14745_v40, %v12112_v58  ;;  %v2561_v58 = vrot.slane %v14742_v1, 7  ;;  %v14753_v40 = vld [vmem:[#allocation64_spill] sm:$0xff] }
 0x3fb   : > { %3169 = vrot.lane.b32.xlu0 %v2555_v17, %s8692_s18  ;;  %4904 = vmatprep.mubr.bf16.mxu1 %v4150_v25  ;;  %v14746_v25 = vld [vmem:[#allocation123_spill] sm:$0xff]  ;;  %v3809_v63 = vsel %vm3250_vm9, %v3725_v35, %v12134_v54  ;;  %v4156_v54 = vsel %vm3317_vm10, %v4075_v53, %v12186_v4 }
 0x3fc   : > { %v12276_v26 = vpop.permute.xlu1 %2606  ;;  %v2434_v14 = vrot.slane %v14746_v25, 6  ;;  %v3889_v3 = vsel %vm3317_vm10, %v3809_v63, %v12150_v30  ;;  %v2562_v52 = vor.u32 %v2561_v58, %v2560_v46  ;;  %v14751_v30 = vld [vmem:[#allocation27_spill] sm:$0xff]  ;;  %v2436_v46 = vrot.slane %v14754_v47, 6 }
 0x3fd   : > { %v12278_v5 = vpop.permute.xlu0 %3081  ;;  %v3728_v4 = vsel %vm3183_vm8, %v14751_v30, %v12169_v38  ;;  %v14752_v38 = vld [vmem:[#allocation31_spill] sm:$0xff]  ;;  %v2564_v63 = vrot.slane %v14749_v15, 6 }
 0x3fe   : > { %2767 = vrot.lane.b32.xlu1 %v14739_v9, %s8692_s18  ;;  %v14747_v9 = vld [vmem:[#allocation154_spill] sm:$0xff]  ;;  %v12353_v2 = vsel %vm2374_vm0, %v2432_v32, %v2434_v14  ;;  %v2563_v50 = vsel %vm2440_vm7, %v2558_v13, %v2562_v52 }
 0x3ff   : > { %3033 = vrot.lane.b32.xlu0 %v2962_v18, %s8691_s15 }
 0x400   : > { %v12291_v48 = vpop.permute.xlu1 %2675 }
 0x401   : > { %v12293_v39 = vpop.permute.xlu0 %3151 }
 0x402   : > { %2626 = vrot.lane.b32.xlu1 %v2555_v17, %s8691_s15  ;;  %4905 = vmatmul.mubr.bf16.gmra.mrb[160].mxu1 %v3886_v23  ;;  %v2965_v17 = vor.u32 %v2964_v56, %v2963_v16  ;;  %v14750_v16 = vld [vmem:[#allocation169_spill] sm:$0xff]  ;;  %v2816_v56 = vsel %vm2781_vm11, %v2813_v29, %v2815_v62  ;;  %v3811_v23 = vsel %vm3250_vm9, %v3728_v4, %v12184_v8 }
 0x403   : > { %3101 = vrot.lane.b32.xlu0 %v12296_v6, %s8690_s25  ;;  %4912 = vmatprep.mubr.bf16.mxu1 %v4153_v60  ;;  %v2968_v1 = vrot.slane %v14750_v16, 6  ;;  %v3995_v60 = vsel %vm3183_vm8, %v2816_v56, %v12209_v10  ;;  %v3892_v29 = vsel %vm3317_vm10, %v3811_v23, %v12207_v55  ;;  %v2817_v10 = vrot.slane %v14753_v40, 5  ;;  %v14755_v55 = vld [vmem:[#allocation164_spill] sm:$0xff] }
 0x404   : > { %v12314_v51 = vpop.permute.xlu1 %2749  ;;  %v2966_v18 = vsel %vm2847_vm6, %v2961_v12, %v2965_v17  ;;  %v2565_v27 = vrot.slane %v14750_v16, 7  ;;  %v14760_v56 = vld [vmem:[#allocation136_spill] sm:$0xff] }
 0x405   : > { %v12316_v61 = vpop.permute.xlu0 %3015  ;;  %v2818_v58 = vsel %vm2781_vm11, %v2815_v62, %v2817_v10  ;;  %v12424_v23 = vrot.slane %v14760_v56, 6 }
 0x406   : > { %2695 = vrot.lane.b32.xlu1 %v14744_v57, %s8690_s25  ;;  %v4077_v57 = vsel %vm3250_vm9, %v3995_v60, %v12221_v7  ;;  %v2566_v24 = vor.u32 %v2565_v27, %v2564_v63  ;;  %v14761_v60 = vld [vmem:[#allocation156_spill] sm:$0xff] }
 0x407   : > { %3171 = vrot.lane.b32.xlu0 %v2559_v36, %s8692_s18  ;;  %v4159_v8 = vsel %vm3317_vm10, %v4077_v57, %v12243_v34  ;;  %v14756_v34 = vld [vmem:[#allocation33_spill] sm:$0xff] }
 0x408   : > { %v12326_v19 = vpop.permute.xlu1 %2608  ;;  %v2567_v16 = vsel %vm2440_vm7, %v2562_v52, %v2566_v24 }
 0x409   : > { %v12328_v59 = vpop.permute.xlu0 %3083 }
 0x40a   : > { %2769 = vrot.lane.b32.xlu1 %v14747_v9, %s8692_s18  ;;  %4913 = vmatmul.mubr.bf16.gmra.mrb[164].mxu1 %v3889_v3  ;;  %v3998_v3 = vsel %vm3183_vm8, %v2818_v58, %v12259_v0  ;;  %v14757_v0 = vld [vmem:[#allocation69_spill] sm:$0xff] }
 0x40b   : > { %3035 = vrot.lane.b32.xlu0 %v2966_v18, %s8691_s15  ;;  %4920 = vmatprep.mubr.bf16.mxu1 %v4156_v54  ;;  %v3731_v18 = vsel %vm3183_vm8, %v14756_v34, %v12219_v45  ;;  %v12403_v54 = vsel %vm2374_vm0, %v2434_v14, %v2436_v46  ;;  %v4079_v15 = vsel %vm3250_vm9, %v3998_v3, %v12278_v5  ;;  %v2819_v62 = vrot.slane %v14757_v0, 5  ;;  %v14758_v5 = vld [vmem:[#allocation32_spill] sm:$0xff] }
 0x40c   : > { %v12348_v12 = vpop.permute.xlu1 %2677  ;;  %v3813_v9 = vsel %vm3250_vm9, %v3731_v18, %v12241_v28  ;;  %v4162_v28 = vsel %vm3317_vm10, %v4079_v15, %v12293_v39 }
 0x40d   : > { %v12350_v20 = vpop.permute.xlu0 %3153  ;;  %v3895_v45 = vsel %vm3317_vm10, %v3813_v9, %v12257_v31  ;;  %v2820_v30 = vsel %vm2781_vm11, %v2817_v10, %v2819_v62  ;;  %v14764_v10 = vld [vmem:[#allocation168_spill] sm:$0xff] }
 0x40e   : > { %2628 = vrot.lane.b32.xlu1 %v2559_v36, %s8691_s15  ;;  %v2969_v36 = vor.u32 %v2968_v1, %v2967_v22  ;;  %v14759_v1 = vld [vmem:[#allocation43_spill] sm:$0xff]  ;;  %v4001_v57 = vsel %vm3183_vm8, %v2820_v30, %v12316_v61 }
 0x40f   : > { %3103 = vrot.lane.b32.xlu0 %v12353_v2, %s8690_s25  ;;  %v3734_v31 = vsel %vm3183_vm8, %v14759_v1, %v12276_v26  ;;  %v4081_v40 = vsel %vm3250_vm9, %v4001_v57, %v12328_v59  ;;  %v14765_v61 = vld [vmem:[#allocation79_spill] sm:$0xff]  ;;  %v12446_v59 = vsel %vm2374_vm0, %v2436_v46, %v12424_v23  ;;  %v14771_v57 = vld [vmem:[#allocation89_spill] sm:$0xff] }
 0x410   : > { %v12364_v37 = vpop.permute.xlu1 %2751  ;;  %v2970_v7 = vsel %vm2847_vm6, %v2965_v17, %v2969_v36  ;;  %v3815_v52 = vsel %vm3250_vm9, %v3734_v31, %v12291_v48  ;;  %v4165_v48 = vsel %vm3317_vm10, %v4081_v40, %v12350_v20  ;;  %v2821_v63 = vrot.slane %v14765_v61, 5  ;;  %v14773_v61 = vld [vmem:[#allocation96_spill] sm:$0xff] }
 0x411   : > { %v12366_v32 = vpop.permute.xlu0 %3017 }
 0x412   : > { %2697 = vrot.lane.b32.xlu1 %v14752_v38, %s8690_s25  ;;  %4921 = vmatmul.mubr.bf16.gmra.mrb[168].mxu1 %v3892_v29  ;;  %v14762_v38 = vld [vmem:[#allocation160_spill] sm:$0xff]  ;;  %v2822_v34 = vsel %vm2781_vm11, %v2819_v62, %v2821_v63  ;;  %v14769_v62 = vld [vmem:[#allocation171_spill] sm:$0xff] }
 0x413   : > { %3173 = vrot.lane.b32.xlu0 %v2563_v50, %s8692_s18  ;;  %4928 = vmatprep.mubr.bf16.mxu1 %v4159_v8  ;;  %v2974_v29 = vsel %vm2847_vm6, %v2969_v36, %v14762_v38  ;;  %v14763_v8 = vld [vmem:[#allocation155_spill] sm:$0xff]  ;;  %v4004_v46 = vsel %vm3183_vm8, %v2822_v34, %v12366_v32  ;;  %v2825_v38 = vrot.slane %v14771_v57, 5 }
 0x414   : > { %v12383_v13 = vpop.permute.xlu1 %2610  ;;  %v2569_v26 = vrot.slane %v14763_v8, 7  ;;  %v14772_v8 = vld [vmem:[#allocation24_spill] sm:$0xff] }
 0x415   : > { %v3086_v35 = vpop.permute.xlu0 %3085 }
 0x416   : > { %2771 = vrot.lane.b32.xlu1 %v14755_v55, %s8692_s18  ;;  %v4083_v15 = vsel %vm3250_vm9, %v4004_v46, %v3086_v35  ;;  %v14770_v35 = vld [vmem:[#allocation106_spill] sm:$0xff] }
 0x417   : > { %3037 = vrot.lane.b32.xlu0 %v2970_v7, %s8691_s15  ;;  %v3898_v7 = vsel %vm3317_vm10, %v3815_v52, %v12314_v51  ;;  %v14766_v51 = vld [vmem:[#allocation75_spill] sm:$0xff] }
 0x418   : > { %v12396_v53 = vpop.permute.xlu1 %2679  ;;  %v3737_v20 = vsel %vm3183_vm8, %v14766_v51, %v12326_v19  ;;  %v14774_v51 = vld [vmem:[#allocation62_spill] sm:$0xff] }
 0x419   : > { %v3156_v17 = vpop.permute.xlu0 %3155  ;;  %v3817_v9 = vsel %vm3250_vm9, %v3737_v20, %v12348_v12 }
 0x41a   : > { %2630 = vrot.lane.b32.xlu1 %v2563_v50, %s8691_s15  ;;  %4929 = vmatmul.mubr.bf16.gmra.mrb[172].mxu1 %v3895_v45  ;;  %v2568_v50 = vrot.slane %v14761_v60, 6  ;;  %v14767_v45 = vld [vmem:[#allocation34_spill] sm:$0xff]  ;;  %v3901_v19 = vsel %vm3317_vm10, %v3817_v9, %v12364_v37  ;;  %v4168_v12 = vsel %vm3317_vm10, %v4083_v15, %v3156_v17 }
 0x41b   : > { %3105 = vrot.lane.b32.xlu0 %v12403_v54, %s8690_s25  ;;  %4936 = vmatprep.mubr.bf16.mxu1 %v4162_v28  ;;  %v14768_v28 = vld [vmem:[#allocation84_spill] sm:$0xff]  ;;  %v14775_v15 = vld [vmem:[#allocation98_spill] sm:$0xff] }
 0x41c   : > { %v2754_v14 = vpop.permute.xlu1 %2753  ;;  %v12448_v55 = vor.u32 %v2569_v26, %v2568_v50  ;;  %v2823_v32 = vrot.slane %v14768_v28, 5 }
 0x41d   : > { %v3020_v22 = vpop.permute.xlu0 %3019 }
 0x41e   : > { %2699 = vrot.lane.b32.xlu1 %v14758_v5, %s8690_s25  ;;  %v12463_v3 = vsel %vm2440_vm7, %v2566_v24, %v12448_v55  ;;  %v2824_v5 = vsel %vm2781_vm11, %v2821_v63, %v2823_v32  ;;  %v2826_v40 = vsel %vm2781_vm11, %v2823_v32, %v2825_v38  ;;  %v2827_v63 = vrot.slane %v14773_v61, 5 }
 0x41f   : > { %3175 = vrot.lane.b32.xlu0 %v2567_v16, %s8692_s18  ;;  %v4007_v17 = vsel %vm3183_vm8, %v2824_v5, %v3020_v22 }
 0x420   : > { %v2613_v4 = vpop.permute.xlu1 %2612  ;;  %v2828_v34 = vsel %vm2781_vm11, %v2825_v38, %v2827_v63 }
 0x421   : > { %v3088_v39 = vpop.permute.xlu0 %3087  ;;  %v3743_v26 = vsel %vm3183_vm8, %v14772_v8, %v2613_v4  ;;  %v8628_v8 = vld [vmem:[%s13968_s5 + $0x18] sm:$0xff]  }
 0x422   : > { %2773 = vrot.lane.b32.xlu1 %v14764_v10, %s8692_s18  ;;  %4937 = vmatmul.mubr.bf16.gmra.mrb[176].mxu1 %v3898_v7  ;;  %v4085_v30 = vsel %vm3250_vm9, %v4007_v17, %v3088_v39  ;;  %v14777_v17 = vmov 0  }
 0x423   : > { %3039 = vrot.lane.b32.xlu0 %v2974_v29, %s8691_s15  ;;  %4944 = vmatprep.mubr.bf16.mxu1 %v4165_v48 }
 0x424   : > { %v2682_v36 = vpop.permute.xlu1 %2681 }
 0x425   : > { %v3158_v27 = vpop.permute.xlu0 %3157  ;;  %v3821_v22 = vsel %vm3250_vm9, %v3743_v26, %v2682_v36  ;;  %v14778_v26 = vld [vmem:[#allocation81_spill] sm:$0xff] }
 0x426   : > { %2632 = vrot.lane.b32.xlu1 %v2567_v16, %s8691_s15  ;;  %v3740_v16 = vsel %vm3183_vm8, %v14770_v35, %v12383_v13  ;;  %v4171_v52 = vsel %vm3317_vm10, %v4085_v30, %v3158_v27  ;;  %v8626_v35 = vld [vmem:[%s13968_s5 + $0x8] sm:$0xff]  }
 0x427   : > { %3107 = vrot.lane.b32.xlu0 %v12446_v59, %s8690_s25  ;;  %v3819_v37 = vsel %vm3250_vm9, %v3740_v16, %v12396_v53  ;;  %v14776_v16 = vld [vmem:[#allocation52_spill] sm:$0xff] }
 0x428   : > { %v2756_v18 = vpop.permute.xlu1 %2755  ;;  %v3904_v50 = vsel %vm3317_vm10, %v3819_v37, %v2754_v14 }
 0x429   : > { %v3022_v58 = vpop.permute.xlu0 %3021  ;;  %v3907_v7 = vsel %vm3317_vm10, %v3821_v22, %v2756_v18 }
 0x42a   : > { %2701 = vrot.lane.b32.xlu1 %v14767_v45, %s8690_s25  ;;  %4945 = vmatmul.mubr.bf16.gmra.mrb[180].mxu1 %v3901_v19  ;;  %v4010_v39 = vsel %vm3183_vm8, %v2826_v40, %v3022_v58  ;;  %v2829_v45 = vrot.slane %v14775_v15, 5 }
 0x42b   : > { %3177 = vrot.lane.b32.xlu0 %v12463_v3, %s8692_s18  ;;  %4952 = vmatprep.mubr.bf16.mxu1 %v4168_v12 }
 0x42c   : > { %v2615_v0 = vpop.permute.xlu1 %2614 }
 0x42d   : > { %v3090_v24 = vpop.permute.xlu0 %3089  ;;  %v3746_v20 = vsel %vm3183_vm8, %v14774_v51, %v2615_v0  ;;  %v8625_v0 = vld [vmem:[%s13968_s5] sm:$0xff]   ;;  %v8630_v51 = vld [vmem:[%s13968_s5 + $0x28] sm:$0xff]  }
 0x42e   : > { %2775 = vrot.lane.b32.xlu1 %v14769_v62, %s8692_s18  ;;  %v4087_v14 = vsel %vm3250_vm9, %v4010_v39, %v3090_v24  ;;  %v2830_v24 = vsel %vm2781_vm11, %v2827_v63, %v2829_v45  ;;  %6628 = vmatpush1.bf16.msra.mxu0 %v8625_v0 }
 0x42f   : > { %6629 = vmatprep.subr.bf16.mxu0 %v14777_v17 }
 0x430   : > { %v2684_v1 = vpop.permute.xlu1 %2683 }
 0x431   : > { %v3160_v31 = vpop.permute.xlu0 %3159  ;;  %v3823_v58 = vsel %vm3250_vm9, %v3746_v20, %v2684_v1 }
 0x432   : > { %4953 = vmatmul.mubr.bf16.gmra.mrb[184].mxu1 %v3904_v50  ;;  %v4174_v48 = vsel %vm3317_vm10, %v4087_v14, %v3160_v31  ;;  %6630 = vmatpush1.bf16.msra.mxu0 %v8626_v35 }
 0x433   : > { %4960 = vmatprep.mubr.bf16.mxu1 %v4171_v52  ;;  %6631 = vmatprep.subr.bf16.mxu0 %v14777_v17 }
 0x434   : > { %v2758_v13 = vpop.permute.xlu1 %2757 }
 0x435   : > { %v3024_v29 = vpop.permute.xlu0 %3023  ;;  %v3910_v19 = vsel %vm3317_vm10, %v3823_v58, %v2758_v13  ;;  %v8627_v13 = vld [vmem:[%s13968_s5 + $0x10] sm:$0xff]   ;;  %v2833_v58 = vrot.slane %v14585_v41, 5 }
 0x436   : > { %v4013_v46 = vsel %vm3183_vm8, %v2828_v34, %v3024_v29  ;;  %v2831_v29 = vrot.slane %v10280_v44, 5  ;;  %6632 = vmatpush1.bf16.msra.mxu0 %v8627_v13 }
 0x437   : > { %6633 = vmatprep.subr.bf16.mxu0 %v14777_v17 }
 0x438   : > { %v2617_v53 = vpop.permute.xlu1 %2616  ;;  %v2832_v39 = vsel %vm2781_vm11, %v2829_v45, %v2831_v29  ;;  %v2834_v15 = vsel %vm2781_vm11, %v2831_v29, %v2833_v58  ;;  %v8635_v29 = vld [vmem:[%s13968_s5 + $0x50] sm:$0xff]  }
 0x439   : > { %v3092_v10 = vpop.permute.xlu0 %3091  ;;  %v3749_v5 = vsel %vm3183_vm8, %v14776_v16, %v2617_v53 }
 0x43a   : > { %4961 = vmatmul.mubr.bf16.gmra.mrb[188].mxu1 %v3907_v7  ;;  %v4089_v18 = vsel %vm3250_vm9, %v4013_v46, %v3092_v10  ;;  %6634 = vmatpush1.bf16.msra.mxu0 %v8628_v8 }
 0x43b   : > { %4968 = vmatprep.mubr.bf16.mxu1 %v4174_v48  ;;  %6635 = vmatprep.subr.bf16.mxu0 %v14777_v17 }
 0x43c   : > { %v2686_v27 = vpop.permute.xlu1 %2685 }
 0x43d   : > { %v3162_v4 = vpop.permute.xlu0 %3161  ;;  %v3825_v30 = vsel %vm3250_vm9, %v3749_v5, %v2686_v27  ;;  %v8629_v27 = vld [vmem:[%s13968_s5 + $0x20] sm:$0xff]  }
 0x43e   : > { %v4177_v12 = vsel %vm3317_vm10, %v4089_v18, %v3162_v4  ;;  %6636 = vmatpush1.bf16.msra.mxu0 %v8629_v27  ;;  %v8633_v5 = vld [vmem:[%s13968_s5 + $0x40] sm:$0xff]   ;;  %v2837_v27 = vrot.slane %v14738_v43, 5  ;;  %v8638_v43 = vld [vmem:[%s13968_s5 + $0x68] sm:$0xff]  }
 0x43f   : > { %6637 = vmatprep.subr.bf16.mxu0 %v14777_v17 }
 0x440   : > { %v2760_v36 = vpop.permute.xlu1 %2759 }
 0x441   : > { %v3026_v9 = vpop.permute.xlu0 %3025  ;;  %v3913_v52 = vsel %vm3317_vm10, %v3825_v30, %v2760_v36 }
 0x442   : > { %4969 = vmatmul.mubr.bf16.gmra.mrb[192].mxu1 %v3910_v19  ;;  %v4016_v62 = vsel %vm3183_vm8, %v2830_v24, %v3026_v9  ;;  %6638 = vmatpush1.bf16.msra.mxu0 %v8630_v51  ;;  %v8632_v19 = vld [vmem:[%s13968_s5 + $0x38] sm:$0xff]  }
 0x443   : > { %4976 = vmatprep.mubr.bf16.mxu1 %v4177_v12  ;;  %6639 = vmatprep.subr.bf16.mxu0 %v14777_v17 }
 0x444   : > { %v2619_v28 = vpop.permute.xlu1 %2618 }
 0x445   : > { %v3094_v32 = vpop.permute.xlu0 %3093  ;;  %v3752_v40 = vsel %vm3183_vm8, %v14778_v26, %v2619_v28 }
 0x446   : > { %v4091_v1 = vsel %vm3250_vm9, %v4016_v62, %v3094_v32 }
 0x448   : > { %v2688_v31 = vpop.permute.xlu1 %2687 }
 0x449   : > { %v3164_v37 = vpop.permute.xlu0 %3163  ;;  %v3827_v22 = vsel %vm3250_vm9, %v3752_v40, %v2688_v31 }
 0x44a   : > { %v4180_v50 = vsel %vm3317_vm10, %v4091_v1, %v3164_v37  ;;  %4977 = vmatmul.mubr.bf16.gmra.mrb[196].mxu1 %v3913_v52  ;;  %v2835_v1 = vrot.slane %v14728_v21, 5  ;;  %v12581_v21 = vld [vmem:[%s13967_s4] ss:$0 sm:$0xff] }
 0x44b   : > { %4984 = vmatprep.mubr.bf16.mxu1 %v4180_v50 }
 0x44c   : > { %v2762_v57 = vpop.permute.xlu1 %2761  ;;  %v2836_v30 = vsel %vm2781_vm11, %v2833_v58, %v2835_v1 }
 0x44d   : > { %v3028_v38 = vpop.permute.xlu0 %3027  ;;  %v3916_v14 = vsel %vm3317_vm10, %v3827_v22, %v2762_v57 }
 0x44e   : > { %v4019_v44 = vsel %vm3183_vm8, %v2832_v39, %v3028_v38 }
 0x450   : > { %v2621_v53 = vpop.permute.xlu1 %2620 }
 0x451   : > { %v3096_v10 = vpop.permute.xlu0 %3095  ;;  %v3755_v4 = vsel %vm3183_vm8, %v12082_v33, %v2621_v53  ;;  %v8631_v33 = vld [vmem:[%s13968_s5 + $0x30] sm:$0xff]  }
 0x452   : > { %4985 = vmatmul.mubr.bf16.gmra.mrb[200].mxu1 %v3916_v14  ;;  %v4093_v7 = vsel %vm3250_vm9, %v4019_v44, %v3096_v10  ;;  %6640 = vmatpush1.bf16.msra.mxu0 %v8631_v33  ;;  %v8636_v10 = vld [vmem:[%s13968_s5 + $0x58] sm:$0xff]  }
 0x453   : > { %6641 = vmatprep.subr.bf16.mxu0 %v14777_v17 }
 0x454   : > { %v2690_v48 = vpop.permute.xlu1 %2689 }
 0x455   : > { %v3166_v61 = vpop.permute.xlu0 %3165  ;;  %v3829_v20 = vsel %vm3250_vm9, %v3755_v4, %v2690_v48 }
 0x456   : > { %v4183_v63 = vsel %vm3317_vm10, %v4093_v7, %v3166_v61  ;;  %6642 = vmatpush1.bf16.msra.mxu0 %v8632_v19 }
 0x457   : > { %4992 = vmatprep.mubr.bf16.mxu1 %v4183_v63  ;;  %6643 = vmatprep.subr.bf16.mxu0 %v14777_v17 }
 0x458   : > { %v2764_v34 = vpop.permute.xlu1 %2763 }
 0x459   : > { %v3030_v36 = vpop.permute.xlu0 %3029  ;;  %v3919_v9 = vsel %vm3317_vm10, %v3829_v20, %v2764_v34  ;;  %v8637_v34 = vld [vmem:[%s13968_s5 + $0x60] sm:$0xff]  }
 0x45a   : > { %4993 = vmatmul.mubr.bf16.gmra.mrb[204].mxu1 %v3919_v9  ;;  %v4022_v45 = vsel %vm3183_vm8, %v2834_v15, %v3030_v36  ;;  %6644 = vmatpush1.bf16.msra.mxu0 %v8633_v5  ;;  %v2838_v9 = vsel %vm2781_vm11, %v2835_v1, %v2837_v27 }
 0x45b   : > { %6645 = vmatprep.subr.bf16.mxu0 %v14777_v17 }
 0x45c   : > { %v2623_v46 = vpop.permute.xlu1 %2622 }
 0x45d   : > { %v3098_v18 = vpop.permute.xlu0 %3097  ;;  %v3758_v0 = vsel %vm3183_vm8, %v12139_v11, %v2623_v46  ;;  %v8634_v11 = vld [vmem:[%s13968_s5 + $0x48] sm:$0xff]  }
 0x45e   : > { %v4095_v41 = vsel %vm3250_vm9, %v4022_v45, %v3098_v18  ;;  %6646 = vmatpush1.bf16.msra.mxu0 %v8634_v11  ;;  %v8639_v11 = vld [vmem:[%s13968_s5 + $0x70] sm:$0xff]  }
 0x45f   : > { %6647 = vmatprep.subr.bf16.mxu0 %v14777_v17 }
 0x460   : > { %v2692_v12 = vpop.permute.xlu1 %2691 }
 0x461   : > { %v3168_v28 = vpop.permute.xlu0 %3167  ;;  %v3831_v24 = vsel %vm3250_vm9, %v3758_v0, %v2692_v12 }
 0x462   : > { %v4186_v32 = vsel %vm3317_vm10, %v4095_v41, %v3168_v28  ;;  %6648 = vmatpush1.bf16.msra.mxu0 %v8635_v29 }
 0x463   : > { %5000 = vmatprep.mubr.bf16.mxu1 %v4186_v32  ;;  %6649 = vmatprep.subr.bf16.mxu0 %v14777_v17 }
 0x464   : > { %v2766_v62 = vpop.permute.xlu1 %2765 }
 0x465   : > { %v3032_v35 = vpop.permute.xlu0 %3031  ;;  %v3922_v16 = vsel %vm3317_vm10, %v3831_v24, %v2766_v62 }
 0x466   : > { %5001 = vmatmul.mubr.bf16.gmra.mrb[208].mxu1 %v3922_v16  ;;  %v4025_v50 = vsel %vm3183_vm8, %v2836_v30, %v3032_v35  ;;  %6650 = vmatpush1.bf16.msra.mxu0 %v8636_v10 }
 0x467   : > { %6651 = vmatprep.subr.bf16.mxu0 %v14777_v17 }
 0x468   : > { %v2625_v31 = vpop.permute.xlu1 %2624 }
 0x469   : > { %v3100_v37 = vpop.permute.xlu0 %3099  ;;  %v3761_v26 = vsel %vm3183_vm8, %v12189_v42, %v2625_v31 }
 0x46a   : > { %v4097_v52 = vsel %vm3250_vm9, %v4025_v50, %v3100_v37  ;;  %6652 = vmatpush1.bf16.msra.mxu0 %v8637_v34  ;;  %v2839_v37 = vrot.slane %v14746_v25, 5 }
 0x46b   : > { %6653 = vmatprep.subr.bf16.mxu0 %v14777_v17 }
 0x46c   : > { %v2694_v57 = vpop.permute.xlu1 %2693 }
 0x46d   : > { %v3170_v38 = vpop.permute.xlu0 %3169  ;;  %v4802_v8 = vpop.f32.mrb[108].mxu1  ;;  %v3833_v22 = vsel %vm3250_vm9, %v3761_v26, %v2694_v57  ;;  %v8640_v57 = vld [vmem:[%s13968_s5 + $0x78] sm:$0xff]  }
 0x46e   : > { %v4189_v13 = vsel %vm3317_vm10, %v4097_v52, %v3170_v38  ;;  %v8161_v40 = vadd.f32 %v12581_v21, %v4802_v8  ;;  %v4804_v53 = vpop.f32.mrb[109].mxu1  ;;  %6654 = vmatpush1.bf16.msra.mxu0 %v8638_v43 }
 0x46f   : > { %5008 = vmatprep.mubr.bf16.mxu1 %v4189_v13  ;;  %v4805_v39 = vpop.f32.mrb[110].mxu1  ;;  %6655 = vmatprep.subr.bf16.mxu0 %v14777_v17 }
 0x470   : > { %v2768_v14 = vpop.permute.xlu1 %2767  ;;  %v8162_v44 = vadd.f32 %v12581_v21, %v4805_v39  ;;  %v4807_v7 = vpop.f32.mrb[111].mxu1  ;;  %v5064_v61 = vmax.f32 %v8161_v40, 0.0  ;;  %v2840_v40 = vsel %vm2781_vm11, %v2837_v27, %v2839_v37 }
 0x471   : > { %v3034_v48 = vpop.permute.xlu0 %3033  ;;  %v3925_v42 = vsel %vm3317_vm10, %v3833_v22, %v2768_v14 }
 0x472   : > { %5009 = vmatmul.mubr.bf16.gmra.mrb[212].mxu1 %v3925_v42  ;;  %v5065_v63 = vmax.f32 %v8162_v44, 0.0  ;;  %v4028_v18 = vsel %vm3183_vm8, %v2838_v9, %v3034_v48  ;;  %6656 = vmatpush1.bf16.msra.mxu0 %v8639_v11 }
 0x473   : > { %6657 = vmatprep.subr.bf16.mxu0 %v14777_v17 }
 0x474   : > { %v2627_v4 = vpop.permute.xlu1 %2626  ;;  %v12600_v51 = vpack.c.bf16 %v5065_v63, %v5064_v61 }
 0x475   : > { %v3102_v20 = vpop.permute.xlu0 %3101  ;;  %v4810_v36 = vpop.f32.mrb[112].mxu1  ;;  %v3764_v32 = vsel %vm3183_vm8, %v12246_v49, %v2627_v4 }
 0x476   : > { %v8163_v58 = vadd.f32 %v12581_v21, %v4810_v36  ;;  %v4812_v46 = vpop.f32.mrb[113].mxu1  ;;  %v4099_v45 = vsel %vm3250_vm9, %v4028_v18, %v3102_v20  ;;  %v5191_v49 = vrot.slane %v12600_v51, 1  ;;  %6658 = vmatpush1.bf16.msra.mxu0 %v8640_v57 }
 0x477   : > { %v4813_v33 = vpop.f32.mrb[114].mxu1  ;;  %6853 = vmatprep.subr.bf16.mxu0 %v14777_v17 }
 0x478   : > { %v2696_v15 = vpop.permute.xlu1 %2695  ;;  %v8164_v19 = vadd.f32 %v12581_v21, %v4813_v33  ;;  %v4815_v41 = vpop.f32.mrb[115].mxu1  ;;  %v5066_v0 = vmax.f32 %v8163_v58, 0.0 }
 0x479   : > { %v3172_v12 = vpop.permute.xlu0 %3171  ;;  %v3835_v62 = vsel %vm3250_vm9, %v3764_v32, %v2696_v15  ;;  %v2841_v41 = vrot.slane %v14754_v47, 5 }
 0x47a   : > { %v4192_v28 = vsel %vm3317_vm10, %v4099_v45, %v3172_v12  ;;  %v5067_v24 = vmax.f32 %v8164_v19, 0.0 }
 0x47b   : > { %5016 = vmatprep.mubr.bf16.mxu1 %v4192_v28 }
 0x47c   : > { %v2770_v35 = vpop.permute.xlu1 %2769  ;;  %v12619_v16 = vpack.c.bf16 %v5067_v24, %v5066_v0  ;;  %v2842_v24 = vsel %vm2781_vm11, %v2839_v37, %v2841_v41 }
 0x47d   : > { %v3036_v5 = vpop.permute.xlu0 %3035  ;;  %v3928_v1 = vsel %vm3317_vm10, %v3835_v62, %v2770_v35  ;;  %v4818_v31 = vpop.f32.mrb[116].mxu1 }
 0x47e   : > { %5017 = vmatmul.mubr.bf16.gmra.mrb[216].mxu1 %v3928_v1  ;;  %v8165_v30 = vadd.f32 %v12581_v21, %v4818_v31  ;;  %v4820_v50 = vpop.f32.mrb[117].mxu1  ;;  %v5192_v52 = vrot.slane %v12619_v16, 1  ;;  %v4031_v22 = vsel %vm3183_vm8, %v2840_v40, %v3036_v5  ;;  %v5366_v4 = vrot.slane %v12619_v16, 6 }
 0x47f   : > { %v4821_v38 = vpop.f32.mrb[118].mxu1 }
 0x480   : > { %v2629_v13 = vpop.permute.xlu1 %2628  ;;  %v8166_v29 = vadd.f32 %v12581_v21, %v4821_v38  ;;  %v4823_v8 = vpop.f32.mrb[119].mxu1  ;;  %v5193_v25 = vsel %vm1668_vm2, %v5191_v49, %v5192_v52  ;;  %v5068_v53 = vmax.f32 %v8165_v30, 0.0 }
 0x481   : > { %v3104_v26 = vpop.permute.xlu0 %3103  ;;  %5248 = vrot.lane.b32.xlu1 %v5193_v25, %s8690_s25  ;;  %v3767_v34 = vsel %vm3183_vm8, %v12296_v6, %v2629_v13 }
 0x482   : > { %v5069_v10 = vmax.f32 %v8166_v29, 0.0  ;;  %v4101_v44 = vsel %vm3250_vm9, %v4031_v22, %v3104_v26 }
 0x484   : > { %v2698_v39 = vpop.permute.xlu1 %2697  ;;  %v12639_v14 = vpack.c.bf16 %v5069_v10, %v5068_v53 }
 0x485   : > { %v3174_v7 = vpop.permute.xlu0 %3173  ;;  %v4826_v48 = vpop.f32.mrb[120].mxu1  ;;  %v3837_v58 = vsel %vm3250_vm9, %v3767_v34, %v2698_v39  ;;  %v14779_v34 = vrot.slane %v14760_v56, 5 }
 0x486   : > { %v4195_v42 = vsel %vm3317_vm10, %v4101_v44, %v3174_v7  ;;  %v8167_v61 = vadd.f32 %v12581_v21, %v4826_v48  ;;  %v4828_v63 = vpop.f32.mrb[121].mxu1  ;;  %v5194_v27 = vrot.slane %v12639_v14, 1  ;;  %v5367_v20 = vrot.slane %v12639_v14, 6 }
 0x487   : > { %5024 = vmatprep.mubr.bf16.mxu1 %v4195_v42  ;;  %v4829_v36 = vpop.f32.mrb[122].mxu1 }
 0x488   : > { %v2772_v9 = vpop.permute.xlu1 %2771  ;;  %v8168_v46 = vadd.f32 %v12581_v21, %v4829_v36  ;;  %v4831_v43 = vpop.f32.mrb[123].mxu1  ;;  %v5195_v33 = vsel %vm1668_vm2, %v5192_v52, %v5194_v27  ;;  %v5368_v15 = vsel %vm2374_vm0, %v5366_v4, %v5367_v20  ;;  %v5070_v19 = vmax.f32 %v8167_v61, 0.0 }
 0x489   : > { %v3038_v18 = vpop.permute.xlu0 %3037  ;;  %5250 = vrot.lane.b32.xlu1 %v5195_v33, %s8690_s25  ;;  %5425 = vrot.lane.b32.xlu0 %v5368_v15, %s8690_s25  ;;  %v3931_v45 = vsel %vm3317_vm10, %v3837_v58, %v2772_v9  ;;  %v2844_v36 = vsel %vm2781_vm11, %v2841_v41, %v14779_v34 }
 0x48a   : > { %v5071_v6 = vmax.f32 %v8168_v46, 0.0  ;;  %5025 = vmatmul.mubr.bf16.gmra.mrb[220].mxu1 %v3931_v45  ;;  %v4034_v11 = vsel %vm3183_vm8, %v2842_v24, %v3038_v18 }
 0x48c   : > { %v2631_v12 = vpop.permute.xlu1 %2630  ;;  %v12657_v28 = vpack.c.bf16 %v5071_v6, %v5070_v19 }
 0x48d   : > { %v3106_v32 = vpop.permute.xlu0 %3105  ;;  %v4834_v0 = vpop.f32.mrb[124].mxu1  ;;  %v3770_v13 = vsel %vm3183_vm8, %v12353_v2, %v2631_v12 }
 0x48e   : > { %v8169_v62 = vadd.f32 %v12581_v21, %v4834_v0  ;;  %v4836_v35 = vpop.f32.mrb[125].mxu1  ;;  %v5196_v5 = vrot.slane %v12657_v28, 1  ;;  %v5369_v1 = vrot.slane %v12657_v28, 6  ;;  %v4103_v47 = vsel %vm3250_vm9, %v4034_v11, %v3106_v32 }
 0x48f   : > { %v4837_v31 = vpop.f32.mrb[126].mxu1 }
 0x490   : > { %v2700_v49 = vpop.permute.xlu1 %2699  ;;  %v8170_v30 = vadd.f32 %v12581_v21, %v4837_v31  ;;  %v4839_v50 = vpop.f32.mrb[127].mxu1  ;;  %v5197_v57 = vsel %vm1668_vm2, %v5194_v27, %v5196_v5  ;;  %v5370_v37 = vsel %vm2374_vm0, %v5367_v20, %v5369_v1  ;;  %v5072_v29 = vmax.f32 %v8169_v62, 0.0 }
 0x491   : > { %v3176_v52 = vpop.permute.xlu0 %3175  ;;  %5252 = vrot.lane.b32.xlu1 %v5197_v57, %s8690_s25  ;;  %5427 = vrot.lane.b32.xlu0 %v5370_v37, %s8690_s25  ;;  %v3839_v26 = vsel %vm3250_vm9, %v3770_v13, %v2700_v49 }
 0x492   : > { %v4198_v38 = vsel %vm3317_vm10, %v4103_v47, %v3176_v52  ;;  %v5073_v8 = vmax.f32 %v8170_v30, 0.0 }
 0x493   : > { %5032 = vmatprep.mubr.bf16.mxu1 %v4198_v38 }
 0x494   : > { %v2774_v25 = vpop.permute.xlu1 %2773  ;;  %v12674_v40 = vpack.c.bf16 %v5073_v8, %v5072_v29 }
 0x495   : > { %v3040_v53 = vpop.permute.xlu0 %3039  ;;  %v3934_v10 = vsel %vm3317_vm10, %v3839_v26, %v2774_v25  ;;  %v4842_v22 = vpop.f32.mrb[128].mxu1 }
 0x496   : > { %5033 = vmatmul.mubr.bf16.gmra.mrb[224].mxu1 %v3934_v10  ;;  %v8171_v39 = vadd.f32 %v12581_v21, %v4842_v22  ;;  %v4844_v44 = vpop.f32.mrb[129].mxu1  ;;  %v5198_v2 = vrot.slane %v12674_v40, 1  ;;  %v5371_v7 = vrot.slane %v12674_v40, 6  ;;  %v4037_v46 = vsel %vm3183_vm8, %v2844_v36, %v3040_v53 }
 0x497   : > { %v4845_v48 = vpop.f32.mrb[130].mxu1 }
 0x498   : > { %v2633_v42 = vpop.permute.xlu1 %2632  ;;  %v8172_v61 = vadd.f32 %v12581_v21, %v4845_v48  ;;  %v4847_v63 = vpop.f32.mrb[131].mxu1  ;;  %v5199_v4 = vsel %vm1668_vm2, %v5196_v5, %v5198_v2  ;;  %v12684_v20 = vsel %vm2374_vm0, %v5369_v1, %v5371_v7  ;;  %v5074_v9 = vmax.f32 %v8171_v39, 0.0 }
 0x499   : > { %v3108_v27 = vpop.permute.xlu0 %3107  ;;  %5254 = vrot.lane.b32.xlu1 %v5199_v4, %s8690_s25  ;;  %5429 = vrot.lane.b32.xlu0 %v12684_v20, %s8690_s25  ;;  %v3773_v32 = vsel %vm3183_vm8, %v12403_v54, %v2633_v42 }
 0x49a   : > { %v5075_v58 = vmax.f32 %v8172_v61, 0.0  ;;  %v4105_v33 = vsel %vm3250_vm9, %v4037_v46, %v3108_v27 }
 0x49c   : > { %v2702_v43 = vpop.permute.xlu1 %2701  ;;  %v12692_v18 = vpack.c.bf16 %v5075_v58, %v5074_v9 }
 0x49d   : > { %v3178_v15 = vpop.permute.xlu0 %3177  ;;  %v4850_v45 = vpop.f32.mrb[132].mxu1  ;;  %v3841_v62 = vsel %vm3250_vm9, %v3773_v32, %v2702_v43 }
 0x49e   : > { %v4201_v19 = vsel %vm3317_vm10, %v4105_v33, %v3178_v15  ;;  %v8173_v56 = vadd.f32 %v12581_v21, %v4850_v45  ;;  %v4852_v6 = vpop.f32.mrb[133].mxu1  ;;  %v5200_v41 = vrot.slane %v12692_v18, 1  ;;  %v5373_v12 = vrot.slane %v12692_v18, 6 }
 0x49f   : > { %5040 = vmatprep.mubr.bf16.mxu1 %v4201_v19  ;;  %v4853_v0 = vpop.f32.mrb[134].mxu1 }
 0x4a0   : > { %v2776_v24 = vpop.permute.xlu1 %2775  ;;  %v8174_v35 = vadd.f32 %v12581_v21, %v4853_v0  ;;  %v4855_v5 = vpop.f32.mrb[135].mxu1  ;;  %v5201_v1 = vsel %vm1668_vm2, %v5198_v2, %v5200_v41  ;;  %v12705_v11 = vsel %vm2374_vm0, %v5371_v7, %v5373_v12  ;;  %v5076_v54 = vmax.f32 %v8173_v56, 0.0 }
 0x4a1   : > { %5256 = vrot.lane.b32.xlu1 %v5201_v1, %s8690_s25  ;;  %5431 = vrot.lane.b32.xlu0 %v12705_v11, %s8690_s25  ;;  %v3937_v31 = vsel %vm3317_vm10, %v3841_v62, %v2776_v24 }
 0x4a2   : > { %v5077_v49 = vmax.f32 %v8174_v35, 0.0  ;;  %5041 = vmatmul.mubr.bf16.gmra.mrb[228].mxu1 %v3937_v31 }
 0x4a4   : > { %v12711_v47 = vpack.c.bf16 %v5077_v49, %v5076_v54 }
 0x4a5   : > { %v4858_v30 = vpop.f32.mrb[136].mxu1 }
 0x4a6   : > { %v8175_v50 = vadd.f32 %v12581_v21, %v4858_v30  ;;  %v4860_v52 = vpop.f32.mrb[137].mxu1  ;;  %v5202_v57 = vrot.slane %v12711_v47, 1  ;;  %v5375_v37 = vrot.slane %v12711_v47, 6 }
 0x4a7   : > { %v4861_v38 = vpop.f32.mrb[138].mxu1 }
 0x4a8   : > { %v8176_v13 = vadd.f32 %v12581_v21, %v4861_v38  ;;  %v4863_v29 = vpop.f32.mrb[139].mxu1  ;;  %v5203_v8 = vsel %vm1668_vm2, %v5200_v41, %v5202_v57  ;;  %v12719_v26 = vsel %vm2374_vm0, %v5373_v12, %v5375_v37  ;;  %v5078_v25 = vmax.f32 %v8175_v50, 0.0 }
 0x4a9   : > { %5258 = vrot.lane.b32.xlu1 %v5203_v8, %s8690_s25  ;;  %5433 = vrot.lane.b32.xlu0 %v12719_v26, %s8690_s25 }
 0x4aa   : > { %v5079_v53 = vmax.f32 %v8176_v13, 0.0 }
 0x4ac   : > { %v12724_v10 = vpack.c.bf16 %v5079_v53, %v5078_v25 }
 0x4ad   : > { %v4866_v22 = vpop.f32.mrb[140].mxu1 }
 0x4ae   : > { %v8177_v39 = vadd.f32 %v12581_v21, %v4866_v22  ;;  %v4868_v44 = vpop.f32.mrb[141].mxu1  ;;  %v5204_v2 = vrot.slane %v12724_v10, 1  ;;  %v5377_v7 = vrot.slane %v12724_v10, 6 }
 0x4af   : > { %v4869_v48 = vpop.f32.mrb[142].mxu1 }
 0x4b0   : > { %v8178_v42 = vadd.f32 %v12581_v21, %v4869_v48  ;;  %v4871_v61 = vpop.f32.mrb[143].mxu1  ;;  %v5205_v63 = vsel %vm1668_vm2, %v5202_v57, %v5204_v2  ;;  %v12732_v27 = vsel %vm2374_vm0, %v5375_v37, %v5377_v7  ;;  %v5080_v4 = vmax.f32 %v8177_v39, 0.0 }
 0x4b1   : > { %5260 = vrot.lane.b32.xlu1 %v5205_v63, %s8690_s25  ;;  %5435 = vrot.lane.b32.xlu0 %v12732_v27, %s8690_s25 }
 0x4b2   : > { %v5081_v34 = vmax.f32 %v8178_v42, 0.0 }
 0x4b4   : > { %v12737_v36 = vpack.c.bf16 %v5081_v34, %v5080_v4 }
 0x4b5   : > { %v4874_v9 = vpop.f32.mrb[144].mxu1 }
 0x4b6   : > { %v8179_v58 = vadd.f32 %v12581_v21, %v4874_v9  ;;  %v4876_v46 = vpop.f32.mrb[145].mxu1  ;;  %v5206_v43 = vrot.slane %v12737_v36, 1  ;;  %v5379_v33 = vrot.slane %v12737_v36, 6 }
 0x4b7   : > { %v4877_v15 = vpop.f32.mrb[146].mxu1 }
 0x4b8   : > { %v8180_v45 = vadd.f32 %v12581_v21, %v4877_v15  ;;  %v4879_v19 = vpop.f32.mrb[147].mxu1  ;;  %v5207_v56 = vsel %vm1668_vm2, %v5204_v2, %v5206_v43  ;;  %v12745_v6 = vsel %vm2374_vm0, %v5377_v7, %v5379_v33  ;;  %v5082_v41 = vmax.f32 %v8179_v58, 0.0 }
 0x4b9   : > { %5262 = vrot.lane.b32.xlu1 %v5207_v56, %s8690_s25  ;;  %5437 = vrot.lane.b32.xlu0 %v12745_v6, %s8690_s25 }
 0x4ba   : > { %v5083_v12 = vmax.f32 %v8180_v45, 0.0 }
 0x4bc   : > { %v12750_v32 = vpack.c.bf16 %v5083_v12, %v5082_v41 }
 0x4bd   : > { %v4882_v0 = vpop.f32.mrb[148].mxu1 }
 0x4be   : > { %v8181_v24 = vadd.f32 %v12581_v21, %v4882_v0  ;;  %v4884_v62 = vpop.f32.mrb[149].mxu1  ;;  %v5208_v35 = vrot.slane %v12750_v32, 1  ;;  %v5381_v5 = vrot.slane %v12750_v32, 6 }
 0x4bf   : > { %v4885_v1 = vpop.f32.mrb[150].mxu1 }
 0x4c0   : > { %v8182_v31 = vadd.f32 %v12581_v21, %v4885_v1  ;;  %v4887_v54 = vpop.f32.mrb[151].mxu1  ;;  %v5209_v49 = vsel %vm1668_vm2, %v5206_v43, %v5208_v35  ;;  %v12758_v30 = vsel %vm2374_vm0, %v5379_v33, %v5381_v5  ;;  %v5084_v50 = vmax.f32 %v8181_v24, 0.0 }
 0x4c1   : > { %5264 = vrot.lane.b32.xlu1 %v5209_v49, %s8690_s25  ;;  %5439 = vrot.lane.b32.xlu0 %v12758_v30, %s8690_s25 }
 0x4c2   : > { %v5085_v52 = vmax.f32 %v8182_v31, 0.0 }
 0x4c4   : > { %v12763_v57 = vpack.c.bf16 %v5085_v52, %v5084_v50 }
 0x4c5   : > { %v4890_v37 = vpop.f32.mrb[152].mxu1 }
 0x4c6   : > { %v8183_v38 = vadd.f32 %v12581_v21, %v4890_v37  ;;  %v4892_v13 = vpop.f32.mrb[153].mxu1  ;;  %v5210_v29 = vrot.slane %v12763_v57, 1  ;;  %v5383_v8 = vrot.slane %v12763_v57, 6 }
 0x4c7   : > { %v4893_v25 = vpop.f32.mrb[154].mxu1 }
 0x4c8   : > { %v8184_v53 = vadd.f32 %v12581_v21, %v4893_v25  ;;  %v4895_v22 = vpop.f32.mrb[155].mxu1  ;;  %v5211_v39 = vsel %vm1668_vm2, %v5208_v35, %v5210_v29  ;;  %v12771_v44 = vsel %vm2374_vm0, %v5381_v5, %v5383_v8  ;;  %v5086_v2 = vmax.f32 %v8183_v38, 0.0 }
 0x4c9   : > { %5266 = vrot.lane.b32.xlu1 %v5211_v39, %s8690_s25  ;;  %5441 = vrot.lane.b32.xlu0 %v12771_v44, %s8690_s25 }
 0x4ca   : > { %v5087_v7 = vmax.f32 %v8184_v53, 0.0 }
 0x4cc   : > { %v12776_v48 = vpack.c.bf16 %v5087_v7, %v5086_v2 }
 0x4cd   : > { %v4898_v42 = vpop.f32.mrb[156].mxu1 }
 0x4ce   : > { %v8185_v61 = vadd.f32 %v12581_v21, %v4898_v42  ;;  %v4900_v63 = vpop.f32.mrb[157].mxu1  ;;  %v5212_v4 = vrot.slane %v12776_v48, 1  ;;  %v5385_v34 = vrot.slane %v12776_v48, 6 }
 0x4cf   : > { %v4901_v9 = vpop.f32.mrb[158].mxu1 }
 0x4d0   : > { %v8186_v58 = vadd.f32 %v12581_v21, %v4901_v9  ;;  %v4903_v46 = vpop.f32.mrb[159].mxu1  ;;  %v5213_v43 = vsel %vm1668_vm2, %v5210_v29, %v5212_v4  ;;  %v12784_v33 = vsel %vm2374_vm0, %v5383_v8, %v5385_v34  ;;  %v5088_v15 = vmax.f32 %v8185_v61, 0.0 }
 0x4d1   : > { %5268 = vrot.lane.b32.xlu1 %v5213_v43, %s8690_s25  ;;  %5443 = vrot.lane.b32.xlu0 %v12784_v33, %s8690_s25 }
 0x4d2   : > { %v5089_v45 = vmax.f32 %v8186_v58, 0.0 }
 0x4d4   : > { %v12789_v19 = vpack.c.bf16 %v5089_v45, %v5088_v15 }
 0x4d5   : > { %v4906_v56 = vpop.f32.mrb[160].mxu1 }
 0x4d6   : > { %v8187_v41 = vadd.f32 %v12581_v21, %v4906_v56  ;;  %v4908_v12 = vpop.f32.mrb[161].mxu1  ;;  %v5214_v0 = vrot.slane %v12789_v19, 1  ;;  %v5387_v24 = vrot.slane %v12789_v19, 6 }
 0x4d7   : > { %v4909_v62 = vpop.f32.mrb[162].mxu1 }
 0x4d8   : > { %v8188_v35 = vadd.f32 %v12581_v21, %v4909_v62  ;;  %v4911_v5 = vpop.f32.mrb[163].mxu1  ;;  %v5215_v1 = vsel %vm1668_vm2, %v5212_v4, %v5214_v0  ;;  %v12797_v31 = vsel %vm2374_vm0, %v5385_v34, %v5387_v24  ;;  %v5090_v54 = vmax.f32 %v8187_v41, 0.0 }
 0x4d9   : > { %5270 = vrot.lane.b32.xlu1 %v5215_v1, %s8690_s25  ;;  %5445 = vrot.lane.b32.xlu0 %v12797_v31, %s8690_s25 }
 0x4da   : > { %v5091_v49 = vmax.f32 %v8188_v35, 0.0 }
 0x4dc   : > { %v12802_v50 = vpack.c.bf16 %v5091_v49, %v5090_v54 }
 0x4dd   : > { %v4914_v52 = vpop.f32.mrb[164].mxu1 }
 0x4de   : > { %v8189_v37 = vadd.f32 %v12581_v21, %v4914_v52  ;;  %v4916_v38 = vpop.f32.mrb[165].mxu1  ;;  %v5216_v13 = vrot.slane %v12802_v50, 1  ;;  %v5389_v29 = vrot.slane %v12802_v50, 6 }
 0x4df   : > { %v4917_v8 = vpop.f32.mrb[166].mxu1 }
 0x4e0   : > { %v8190_v25 = vadd.f32 %v12581_v21, %v4917_v8  ;;  %v4919_v53 = vpop.f32.mrb[167].mxu1  ;;  %v5217_v22 = vsel %vm1668_vm2, %v5214_v0, %v5216_v13  ;;  %v12810_v39 = vsel %vm2374_vm0, %v5387_v24, %v5389_v29  ;;  %v5092_v2 = vmax.f32 %v8189_v37, 0.0 }
 0x4e1   : > { %5272 = vrot.lane.b32.xlu1 %v5217_v22, %s8690_s25  ;;  %5447 = vrot.lane.b32.xlu0 %v12810_v39, %s8690_s25 }
 0x4e2   : > { %v5093_v7 = vmax.f32 %v8190_v25, 0.0 }
 0x4e4   : > { %v12815_v42 = vpack.c.bf16 %v5093_v7, %v5092_v2 }
 0x4e5   : > { %v4922_v61 = vpop.f32.mrb[168].mxu1 }
 0x4e6   : > { %v8191_v63 = vadd.f32 %v12581_v21, %v4922_v61  ;;  %v4924_v4 = vpop.f32.mrb[169].mxu1  ;;  %v5218_v34 = vrot.slane %v12815_v42, 1  ;;  %v5391_v9 = vrot.slane %v12815_v42, 6  ;;  %v5308_v61 = vrot.slane %v12619_v16, 2 }
 0x4e7   : > { %v4925_v58 = vpop.f32.mrb[170].mxu1 }
 0x4e8   : > { %v8192_v46 = vadd.f32 %v12581_v21, %v4925_v58  ;;  %v4927_v43 = vpop.f32.mrb[171].mxu1  ;;  %v5219_v15 = vsel %vm1668_vm2, %v5216_v13, %v5218_v34  ;;  %v12823_v45 = vsel %vm2374_vm0, %v5389_v29, %v5391_v9  ;;  %v5094_v56 = vmax.f32 %v8191_v63, 0.0 }
 0x4e9   : > { %5274 = vrot.lane.b32.xlu1 %v5219_v15, %s8690_s25  ;;  %5449 = vrot.lane.b32.xlu0 %v12823_v45, %s8690_s25  ;;  %v5307_v58 = vrot.slane %v12600_v51, 2 }
 0x4ea   : > { %v5095_v41 = vmax.f32 %v8192_v46, 0.0 }
 0x4ec   : > { %v12828_v12 = vpack.c.bf16 %v5095_v41, %v5094_v56  ;;  %v5309_v41 = vsel %vm5306_vm12, %v5307_v58, %v5308_v61 }
 0x4ed   : > { %v4930_v0 = vpop.f32.mrb[172].mxu1 }
 0x4ee   : > { %v8193_v24 = vadd.f32 %v12581_v21, %v4930_v0  ;;  %v4932_v62 = vpop.f32.mrb[173].mxu1  ;;  %v5220_v35 = vrot.slane %v12828_v12, 1  ;;  %v5393_v5 = vrot.slane %v12828_v12, 6  ;;  %v8641_v0 = vld [vmem:[%s13968_s5 + $0x80] sm:$0xff]  }
 0x4ef   : > { %v4933_v1 = vpop.f32.mrb[174].mxu1 }
 0x4f0   : > { %v8194_v54 = vadd.f32 %v12581_v21, %v4933_v1  ;;  %v4935_v49 = vpop.f32.mrb[175].mxu1  ;;  %v5221_v52 = vsel %vm1668_vm2, %v5218_v34, %v5220_v35  ;;  %v12836_v37 = vsel %vm2374_vm0, %v5391_v9, %v5393_v5  ;;  %v5096_v38 = vmax.f32 %v8193_v24, 0.0 }
 0x4f1   : > { %14780 = vst [vmem:[#allocation109_spill] sm:$0xff] %v12836_v37  ;;  %5276 = vrot.lane.b32.xlu1 %v5221_v52, %s8690_s25  ;;  %5451 = vrot.lane.b32.xlu0 %v12836_v37, %s8690_s25 }
 0x4f2   : > { %v5097_v13 = vmax.f32 %v8194_v54, 0.0 }
 0x4f3   : > { %v5249_v46 = vpop.permute.xlu1 %5248 }
 0x4f4   : > { %v12841_v29 = vpack.c.bf16 %v5097_v13, %v5096_v38  ;;  %v8642_v13 = vld [vmem:[%s13968_s5 + $0x88] sm:$0xff]  }
 0x4f5   : > { %v4938_v8 = vpop.f32.mrb[176].mxu1 }
 0x4f6   : > { %v8195_v25 = vadd.f32 %v12581_v21, %v4938_v8  ;;  %v4940_v53 = vpop.f32.mrb[177].mxu1  ;;  %v5222_v22 = vrot.slane %v12841_v29, 1  ;;  %v5395_v2 = vrot.slane %v12841_v29, 6 }
 0x4f7   : > { %v4941_v7 = vpop.f32.mrb[178].mxu1 }
 0x4f8   : > { %v8196_v63 = vadd.f32 %v12581_v21, %v4941_v7  ;;  %v4943_v4 = vpop.f32.mrb[179].mxu1  ;;  %v5223_v34 = vsel %vm1668_vm2, %v5220_v35, %v5222_v22  ;;  %v12850_v9 = vsel %vm2374_vm0, %v5393_v5, %v5395_v2  ;;  %v5098_v43 = vmax.f32 %v8195_v25, 0.0 }
 0x4f9   : > { %14781 = vst [vmem:[#allocation108_spill] sm:$0xff] %v12850_v9  ;;  %5278 = vrot.lane.b32.xlu1 %v5223_v34, %s8690_s25  ;;  %5453 = vrot.lane.b32.xlu0 %v12850_v9, %s8690_s25  ;;  %v5783_v35 = vsel %vm3250_vm9, %v12600_v51, %v5249_v46  ;;  %v5310_v7 = vrot.slane %v12639_v14, 2 }
 0x4fa   : > { %v5099_v15 = vmax.f32 %v8196_v63, 0.0 }
 0x4fb   : > { %v5426_v56 = vpop.permute.xlu0 %5425  ;;  %v5251_v34 = vpop.permute.xlu1 %5250 }
 0x4fc   : > { %v12860_v24 = vpack.c.bf16 %v5099_v15, %v5098_v43  ;;  %v5899_v62 = vsel %vm3250_vm9, %v5309_v41, %v5426_v56 }
 0x4fd   : > { %v4946_v5 = vpop.f32.mrb[180].mxu1  ;;  %6659 = vmatprep.mubr.bf16.mxu0 %v5899_v62 }
 0x4fe   : > { %v8197_v1 = vadd.f32 %v12581_v21, %v4946_v5  ;;  %v4948_v54 = vpop.f32.mrb[181].mxu1  ;;  %6660 = vmatmul.mubr.bf16.vlgmr.msra.gmra.mrb[32].mxu0 %v5783_v35  ;;  %v5224_v49 = vrot.slane %v12860_v24, 1  ;;  %v5397_v52 = vrot.slane %v12860_v24, 6 }
 0x4ff   : > { %v4949_v38 = vpop.f32.mrb[182].mxu1  ;;  %6854 = vmatpush1.bf16.msra.mxu0 %v8641_v0  ;;  %v5787_v0 = vsel %vm3250_vm9, %v12619_v16, %v5251_v34  ;;  %v14784_v34 = vld [vmem:[#allocation35_spill] sm:$0xff] }
 0x500   : > { %v8198_v8 = vadd.f32 %v12581_v21, %v4949_v38  ;;  %v4951_v25 = vpop.f32.mrb[183].mxu1  ;;  %v5225_v51 = vsel %vm1668_vm2, %v5222_v22, %v5224_v49  ;;  %v12874_v53 = vsel %vm2374_vm0, %v5395_v2, %v5397_v52  ;;  %6855 = vmatprep.subr.bf16.mxu0 %v14777_v17  ;;  %v5100_v63 = vmax.f32 %v8197_v1, 0.0  ;;  %v8643_v2 = vld [vmem:[%s13968_s5 + $0x90] sm:$0xff]  }
 0x501   : > { %14782 = vst [vmem:[#allocation92_spill] sm:$0xff] %v12874_v53  ;;  %5280 = vrot.lane.b32.xlu1 %v5225_v51, %s8690_s25  ;;  %5455 = vrot.lane.b32.xlu0 %v12874_v53, %s8690_s25  ;;  %v5311_v22 = vsel %vm5306_vm12, %v5308_v61, %v5310_v7  ;;  %v5312_v38 = vrot.slane %v12657_v28, 2 }
 0x502   : > { %v5101_v4 = vmax.f32 %v8198_v8, 0.0 }
 0x503   : > { %6856 = vmatpush1.bf16.msra.mxu0 %v8642_v13  ;;  %v5428_v46 = vpop.permute.xlu0 %5427  ;;  %v8644_v13 = vld [vmem:[%s13968_s5 + $0x98] sm:$0xff]  }
 0x504   : > { %v12881_v58 = vpack.c.bf16 %v5101_v4, %v5100_v63  ;;  %6857 = vmatprep.subr.bf16.mxu0 %v14777_v17  ;;  %v5903_v15 = vsel %vm3250_vm9, %v5311_v22, %v5428_v46  ;;  %v5313_v63 = vsel %vm5306_vm12, %v5310_v7, %v5312_v38  ;;  %v8645_v4 = vld [vmem:[%s13968_s5 + $0xa0] sm:$0xff]   ;;  %v14785_v46 = vld [vmem:[#allocation167_spill] sm:$0xff] }
 0x505   : > { %2634 = vrot.lane.b32.xlu1 %v12463_v3, %s8691_s15  ;;  %v4954_v43 = vpop.f32.mrb[184].mxu1  ;;  %6667 = vmatprep.mubr.bf16.mxu0 %v5903_v15 }
 0x506   : > { %v8199_v56 = vadd.f32 %v12581_v21, %v4954_v43  ;;  %v4956_v41 = vpop.f32.mrb[185].mxu1  ;;  %v5226_v61 = vrot.slane %v12881_v58, 1  ;;  %v5399_v62 = vrot.slane %v12881_v58, 6  ;;  %6668 = vmatmul.mubr.bf16.gmra.mrb[36].mxu0 %v5787_v0 }
 0x507   : > { %v4957_v35 = vpop.f32.mrb[186].mxu1  ;;  %6858 = vmatpush1.bf16.msra.mxu0 %v8643_v2 }
 0x508   : > { %v8200_v5 = vadd.f32 %v12581_v21, %v4957_v35  ;;  %v4959_v1 = vpop.f32.mrb[187].mxu1  ;;  %v5227_v3 = vsel %vm1668_vm2, %v5224_v49, %v5226_v61  ;;  %v12899_v54 = vsel %vm2374_vm0, %v5397_v52, %v5399_v62  ;;  %v5102_v8 = vmax.f32 %v8199_v56, 0.0  ;;  %6859 = vmatprep.subr.bf16.mxu0 %v14777_v17  ;;  %v5253_v49 = vpop.permute.xlu1 %5252  ;;  %v14786_v35 = vld [vmem:[#allocation146_spill] sm:$0xff] }
 0x509   : > { %14783 = vst [vmem:[#allocation76_spill] sm:$0xff] %v12899_v54  ;;  %5282 = vrot.lane.b32.xlu1 %v5227_v3, %s8690_s25  ;;  %5457 = vrot.lane.b32.xlu0 %v12899_v54, %s8690_s25  ;;  %v5791_v7 = vsel %vm3250_vm9, %v12639_v14, %v5253_v49  ;;  %v5314_v1 = vrot.slane %v12674_v40, 2  ;;  %v8646_v49 = vld [vmem:[%s13968_s5 + $0xa8] sm:$0xff]  }
 0x50a   : > { %v5103_v25 = vmax.f32 %v8200_v5, 0.0  ;;  %v14225_v5 = vrot.slane %v14786_v35, 6 }
 0x50b   : > { %v5430_v52 = vpop.permute.xlu0 %5429  ;;  %6860 = vmatpush1.bf16.msra.mxu0 %v8644_v13 }
 0x50c   : > { %v12909_v51 = vpack.c.bf16 %v5103_v25, %v5102_v8  ;;  %v5907_v2 = vsel %vm3250_vm9, %v5313_v63, %v5430_v52  ;;  %6861 = vmatprep.subr.bf16.mxu0 %v14777_v17 }
 0x50d   : > { %2703 = vrot.lane.b32.xlu1 %v14784_v34, %s8690_s25  ;;  %3041 = vrot.lane.b32.xlu0 %v14785_v46, %s8691_s15  ;;  %v4962_v22 = vpop.f32.mrb[188].mxu1  ;;  %v5255_v34 = vpop.permute.xlu1 %5254 }
 0x50e   : > { %v8201_v43 = vadd.f32 %v12581_v21, %v4962_v22  ;;  %6675 = vmatprep.mubr.bf16.mxu0 %v5907_v2  ;;  %v4964_v15 = vpop.f32.mrb[189].mxu1  ;;  %v5228_v56 = vrot.slane %v12909_v51, 1  ;;  %v5401_v41 = vrot.slane %v12909_v51, 6  ;;  %v14788_v2 = vld [vmem:[#allocation158_spill] sm:$0xff] }
 0x50f   : > { %6676 = vmatmul.mubr.bf16.gmra.mrb[40].mxu0 %v5791_v7  ;;  %v4965_v0 = vpop.f32.mrb[190].mxu1  ;;  %v3113_v15 = vrot.slane %v14788_v2, 6  ;;  %v14789_v7 = vld [vmem:[#allocation159_spill] sm:$0xff] }
 0x510   : > { %v8202_v3 = vadd.f32 %v12581_v21, %v4965_v0  ;;  %v4967_v13 = vpop.f32.mrb[191].mxu1  ;;  %v5229_v8 = vsel %vm1668_vm2, %v5226_v61, %v5228_v56  ;;  %v12931_v25 = vsel %vm2374_vm0, %v5399_v62, %v5401_v41  ;;  %6862 = vmatpush1.bf16.msra.mxu0 %v8645_v4  ;;  %v5104_v52 = vmax.f32 %v8201_v43, 0.0  ;;  %v8647_v0 = vld [vmem:[%s13968_s5 + $0xb0] sm:$0xff]  }
 0x511   : > { %14787 = vst [vmem:[#allocation71_spill] sm:$0xff] %v12931_v25  ;;  %5284 = vrot.lane.b32.xlu1 %v5229_v8, %s8690_s25  ;;  %5459 = vrot.lane.b32.xlu0 %v12931_v25, %s8690_s25  ;;  %v3046_v61 = vsel %vm2374_vm0, %v12424_v23, %v14225_v5  ;;  %v5315_v62 = vsel %vm5306_vm12, %v5312_v38, %v5314_v1  ;;  %v3114_v43 = vrot.slane %v14789_v7, 7 }
 0x512   : > { %v5105_v63 = vmax.f32 %v8202_v3, 0.0  ;;  %6863 = vmatprep.subr.bf16.mxu0 %v14777_v17  ;;  %v14790_v3 = vld [vmem:[#allocation28_spill] sm:$0xff] }
 0x513   : > { %v5432_v46 = vpop.permute.xlu0 %5431 }
 0x514   : > { %v12945_v4 = vpack.c.bf16 %v5105_v63, %v5104_v52  ;;  %v5911_v22 = vsel %vm3250_vm9, %v5315_v62, %v5432_v46  ;;  %6864 = vmatpush1.bf16.msra.mxu0 %v8646_v49  ;;  %v5795_v52 = vsel %vm3250_vm9, %v12657_v28, %v5255_v34  ;;  %v5316_v62 = vrot.slane %v12692_v18, 2  ;;  %v8648_v34 = vld [vmem:[%s13968_s5 + $0xb8] sm:$0xff]  }
 0x515   : > { %2777 = vrot.lane.b32.xlu1 %v14790_v3, %s8692_s18  ;;  %3109 = vrot.lane.b32.xlu0 %v3046_v61, %s8690_s25  ;;  %v4970_v13 = vpop.f32.mrb[192].mxu1 }
 0x516   : > { %v8203_v38 = vadd.f32 %v12581_v21, %v4970_v13  ;;  %6683 = vmatprep.mubr.bf16.mxu0 %v5911_v22  ;;  %v4972_v8 = vpop.f32.mrb[193].mxu1  ;;  %v5230_v63 = vrot.slane %v12945_v4, 1  ;;  %v5403_v49 = vrot.slane %v12945_v4, 6  ;;  %6865 = vmatprep.subr.bf16.mxu0 %v14777_v17 }
 0x517   : > { %6684 = vmatmul.mubr.bf16.gmra.mrb[44].mxu0 %v5795_v52  ;;  %v4973_v46 = vpop.f32.mrb[194].mxu1  ;;  %v12968_v8 = vor.u32 %v3114_v43, %v3113_v15 }
 0x518   : > { %v8204_v61 = vadd.f32 %v12581_v21, %v4973_v46  ;;  %v4975_v3 = vpop.f32.mrb[195].mxu1  ;;  %v5231_v13 = vsel %vm1668_vm2, %v5228_v56, %v5230_v63  ;;  %v12966_v22 = vsel %vm2374_vm0, %v5401_v41, %v5403_v49  ;;  %6866 = vmatpush1.bf16.msra.mxu0 %v8647_v0  ;;  %v5106_v52 = vmax.f32 %v8203_v38, 0.0  ;;  %v5257_v56 = vpop.permute.xlu1 %5256 }
 0x519   : > { %14791 = vst [vmem:[#allocation101_spill] sm:$0xff] %v12966_v22  ;;  %5286 = vrot.lane.b32.xlu1 %v5231_v13, %s8690_s25  ;;  %5461 = vrot.lane.b32.xlu0 %v12966_v22, %s8690_s25  ;;  %v5317_v41 = vsel %vm5306_vm12, %v5314_v1, %v5316_v62  ;;  %v3116_v43 = vsel %vm2440_vm7, %v12448_v55, %v12968_v8 }
 0x51a   : > { %v5107_v46 = vmax.f32 %v8204_v61, 0.0  ;;  %6867 = vmatprep.subr.bf16.mxu0 %v14777_v17  ;;  %v5799_v1 = vsel %vm3250_vm9, %v12674_v40, %v5257_v56 }
 0x51b   : > { %v5434_v3 = vpop.permute.xlu0 %5433 }
 0x51c   : > { %v12978_v15 = vpack.c.bf16 %v5107_v46, %v5106_v52  ;;  %v5915_v0 = vsel %vm3250_vm9, %v5317_v41, %v5434_v3  ;;  %6868 = vmatpush1.bf16.msra.mxu0 %v8648_v34 }
 0x51d   : > { %2636 = vrot.lane.b32.xlu1 %v12448_v55, %s8691_s15  ;;  %3179 = vrot.lane.b32.xlu0 %v3116_v43, %s8692_s18  ;;  %v4978_v38 = vpop.f32.mrb[196].mxu1  ;;  %v5318_v55 = vrot.slane %v12711_v47, 2 }
 0x51e   : > { %v8205_v61 = vadd.f32 %v12581_v21, %v4978_v38  ;;  %6689 = vmatprep.mubr.bf16.mxu0 %v5915_v0  ;;  %v4980_v13 = vpop.f32.mrb[197].mxu1  ;;  %v5232_v52 = vrot.slane %v12978_v15, 1  ;;  %v5405_v46 = vrot.slane %v12978_v15, 6  ;;  %6869 = vmatprep.subr.bf16.mxu0 %v14777_v17 }
 0x51f   : > { %6690 = vmatmul.mubr.bf16.gmra.mrb[48].mxu0 %v5799_v1  ;;  %v4981_v34 = vpop.f32.mrb[198].mxu1  ;;  %v5259_v13 = vpop.permute.xlu1 %5258  ;;  %v5319_v5 = vsel %vm5306_vm12, %v5316_v62, %v5318_v55 }
 0x520   : > { %v8206_v3 = vadd.f32 %v12581_v21, %v4981_v34  ;;  %v4983_v41 = vpop.f32.mrb[199].mxu1  ;;  %v5233_v43 = vsel %vm1668_vm2, %v5230_v63, %v5232_v52  ;;  %v12997_v0 = vsel %vm2374_vm0, %v5403_v49, %v5405_v46  ;;  %v5108_v56 = vmax.f32 %v8205_v61, 0.0  ;;  %v14793_v49 = vld [vmem:[#allocation162_spill] sm:$0xff] }
 0x521   : > { %14792 = vst [vmem:[#allocation117_spill] sm:$0xff] %v12997_v0  ;;  %5288 = vrot.lane.b32.xlu1 %v5233_v43, %s8690_s25  ;;  %5463 = vrot.lane.b32.xlu0 %v12997_v0, %s8690_s25  ;;  %v2710_v63 = vrot.slane %v14788_v2, 7  ;;  %v14794_v41 = vld [vmem:[#allocation161_spill] sm:$0xff]  ;;  %v5803_v62 = vsel %vm3250_vm9, %v12692_v18, %v5259_v13 }
 0x522   : > { %v5109_v38 = vmax.f32 %v8206_v3, 0.0 }
 0x523   : > { %v5436_v1 = vpop.permute.xlu0 %5435  ;;  %v5261_v0 = vpop.permute.xlu1 %5260 }
 0x524   : > { %v13003_v22 = vpack.c.bf16 %v5109_v38, %v5108_v56  ;;  %v5919_v34 = vsel %vm3250_vm9, %v5319_v5, %v5436_v1  ;;  %v5320_v38 = vrot.slane %v12724_v10, 2  ;;  %v8649_v1 = vld [vmem:[%s13968_s5 + $0xc0] sm:$0xff]  }
 0x525   : > { %2705 = vrot.lane.b32.xlu1 %v14793_v49, %s8690_s25  ;;  %3043 = vrot.lane.b32.xlu0 %v14794_v41, %s8691_s15  ;;  %v4986_v43 = vpop.f32.mrb[200].mxu1 }
 0x526   : > { %v8207_v61 = vadd.f32 %v12581_v21, %v4986_v43  ;;  %6695 = vmatprep.mubr.bf16.mxu0 %v5919_v34  ;;  %v4988_v3 = vpop.f32.mrb[201].mxu1  ;;  %v5407_v56 = vrot.slane %v13003_v22, 6  ;;  %v5234_v5 = vrot.slane %v13003_v22, 1  ;;  %v13023_v21 = vld [vmem:[%s13967_s4] ss:$0 sm:$0xff]  ;;  %v2713_v43 = vor.u32 %v14789_v7, %v2710_v63  ;;  %6870 = vmatpush1.bf16.msra.mxu0 %v8649_v1 }
 0x527   : > { %6696 = vmatmul.mubr.bf16.gmra.mrb[52].mxu0 %v5803_v62  ;;  %v4989_v2 = vpop.f32.mrb[202].mxu1  ;;  %6871 = vmatprep.subr.bf16.mxu0 %v14777_v17 }
 0x528   : > { %v8208_v34 = vadd.f32 %v13023_v21, %v4989_v2  ;;  %v4991_v13 = vpop.f32.mrb[203].mxu1  ;;  %v13027_v49 = vsel %vm2374_vm0, %v5405_v46, %v5407_v56  ;;  %v5235_v41 = vsel %vm1668_vm2, %v5232_v52, %v5234_v5  ;;  %v5110_v3 = vmax.f32 %v8207_v61, 0.0 }
 0x529   : > { %14795 = vst [vmem:[#allocation116_spill] sm:$0xff] %v13027_v49  ;;  %5465 = vrot.lane.b32.xlu0 %v13027_v49, %s8690_s25  ;;  %5290 = vrot.lane.b32.xlu1 %v5235_v41, %s8690_s25  ;;  %v5321_v2 = vsel %vm5306_vm12, %v5318_v55, %v5320_v38  ;;  %v14796_v52 = vrot.slane %v14761_v60, 7  ;;  %v14797_v61 = vrot.slane %v14786_v35, 6  ;;  %v5807_v13 = vsel %vm3250_vm9, %v12711_v47, %v5261_v0 }
 0x52a   : > { %v5111_v62 = vmax.f32 %v8208_v34, 0.0 }
 0x52b   : > { %v5438_v25 = vpop.permute.xlu0 %5437  ;;  %v2714_v7 = vsel %vm2067_vm3, %v14796_v52, %v2713_v43  ;;  %v5322_v43 = vrot.slane %v12737_v36, 2 }
 0x52c   : > { %v13036_v46 = vpack.c.bf16 %v5111_v62, %v5110_v3  ;;  %v5923_v63 = vsel %vm3250_vm9, %v5321_v2, %v5438_v25 }
 0x52d   : > { %2779 = vrot.lane.b32.xlu1 %v2714_v7, %s8692_s18  ;;  %3111 = vrot.lane.b32.xlu0 %v14797_v61, %s8690_s25  ;;  %v4994_v1 = vpop.f32.mrb[204].mxu1 }
 0x52e   : > { %v8209_v34 = vadd.f32 %v13023_v21, %v4994_v1  ;;  %6701 = vmatprep.mubr.bf16.mxu0 %v5923_v63  ;;  %v4996_v55 = vpop.f32.mrb[205].mxu1  ;;  %v5409_v60 = vrot.slane %v13036_v46, 6  ;;  %v5236_v41 = vrot.slane %v13036_v46, 1  ;;  %v5263_v63 = vpop.permute.xlu1 %5262  ;;  %v5323_v1 = vsel %vm5306_vm12, %v5320_v38, %v5322_v43 }
 0x52f   : > { %6702 = vmatmul.mubr.bf16.gmra.mrb[56].mxu0 %v5807_v13  ;;  %v4997_v25 = vpop.f32.mrb[206].mxu1  ;;  %v5324_v38 = vrot.slane %v12750_v32, 2 }
 0x530   : > { %v8210_v3 = vadd.f32 %v13023_v21, %v4997_v25  ;;  %v4999_v62 = vpop.f32.mrb[207].mxu1  ;;  %v13054_v2 = vsel %vm2374_vm0, %v5407_v56, %v5409_v60  ;;  %v5237_v52 = vsel %vm1668_vm2, %v5234_v5, %v5236_v41  ;;  %v5112_v0 = vmax.f32 %v8209_v34, 0.0  ;;  %v8650_v25 = vld [vmem:[%s13968_s5 + $0xc8] sm:$0xff]  }
 0x531   : > { %14798 = vst [vmem:[#allocation72_spill] sm:$0xff] %v13054_v2  ;;  %5467 = vrot.lane.b32.xlu0 %v13054_v2, %s8690_s25  ;;  %5292 = vrot.lane.b32.xlu1 %v5237_v52, %s8690_s25  ;;  %v5811_v56 = vsel %vm3250_vm9, %v12724_v10, %v5263_v63 }
 0x532   : > { %v5113_v7 = vmax.f32 %v8210_v3, 0.0  ;;  %6872 = vmatpush1.bf16.msra.mxu0 %v8650_v25 }
 0x533   : > { %v5440_v61 = vpop.permute.xlu0 %5439  ;;  %6873 = vmatprep.subr.bf16.mxu0 %v14777_v17  ;;  %v5265_v63 = vpop.permute.xlu1 %5264 }
 0x534   : > { %v13061_v55 = vpack.c.bf16 %v5113_v7, %v5112_v0  ;;  %v5927_v13 = vsel %vm3250_vm9, %v5323_v1, %v5440_v61  ;;  %v5325_v1 = vsel %vm5306_vm12, %v5322_v43, %v5324_v38 }
 0x535   : > { %3181 = vrot.lane.b32.xlu0 %v12968_v8, %s8692_s18  ;;  %6707 = vmatprep.mubr.bf16.mxu0 %v5927_v13 }
 0x536   : > { %v5411_v5 = vrot.slane %v13061_v55, 6  ;;  %v5238_v34 = vrot.slane %v13061_v55, 1 }
 0x537   : > { %6708 = vmatmul.mubr.bf16.gmra.mrb[60].mxu0 %v5811_v56 }
 0x538   : > { %v13075_v3 = vsel %vm2374_vm0, %v5409_v60, %v5411_v5  ;;  %v5239_v8 = vsel %vm1668_vm2, %v5236_v41, %v5238_v34 }
 0x539   : > { %14799 = vst [vmem:[#allocation97_spill] sm:$0xff] %v13075_v3  ;;  %v5002_v62 = vpop.f32.mrb[208].mxu1  ;;  %5469 = vrot.lane.b32.xlu0 %v13075_v3, %s8690_s25  ;;  %5294 = vrot.lane.b32.xlu1 %v5239_v8, %s8690_s25  ;;  %v5815_v8 = vsel %vm3250_vm9, %v12737_v36, %v5265_v63 }
 0x53a   : > { %v8211_v52 = vadd.f32 %v13023_v21, %v5002_v62  ;;  %v5004_v0 = vpop.f32.mrb[209].mxu1 }
 0x53b   : > { %v5005_v7 = vpop.f32.mrb[210].mxu1  ;;  %v5442_v60 = vpop.permute.xlu0 %5441  ;;  %v5326_v0 = vrot.slane %v12763_v57, 2 }
 0x53c   : > { %v8212_v61 = vadd.f32 %v13023_v21, %v5005_v7  ;;  %v5007_v41 = vpop.f32.mrb[211].mxu1  ;;  %v5931_v13 = vsel %vm3250_vm9, %v5325_v1, %v5442_v60  ;;  %v5114_v56 = vmax.f32 %v8211_v52, 0.0  ;;  %v5267_v2 = vpop.permute.xlu1 %5266 }
 0x53d   : > { %6713 = vmatprep.mubr.bf16.mxu0 %v5931_v13 }
 0x53e   : > { %v5115_v25 = vmax.f32 %v8212_v61, 0.0  ;;  %v5327_v61 = vsel %vm5306_vm12, %v5324_v38, %v5326_v0 }
 0x53f   : > { %6714 = vmatmul.mubr.bf16.gmra.mrb[64].mxu0 %v5815_v8  ;;  %v5328_v8 = vrot.slane %v12776_v48, 2 }
 0x540   : > { %v13088_v62 = vpack.c.bf16 %v5115_v25, %v5114_v56 }
 0x542   : > { %v5413_v3 = vrot.slane %v13088_v62, 6  ;;  %v5240_v7 = vrot.slane %v13088_v62, 1 }
 0x543   : > { %v5444_v43 = vpop.permute.xlu0 %5443 }
 0x544   : > { %v13094_v41 = vsel %vm2374_vm0, %v5411_v5, %v5413_v3  ;;  %v5241_v52 = vsel %vm1668_vm2, %v5238_v34, %v5240_v7  ;;  %v5935_v60 = vsel %vm3250_vm9, %v5327_v61, %v5444_v43  ;;  %v8651_v5 = vld [vmem:[%s13968_s5 + $0xd0] sm:$0xff]   ;;  %v5819_v34 = vsel %vm3250_vm9, %v12750_v32, %v5267_v2  ;;  %v5269_v61 = vpop.permute.xlu1 %5268 }
 0x545   : > { %14800 = vst [vmem:[#allocation107_spill] sm:$0xff] %v13094_v41  ;;  %5471 = vrot.lane.b32.xlu0 %v13094_v41, %s8690_s25  ;;  %5296 = vrot.lane.b32.xlu1 %v5241_v52, %s8690_s25  ;;  %v5010_v63 = vpop.f32.mrb[212].mxu1 }
 0x546   : > { %v8213_v1 = vadd.f32 %v13023_v21, %v5010_v63  ;;  %6721 = vmatprep.mubr.bf16.mxu0 %v5935_v60  ;;  %v5012_v13 = vpop.f32.mrb[213].mxu1  ;;  %6874 = vmatpush1.bf16.msra.mxu0 %v8651_v5  ;;  %v5823_v5 = vsel %vm3250_vm9, %v12763_v57, %v5269_v61  ;;  %v8652_v61 = vld [vmem:[%s13968_s5 + $0xd8] sm:$0xff]  }
 0x547   : > { %v5013_v38 = vpop.f32.mrb[214].mxu1  ;;  %6722 = vmatmul.mubr.bf16.gmra.mrb[68].mxu0 %v5819_v34  ;;  %6875 = vmatprep.subr.bf16.mxu0 %v14777_v17  ;;  %v5329_v13 = vsel %vm5306_vm12, %v5326_v0, %v5328_v8 }
 0x548   : > { %v8214_v56 = vadd.f32 %v13023_v21, %v5013_v38  ;;  %v5015_v25 = vpop.f32.mrb[215].mxu1  ;;  %v5116_v43 = vmax.f32 %v8213_v1, 0.0 }
 0x549   : > { %v5330_v25 = vrot.slane %v12789_v19, 2 }
 0x54a   : > { %v5117_v52 = vmax.f32 %v8214_v56, 0.0  ;;  %6876 = vmatpush1.bf16.msra.mxu0 %v8652_v61 }
 0x54b   : > { %v5446_v60 = vpop.permute.xlu0 %5445  ;;  %6877 = vmatprep.subr.bf16.mxu0 %v14777_v17 }
 0x54c   : > { %v13111_v63 = vpack.c.bf16 %v5117_v52, %v5116_v43  ;;  %v5939_v2 = vsel %vm3250_vm9, %v5329_v13, %v5446_v60 }
 0x54d   : > { %6729 = vmatprep.mubr.bf16.mxu0 %v5939_v2  ;;  %v5331_v2 = vsel %vm5306_vm12, %v5328_v8, %v5330_v25 }
 0x54e   : > { %v5415_v34 = vrot.slane %v13111_v63, 6  ;;  %v5242_v38 = vrot.slane %v13111_v63, 1 }
 0x54f   : > { %6730 = vmatmul.mubr.bf16.gmra.mrb[72].mxu0 %v5823_v5 }
 0x550   : > { %v13120_v1 = vsel %vm2374_vm0, %v5413_v3, %v5415_v34  ;;  %v5243_v56 = vsel %vm1668_vm2, %v5240_v7, %v5242_v38  ;;  %v5271_v3 = vpop.permute.xlu1 %5270 }
 0x551   : > { %14801 = vst [vmem:[#allocation122_spill] sm:$0xff] %v13120_v1  ;;  %5473 = vrot.lane.b32.xlu0 %v13120_v1, %s8690_s25  ;;  %5298 = vrot.lane.b32.xlu1 %v5243_v56, %s8690_s25  ;;  %v5018_v0 = vpop.f32.mrb[216].mxu1 }
 0x552   : > { %v8215_v43 = vadd.f32 %v13023_v21, %v5018_v0  ;;  %v5020_v52 = vpop.f32.mrb[217].mxu1  ;;  %v5827_v0 = vsel %vm3250_vm9, %v12776_v48, %v5271_v3 }
 0x553   : > { %v5021_v60 = vpop.f32.mrb[218].mxu1  ;;  %v5448_v7 = vpop.permute.xlu0 %5447 }
 0x554   : > { %v8216_v13 = vadd.f32 %v13023_v21, %v5021_v60  ;;  %v5023_v5 = vpop.f32.mrb[219].mxu1  ;;  %v5943_v1 = vsel %vm3250_vm9, %v5331_v2, %v5448_v7  ;;  %v5118_v56 = vmax.f32 %v8215_v43, 0.0  ;;  %v5332_v60 = vrot.slane %v12802_v50, 2 }
 0x555   : > { %6737 = vmatprep.mubr.bf16.mxu0 %v5943_v1  ;;  %v5273_v5 = vpop.permute.xlu1 %5272 }
 0x556   : > { %v5119_v41 = vmax.f32 %v8216_v13, 0.0  ;;  %v5333_v61 = vsel %vm5306_vm12, %v5330_v25, %v5332_v60 }
 0x557   : > { %6738 = vmatmul.mubr.bf16.gmra.mrb[76].mxu0 %v5827_v0 }
 0x558   : > { %v13137_v52 = vpack.c.bf16 %v5119_v41, %v5118_v56 }
 0x55a   : > { %v5417_v49 = vrot.slane %v13137_v52, 6  ;;  %v5244_v8 = vrot.slane %v13137_v52, 1 }
 0x55b   : > { %v5450_v7 = vpop.permute.xlu0 %5449 }
 0x55c   : > { %v13143_v43 = vsel %vm2374_vm0, %v5415_v34, %v5417_v49  ;;  %v5245_v1 = vsel %vm1668_vm2, %v5242_v38, %v5244_v8  ;;  %v5947_v41 = vsel %vm3250_vm9, %v5333_v61, %v5450_v7  ;;  %v5831_v34 = vsel %vm3250_vm9, %v12789_v19, %v5273_v5 }
 0x55d   : > { %14802 = vst [vmem:[#allocation121_spill] sm:$0xff] %v13143_v43  ;;  %5475 = vrot.lane.b32.xlu0 %v13143_v43, %s8690_s25  ;;  %5300 = vrot.lane.b32.xlu1 %v5245_v1, %s8690_s25  ;;  %v5026_v3 = vpop.f32.mrb[220].mxu1  ;;  %v5334_v38 = vrot.slane %v12815_v42, 2  ;;  %v8653_v1 = vld [vmem:[%s13968_s5 + $0xe0] sm:$0xff]  }
 0x55e   : > { %6743 = vmatprep.mubr.bf16.mxu0 %v5947_v41  ;;  %v8217_v13 = vadd.f32 %v13023_v21, %v5026_v3  ;;  %v5028_v2 = vpop.f32.mrb[221].mxu1  ;;  %v5275_v41 = vpop.permute.xlu1 %5274  ;;  %6878 = vmatpush1.bf16.msra.mxu0 %v8653_v1 }
 0x55f   : > { %6744 = vmatmul.mubr.bf16.gmra.mrb[80].mxu0 %v5831_v34  ;;  %v5029_v56 = vpop.f32.mrb[222].mxu1  ;;  %v5335_v3 = vsel %vm5306_vm12, %v5332_v60, %v5334_v38  ;;  %6879 = vmatprep.subr.bf16.mxu0 %v14777_v17  ;;  %v5835_v34 = vsel %vm3250_vm9, %v12802_v50, %v5275_v41 }
 0x560   : > { %v8218_v25 = vadd.f32 %v13023_v21, %v5029_v56  ;;  %v5031_v0 = vpop.f32.mrb[223].mxu1  ;;  %v5120_v7 = vmax.f32 %v8217_v13, 0.0 }
 0x562   : > { %v5121_v61 = vmax.f32 %v8218_v25, 0.0  ;;  %v5336_v25 = vrot.slane %v12828_v12, 2 }
 0x563   : > { %v5452_v43 = vpop.permute.xlu0 %5451  ;;  %v5277_v41 = vpop.permute.xlu1 %5276 }
 0x564   : > { %v13160_v2 = vpack.c.bf16 %v5121_v61, %v5120_v7  ;;  %v5951_v5 = vsel %vm3250_vm9, %v5335_v3, %v5452_v43 }
 0x565   : > { %6749 = vmatprep.mubr.bf16.mxu0 %v5951_v5 }
 0x566   : > { %v5419_v56 = vrot.slane %v13160_v2, 6  ;;  %v5246_v13 = vrot.slane %v13160_v2, 1 }
 0x567   : > { %6750 = vmatmul.mubr.bf16.gmra.mrb[84].mxu0 %v5835_v34  ;;  %v5337_v34 = vsel %vm5306_vm12, %v5334_v38, %v5336_v25 }
 0x568   : > { %v13170_v60 = vsel %vm2374_vm0, %v5417_v49, %v5419_v56  ;;  %v5247_v0 = vsel %vm1668_vm2, %v5244_v8, %v5246_v13 }
 0x569   : > { %14803 = vst [vmem:[#allocation137_spill] sm:$0xff] %v13170_v60  ;;  %v5034_v1 = vpop.f32.mrb[224].mxu1  ;;  %5477 = vrot.lane.b32.xlu0 %v13170_v60, %s8690_s25  ;;  %5302 = vrot.lane.b32.xlu1 %v5247_v0, %s8690_s25  ;;  %v5839_v0 = vsel %vm3250_vm9, %v12815_v42, %v5277_v41 }
 0x56a   : > { %v8219_v43 = vadd.f32 %v13023_v21, %v5034_v1  ;;  %v5036_v7 = vpop.f32.mrb[225].mxu1 }
 0x56b   : > { %v5037_v61 = vpop.f32.mrb[226].mxu1  ;;  %v5454_v5 = vpop.permute.xlu0 %5453 }
 0x56c   : > { %v8220_v3 = vadd.f32 %v13023_v21, %v5037_v61  ;;  %v5039_v49 = vpop.f32.mrb[227].mxu1  ;;  %v5955_v54 = vsel %vm3250_vm9, %v5337_v34, %v5454_v5  ;;  %v5122_v8 = vmax.f32 %v8219_v43, 0.0  ;;  %v5279_v1 = vpop.permute.xlu1 %5278  ;;  %v5338_v61 = vrot.slane %v12841_v29, 2  ;;  %v8654_v43 = vld [vmem:[%s13968_s5 + $0xe8] sm:$0xff]  }
 0x56d   : > { %5304 = vrot.lane.b32.xlu1 %v5246_v13, %s8690_s25  ;;  %6755 = vmatprep.mubr.bf16.mxu0 %v5955_v54 }
 0x56e   : > { %v5123_v53 = vmax.f32 %v8220_v3, 0.0  ;;  %6880 = vmatpush1.bf16.msra.mxu0 %v8654_v43  ;;  %v8655_v43 = vld [vmem:[%s13968_s5 + $0xf0] sm:$0xff]  }
 0x56f   : > { %6756 = vmatmul.mubr.bf16.gmra.mrb[88].mxu0 %v5839_v0  ;;  %6881 = vmatprep.subr.bf16.mxu0 %v14777_v17  ;;  %v5340_v0 = vrot.slane %v12860_v24, 2 }
 0x570   : > { %v13183_v7 = vpack.c.bf16 %v5123_v53, %v5122_v8  ;;  %v5339_v53 = vsel %vm5306_vm12, %v5336_v25, %v5338_v61 }
 0x571   : > { %5542 = vrot.lane.b32.xlu1 %v12639_v14, %s8690_s25 }
 0x572   : > { %v5421_v38 = vrot.slane %v13183_v7, 6  ;;  %6882 = vmatpush1.bf16.msra.mxu0 %v8655_v43  ;;  %v5342_v43 = vrot.slane %v12881_v58, 2 }
 0x573   : > { %v5281_v13 = vpop.permute.xlu1 %5280  ;;  %v5456_v54 = vpop.permute.xlu0 %5455  ;;  %6883 = vmatprep.subr.bf16.mxu0 %v14777_v17 }
 0x574   : > { %v13193_v3 = vsel %vm2374_vm0, %v5419_v56, %v5421_v38  ;;  %v5959_v41 = vsel %vm3250_vm9, %v5339_v53, %v5456_v54  ;;  %v5843_v56 = vsel %vm3250_vm9, %v12828_v12, %v5279_v1 }
 0x575   : > { %14804 = vst [vmem:[#allocation115_spill] sm:$0xff] %v13193_v3  ;;  %5479 = vrot.lane.b32.xlu0 %v13193_v3, %s8690_s25  ;;  %5544 = vrot.lane.b32.xlu1 %v12657_v28, %s8690_s25  ;;  %v5042_v5 = vpop.f32.mrb[228].mxu1 }
 0x576   : > { %6761 = vmatprep.mubr.bf16.mxu0 %v5959_v41  ;;  %v8221_v34 = vadd.f32 %v13023_v21, %v5042_v5  ;;  %v5044_v49 = vpop.f32.mrb[229].mxu1 }
 0x577   : > { %6762 = vmatmul.mubr.bf16.gmra.mrb[92].mxu0 %v5843_v56  ;;  %v13205_v25 = vpop.permute.xlu1 %2634  ;;  %v5045_v8 = vpop.f32.mrb[230].mxu1  ;;  %v5341_v56 = vsel %vm5306_vm12, %v5338_v61, %v5340_v0 }
 0x578   : > { %v8222_v54 = vadd.f32 %v13023_v21, %v5045_v8  ;;  %v5047_v53 = vpop.f32.mrb[231].mxu1  ;;  %v5124_v1 = vmax.f32 %v8221_v34, 0.0  ;;  %v8656_v21 = vld [vmem:[%s13968_s5 + $0xf8] sm:$0xff]   ;;  %v5847_v34 = vsel %vm3250_vm9, %v12841_v29, %v5281_v13  ;;  %v3776_v37 = vsel %vm3183_vm8, %v12446_v59, %v13205_v25 }
 0x579   : > { %5546 = vrot.lane.b32.xlu1 %v12674_v40, %s8690_s25  ;;  %6884 = vmatpush1.bf16.msra.mxu0 %v8656_v21  ;;  %v5661_v53 = vrot.slane %v12674_v40, 5 }
 0x57a   : > { %v5125_v41 = vmax.f32 %v8222_v54, 0.0 }
 0x57b   : > { %v5283_v5 = vpop.permute.xlu1 %5282  ;;  %v5458_v49 = vpop.permute.xlu0 %5457 }
 0x57c   : > { %v13216_v3 = vpack.c.bf16 %v5125_v41, %v5124_v1  ;;  %v5963_v60 = vsel %vm3250_vm9, %v5341_v56, %v5458_v49  ;;  %v5343_v41 = vsel %vm5306_vm12, %v5340_v0, %v5342_v43  ;;  %v5851_v21 = vsel %vm3250_vm9, %v12860_v24, %v5283_v5 }
 0x57d   : > { %5548 = vrot.lane.b32.xlu1 %v12692_v18, %s8690_s25  ;;  %6767 = vmatprep.mubr.bf16.mxu0 %v5963_v60  ;;  %v5660_v60 = vrot.slane %v12657_v28, 5  ;;  %v5344_v0 = vrot.slane %v12909_v51, 2 }
 0x57e   : > { %v14239_v17 = vrot.slane %v13216_v3, 6 }
 0x57f   : > { %6768 = vmatmul.mubr.bf16.gmra.mrb[96].mxu0 %v5847_v34  ;;  %v2704_v61 = vpop.permute.xlu1 %2703  ;;  %v3042_v8 = vpop.permute.xlu0 %3041  ;;  %v5662_v49 = vsel %vm2781_vm11, %v5660_v60, %v5661_v53 }
 0x580   : > { %v13231_v54 = vsel %vm2374_vm0, %v5421_v38, %v14239_v17  ;;  %v5663_v38 = vrot.slane %v12692_v18, 5 }
 0x581   : > { %14805 = vst [vmem:[#allocation126_spill] sm:$0xff] %v13231_v54  ;;  %5550 = vrot.lane.b32.xlu1 %v12711_v47, %s8690_s25  ;;  %5481 = vrot.lane.b32.xlu0 %v13231_v54, %s8690_s25  ;;  %v5667_v54 = vrot.slane %v12724_v10, 5 }
 0x582   : > { %v5664_v60 = vsel %vm2781_vm11, %v5661_v53, %v5663_v38  ;;  %v14806_v53 = vld [vmem:[#allocation163_spill] sm:$0xff] }
 0x583   : > { %v5285_v13 = vpop.permute.xlu1 %5284  ;;  %v5460_v1 = vpop.permute.xlu0 %5459  ;;  %v4040_v9 = vsel %vm3183_vm8, %v14806_v53, %v3042_v8 }
 0x584   : > { %v5967_v56 = vsel %vm3250_vm9, %v5343_v41, %v5460_v1  ;;  %v5665_v1 = vrot.slane %v12711_v47, 5 }
 0x585   : > { %5552 = vrot.lane.b32.xlu1 %v12724_v10, %s8690_s25  ;;  %5719 = vrot.lane.b32.xlu0 %v5662_v49, %s8690_s25 }
 0x586   : > { %6773 = vmatprep.mubr.bf16.mxu0 %v5967_v56  ;;  %v5345_v56 = vsel %vm5306_vm12, %v5342_v43, %v5344_v0  ;;  %v5666_v5 = vsel %vm2781_vm11, %v5663_v38, %v5665_v1 }
 0x587   : > { %6774 = vmatmul.mubr.bf16.gmra.mrb[100].mxu0 %v5851_v21  ;;  %v2778_v34 = vpop.permute.xlu1 %2777  ;;  %v3110_v17 = vpop.permute.xlu0 %3109 }
 0x588   : > { %v4107_v43 = vsel %vm3250_vm9, %v4040_v9, %v3110_v17 }
 0x589   : > { %5554 = vrot.lane.b32.xlu1 %v12737_v36, %s8690_s25  ;;  %5721 = vrot.lane.b32.xlu0 %v5664_v60, %s8690_s25  ;;  %v5855_v60 = vsel %vm3250_vm9, %v12881_v58, %v5285_v13  ;;  %v3843_v13 = vsel %vm3250_vm9, %v3776_v37, %v2704_v61 }
 0x58a   : > { %v3940_v9 = vsel %vm3317_vm10, %v3843_v13, %v2778_v34  ;;  %v5348_v34 = vrot.slane %v12978_v15, 2  ;;  %v5675_v13 = vrot.slane %v12776_v48, 5 }
 0x58b   : > { %v5287_v41 = vpop.permute.xlu1 %5286  ;;  %v5462_v49 = vpop.permute.xlu0 %5461 }
 0x58c   : > { %v5971_v21 = vsel %vm3250_vm9, %v5345_v56, %v5462_v49  ;;  %v5346_v56 = vrot.slane %v12945_v4, 2  ;;  %v5859_v37 = vsel %vm3250_vm9, %v12909_v51, %v5287_v41 }
 0x58d   : > { %5556 = vrot.lane.b32.xlu1 %v12750_v32, %s8690_s25  ;;  %5723 = vrot.lane.b32.xlu0 %v5666_v5, %s8690_s25  ;;  %v5668_v5 = vsel %vm2781_vm11, %v5665_v1, %v5667_v54 }
 0x58e   : > { %6781 = vmatprep.mubr.bf16.mxu0 %v5971_v21  ;;  %v5669_v21 = vrot.slane %v12737_v36, 5  ;;  %v5347_v59 = vsel %vm5306_vm12, %v5344_v0, %v5346_v56 }
 0x58f   : > { %6782 = vmatmul.mubr.bf16.gmra.mrb[104].mxu0 %v5855_v60  ;;  %v13266_v38 = vpop.permute.xlu1 %2636  ;;  %v3180_v49 = vpop.permute.xlu0 %3179  ;;  %v5671_v60 = vrot.slane %v12750_v32, 5 }
 0x590   : > { %v4204_v8 = vsel %vm3317_vm10, %v4107_v43, %v3180_v49  ;;  %v5670_v25 = vsel %vm2781_vm11, %v5667_v54, %v5669_v21  ;;  %v5673_v54 = vrot.slane %v12763_v57, 5 }
 0x591   : > { %5558 = vrot.lane.b32.xlu1 %v12763_v57, %s8690_s25  ;;  %5725 = vrot.lane.b32.xlu0 %v5668_v5, %s8690_s25  ;;  %v5672_v0 = vsel %vm2781_vm11, %v5669_v21, %v5671_v60  ;;  %v5349_v5 = vsel %vm5306_vm12, %v5346_v56, %v5348_v34 }
 0x592   : > { %5048 = vmatprep.mubr.bf16.mxu1 %v4204_v8  ;;  %v5674_v8 = vsel %vm2781_vm11, %v5671_v60, %v5673_v54 }
 0x593   : > { %5049 = vmatmul.mubr.bf16.gmra.mrb[232].mxu1 %v3940_v9  ;;  %v5289_v17 = vpop.permute.xlu1 %5288  ;;  %v5464_v53 = vpop.permute.xlu0 %5463  ;;  %v8693_v9 = vmov 0.0  }
 0x594   : > { %v5975_v1 = vsel %vm3250_vm9, %v5347_v59, %v5464_v53  ;;  %8005 = vmatprep.subr.bf16.mxu0 %v8693_v9  ;;  %v5863_v21 = vsel %vm3250_vm9, %v12945_v4, %v5289_v17  ;;  %v5350_v59 = vrot.slane %v13003_v22, 2 }
 0x595   : > { %5560 = vrot.lane.b32.xlu1 %v12776_v48, %s8690_s25  ;;  %5727 = vrot.lane.b32.xlu0 %v5670_v25, %s8690_s25  ;;  %v5676_v25 = vsel %vm2781_vm11, %v5673_v54, %v5675_v13  ;;  %v14807_v54 = vrot.slane %v14786_v35, 5 }
 0x596   : > { %6787 = vmatprep.mubr.bf16.mxu0 %v5975_v1  ;;  %v5677_v1 = vrot.slane %v12789_v19, 5 }
 0x597   : > { %6788 = vmatmul.mubr.bf16.gmra.mrb[108].mxu0 %v5859_v37  ;;  %v3044_v61 = vpop.permute.xlu0 %3043  ;;  %v2706_v43 = vpop.permute.xlu1 %2705  ;;  %v5351_v37 = vsel %vm5306_vm12, %v5348_v34, %v5350_v59 }
 0x599   : > { %5562 = vrot.lane.b32.xlu1 %v12789_v19, %s8690_s25  ;;  %5729 = vrot.lane.b32.xlu0 %v5672_v0, %s8690_s25  ;;  %v5678_v0 = vsel %vm2781_vm11, %v5675_v13, %v5677_v1 }
 0x59b   : > { %v5466_v49 = vpop.permute.xlu0 %5465  ;;  %v5291_v53 = vpop.permute.xlu1 %5290 }
 0x59c   : > { %v5979_v41 = vsel %vm3250_vm9, %v5349_v5, %v5466_v49  ;;  %v5679_v49 = vrot.slane %v12802_v50, 5  ;;  %v5867_v34 = vsel %vm3250_vm9, %v12978_v15, %v5291_v53 }
 0x59d   : > { %5564 = vrot.lane.b32.xlu1 %v12802_v50, %s8690_s25  ;;  %5731 = vrot.lane.b32.xlu0 %v5674_v8, %s8690_s25  ;;  %v4043_v8 = vsel %vm3183_vm8, %v14807_v54, %v3044_v61  ;;  %v5681_v61 = vrot.slane %v12815_v42, 5 }
 0x59e   : > { %6795 = vmatprep.mubr.bf16.mxu0 %v5979_v41 }
 0x59f   : > { %6796 = vmatmul.mubr.bf16.gmra.mrb[112].mxu0 %v5863_v21  ;;  %v3112_v56 = vpop.permute.xlu0 %3111  ;;  %v2780_v5 = vpop.permute.xlu1 %2779  ;;  %v5352_v21 = vrot.slane %v13036_v46, 2 }
 0x5a0   : > { %v4109_v41 = vsel %vm3250_vm9, %v4043_v8, %v3112_v56  ;;  %v5687_v8 = vrot.slane %v12860_v24, 5 }
 0x5a1   : > { %5566 = vrot.lane.b32.xlu1 %v12815_v42, %s8690_s25  ;;  %5733 = vrot.lane.b32.xlu0 %v5676_v25, %s8690_s25  ;;  %v3779_v25 = vsel %vm3183_vm8, %v12424_v23, %v13266_v38  ;;  %v5353_v23 = vsel %vm5306_vm12, %v5350_v59, %v5352_v21  ;;  %v5682_v38 = vsel %vm2781_vm11, %v5679_v49, %v5681_v61  ;;  %v5685_v59 = vrot.slane %v12841_v29, 5 }
 0x5a3   : > { %v5468_v60 = vpop.permute.xlu0 %5467  ;;  %v5293_v56 = vpop.permute.xlu1 %5292 }
 0x5a4   : > { %v5983_v17 = vsel %vm3250_vm9, %v5351_v37, %v5468_v60  ;;  %v5680_v60 = vsel %vm2781_vm11, %v5677_v1, %v5679_v49  ;;  %v3845_v37 = vsel %vm3250_vm9, %v3779_v25, %v2706_v43  ;;  %v5871_v43 = vsel %vm3250_vm9, %v13003_v22, %v5293_v56 }
 0x5a5   : > { %5568 = vrot.lane.b32.xlu1 %v12828_v12, %s8690_s25  ;;  %5735 = vrot.lane.b32.xlu0 %v5678_v0, %s8690_s25  ;;  %v3943_v53 = vsel %vm3317_vm10, %v3845_v37, %v2780_v5  ;;  %v5354_v49 = vrot.slane %v13061_v55, 2 }
 0x5a6   : > { %6801 = vmatprep.mubr.bf16.mxu0 %v5983_v17  ;;  %v5683_v17 = vrot.slane %v12828_v12, 5 }
 0x5a7   : > { %6802 = vmatmul.mubr.bf16.gmra.mrb[116].mxu0 %v5867_v34  ;;  %v3182_v13 = vpop.permute.xlu0 %3181 }
 0x5a8   : > { %v4207_v35 = vsel %vm3317_vm10, %v4109_v41, %v3182_v13  ;;  %v5684_v5 = vsel %vm2781_vm11, %v5681_v61, %v5683_v17  ;;  %v5686_v54 = vsel %vm2781_vm11, %v5683_v17, %v5685_v59  ;;  %v5355_v13 = vsel %vm5306_vm12, %v5352_v21, %v5354_v49 }
 0x5a9   : > { %5570 = vrot.lane.b32.xlu1 %v12841_v29, %s8690_s25  ;;  %5737 = vrot.lane.b32.xlu0 %v5680_v60, %s8690_s25  ;;  %v5688_v60 = vsel %vm2781_vm11, %v5685_v59, %v5687_v8  ;;  %v5691_v21 = vrot.slane %v12909_v51, 5 }
 0x5aa   : > { %5056 = vmatprep.mubr.bf16.mxu1 %v4207_v35  ;;  %v5689_v35 = vrot.slane %v12881_v58, 5 }
 0x5ab   : > { %5057 = vmatmul.mubr.bf16.gmra.mrb[236].mxu1 %v3943_v53  ;;  %v5470_v0 = vpop.permute.xlu0 %5469  ;;  %v5295_v34 = vpop.permute.xlu1 %5294  ;;  %v5356_v53 = vrot.slane %v13088_v62, 2 }
 0x5ac   : > { %v5987_v1 = vsel %vm3250_vm9, %v5353_v23, %v5470_v0  ;;  %v5875_v61 = vsel %vm3250_vm9, %v13036_v46, %v5295_v34  ;;  %v5690_v37 = vsel %vm2781_vm11, %v5687_v8, %v5689_v35  ;;  %v5692_v56 = vsel %vm2781_vm11, %v5689_v35, %v5691_v21 }
 0x5ad   : > { %5572 = vrot.lane.b32.xlu1 %v12860_v24, %s8690_s25  ;;  %5739 = vrot.lane.b32.xlu0 %v5682_v38, %s8690_s25  ;;  %v5693_v0 = vrot.slane %v12945_v4, 5  ;;  %v5358_v8 = vrot.slane %v13111_v63, 2 }
 0x5ae   : > { %6807 = vmatprep.mubr.bf16.mxu0 %v5987_v1  ;;  %v5357_v1 = vsel %vm5306_vm12, %v5354_v49, %v5356_v53  ;;  %v5697_v49 = vrot.slane %v13003_v22, 5 }
 0x5af   : > { %6808 = vmatmul.mubr.bf16.gmra.mrb[120].mxu0 %v5871_v43  ;;  %v5694_v43 = vsel %vm2781_vm11, %v5691_v21, %v5693_v0 }
 0x5b1   : > { %5574 = vrot.lane.b32.xlu1 %v12881_v58, %s8690_s25  ;;  %5741 = vrot.lane.b32.xlu0 %v5684_v5, %s8690_s25  ;;  %v5695_v5 = vrot.slane %v12978_v15, 5 }
 0x5b3   : > { %v5698_v34 = vsel %vm2781_vm11, %v5695_v5, %v5697_v49 }
 0x5b5   : > { %5576 = vrot.lane.b32.xlu1 %v12909_v51, %s8690_s25  ;;  %5743 = vrot.lane.b32.xlu0 %v5686_v54, %s8690_s25  ;;  %v5696_v54 = vsel %vm2781_vm11, %v5693_v0, %v5695_v5  ;;  %v5360_v0 = vrot.slane %v13137_v52, 2 }
 0x5b7   : > { %v5472_v41 = vpop.permute.xlu0 %5471  ;;  %v5297_v23 = vpop.permute.xlu1 %5296 }
 0x5b8   : > { %v5991_v25 = vsel %vm3250_vm9, %v5355_v13, %v5472_v41  ;;  %v5879_v59 = vsel %vm3250_vm9, %v13061_v55, %v5297_v23  ;;  %v5699_v41 = vrot.slane %v13036_v46, 5 }
 0x5b9   : > { %6813 = vmatprep.mubr.bf16.mxu0 %v5991_v25  ;;  %5578 = vrot.lane.b32.xlu1 %v12945_v4, %s8690_s25 }
 0x5ba   : > { %5745 = vrot.lane.b32.xlu0 %v5688_v60, %s8690_s25  ;;  %6814 = vmatmul.mubr.bf16.gmra.mrb[124].mxu0 %v5875_v61  ;;  %v5359_v60 = vsel %vm5306_vm12, %v5356_v53, %v5358_v8  ;;  %v5700_v61 = vsel %vm2781_vm11, %v5697_v49, %v5699_v41  ;;  %v5703_v53 = vrot.slane %v13088_v62, 5 }
 0x5bd   : > { %5580 = vrot.lane.b32.xlu1 %v12978_v15, %s8690_s25 }
 0x5be   : > { %5747 = vrot.lane.b32.xlu0 %v5690_v37, %s8690_s25  ;;  %v5701_v37 = vrot.slane %v13061_v55, 5 }
 0x5c0   : > { %v5704_v23 = vsel %vm2781_vm11, %v5701_v37, %v5703_v53 }
 0x5c1   : > { %5582 = vrot.lane.b32.xlu1 %v13003_v22, %s8690_s25 }
 0x5c2   : > { %5749 = vrot.lane.b32.xlu0 %v5692_v56, %s8690_s25  ;;  %v5702_v56 = vsel %vm2781_vm11, %v5699_v41, %v5701_v37  ;;  %v5362_v41 = vrot.slane %v13160_v2, 2 }
 0x5c3   : > { %v5474_v38 = vpop.permute.xlu0 %5473  ;;  %v5299_v13 = vpop.permute.xlu1 %5298 }
 0x5c4   : > { %v5995_v17 = vsel %vm3250_vm9, %v5357_v1, %v5474_v38  ;;  %v5883_v21 = vsel %vm3250_vm9, %v13088_v62, %v5299_v13  ;;  %v5705_v38 = vrot.slane %v13111_v63, 5 }
 0x5c5   : > { %6819 = vmatprep.mubr.bf16.mxu0 %v5995_v17  ;;  %5584 = vrot.lane.b32.xlu1 %v13036_v46, %s8690_s25 }
 0x5c6   : > { %5751 = vrot.lane.b32.xlu0 %v5694_v43, %s8690_s25  ;;  %6820 = vmatmul.mubr.bf16.gmra.mrb[128].mxu0 %v5879_v59  ;;  %v5361_v43 = vsel %vm5306_vm12, %v5358_v8, %v5360_v0  ;;  %v5706_v5 = vsel %vm2781_vm11, %v5703_v53, %v5705_v38  ;;  %v5709_v8 = vrot.slane %v13160_v2, 5  ;;  %v5713_v53 = vrot.slane %v13216_v3, 5 }
 0x5c9   : > { %5586 = vrot.lane.b32.xlu1 %v13061_v55, %s8690_s25 }
 0x5ca   : > { %5753 = vrot.lane.b32.xlu0 %v5696_v54, %s8690_s25  ;;  %v5707_v54 = vrot.slane %v13137_v52, 5 }
 0x5cc   : > { %v5710_v13 = vsel %vm2781_vm11, %v5707_v54, %v5709_v8 }
 0x5cd   : > { %5588 = vrot.lane.b32.xlu1 %v13088_v62, %s8690_s25 }
 0x5ce   : > { %5755 = vrot.lane.b32.xlu0 %v5698_v34, %s8690_s25  ;;  %v5708_v34 = vsel %vm2781_vm11, %v5705_v38, %v5707_v54 }
 0x5cf   : > { %v5476_v25 = vpop.permute.xlu0 %5475  ;;  %v5301_v1 = vpop.permute.xlu1 %5300 }
 0x5d0   : > { %v5999_v35 = vsel %vm3250_vm9, %v5359_v60, %v5476_v25  ;;  %v5887_v49 = vsel %vm3250_vm9, %v13111_v63, %v5301_v1  ;;  %v5711_v25 = vrot.slane %v13183_v7, 5 }
 0x5d1   : > { %6825 = vmatprep.mubr.bf16.mxu0 %v5999_v35  ;;  %5590 = vrot.lane.b32.xlu1 %v13111_v63, %s8690_s25 }
 0x5d2   : > { %5757 = vrot.lane.b32.xlu0 %v5700_v61, %s8690_s25  ;;  %6826 = vmatmul.mubr.bf16.gmra.mrb[132].mxu0 %v5883_v21  ;;  %v5363_v61 = vsel %vm5306_vm12, %v5360_v0, %v5362_v41  ;;  %v5712_v21 = vsel %vm2781_vm11, %v5709_v8, %v5711_v25  ;;  %v5714_v0 = vsel %vm2781_vm11, %v5711_v25, %v5713_v53  ;;  %v5602_v25 = vrot.slane %v12657_v28, 4 }
 0x5d5   : > { %5592 = vrot.lane.b32.xlu1 %v13137_v52, %s8690_s25 }
 0x5d6   : > { %5759 = vrot.lane.b32.xlu0 %v5702_v56, %s8690_s25 }
 0x5d9   : > { %5594 = vrot.lane.b32.xlu1 %v13160_v2, %s8690_s25 }
 0x5da   : > { %5761 = vrot.lane.b32.xlu0 %v5704_v23, %s8690_s25 }
 0x5db   : > { %v5478_v17 = vpop.permute.xlu0 %5477  ;;  %v5303_v60 = vpop.permute.xlu1 %5302 }
 0x5dc   : > { %v6003_v59 = vsel %vm3250_vm9, %v5361_v43, %v5478_v17  ;;  %v5891_v56 = vsel %vm3250_vm9, %v13137_v52, %v5303_v60 }
 0x5dd   : > { %5596 = vrot.lane.b32.xlu1 %v13183_v7, %s8690_s25  ;;  %6831 = vmatprep.mubr.bf16.mxu0 %v6003_v59 }
 0x5de   : > { %5763 = vrot.lane.b32.xlu0 %v5706_v5, %s8690_s25  ;;  %6832 = vmatmul.mubr.bf16.gmra.mrb[136].mxu0 %v5887_v49 }
 0x5df   : > { %v5305_v5 = vpop.permute.xlu1 %5304 }
 0x5e0   : > { %v5895_v60 = vsel %vm3250_vm9, %v13160_v2, %v5305_v5 }
 0x5e1   : > { %5598 = vrot.lane.b32.xlu1 %v13216_v3, %s8690_s25 }
 0x5e2   : > { %5765 = vrot.lane.b32.xlu0 %v5708_v34, %s8690_s25  ;;  %v5603_v34 = vrot.slane %v12674_v40, 4 }
 0x5e6   : > { %5767 = vrot.lane.b32.xlu0 %v5710_v13, %s8690_s25 }
 0x5e7   : > { %v5480_v35 = vpop.permute.xlu0 %5479 }
 0x5e8   : > { %v6007_v37 = vsel %vm3250_vm9, %v5363_v61, %v5480_v35  ;;  %v5604_v61 = vsel %vm5601_vm13, %v5602_v25, %v5603_v34 }
 0x5e9   : > { %6839 = vmatprep.mubr.bf16.mxu0 %v6007_v37  ;;  %v5484_v37 = vrot.slane %v12639_v14, 7 }
 0x5ea   : > { %5769 = vrot.lane.b32.xlu0 %v5712_v21, %s8690_s25  ;;  %6840 = vmatmul.mubr.bf16.gmra.mrb[140].mxu0 %v5891_v56  ;;  %v6685_v23 = vpop.f32.mrb[44].mxu0 }
 0x5eb   : > { %v6686_v38 = vpop.f32.mrb[45].mxu0  ;;  %v5605_v23 = vrot.slane %v12692_v18, 4 }
 0x5ec   : > { %v6687_v1 = vpop.f32.mrb[46].mxu0  ;;  %v5543_v38 = vpop.permute.xlu1 %5542 }
 0x5ed   : > { %v6688_v17 = vpop.f32.mrb[47].mxu0 }
 0x5ee   : > { %5771 = vrot.lane.b32.xlu0 %v5714_v0, %s8690_s25 }
 0x5f0   : > { %v5545_v25 = vpop.permute.xlu1 %5544 }
 0x5f2   : > { %v6691_v43 = vpop.f32.mrb[48].mxu0 }
 0x5f3   : > { %v6692_v59 = vpop.f32.mrb[49].mxu0  ;;  %v5482_v49 = vpop.permute.xlu0 %5481  ;;  %v8657_v43 = vld [vmem:[%s13968_s5 + $0x100] sm:$0xff]  }
 0x5f4   : > { %v6693_v54 = vpop.f32.mrb[50].mxu0  ;;  %v6011_v13 = vsel %vm3250_vm9, %v5362_v41, %v5482_v49  ;;  %v5483_v41 = vrot.slane %v12619_v16, 7  ;;  %v8658_v16 = vld [vmem:[%s13968_s5 + $0x108] sm:$0xff]  }
 0x5f5   : > { %v6694_v8 = vpop.f32.mrb[51].mxu0  ;;  %6845 = vmatprep.mubr.bf16.mxu0 %v6011_v13  ;;  %v5606_v54 = vsel %vm5601_vm13, %v5603_v34, %v5605_v23 }
 0x5f6   : > { %6846 = vmatmul.mubr.bf16.gmra.mrb[144].mxu0 %v5895_v60  ;;  %v5485_v5 = vsel %vm1999_vm4, %v5483_v41, %v5484_v37  ;;  %v5486_v8 = vrot.slane %v12657_v28, 7  ;;  %v5607_v60 = vrot.slane %v12711_v47, 4 }
 0x5f7   : > { %v5720_v35 = vpop.permute.xlu0 %5719  ;;  %v6015_v14 = vsel %vm3250_vm9, %v5485_v5, %v5543_v38 }
 0x5f8   : > { %v6131_v21 = vsel %vm3250_vm9, %v5604_v61, %v5720_v35  ;;  %v5608_v38 = vsel %vm5601_vm13, %v5605_v23, %v5607_v60 }
 0x5f9   : > { %6885 = vmatprep.mubr.bf16.mxu0 %v6131_v21 }
 0x5fa   : > { %v6697_v56 = vpop.f32.mrb[52].mxu0 }
 0x5fb   : > { %v6698_v1 = vpop.f32.mrb[53].mxu0  ;;  %v5722_v17 = vpop.permute.xlu0 %5721  ;;  %v5487_v56 = vsel %vm1999_vm4, %v5484_v37, %v5486_v8 }
 0x5fc   : > { %v6699_v0 = vpop.f32.mrb[54].mxu0  ;;  %v6135_v49 = vsel %vm3250_vm9, %v5606_v54, %v5722_v17  ;;  %v6019_v41 = vsel %vm3250_vm9, %v5487_v56, %v5545_v25  ;;  %v5488_v1 = vrot.slane %v12674_v40, 7  ;;  %v5609_v17 = vrot.slane %v12724_v10, 4  ;;  %v8659_v40 = vld [vmem:[%s13968_s5 + $0x110] sm:$0xff]  }
 0x5fd   : > { %v6700_v59 = vpop.f32.mrb[55].mxu0  ;;  %v5611_v25 = vrot.slane %v12737_v36, 4  ;;  %v5492_v56 = vrot.slane %v12711_v47, 7 }
 0x5fe   : > { %6886 = vmatmul.mubr.bf16.vlgmr.msra.gmra.mrb[32].mxu0 %v6015_v14  ;;  %v5489_v54 = vsel %vm1999_vm4, %v5486_v8, %v5488_v1  ;;  %v5610_v23 = vsel %vm5601_vm13, %v5607_v60, %v5609_v17 }
 0x5ff   : > { %6893 = vmatprep.mubr.bf16.mxu0 %v6135_v49  ;;  %8006 = vmatpush3.bf16.msra.mxu0 %v8657_v43  ;;  %v5724_v61 = vpop.permute.xlu0 %5723  ;;  %v5547_v43 = vpop.permute.xlu1 %5546 }
 0x600   : > { %8007 = vmatprep.subr.bf16.mxu0 %v8693_v9  ;;  %v6139_v28 = vsel %vm3250_vm9, %v5608_v38, %v5724_v61  ;;  %v6023_v49 = vsel %vm3250_vm9, %v5489_v54, %v5547_v43 }
 0x602   : > { %v6703_v13 = vpop.f32.mrb[56].mxu0 }
 0x603   : > { %v6704_v35 = vpop.f32.mrb[57].mxu0  ;;  %8008 = vmatpush3.bf16.msra.mxu0 %v8658_v16  ;;  %v5726_v59 = vpop.permute.xlu0 %5725  ;;  %v5490_v13 = vrot.slane %v12692_v18, 7  ;;  %v5613_v18 = vrot.slane %v12750_v32, 4 }
 0x604   : > { %v6705_v34 = vpop.f32.mrb[58].mxu0  ;;  %8009 = vmatprep.subr.bf16.mxu0 %v8693_v9  ;;  %v6143_v16 = vsel %vm3250_vm9, %v5610_v23, %v5726_v59  ;;  %v5549_v35 = vpop.permute.xlu1 %5548  ;;  %v5496_v23 = vrot.slane %v12737_v36, 7  ;;  %v5498_v36 = vrot.slane %v12750_v32, 7  ;;  %v5500_v32 = vrot.slane %v12763_v57, 7 }
 0x605   : > { %v6706_v21 = vpop.f32.mrb[59].mxu0  ;;  %v5491_v61 = vsel %vm1999_vm4, %v5488_v1, %v5490_v13  ;;  %v5612_v34 = vsel %vm5601_vm13, %v5609_v17, %v5611_v25  ;;  %v5614_v1 = vsel %vm5601_vm13, %v5611_v25, %v5613_v18  ;;  %v5494_v17 = vrot.slane %v12724_v10, 7 }
 0x606   : > { %6894 = vmatmul.mubr.bf16.gmra.mrb[36].mxu0 %v6019_v41  ;;  %v6027_v60 = vsel %vm3250_vm9, %v5491_v61, %v5549_v35 }
 0x607   : > { %6901 = vmatprep.mubr.bf16.mxu0 %v6139_v28  ;;  %8010 = vmatpush3.bf16.msra.mxu0 %v8659_v40  ;;  %v5728_v8 = vpop.permute.xlu0 %5727  ;;  %v5493_v28 = vsel %vm1999_vm4, %v5490_v13, %v5492_v56  ;;  %v5617_v40 = vrot.slane %v12776_v48, 4  ;;  %v5497_v61 = vsel %vm1999_vm4, %v5494_v17, %v5496_v23 }
 0x608   : > { %8011 = vmatprep.subr.bf16.mxu0 %v8693_v9  ;;  %v6147_v21 = vsel %vm3250_vm9, %v5612_v34, %v5728_v8  ;;  %v5551_v41 = vpop.permute.xlu1 %5550 }
 0x60a   : > { %v6709_v0 = vpop.f32.mrb[60].mxu0 }
 0x60b   : > { %v6710_v5 = vpop.f32.mrb[61].mxu0  ;;  %v5730_v38 = vpop.permute.xlu0 %5729  ;;  %v6031_v0 = vsel %vm3250_vm9, %v5493_v28, %v5551_v41 }
 0x60c   : > { %v6711_v14 = vpop.f32.mrb[62].mxu0  ;;  %v6151_v43 = vsel %vm3250_vm9, %v5614_v1, %v5730_v38  ;;  %v5615_v5 = vrot.slane %v12763_v57, 4  ;;  %v5553_v59 = vpop.permute.xlu1 %5552  ;;  %v5502_v57 = vrot.slane %v12776_v48, 7  ;;  %v8660_v48 = vld [vmem:[%s13968_s5 + $0x118] sm:$0xff]  }
 0x60d   : > { %v6712_v37 = vpop.f32.mrb[63].mxu0  ;;  %v5495_v14 = vsel %vm1999_vm4, %v5492_v56, %v5494_v17  ;;  %8012 = vmatpush3.bf16.msra.mxu0 %v8660_v48 }
 0x60e   : > { %6902 = vmatmul.mubr.bf16.gmra.mrb[40].mxu0 %v6023_v49  ;;  %v6035_v37 = vsel %vm3250_vm9, %v5495_v14, %v5553_v59  ;;  %v5616_v54 = vsel %vm5601_vm13, %v5613_v18, %v5615_v5  ;;  %v5618_v34 = vsel %vm5601_vm13, %v5615_v5, %v5617_v40  ;;  %v5619_v18 = vrot.slane %v12789_v19, 4 }
 0x60f   : > { %6909 = vmatprep.mubr.bf16.mxu0 %v6143_v16  ;;  %v5732_v47 = vpop.permute.xlu0 %5731  ;;  %v5621_v14 = vrot.slane %v12802_v50, 4 }
 0x610   : > { %v6155_v49 = vsel %vm3250_vm9, %v5616_v54, %v5732_v47  ;;  %v5555_v10 = vpop.permute.xlu1 %5554  ;;  %v5620_v5 = vsel %vm5601_vm13, %v5617_v40, %v5619_v18 }
 0x611   : > { %v5622_v40 = vsel %vm5601_vm13, %v5619_v18, %v5621_v14 }
 0x613   : > { %v5734_v25 = vpop.permute.xlu0 %5733 }
 0x614   : > { %v5557_v41 = vpop.permute.xlu1 %5556 }
 0x616   : > { %6910 = vmatmul.mubr.bf16.gmra.mrb[148].mxu0 %v6027_v60  ;;  %v6039_v60 = vsel %vm3250_vm9, %v5497_v61, %v5555_v10 }
 0x617   : > { %6915 = vmatprep.mubr.bf16.mxu0 %v6147_v21  ;;  %v6159_v21 = vsel %vm3250_vm9, %v5618_v34, %v5734_v25  ;;  %v5736_v28 = vpop.permute.xlu0 %5735 }
 0x618   : > { %v6163_v59 = vsel %vm3250_vm9, %v5620_v5, %v5736_v28  ;;  %v5504_v28 = vrot.slane %v12789_v19, 7  ;;  %v5506_v19 = vrot.slane %v12802_v50, 7  ;;  %v5508_v50 = vrot.slane %v12815_v42, 7 }
 0x61e   : > { %6916 = vmatmul.mubr.bf16.gmra.mrb[152].mxu0 %v6031_v0 }
 0x61f   : > { %6921 = vmatprep.mubr.bf16.mxu0 %v6151_v43  ;;  %v5499_v43 = vsel %vm1999_vm4, %v5496_v23, %v5498_v36  ;;  %v5501_v23 = vsel %vm1999_vm4, %v5498_v36, %v5500_v32  ;;  %v5503_v36 = vsel %vm1999_vm4, %v5500_v32, %v5502_v57 }
 0x620   : > { %v6043_v17 = vsel %vm3250_vm9, %v5499_v43, %v5557_v41 }
 0x626   : > { %6922 = vmatmul.mubr.bf16.gmra.mrb[156].mxu0 %v6035_v37  ;;  %v5559_v37 = vpop.permute.xlu1 %5558 }
 0x627   : > { %6927 = vmatprep.mubr.bf16.mxu0 %v6155_v49  ;;  %v5738_v49 = vpop.permute.xlu0 %5737 }
 0x628   : > { %v6167_v25 = vsel %vm3250_vm9, %v5622_v40, %v5738_v49 }
 0x62a   : > { %v6739_v16 = vpop.f32.mrb[76].mxu0  ;;  %v5561_v61 = vpop.permute.xlu1 %5560 }
 0x62b   : > { %v6740_v13 = vpop.f32.mrb[77].mxu0  ;;  %v5740_v34 = vpop.permute.xlu0 %5739  ;;  %v6051_v41 = vsel %vm3250_vm9, %v5503_v36, %v5561_v61 }
 0x62c   : > { %v6741_v35 = vpop.f32.mrb[78].mxu0  ;;  %v6047_v13 = vsel %vm3250_vm9, %v5501_v23, %v5559_v37 }
 0x62d   : > { %v6742_v8 = vpop.f32.mrb[79].mxu0 }
 0x62e   : > { %6928 = vmatmul.mubr.bf16.gmra.mrb[160].mxu0 %v6039_v60  ;;  %v5623_v8 = vrot.slane %v12815_v42, 4  ;;  %v5563_v43 = vpop.permute.xlu1 %5562 }
 0x62f   : > { %6933 = vmatprep.mubr.bf16.mxu0 %v6159_v21  ;;  %v5742_v5 = vpop.permute.xlu0 %5741 }
 0x630   : > { %v5624_v18 = vsel %vm5601_vm13, %v5621_v14, %v5623_v8 }
 0x632   : > { %v6745_v56 = vpop.f32.mrb[80].mxu0 }
 0x633   : > { %v6746_v38 = vpop.f32.mrb[81].mxu0 }
 0x634   : > { %v6747_v0 = vpop.f32.mrb[82].mxu0  ;;  %v6171_v38 = vsel %vm3250_vm9, %v5624_v18, %v5740_v34 }
 0x635   : > { %v6748_v1 = vpop.f32.mrb[83].mxu0 }
 0x636   : > { %6934 = vmatmul.mubr.bf16.gmra.mrb[164].mxu0 %v6043_v17  ;;  %v5625_v1 = vrot.slane %v12828_v12, 4 }
 0x637   : > { %6939 = vmatprep.mubr.bf16.mxu0 %v6163_v59 }
 0x638   : > { %v5626_v37 = vsel %vm5601_vm13, %v5623_v8, %v5625_v1 }
 0x63a   : > { %v6751_v47 = vpop.f32.mrb[84].mxu0 }
 0x63b   : > { %v6752_v54 = vpop.f32.mrb[85].mxu0  ;;  %v5505_v47 = vsel %vm1999_vm4, %v5502_v57, %v5504_v28  ;;  %v5507_v57 = vsel %vm1999_vm4, %v5504_v28, %v5506_v19  ;;  %v5631_v28 = vrot.slane %v12881_v58, 4 }
 0x63c   : > { %v6753_v16 = vpop.f32.mrb[86].mxu0  ;;  %v6055_v14 = vsel %vm3250_vm9, %v5505_v47, %v5563_v43  ;;  %v6175_v54 = vsel %vm3250_vm9, %v5626_v37, %v5742_v5 }
 0x63d   : > { %v6754_v10 = vpop.f32.mrb[87].mxu0  ;;  %v5627_v16 = vrot.slane %v12841_v29, 4 }
 0x63e   : > { %6940 = vmatmul.mubr.bf16.gmra.mrb[64].mxu0 %v6047_v13  ;;  %v5565_v10 = vpop.permute.xlu1 %5564  ;;  %v5744_v13 = vpop.permute.xlu0 %5743 }
 0x63f   : > { %6947 = vmatprep.mubr.bf16.mxu0 %v6167_v25  ;;  %v5628_v8 = vsel %vm5601_vm13, %v5625_v1, %v5627_v16 }
 0x640   : > { %v6179_v61 = vsel %vm3250_vm9, %v5628_v8, %v5744_v13 }
 0x642   : > { %v6757_v35 = vpop.f32.mrb[88].mxu0  ;;  %v5567_v34 = vpop.permute.xlu1 %5566 }
 0x643   : > { %v6758_v60 = vpop.f32.mrb[89].mxu0  ;;  %v6059_v35 = vsel %vm3250_vm9, %v5507_v57, %v5565_v10  ;;  %v5512_v10 = vrot.slane %v12841_v29, 7 }
 0x644   : > { %v6759_v21 = vpop.f32.mrb[90].mxu0  ;;  %v5629_v60 = vrot.slane %v12860_v24, 4 }
 0x645   : > { %v6760_v56 = vpop.f32.mrb[91].mxu0  ;;  %v5746_v21 = vpop.permute.xlu0 %5745 }
 0x646   : > { %6948 = vmatmul.mubr.bf16.gmra.mrb[68].mxu0 %v6051_v41  ;;  %v5509_v56 = vsel %vm1999_vm4, %v5506_v19, %v5508_v50  ;;  %v5630_v41 = vsel %vm5601_vm13, %v5627_v16, %v5629_v60  ;;  %v5569_v42 = vpop.permute.xlu1 %5568  ;;  %v5632_v47 = vsel %vm5601_vm13, %v5629_v60, %v5631_v28 }
 0x647   : > { %6955 = vmatprep.mubr.bf16.mxu0 %v6171_v38  ;;  %v6063_v36 = vsel %vm3250_vm9, %v5509_v56, %v5567_v34  ;;  %v6183_v18 = vsel %vm3250_vm9, %v5630_v41, %v5746_v21  ;;  %v5510_v38 = vrot.slane %v12828_v12, 7  ;;  %v5514_v21 = vrot.slane %v12860_v24, 7 }
 0x648   : > { %v5516_v24 = vrot.slane %v12881_v58, 7 }
 0x649   : > { %v5748_v1 = vpop.permute.xlu0 %5747  ;;  %v5511_v5 = vsel %vm1999_vm4, %v5508_v50, %v5510_v38  ;;  %v5513_v8 = vsel %vm1999_vm4, %v5510_v38, %v5512_v10 }
 0x64a   : > { %v6763_v0 = vpop.f32.mrb[92].mxu0  ;;  %v5571_v13 = vpop.permute.xlu1 %5570 }
 0x64b   : > { %v6764_v17 = vpop.f32.mrb[93].mxu0 }
 0x64c   : > { %v6765_v59 = vpop.f32.mrb[94].mxu0 }
 0x64d   : > { %v6766_v32 = vpop.f32.mrb[95].mxu0  ;;  %v5750_v57 = vpop.permute.xlu0 %5749 }
 0x64e   : > { %6956 = vmatmul.mubr.bf16.gmra.mrb[72].mxu0 %v6055_v14  ;;  %v6067_v32 = vsel %vm3250_vm9, %v5511_v5, %v5569_v42  ;;  %v8680_v14 = vld [vmem:[%s13967_s4] ss:$0 sm:$0xff]  ;;  %v5573_v41 = vpop.permute.xlu1 %5572  ;;  %v5515_v42 = vsel %vm1999_vm4, %v5512_v10, %v5514_v21 }
 0x64f   : > { %6963 = vmatprep.mubr.bf16.mxu0 %v6175_v54  ;;  %v6187_v54 = vsel %vm3250_vm9, %v5632_v47, %v5748_v1 }
 0x651   : > { %v5752_v38 = vpop.permute.xlu0 %5751 }
 0x652   : > { %v6769_v49 = vpop.f32.mrb[96].mxu0  ;;  %v5575_v5 = vpop.permute.xlu1 %5574 }
 0x653   : > { %v6770_v23 = vpop.f32.mrb[97].mxu0 }
 0x654   : > { %v6771_v40 = vpop.f32.mrb[98].mxu0  ;;  %v5633_v23 = vrot.slane %v12909_v51, 4 }
 0x655   : > { %v6772_v25 = vpop.f32.mrb[99].mxu0 }
 0x656   : > { %6964 = vmatmul.mubr.bf16.gmra.mrb[168].mxu0 %v6059_v35  ;;  %v5634_v50 = vsel %vm5601_vm13, %v5631_v28, %v5633_v23 }
 0x657   : > { %6969 = vmatprep.mubr.bf16.mxu0 %v6179_v61  ;;  %v6071_v61 = vsel %vm3250_vm9, %v5513_v8, %v5571_v13  ;;  %v6191_v34 = vsel %vm3250_vm9, %v5634_v50, %v5750_v57  ;;  %v5639_v8 = vrot.slane %v13003_v22, 4 }
 0x65e   : > { %6970 = vmatmul.mubr.bf16.gmra.mrb[172].mxu0 %v6063_v36  ;;  %v5635_v36 = vrot.slane %v12945_v4, 4 }
 0x65f   : > { %6975 = vmatprep.mubr.bf16.mxu0 %v6183_v18 }
 0x660   : > { %v5636_v1 = vsel %vm5601_vm13, %v5633_v23, %v5635_v36 }
 0x662   : > { %v6783_v48 = vpop.f32.mrb[104].mxu0 }
 0x663   : > { %v6784_v0 = vpop.f32.mrb[105].mxu0 }
 0x664   : > { %v6785_v43 = vpop.f32.mrb[106].mxu0  ;;  %v6075_v0 = vsel %vm3250_vm9, %v5515_v42, %v5573_v41 }
 0x665   : > { %v6786_v17 = vpop.f32.mrb[107].mxu0 }
 0x666   : > { %v5050_v59 = vpop.f32.mrb[232].mxu1  ;;  %6976 = vmatmul.mubr.bf16.gmra.mrb[176].mxu0 %v6067_v32  ;;  %v5637_v17 = vrot.slane %v12978_v15, 4  ;;  %v5754_v32 = vpop.permute.xlu0 %5753 }
 0x667   : > { %v8223_v12 = vadd.f32 %v8680_v14, %v5050_v59  ;;  %v5052_v37 = vpop.f32.mrb[233].mxu1  ;;  %6981 = vmatprep.mubr.bf16.mxu0 %v6187_v54 }
 0x668   : > { %v5053_v19 = vpop.f32.mrb[234].mxu1  ;;  %v5517_v37 = vsel %vm1999_vm4, %v5514_v21, %v5516_v24 }
 0x669   : > { %v8224_v49 = vadd.f32 %v8680_v14, %v5053_v19  ;;  %v5055_v16 = vpop.f32.mrb[235].mxu1  ;;  %v5126_v40 = vmax.f32 %v8223_v12, 0.0  ;;  %v6079_v19 = vsel %vm3250_vm9, %v5517_v37, %v5575_v5  ;;  %v5643_v37 = vrot.slane %v13061_v55, 4 }
 0x66b   : > { %v5127_v25 = vmax.f32 %v8224_v49, 0.0  ;;  %v5638_v49 = vsel %vm5601_vm13, %v5635_v36, %v5637_v17 }
 0x66c   : > { %v6199_v58 = vsel %vm3250_vm9, %v5638_v49, %v5754_v32 }
 0x66d   : > { %v13557_v35 = vpack.c.bf16 %v5127_v25, %v5126_v40  ;;  %v5518_v25 = vrot.slane %v12909_v51, 7 }
 0x66e   : > { %6982 = vmatmul.mubr.bf16.gmra.mrb[180].mxu0 %v6071_v61  ;;  %v5577_v61 = vpop.permute.xlu1 %5576 }
 0x66f   : > { %v5715_v60 = vrot.slane %v13557_v35, 5  ;;  %6987 = vmatprep.mubr.bf16.mxu0 %v6191_v34 }
 0x671   : > { %v5716_v29 = vsel %vm2781_vm11, %v5713_v53, %v5715_v60  ;;  %v6195_v53 = vsel %vm3250_vm9, %v5636_v1, %v5752_v38  ;;  %v5641_v1 = vrot.slane %v13036_v46, 4 }
 0x672   : > { %5773 = vrot.lane.b32.xlu0 %v5716_v29, %s8690_s25  ;;  %v6797_v56 = vpop.f32.mrb[112].mxu0  ;;  %v5756_v29 = vpop.permute.xlu0 %5755 }
 0x673   : > { %v6798_v18 = vpop.f32.mrb[113].mxu0 }
 0x674   : > { %v6799_v48 = vpop.f32.mrb[114].mxu0  ;;  %v5519_v18 = vsel %vm1999_vm4, %v5516_v24, %v5518_v25 }
 0x675   : > { %v6800_v28 = vpop.f32.mrb[115].mxu0  ;;  %v6083_v38 = vsel %vm3250_vm9, %v5519_v18, %v5577_v61  ;;  %v5640_v48 = vsel %vm5601_vm13, %v5637_v17, %v5639_v8 }
 0x676   : > { %6988 = vmatmul.mubr.bf16.gmra.mrb[184].mxu0 %v6075_v0  ;;  %v6203_v28 = vsel %vm3250_vm9, %v5640_v48, %v5756_v29  ;;  %v5520_v0 = vrot.slane %v12945_v4, 7  ;;  %v5758_v24 = vpop.permute.xlu0 %5757  ;;  %v5522_v4 = vrot.slane %v12978_v15, 7  ;;  %v5645_v15 = vrot.slane %v13088_v62, 4 }
 0x677   : > { %6993 = vmatprep.mubr.bf16.mxu0 %v6195_v53  ;;  %v5579_v53 = vpop.permute.xlu1 %5578 }
 0x678   : > { %v5521_v17 = vsel %vm1999_vm4, %v5518_v25, %v5520_v0  ;;  %v5523_v49 = vsel %vm1999_vm4, %v5520_v0, %v5522_v4  ;;  %v5646_v29 = vsel %vm5601_vm13, %v5643_v37, %v5645_v15 }
 0x679   : > { %v6087_v5 = vsel %vm3250_vm9, %v5521_v17, %v5579_v53 }
 0x67a   : > { %v6803_v43 = vpop.f32.mrb[116].mxu0 }
 0x67b   : > { %v6804_v59 = vpop.f32.mrb[117].mxu0 }
 0x67c   : > { %v6805_v47 = vpop.f32.mrb[118].mxu0  ;;  %v5642_v59 = vsel %vm5601_vm13, %v5639_v8, %v5641_v1 }
 0x67d   : > { %v6806_v12 = vpop.f32.mrb[119].mxu0  ;;  %v6207_v47 = vsel %vm3250_vm9, %v5642_v59, %v5758_v24  ;;  %v5649_v24 = vrot.slane %v13137_v52, 4 }
 0x67e   : > { %v5058_v54 = vpop.f32.mrb[236].mxu1  ;;  %6994 = vmatmul.mubr.bf16.gmra.mrb[188].mxu0 %v6079_v19  ;;  %v5760_v19 = vpop.permute.xlu0 %5759 }
 0x67f   : > { %v8225_v16 = vadd.f32 %v8680_v14, %v5058_v54  ;;  %v5060_v10 = vpop.f32.mrb[237].mxu1  ;;  %6999 = vmatprep.mubr.bf16.mxu0 %v6199_v58  ;;  %v5777_v14 = vrot.slane %v13557_v35, 6  ;;  %v5581_v54 = vpop.permute.xlu1 %5580 }
 0x680   : > { %v5061_v23 = vpop.f32.mrb[238].mxu1  ;;  %v5644_v10 = vsel %vm5601_vm13, %v5641_v1, %v5643_v37 }
 0x681   : > { %v5128_v13 = vmax.f32 %v8225_v16, 0.0  ;;  %v5062_v40 = vpop.f32.mrb[239].mxu1  ;;  %v6091_v16 = vsel %vm3250_vm9, %v5523_v49, %v5581_v54  ;;  %v6211_v58 = vsel %vm3250_vm9, %v5644_v10, %v5760_v19  ;;  %v5653_v10 = vrot.slane %v13183_v7, 4 }
 0x682   : > { %v6809_v57 = vpop.f32.mrb[120].mxu0  ;;  %v5762_v8 = vpop.permute.xlu0 %5761 }
 0x683   : > { %v5161_v50 = vpack.c.bf16 %v5128_v13, %v5128_v13  ;;  %v6810_v34 = vpop.f32.mrb[121].mxu0  ;;  %v5524_v13 = vrot.slane %v13003_v22, 7  ;;  %v5583_v25 = vpop.permute.xlu1 %5582  ;;  %v5647_v22 = vrot.slane %v13111_v63, 4 }
 0x684   : > { %v6811_v21 = vpop.f32.mrb[122].mxu0 }
 0x685   : > { %v5717_v56 = vrot.slane %v5161_v50, 5  ;;  %v5779_v36 = vrot.slane %v5161_v50, 6  ;;  %v6812_v41 = vpop.f32.mrb[123].mxu0  ;;  %v5525_v50 = vsel %vm1999_vm4, %v5522_v4, %v5524_v13  ;;  %v6215_v21 = vsel %vm3250_vm9, %v5646_v29, %v5762_v8 }
 0x686   : > { %7000 = vmatmul.mubr.bf16.gmra.mrb[100].mxu0 %v6083_v38  ;;  %v6095_v34 = vsel %vm3250_vm9, %v5525_v50, %v5583_v25  ;;  %v5764_v41 = vpop.permute.xlu0 %5763  ;;  %v5650_v59 = vsel %vm5601_vm13, %v5647_v22, %v5649_v24  ;;  %v5655_v50 = vrot.slane %v13216_v3, 4 }
 0x687   : > { %v5718_v51 = vsel %vm2781_vm11, %v5715_v60, %v5717_v56  ;;  %v13591_v42 = vsel %vm2374_vm0, %v5777_v14, %v5779_v36  ;;  %7007 = vmatprep.mubr.bf16.mxu0 %v6203_v28  ;;  %v5526_v56 = vrot.slane %v13036_v46, 7  ;;  %v5585_v36 = vpop.permute.xlu1 %5584  ;;  %v5648_v28 = vsel %vm5601_vm13, %v5645_v15, %v5647_v22 }
 0x688   : > { %5775 = vrot.lane.b32.xlu0 %v5718_v51, %s8690_s25  ;;  %v6219_v1 = vsel %vm3250_vm9, %v5648_v28, %v5764_v41  ;;  %v5528_v46 = vrot.slane %v13061_v55, 7  ;;  %v5656_v22 = vsel %vm5601_vm13, %v5653_v10, %v5655_v50  ;;  %v5536_v41 = vrot.slane %v13160_v2, 7 }
 0x689   : > { %v5527_v38 = vsel %vm1999_vm4, %v5524_v13, %v5526_v56 }
 0x68a   : > { %v6099_v51 = vsel %vm3250_vm9, %v5527_v38, %v5585_v36  ;;  %v5766_v17 = vpop.permute.xlu0 %5765 }
 0x68d   : > { %v6815_v43 = vpop.f32.mrb[124].mxu0 }
 0x68e   : > { %v6816_v60 = vpop.f32.mrb[125].mxu0  ;;  %7008 = vmatmul.mubr.bf16.gmra.mrb[192].mxu0 %v6087_v5  ;;  %v5587_v43 = vpop.permute.xlu1 %5586 }
 0x68f   : > { %v6817_v32 = vpop.f32.mrb[126].mxu0  ;;  %7013 = vmatprep.mubr.bf16.mxu0 %v6207_v47  ;;  %v5529_v60 = vsel %vm1999_vm4, %v5526_v56, %v5528_v46  ;;  %v5530_v47 = vrot.slane %v13088_v62, 7  ;;  %v5768_v55 = vpop.permute.xlu0 %5767 }
 0x690   : > { %v6818_v12 = vpop.f32.mrb[127].mxu0  ;;  %v6103_v5 = vsel %vm3250_vm9, %v5529_v60, %v5587_v43  ;;  %v6223_v32 = vsel %vm3250_vm9, %v5650_v59, %v5766_v17 }
 0x691   : > { %v5651_v12 = vrot.slane %v13160_v2, 4  ;;  %v5531_v37 = vsel %vm1999_vm4, %v5528_v46, %v5530_v47 }
 0x692   : > { %v5589_v4 = vpop.permute.xlu1 %5588 }
 0x693   : > { %v6107_v54 = vsel %vm3250_vm9, %v5531_v37, %v5589_v4  ;;  %v5652_v19 = vsel %vm5601_vm13, %v5649_v24, %v5651_v12  ;;  %v5770_v62 = vpop.permute.xlu0 %5769 }
 0x694   : > { %v6227_v49 = vsel %vm3250_vm9, %v5652_v19, %v5768_v55 }
 0x696   : > { %7014 = vmatmul.mubr.bf16.gmra.mrb[108].mxu0 %v6091_v16  ;;  %v5532_v16 = vrot.slane %v13111_v63, 7  ;;  %v5534_v63 = vrot.slane %v13137_v52, 7 }
 0x697   : > { %7021 = vmatprep.mubr.bf16.mxu0 %v6211_v58  ;;  %v5591_v58 = vpop.permute.xlu1 %5590  ;;  %v5772_v29 = vpop.permute.xlu0 %5771 }
 0x698   : > { %v6235_v36 = vsel %vm3250_vm9, %v5656_v22, %v5772_v29  ;;  %v5537_v38 = vsel %vm1999_vm4, %v5534_v63, %v5536_v41 }
 0x699   : > { %v6821_v23 = vpop.f32.mrb[128].mxu0 }
 0x69a   : > { %v6822_v40 = vpop.f32.mrb[129].mxu0 }
 0x69b   : > { %v6823_v57 = vpop.f32.mrb[130].mxu0  ;;  %v5533_v40 = vsel %vm1999_vm4, %v5530_v47, %v5532_v16  ;;  %v5540_v47 = vrot.slane %v13216_v3, 7 }
 0x69c   : > { %v6824_v61 = vpop.f32.mrb[131].mxu0  ;;  %v6111_v15 = vsel %vm3250_vm9, %v5533_v40, %v5591_v58  ;;  %v5654_v57 = vsel %vm5601_vm13, %v5651_v12, %v5653_v10 }
 0x69d   : > { %v6231_v8 = vsel %vm3250_vm9, %v5654_v57, %v5770_v62 }
 0x69e   : > { %7022 = vmatmul.mubr.bf16.gmra.mrb[196].mxu0 %v6095_v34  ;;  %v5593_v34 = vpop.permute.xlu1 %5592 }
 0x69f   : > { %7027 = vmatprep.mubr.bf16.mxu0 %v6215_v21  ;;  %v5535_v21 = vsel %vm1999_vm4, %v5532_v16, %v5534_v63 }
 0x6a0   : > { %v6115_v56 = vsel %vm3250_vm9, %v5535_v21, %v5593_v34 }
 0x6a5   : > { %v6827_v18 = vpop.f32.mrb[132].mxu0 }
 0x6a6   : > { %v6828_v48 = vpop.f32.mrb[133].mxu0  ;;  %7028 = vmatmul.mubr.bf16.gmra.mrb[200].mxu0 %v6099_v51  ;;  %v5595_v18 = vpop.permute.xlu1 %5594  ;;  %v5538_v51 = vrot.slane %v13183_v7, 7 }
 0x6a7   : > { %v6829_v0 = vpop.f32.mrb[134].mxu0  ;;  %7033 = vmatprep.mubr.bf16.mxu0 %v6219_v1  ;;  %v6119_v52 = vsel %vm3250_vm9, %v5537_v38, %v5595_v18  ;;  %v5657_v48 = vrot.slane %v13557_v35, 4 }
 0x6a8   : > { %v6830_v53 = vpop.f32.mrb[135].mxu0  ;;  %v5539_v46 = vsel %vm1999_vm4, %v5536_v41, %v5538_v51  ;;  %v5541_v19 = vsel %vm1999_vm4, %v5538_v51, %v5540_v47 }
 0x6a9   : > { %v5658_v1 = vsel %vm5601_vm13, %v5655_v50, %v5657_v48 }
 0x6aa   : > { %v5597_v28 = vpop.permute.xlu1 %5596 }
 0x6ab   : > { %v6123_v2 = vsel %vm3250_vm9, %v5539_v46, %v5597_v28 }
 0x6ae   : > { %7034 = vmatmul.mubr.bf16.gmra.mrb[204].mxu0 %v6103_v5  ;;  %v5599_v12 = vpop.permute.xlu1 %5598 }
 0x6af   : > { %7039 = vmatprep.mubr.bf16.mxu0 %v6223_v32  ;;  %v6127_v16 = vsel %vm3250_vm9, %v5541_v19, %v5599_v12 }
 0x6b6   : > { %7040 = vmatmul.mubr.bf16.gmra.mrb[208].mxu0 %v6107_v54 }
 0x6b7   : > { %7045 = vmatprep.mubr.bf16.mxu0 %v6227_v49 }
 0x6bd   : > { %v6841_v23 = vpop.f32.mrb[140].mxu0 }
 0x6be   : > { %v6842_v13 = vpop.f32.mrb[141].mxu0  ;;  %7046 = vmatmul.mubr.bf16.gmra.mrb[212].mxu0 %v6111_v15 }
 0x6bf   : > { %v6843_v25 = vpop.f32.mrb[142].mxu0  ;;  %7051 = vmatprep.mubr.bf16.mxu0 %v6231_v8 }
 0x6c0   : > { %v6844_v61 = vpop.f32.mrb[143].mxu0 }
 0x6c6   : > { %7052 = vmatmul.mubr.bf16.gmra.mrb[216].mxu0 %v6115_v56 }
 0x6c7   : > { %7057 = vmatprep.mubr.bf16.mxu0 %v6235_v36 }
 0x6ce   : > { %7058 = vmatmul.mubr.bf16.gmra.mrb[136].mxu0 %v6119_v52 }
 0x6e4   : > { %v5774_v0 = vpop.permute.xlu0 %5773 }
 0x6e5   : > { %v6239_v53 = vsel %vm3250_vm9, %v5658_v1, %v5774_v0 }
 0x6e6   : > { %7065 = vmatprep.mubr.bf16.mxu0 %v6239_v53  ;;  %v14809_v53 = vld [vmem:[#allocation108_spill] sm:$0xff] }
 0x6e7   : > { %7066 = vmatmul.mubr.bf16.gmra.mrb[220].mxu0 %v6123_v2 }
 0x6e9   : > { %v6911_v24 = vpop.f32.mrb[148].mxu0 }
 0x6ea   : > { %v6912_v43 = vpop.f32.mrb[149].mxu0 }
 0x6eb   : > { %v6913_v17 = vpop.f32.mrb[150].mxu0 }
 0x6ec   : > { %v6914_v60 = vpop.f32.mrb[151].mxu0  ;;  %v14811_v17 = vld [vmem:[#allocation76_spill] sm:$0xff] }
 0x6f1   : > { %v6917_v5 = vpop.f32.mrb[152].mxu0 }
 0x6f2   : > { %v6918_v59 = vpop.f32.mrb[153].mxu0 }
 0x6f3   : > { %v6919_v32 = vpop.f32.mrb[154].mxu0 }
 0x6f4   : > { %v6920_v7 = vpop.f32.mrb[155].mxu0 }
 0x6f5   : > { %v14812_v7 = vld [vmem:[#allocation71_spill] sm:$0xff] }
 0x6f9   : > { %v6923_v4 = vpop.f32.mrb[156].mxu0 }
 0x6fa   : > { %v5776_v55 = vpop.permute.xlu0 %5775  ;;  %v6924_v37 = vpop.f32.mrb[157].mxu0 }
 0x6fb   : > { %v6243_v54 = vsel %vm3250_vm9, %v5657_v48, %v5776_v55  ;;  %v6925_v49 = vpop.f32.mrb[158].mxu0  ;;  %v14813_v37 = vld [vmem:[#allocation101_spill] sm:$0xff] }
 0x6fc   : > { %7071 = vmatprep.mubr.bf16.mxu0 %v6243_v54  ;;  %v6926_v10 = vpop.f32.mrb[159].mxu0 }
 0x6fd   : > { %7072 = vmatmul.mubr.bf16.gmra.mrb[144].mxu0 %v6127_v16  ;;  %v14814_v10 = vld [vmem:[#allocation117_spill] sm:$0xff] }
 0x6fe   : > { %8013 = vmatprep.mubr.msk.bf16.mxu0 %vm8694_vm14, %v8693_v9 }
 0x701   : > { %v6929_v58 = vpop.f32.mrb[160].mxu0 }
 0x702   : > { %v6930_v62 = vpop.f32.mrb[161].mxu0 }
 0x703   : > { %v6931_v23 = vpop.f32.mrb[162].mxu0 }
 0x704   : > { %v6932_v13 = vpop.f32.mrb[163].mxu0 }
 0x705   : > { %8014 = vmatmul.mubr.msk.bf16.vlgmr.msra.gmra.mrb[32].mxu0 %vm3250_vm9, %v12684_v20 }
 0x706   : > { %8017 = vmatprep.mubr.msk.bf16.mxu0 %vm8694_vm14, %v8693_v9 }
 0x709   : > { %v6935_v40 = vpop.f32.mrb[164].mxu0 }
 0x70a   : > { %v6936_v15 = vpop.f32.mrb[165].mxu0  ;;  %v14815_v40 = vld [vmem:[#allocation116_spill] sm:$0xff] }
 0x70b   : > { %v6937_v25 = vpop.f32.mrb[166].mxu0 }
 0x70c   : > { %v6938_v57 = vpop.f32.mrb[167].mxu0 }
 0x70d   : > { %8018 = vmatmul.mubr.msk.bf16.gmra.mrb[36].mxu0 %vm3250_vm9, %v12705_v11 }
 0x70e   : > { %8021 = vmatprep.mubr.msk.bf16.mxu0 %vm8694_vm14, %v8693_v9 }
 0x715   : > { %8022 = vmatmul.mubr.msk.bf16.gmra.mrb[40].mxu0 %vm3250_vm9, %v12719_v26 }
 0x716   : > { %8025 = vmatprep.mubr.msk.bf16.mxu0 %vm8694_vm14, %v8693_v9 }
 0x71d   : > { %8026 = vmatmul.mubr.msk.bf16.gmra.mrb[224].mxu0 %vm3250_vm9, %v12732_v27 }
 0x71e   : > { %8029 = vmatprep.mubr.msk.bf16.mxu0 %vm8694_vm14, %v8693_v9 }
 0x725   : > { %8030 = vmatmul.mubr.msk.bf16.gmra.mrb[228].mxu0 %vm3250_vm9, %v12745_v6 }
 0x726   : > { %8033 = vmatprep.mubr.msk.bf16.mxu0 %vm8694_vm14, %v8693_v9 }
 0x729   : > { %v6965_v20 = vpop.f32.mrb[168].mxu0 }
 0x72a   : > { %v6966_v11 = vpop.f32.mrb[169].mxu0 }
 0x72b   : > { %v6967_v8 = vpop.f32.mrb[170].mxu0  ;;  %v14816_v11 = vld [vmem:[#allocation72_spill] sm:$0xff] }
 0x72c   : > { %v6968_v61 = vpop.f32.mrb[171].mxu0  ;;  %v14817_v8 = vld [vmem:[#allocation97_spill] sm:$0xff] }
 0x72d   : > { %8034 = vmatmul.mubr.msk.bf16.gmra.mrb[232].mxu0 %vm3250_vm9, %v12758_v30  ;;  %v14818_v61 = vld [vmem:[#allocation107_spill] sm:$0xff] }
 0x72e   : > { %8037 = vmatprep.mubr.msk.bf16.mxu0 %vm8694_vm14, %v8693_v9 }
 0x731   : > { %v6971_v26 = vpop.f32.mrb[172].mxu0 }
 0x732   : > { %v6972_v27 = vpop.f32.mrb[173].mxu0  ;;  %v14819_v26 = vld [vmem:[#allocation122_spill] sm:$0xff] }
 0x733   : > { %v6973_v63 = vpop.f32.mrb[174].mxu0  ;;  %v8661_v27 = vld [vmem:[%s13970_s7 + $0x40] sm:$0xff]  }
 0x734   : > { %v6974_v50 = vpop.f32.mrb[175].mxu0  ;;  %7983 = vmatprep.subr.bf16.mxu1 %v8661_v27 }
 0x735   : > { %8038 = vmatmul.mubr.msk.bf16.gmra.mrb[236].mxu0 %vm3250_vm9, %v12771_v44  ;;  %v8662_v50 = vld [vmem:[%s13970_s7] sm:$0xff]  }
 0x736   : > { %8041 = vmatprep.mubr.msk.bf16.mxu0 %vm8694_vm14, %v8693_v9  ;;  %7984 = vmatpush3.bf16.msra.mxu1 %v8662_v50 }
 0x739   : > { %v6977_v6 = vpop.f32.mrb[176].mxu0 }
 0x73a   : > { %v6978_v34 = vpop.f32.mrb[177].mxu0 }
 0x73b   : > { %v6979_v29 = vpop.f32.mrb[178].mxu0 }
 0x73c   : > { %v6980_v21 = vpop.f32.mrb[179].mxu0 }
 0x73d   : > { %8042 = vmatmul.mubr.msk.bf16.gmra.mrb[240].mxu0 %vm3250_vm9, %v12784_v33  ;;  %v14820_v21 = vld [vmem:[#allocation121_spill] sm:$0xff] }
 0x73e   : > { %8045 = vmatprep.mubr.msk.bf16.mxu0 %vm8694_vm14, %v8693_v9 }
 0x741   : > { %v6983_v30 = vpop.f32.mrb[180].mxu0 }
 0x742   : > { %v6984_v56 = vpop.f32.mrb[181].mxu0  ;;  %v14821_v30 = vld [vmem:[#allocation137_spill] sm:$0xff] }
 0x743   : > { %v6985_v22 = vpop.f32.mrb[182].mxu0  ;;  %v14822_v56 = vld [vmem:[#allocation115_spill] sm:$0xff] }
 0x744   : > { %v6986_v36 = vpop.f32.mrb[183].mxu0  ;;  %v14823_v22 = vld [vmem:[#allocation126_spill] sm:$0xff] }
 0x745   : > { %8046 = vmatmul.mubr.msk.bf16.gmra.mrb[64].mxu0 %vm3250_vm9, %v12797_v31  ;;  %v14808_v31 = vld [vmem:[#allocation109_spill] sm:$0xff]  ;;  %v13772_v36 = vld [vmem:[%s13969_s6] ss:$0 sm:$0xff] }
 0x746   : > { %8049 = vmatprep.mubr.msk.bf16.mxu0 %vm8694_vm14, %v8693_v9 }
 0x749   : > { %v6989_v44 = vpop.f32.mrb[184].mxu0 }
 0x74a   : > { %v6990_v41 = vpop.f32.mrb[185].mxu0 }
 0x74b   : > { %v6991_v18 = vpop.f32.mrb[186].mxu0 }
 0x74c   : > { %v6992_v38 = vpop.f32.mrb[187].mxu0 }
 0x74d   : > { %8050 = vmatmul.mubr.msk.bf16.gmra.mrb[68].mxu0 %vm3250_vm9, %v12810_v39 }
 0x74e   : > { %8053 = vmatprep.mubr.msk.bf16.mxu0 %vm8694_vm14, %v8693_v9 }
 0x751   : > { %v6995_v33 = vpop.f32.mrb[188].mxu0 }
 0x752   : > { %v6996_v52 = vpop.f32.mrb[189].mxu0  ;;  %v8663_v33 = vld [vmem:[%s13970_s7 + $0x48] sm:$0xff]  }
 0x753   : > { %v6997_v48 = vpop.f32.mrb[190].mxu0  ;;  %7985 = vmatprep.subr.bf16.mxu1 %v8663_v33 }
 0x754   : > { %v6998_v51 = vpop.f32.mrb[191].mxu0 }
 0x755   : > { %8054 = vmatmul.mubr.msk.bf16.gmra.mrb[72].mxu0 %vm3250_vm9, %v12823_v45  ;;  %v14810_v45 = vld [vmem:[#allocation92_spill] sm:$0xff]  ;;  %v8664_v51 = vld [vmem:[%s13970_s7 + $0x8] sm:$0xff]  }
 0x756   : > { %8057 = vmatprep.mubr.msk.bf16.mxu0 %vm8694_vm14, %v8693_v9  ;;  %7986 = vmatpush3.bf16.msra.mxu1 %v8664_v51 }
 0x75d   : > { %8058 = vmatmul.mubr.msk.bf16.gmra.mrb[244].mxu0 %vm3250_vm9, %v14808_v31  ;;  %v14824_v31 = vrot.slane %v13216_v3, 6 }
 0x75e   : > { %8061 = vmatprep.mubr.msk.bf16.mxu0 %vm8694_vm14, %v8693_v9 }
 0x761   : > { %v7009_v39 = vpop.f32.mrb[192].mxu0 }
 0x762   : > { %v7010_v28 = vpop.f32.mrb[193].mxu0  ;;  %v5778_v39 = vsel %vm2374_vm0, %v14824_v31, %v5777_v14 }
 0x763   : > { %v7011_v0 = vpop.f32.mrb[194].mxu0 }
 0x764   : > { %v7012_v1 = vpop.f32.mrb[195].mxu0 }
 0x765   : > { %8062 = vmatmul.mubr.msk.bf16.gmra.mrb[248].mxu0 %vm3250_vm9, %v14809_v53 }
 0x766   : > { %8065 = vmatprep.mubr.msk.bf16.mxu0 %vm8694_vm14, %v8693_v9 }
 0x76d   : > { %8066 = vmatmul.mubr.msk.bf16.gmra.mrb[252].mxu0 %vm3250_vm9, %v14810_v45 }
 0x76e   : > { %8069 = vmatprep.mubr.msk.bf16.mxu0 %vm8694_vm14, %v8693_v9 }
 0x771   : > { %v7023_v46 = vpop.f32.mrb[196].mxu0 }
 0x772   : > { %v7024_v2 = vpop.f32.mrb[197].mxu0 }
 0x773   : > { %v7025_v24 = vpop.f32.mrb[198].mxu0 }
 0x774   : > { %v7026_v43 = vpop.f32.mrb[199].mxu0 }
 0x775   : > { %8070 = vmatmul.mubr.msk.bf16.gmra.mrb[0].mxu0 %vm3250_vm9, %v14811_v17 }
 0x776   : > { %8073 = vmatprep.mubr.msk.bf16.mxu0 %vm8694_vm14, %v8693_v9 }
 0x779   : > { %v7029_v60 = vpop.f32.mrb[200].mxu0 }
 0x77a   : > { %v7030_v5 = vpop.f32.mrb[201].mxu0 }
 0x77b   : > { %v7031_v59 = vpop.f32.mrb[202].mxu0 }
 0x77c   : > { %v7032_v32 = vpop.f32.mrb[203].mxu0 }
 0x77d   : > { %8074 = vmatmul.mubr.msk.bf16.gmra.mrb[4].mxu0 %vm3250_vm9, %v14812_v7 }
 0x77e   : > { %8077 = vmatprep.mubr.msk.bf16.mxu0 %vm8694_vm14, %v8693_v9 }
 0x781   : > { %v7035_v47 = vpop.f32.mrb[204].mxu0 }
 0x782   : > { %v7036_v12 = vpop.f32.mrb[205].mxu0 }
 0x783   : > { %v7037_v4 = vpop.f32.mrb[206].mxu0 }
 0x784   : > { %v7038_v55 = vpop.f32.mrb[207].mxu0 }
 0x785   : > { %8078 = vmatmul.mubr.msk.bf16.gmra.mrb[8].mxu0 %vm3250_vm9, %v14813_v37 }
 0x786   : > { %8081 = vmatprep.mubr.msk.bf16.mxu0 %vm8694_vm14, %v8693_v9 }
 0x789   : > { %v7041_v54 = vpop.f32.mrb[208].mxu0 }
 0x78a   : > { %v7042_v19 = vpop.f32.mrb[209].mxu0 }
 0x78b   : > { %v7043_v49 = vpop.f32.mrb[210].mxu0 }
 0x78c   : > { %v7044_v16 = vpop.f32.mrb[211].mxu0 }
 0x78d   : > { %8082 = vmatmul.mubr.msk.bf16.gmra.mrb[100].mxu0 %vm3250_vm9, %v14814_v10 }
 0x78e   : > { %8085 = vmatprep.mubr.msk.bf16.mxu0 %vm8694_vm14, %v8693_v9 }
 0x791   : > { %v7047_v58 = vpop.f32.mrb[212].mxu0 }
 0x792   : > { %v7048_v62 = vpop.f32.mrb[213].mxu0 }
 0x793   : > { %v7049_v23 = vpop.f32.mrb[214].mxu0  ;;  %v8665_v62 = vld [vmem:[%s13970_s7 + $0x50] sm:$0xff]  }
 0x794   : > { %v7050_v13 = vpop.f32.mrb[215].mxu0  ;;  %7987 = vmatprep.subr.bf16.mxu1 %v8665_v62 }
 0x795   : > { %8086 = vmatmul.mubr.msk.bf16.gmra.mrb[12].mxu0 %vm3250_vm9, %v14815_v40  ;;  %v8666_v13 = vld [vmem:[%s13970_s7 + $0x10] sm:$0xff]  }
 0x796   : > { %8089 = vmatprep.mubr.msk.bf16.mxu0 %vm8694_vm14, %v8693_v9  ;;  %7988 = vmatpush3.bf16.msra.mxu1 %v8666_v13 }
 0x799   : > { %v7053_v15 = vpop.f32.mrb[216].mxu0 }
 0x79a   : > { %v7054_v25 = vpop.f32.mrb[217].mxu0 }
 0x79b   : > { %v7055_v57 = vpop.f32.mrb[218].mxu0 }
 0x79c   : > { %v7056_v20 = vpop.f32.mrb[219].mxu0 }
 0x79d   : > { %8090 = vmatmul.mubr.msk.bf16.gmra.mrb[108].mxu0 %vm3250_vm9, %v14816_v11 }
 0x79e   : > { %8093 = vmatprep.mubr.msk.bf16.mxu0 %vm8694_vm14, %v8693_v9 }
 0x7a5   : > { %8094 = vmatmul.mubr.msk.bf16.gmra.mrb[16].mxu0 %vm3250_vm9, %v14817_v8 }
 0x7a6   : > { %8097 = vmatprep.mubr.msk.bf16.mxu0 %vm8694_vm14, %v8693_v9 }
 0x7ad   : > { %8098 = vmatmul.mubr.msk.bf16.gmra.mrb[20].mxu0 %vm3250_vm9, %v14818_v61 }
 0x7ae   : > { %8101 = vmatprep.mubr.msk.bf16.mxu0 %vm8694_vm14, %v8693_v9 }
 0x7b5   : > { %8102 = vmatmul.mubr.msk.bf16.gmra.mrb[24].mxu0 %vm3250_vm9, %v14819_v26 }
 0x7b6   : > { %8105 = vmatprep.mubr.msk.bf16.mxu0 %vm8694_vm14, %v8693_v9 }
 0x7ba   : > { %v7067_v63 = vpop.f32.mrb[220].mxu0 }
 0x7bb   : > { %v7068_v6 = vpop.f32.mrb[221].mxu0 }
 0x7bc   : > { %v7069_v34 = vpop.f32.mrb[222].mxu0 }
 0x7bd   : > { %v7070_v29 = vpop.f32.mrb[223].mxu0  ;;  %8106 = vmatmul.mubr.msk.bf16.gmra.mrb[28].mxu0 %vm3250_vm9, %v14820_v21 }
 0x7be   : > { %8109 = vmatprep.mubr.msk.bf16.mxu0 %vm8694_vm14, %v8693_v9 }
 0x7c5   : > { %8110 = vmatmul.mubr.msk.bf16.gmra.mrb[44].mxu0 %vm3250_vm9, %v14821_v30 }
 0x7c6   : > { %8113 = vmatprep.mubr.msk.bf16.mxu0 %vm8694_vm14, %v8693_v9 }
 0x7cd   : > { %8114 = vmatmul.mubr.msk.bf16.gmra.mrb[48].mxu0 %vm3250_vm9, %v14822_v56 }
 0x7ce   : > { %8117 = vmatprep.mubr.msk.bf16.mxu0 %vm8694_vm14, %v8693_v9 }
 0x7d5   : > { %8118 = vmatmul.mubr.msk.bf16.gmra.mrb[136].mxu0 %vm3250_vm9, %v14823_v22  ;;  %v8667_v22 = vld [vmem:[%s13970_s7 + $0x58] sm:$0xff]  }
 0x7d6   : > { %8121 = vmatprep.mubr.msk.bf16.mxu0 %vm8694_vm14, %v8693_v9  ;;  %7989 = vmatprep.subr.bf16.mxu1 %v8667_v22 }
 0x7d8   : > { %v7113_v44 = vpop.f32.mrb[32].mxu0 }
 0x7d9   : > { %v8226_v41 = vadd.f32 %v13772_v36, %v7113_v44  ;;  %v8015_v18 = vpop.f32.mrb[33].mxu0  ;;  %v8668_v44 = vld [vmem:[%s13970_s7 + $0x18] sm:$0xff]  }
 0x7da   : > { %v7116_v38 = vpop.f32.mrb[34].mxu0  ;;  %7990 = vmatpush3.bf16.msra.mxu1 %v8668_v44 }
 0x7db   : > { %v8227_v52 = vadd.f32 %v13772_v36, %v7116_v38  ;;  %v8016_v48 = vpop.f32.mrb[35].mxu0  ;;  %v7305_v28 = vmax.f32 %v8226_v41, 0.0 }
 0x7dd   : > { %v7306_v0 = vmax.f32 %v8227_v52, 0.0  ;;  %8122 = vmatmul.mubr.msk.bf16.gmra.mrb[52].mxu0 %vm3250_vm9, %v5778_v39 }
 0x7de   : > { %8125 = vmatprep.mubr.msk.bf16.mxu0 %vm8694_vm14, %v8693_v9 }
 0x7df   : > { %v13792_v1 = vpack.c.bf16 %v7306_v0, %v7305_v28 }
 0x7e0   : > { %v7121_v53 = vpop.f32.mrb[36].mxu0 }
 0x7e1   : > { %v8228_v45 = vadd.f32 %v13772_v36, %v7121_v53  ;;  %v8019_v46 = vpop.f32.mrb[37].mxu0  ;;  %v7338_v35 = vrot.slane %v13792_v1, 2  ;;  %v7335_v3 = vrot.slane %v13792_v1, 1 }
 0x7e2   : > { %v7124_v14 = vpop.f32.mrb[38].mxu0 }
 0x7e3   : > { %v8229_v2 = vadd.f32 %v13772_v36, %v7124_v14  ;;  %7339 = vrot.lane.b32.xlu0 %v7338_v35, %s8690_s25  ;;  %7336 = vrot.lane.b32.xlu1 %v7335_v3, %s8691_s15  ;;  %v8020_v24 = vpop.f32.mrb[39].mxu0  ;;  %v7307_v43 = vmax.f32 %v8228_v45, 0.0 }
 0x7e5   : > { %v7308_v9 = vmax.f32 %v8229_v2, 0.0  ;;  %8126 = vmatmul.mubr.msk.bf16.gmra.mrb[144].mxu0 %vm3250_vm9, %v13591_v42 }
 0x7e7   : > { %v13802_v17 = vpack.c.bf16 %v7308_v9, %v7307_v43 }
 0x7e8   : > { %v7129_v60 = vpop.f32.mrb[40].mxu0 }
 0x7e9   : > { %v7346_v5 = vrot.slane %v13802_v17, 7  ;;  %v8230_v59 = vadd.f32 %v13772_v36, %v7129_v60  ;;  %v8023_v32 = vpop.f32.mrb[41].mxu0 }
 0x7ea   : > { %v7132_v7 = vpop.f32.mrb[42].mxu0 }
 0x7eb   : > { %v8231_v47 = vadd.f32 %v13772_v36, %v7132_v7  ;;  %7347 = vrot.lane.b32.xlu0 %v7346_v5, %s8691_s15  ;;  %v8024_v12 = vpop.f32.mrb[43].mxu0  ;;  %v7309_v4 = vmax.f32 %v8230_v59, 0.0 }
 0x7ed   : > { %v7310_v55 = vmax.f32 %v8231_v47, 0.0 }
 0x7ef   : > { %v13808_v37 = vpack.c.bf16 %v7310_v55, %v7309_v4 }
 0x7f0   : > { %v7137_v54 = vpop.f32.mrb[224].mxu0 }
 0x7f1   : > { %7350 = vrot.lane.b32.xlu0 %v13808_v37, %s8690_s25  ;;  %v8027_v42 = vpop.f32.mrb[225].mxu0 }
 0x7f2   : > { %v7139_v19 = vpop.f32.mrb[226].mxu0 }
 0x7f3   : > { %v8028_v49 = vpop.f32.mrb[227].mxu0 }
 0x7f8   : > { %v7143_v16 = vpop.f32.mrb[228].mxu0 }
 0x7f9   : > { %v8031_v10 = vpop.f32.mrb[229].mxu0  ;;  %v8669_v16 = vld [vmem:[%s13970_s7 + $0x60] sm:$0xff]  }
 0x7fa   : > { %v7145_v58 = vpop.f32.mrb[230].mxu0  ;;  %v8670_v10 = vld [vmem:[%s13970_s7 + $0x20] sm:$0xff]   ;;  %7991 = vmatprep.subr.bf16.mxu1 %v8669_v16 }
 0x7fb   : > { %v8032_v23 = vpop.f32.mrb[231].mxu0  ;;  %7992 = vmatpush3.bf16.msra.mxu1 %v8670_v10 }
 0x800   : > { %v7149_v40 = vpop.f32.mrb[232].mxu0 }
 0x801   : > { %v8035_v15 = vpop.f32.mrb[233].mxu0 }
 0x802   : > { %v7151_v25 = vpop.f32.mrb[234].mxu0 }
 0x803   : > { %v8036_v57 = vpop.f32.mrb[235].mxu0 }
 0x808   : > { %v7155_v20 = vpop.f32.mrb[236].mxu0 }
 0x809   : > { %v8039_v11 = vpop.f32.mrb[237].mxu0 }
 0x80a   : > { %v7157_v8 = vpop.f32.mrb[238].mxu0 }
 0x80b   : > { %v8040_v61 = vpop.f32.mrb[239].mxu0 }
 0x810   : > { %v7161_v26 = vpop.f32.mrb[240].mxu0 }
 0x811   : > { %v8043_v27 = vpop.f32.mrb[241].mxu0 }
 0x812   : > { %v7163_v63 = vpop.f32.mrb[242].mxu0 }
 0x813   : > { %v8044_v50 = vpop.f32.mrb[243].mxu0 }
 0x818   : > { %v7167_v6 = vpop.f32.mrb[64].mxu0 }
 0x819   : > { %v8232_v34 = vadd.f32 %v13772_v36, %v7167_v6  ;;  %v8047_v29 = vpop.f32.mrb[65].mxu0  ;;  %v8671_v6 = vld [vmem:[%s13970_s7 + $0x68] sm:$0xff]  }
 0x81a   : > { %v7170_v21 = vpop.f32.mrb[66].mxu0  ;;  %7993 = vmatprep.subr.bf16.mxu1 %v8671_v6 }
 0x81b   : > { %v8233_v30 = vadd.f32 %v13772_v36, %v7170_v21  ;;  %v8048_v56 = vpop.f32.mrb[67].mxu0  ;;  %v7311_v41 = vmax.f32 %v8232_v34, 0.0  ;;  %v8672_v34 = vld [vmem:[%s13970_s7 + $0x28] sm:$0xff]  }
 0x81c   : > { %7994 = vmatpush3.bf16.msra.mxu1 %v8672_v34 }
 0x81d   : > { %v7312_v18 = vmax.f32 %v8233_v30, 0.0 }
 0x81f   : > { %v13826_v38 = vpack.c.bf16 %v7312_v18, %v7311_v41 }
 0x820   : > { %v7175_v33 = vpop.f32.mrb[68].mxu0 }
 0x821   : > { %v7372_v52 = vrot.slane %v13826_v38, 1  ;;  %v8234_v48 = vadd.f32 %v13772_v36, %v7175_v33  ;;  %v8051_v51 = vpop.f32.mrb[69].mxu0 }
 0x822   : > { %v7178_v31 = vpop.f32.mrb[70].mxu0 }
 0x823   : > { %v8235_v39 = vadd.f32 %v13772_v36, %v7178_v31  ;;  %7373 = vrot.lane.b32.xlu1 %v7372_v52, %s8691_s15  ;;  %v8052_v28 = vpop.f32.mrb[71].mxu0  ;;  %v7313_v0 = vmax.f32 %v8234_v48, 0.0 }
 0x825   : > { %v7314_v53 = vmax.f32 %v8235_v39, 0.0 }
 0x827   : > { %v7328_v45 = vpack.c.bf16 %v7314_v53, %v7313_v0 }
 0x828   : > { %v7183_v46 = vpop.f32.mrb[72].mxu0 }
 0x829   : > { %v7376_v35 = vrot.slane %v7328_v45, 2  ;;  %v7379_v3 = vrot.slane %v7328_v45, 3  ;;  %v8236_v14 = vadd.f32 %v13772_v36, %v7183_v46  ;;  %v8055_v2 = vpop.f32.mrb[73].mxu0  ;;  %v8673_v46 = vld [vmem:[%s13970_s7 + $0x70] sm:$0xff]  }
 0x82a   : > { %v7186_v24 = vpop.f32.mrb[74].mxu0  ;;  %7995 = vmatprep.subr.bf16.mxu1 %v8673_v46 }
 0x82b   : > { %v8237_v43 = vadd.f32 %v13772_v36, %v7186_v24  ;;  %7380 = vrot.lane.b32.xlu0 %v7379_v3, %s8692_s18  ;;  %7377 = vrot.lane.b32.xlu1 %v7376_v35, %s8690_s25  ;;  %v8056_v9 = vpop.f32.mrb[75].mxu0  ;;  %v7315_v60 = vmax.f32 %v8236_v14, 0.0  ;;  %v8674_v35 = vld [vmem:[%s13970_s7 + $0x30] sm:$0xff]   ;;  %v8675_v3 = vld [vmem:[%s13970_s7 + $0x78] sm:$0xff]  }
 0x82c   : > { %7996 = vmatpush3.bf16.msra.mxu1 %v8674_v35 }
 0x82d   : > { %v7316_v5 = vmax.f32 %v8237_v43, 0.0  ;;  %v8676_v43 = vld [vmem:[%s13970_s7 + $0x38] sm:$0xff]   ;;  %7997 = vmatprep.subr.bf16.mxu1 %v8675_v3 }
 0x82f   : > { %v13836_v59 = vpack.c.bf16 %v7316_v5, %v7315_v60 }
 0x830   : > { %v7191_v32 = vpop.f32.mrb[244].mxu0  ;;  %7998 = vmatpush3.bf16.msra.mxu1 %v8676_v43 }
 0x831   : > { %7387 = vrot.lane.b32.xlu0 %v13836_v59, %s8690_s25  ;;  %v8059_v7 = vpop.f32.mrb[245].mxu0  ;;  %v7384_v4 = vrot.slane %v13836_v59, 7  ;;  %v7389_v55 = vrot.slane %v13836_v59, 1 }
 0x832   : > { %v7193_v47 = vpop.f32.mrb[246].mxu0 }
 0x833   : > { %v8060_v12 = vpop.f32.mrb[247].mxu0 }
 0x835   : > { %7385 = vrot.lane.b32.xlu0 %v7384_v4, %s8691_s15 }
 0x838   : > { %v7197_v54 = vpop.f32.mrb[248].mxu0 }
 0x839   : > { %7390 = vrot.lane.b32.xlu0 %v7389_v55, %s8692_s18  ;;  %v8063_v42 = vpop.f32.mrb[249].mxu0 }
 0x83a   : > { %v7199_v19 = vpop.f32.mrb[250].mxu0 }
 0x83b   : > { %v8064_v49 = vpop.f32.mrb[251].mxu0 }
 0x840   : > { %v7203_v58 = vpop.f32.mrb[252].mxu0 }
 0x841   : > { %v8067_v62 = vpop.f32.mrb[253].mxu0 }
 0x842   : > { %v7205_v23 = vpop.f32.mrb[254].mxu0 }
 0x843   : > { %v8068_v13 = vpop.f32.mrb[255].mxu0 }
 0x848   : > { %v7209_v40 = vpop.f32.mrb[0].mxu0 }
 0x849   : > { %v8071_v15 = vpop.f32.mrb[1].mxu0 }
 0x84a   : > { %v7211_v25 = vpop.f32.mrb[2].mxu0 }
 0x84b   : > { %v8072_v57 = vpop.f32.mrb[3].mxu0 }
 0x850   : > { %v7215_v20 = vpop.f32.mrb[4].mxu0 }
 0x851   : > { %v8075_v11 = vpop.f32.mrb[5].mxu0 }
 0x852   : > { %v7217_v8 = vpop.f32.mrb[6].mxu0 }
 0x853   : > { %v8076_v61 = vpop.f32.mrb[7].mxu0 }
 0x855   : > { %v7340_v43 = vpop.permute.xlu0 %7339 }
 0x858   : > { %v7221_v26 = vpop.f32.mrb[8].mxu0 }
 0x859   : > { %v8079_v27 = vpop.f32.mrb[9].mxu0 }
 0x85a   : > { %v7223_v63 = vpop.f32.mrb[10].mxu0 }
 0x85b   : > { %v8080_v50 = vpop.f32.mrb[11].mxu0 }
 0x860   : > { %v7227_v29 = vpop.f32.mrb[100].mxu0 }
 0x861   : > { %v8238_v21 = vadd.f32 %v13772_v36, %v7227_v29  ;;  %v8083_v30 = vpop.f32.mrb[101].mxu0 }
 0x862   : > { %v7230_v56 = vpop.f32.mrb[102].mxu0 }
 0x863   : > { %v8239_v22 = vadd.f32 %v13772_v36, %v7230_v56  ;;  %v8084_v44 = vpop.f32.mrb[103].mxu0  ;;  %v7317_v41 = vmax.f32 %v8238_v21, 0.0 }
 0x865   : > { %v7318_v18 = vmax.f32 %v8239_v22, 0.0 }
 0x867   : > { %v13858_v33 = vpack.c.bf16 %v7318_v18, %v7317_v41 }
 0x868   : > { %v7235_v52 = vpop.f32.mrb[12].mxu0 }
 0x869   : > { %v8087_v48 = vpop.f32.mrb[13].mxu0  ;;  %v7407_v51 = vrot.slane %v13858_v33, 1  ;;  %v7410_v28 = vrot.slane %v13858_v33, 2 }
 0x86a   : > { %v7237_v31 = vpop.f32.mrb[14].mxu0 }
 0x86b   : > { %7408 = vrot.lane.b32.xlu1 %v7407_v51, %s8691_s15  ;;  %v8088_v39 = vpop.f32.mrb[15].mxu0 }
 0x86f   : > { %7411 = vrot.lane.b32.xlu1 %v7410_v28, %s8690_s25 }
 0x870   : > { %v7241_v0 = vpop.f32.mrb[108].mxu0 }
 0x871   : > { %v8240_v53 = vadd.f32 %v13772_v36, %v7241_v0  ;;  %v8091_v45 = vpop.f32.mrb[109].mxu0 }
 0x872   : > { %v7244_v14 = vpop.f32.mrb[110].mxu0 }
 0x873   : > { %v8241_v2 = vadd.f32 %v13772_v36, %v7244_v14  ;;  %v8092_v24 = vpop.f32.mrb[111].mxu0  ;;  %v7319_v9 = vmax.f32 %v8240_v53, 0.0 }
 0x874   : > { %v7352_v24 = vrot.slane %v13808_v37, 1 }
 0x875   : > { %v7320_v60 = vmax.f32 %v8241_v2, 0.0  ;;  %v7413_v2 = vrot.slane %v13858_v33, 3 }
 0x877   : > { %v13878_v5 = vpack.c.bf16 %v7320_v60, %v7319_v9  ;;  %v7348_v9 = vpop.permute.xlu0 %7347  ;;  %v7337_v60 = vpop.permute.xlu1 %7336 }
 0x878   : > { %v7249_v32 = vpop.f32.mrb[16].mxu0 }
 0x879   : > { %7421 = vrot.lane.b32.xlu0 %v13878_v5, %s8690_s25  ;;  %v8095_v7 = vpop.f32.mrb[17].mxu0  ;;  %v7418_v47 = vrot.slane %v13878_v5, 7  ;;  %v7423_v55 = vrot.slane %v13878_v5, 1 }
 0x87a   : > { %v7251_v12 = vpop.f32.mrb[18].mxu0 }
 0x87b   : > { %7419 = vrot.lane.b32.xlu1 %v7418_v47, %s8691_s15  ;;  %v8096_v4 = vpop.f32.mrb[19].mxu0  ;;  %v7351_v32 = vpop.permute.xlu0 %7350 }
 0x87d   : > { %7424 = vrot.lane.b32.xlu0 %v7423_v55, %s8692_s18 }
 0x880   : > { %v7255_v54 = vpop.f32.mrb[20].mxu0 }
 0x881   : > { %v8099_v42 = vpop.f32.mrb[21].mxu0 }
 0x882   : > { %v7257_v19 = vpop.f32.mrb[22].mxu0 }
 0x883   : > { %v8100_v49 = vpop.f32.mrb[23].mxu0 }
 0x888   : > { %v7261_v16 = vpop.f32.mrb[24].mxu0 }
 0x889   : > { %v8103_v10 = vpop.f32.mrb[25].mxu0 }
 0x88a   : > { %v7263_v58 = vpop.f32.mrb[26].mxu0 }
 0x88b   : > { %v8104_v62 = vpop.f32.mrb[27].mxu0  ;;  %v7383_v58 = vrot.slane %v13836_v59, 6 }
 0x890   : > { %v7267_v23 = vpop.f32.mrb[28].mxu0 }
 0x891   : > { %v8107_v13 = vpop.f32.mrb[29].mxu0 }
 0x892   : > { %v7269_v40 = vpop.f32.mrb[30].mxu0  ;;  %v7417_v13 = vrot.slane %v13878_v5, 6  ;;  %v7345_v5 = vrot.slane %v13802_v17, 6 }
 0x893   : > { %v8108_v15 = vpop.f32.mrb[31].mxu0 }
 0x895   : > { %v7374_v7 = vpop.permute.xlu1 %7373 }
 0x898   : > { %v7273_v25 = vpop.f32.mrb[44].mxu0 }
 0x899   : > { %v8111_v57 = vpop.f32.mrb[45].mxu0 }
 0x89a   : > { %v7275_v20 = vpop.f32.mrb[46].mxu0 }
 0x89b   : > { %v8112_v11 = vpop.f32.mrb[47].mxu0  ;;  %v7394_v20 = vsel %vm3183_vm8, %v13826_v38, %v7374_v7  ;;  %v7365_v38 = vsel %vm3183_vm8, %v7345_v5, %v7348_v9 }
 0x89d   : > { %v7381_v47 = vpop.permute.xlu0 %7380  ;;  %v7378_v12 = vpop.permute.xlu1 %7377 }
 0x8a0   : > { %v7279_v8 = vpop.f32.mrb[48].mxu0 }
 0x8a1   : > { %v8115_v61 = vpop.f32.mrb[49].mxu0  ;;  %v7396_v8 = vsel %vm3250_vm9, %v7394_v20, %v7378_v12 }
 0x8a2   : > { %v7281_v26 = vpop.f32.mrb[50].mxu0 }
 0x8a3   : > { %v8116_v27 = vpop.f32.mrb[51].mxu0  ;;  %v7388_v4 = vpop.permute.xlu0 %7387 }
 0x8a7   : > { %v7386_v54 = vpop.permute.xlu0 %7385 }
 0x8a8   : > { %v7285_v63 = vpop.f32.mrb[136].mxu0  ;;  %v7401_v23 = vsel %vm3183_vm8, %v7383_v58, %v7386_v54 }
 0x8a9   : > { %v8242_v50 = vadd.f32 %v13772_v36, %v7285_v63  ;;  %v8119_v6 = vpop.f32.mrb[137].mxu0  ;;  %v7403_v15 = vsel %vm3250_vm9, %v7401_v23, %v7388_v4 }
 0x8aa   : > { %v7288_v34 = vpop.f32.mrb[138].mxu0  ;;  %v7398_v6 = vsel %vm3317_vm10, %v7396_v8, %v7381_v47 }
 0x8ab   : > { %v8243_v29 = vadd.f32 %v13772_v36, %v7288_v34  ;;  %v8120_v21 = vpop.f32.mrb[139].mxu0  ;;  %v7321_v30 = vmax.f32 %v8242_v50, 0.0  ;;  %v7391_v37 = vpop.permute.xlu0 %7390 }
 0x8ac   : > { %v7405_v11 = vsel %vm3317_vm10, %v7403_v15, %v7391_v37 }
 0x8ad   : > { %v7322_v56 = vmax.f32 %v8243_v29, 0.0  ;;  %v7477_v63 = vshll.u32 %v7405_v11, 16 }
 0x8af   : > { %v7332_v22 = vpack.c.bf16 %v7322_v56, %v7321_v30  ;;  %v7367_v56 = vsel %vm3250_vm9, %v7365_v38, %v7351_v32 }
 0x8b0   : > { %v7293_v44 = vpop.f32.mrb[52].mxu0 }
 0x8b1   : > { %v8123_v41 = vpop.f32.mrb[53].mxu0  ;;  %v7444_v18 = vrot.slane %v7332_v22, 2  ;;  %v7441_v52 = vrot.slane %v7332_v22, 1  ;;  %v7447_v31 = vrot.slane %v7332_v22, 3 }
 0x8b2   : > { %v7295_v48 = vpop.f32.mrb[54].mxu0 }
 0x8b3   : > { %7445 = vrot.lane.b32.xlu1 %v7444_v18, %s8690_s25  ;;  %7442 = vrot.lane.b32.xlu0 %v7441_v52, %s8691_s15  ;;  %v8124_v51 = vpop.f32.mrb[55].mxu0  ;;  %v7474_v18 = vshll.u32 %v7398_v6, 16  ;;  %v7479_v52 = vrot.slane %v7477_v63, 6 }
 0x8b7   : > { %7448 = vrot.lane.b32.xlu1 %v7447_v31, %s8692_s18 }
 0x8b8   : > { %v7299_v39 = vpop.f32.mrb[144].mxu0 }
 0x8b9   : > { %v8244_v28 = vadd.f32 %v13772_v36, %v7299_v39  ;;  %v8127_v0 = vpop.f32.mrb[145].mxu0  ;;  %v7341_v36 = vrot.slane %v13792_v1, 3  ;;  %v7357_v39 = vsel %vm3183_vm8, %v13792_v1, %v7337_v60 }
 0x8ba   : > { %v7302_v53 = vpop.f32.mrb[146].mxu0 }
 0x8bb   : > { %v7323_v45 = vmax.f32 %v8244_v28, 0.0  ;;  %v8128_v46 = vpop.f32.mrb[147].mxu0 }
 0x8bd   : > { %v7333_v35 = vpack.c.bf16 %v7323_v45, %v7323_v45 }
 0x8bf   : > { %7455 = vrot.lane.b32.xlu1 %v7333_v35, %s8690_s25  ;;  %v7457_v3 = vrot.slane %v7333_v35, 1  ;;  %v7452_v14 = vrot.slane %v7333_v35, 7  ;;  %v7451_v27 = vrot.slane %v7333_v35, 6  ;;  %s7744_s25 = sshll.u32 %s14830_s10, 2 }
 0x8c0   : > { %s330_s19 = scalar_lea.vmem %s13972_s9, %s7744_s25 }
 0x8c1   : > { %7458 = vrot.lane.b32.xlu0 %v7457_v3, %s8692_s18 }
 0x8c3   : > { %7453 = vrot.lane.b32.xlu1 %v7452_v14, %s8691_s15  ;;  %v7476_v14 = vrot.slane %v7474_v18, 6 }
 0x8c5   : > { %7414 = vrot.lane.b32.xlu0 %v7413_v2, %s8692_s18  ;;  %v7359_v2 = vsel %vm3250_vm9, %v7357_v39, %v7340_v43  ;;  %v7931_v43 = vld [vmem:[%s13971_s8] ss:$0 sm:$0xff] }
 0x8c7   : > { %7353 = vrot.lane.b32.xlu1 %v7352_v24, %s8692_s18 }
 0x8cb   : > { %7342 = vrot.lane.b32.xlu1 %v7341_v36, %s8692_s18 }
 0x8dd   : > { %v7409_v55 = vpop.permute.xlu1 %7408 }
 0x8de   : > { %v7428_v48 = vsel %vm3183_vm8, %v13858_v33, %v7409_v55 }
 0x8e1   : > { %v7412_v42 = vpop.permute.xlu1 %7411 }
 0x8e2   : > { %v7430_v28 = vsel %vm3250_vm9, %v7428_v48, %v7412_v42 }
 0x8eb   : > { %v7422_v49 = vpop.permute.xlu0 %7421 }
 0x8ed   : > { %v7420_v19 = vpop.permute.xlu1 %7419 }
 0x8ee   : > { %v7435_v25 = vsel %vm3183_vm8, %v7417_v13, %v7420_v19 }
 0x8ef   : > { %v7425_v10 = vpop.permute.xlu0 %7424  ;;  %v7437_v59 = vsel %vm3250_vm9, %v7435_v25, %v7422_v49 }
 0x8f0   : > { %v7439_v29 = vsel %vm3317_vm10, %v7437_v59, %v7425_v10 }
 0x8f1   : > { %v7485_v0 = vrot.slane %v7439_v29, 3 }
 0x925   : > { %v7446_v16 = vpop.permute.xlu1 %7445  ;;  %v7443_v40 = vpop.permute.xlu0 %7442 }
 0x926   : > { %v7462_v26 = vsel %vm3183_vm8, %v7332_v22, %v7443_v40 }
 0x927   : > { %v7464_v21 = vsel %vm3250_vm9, %v7462_v26, %v7446_v16 }
 0x929   : > { %v7449_v62 = vpop.permute.xlu1 %7448 }
 0x92a   : > { %v7466_v22 = vsel %vm3317_vm10, %v7464_v21, %v7449_v62 }
 0x92b   : > { %v7486_v46 = vshll.u32 %v7466_v22, 16 }
 0x92d   : > { %v7488_v32 = vrot.slane %v7486_v46, 1 }
 0x931   : > { %v7456_v57 = vpop.permute.xlu1 %7455 }
 0x933   : > { %v7459_v61 = vpop.permute.xlu0 %7458 }
 0x935   : > { %v7454_v50 = vpop.permute.xlu1 %7453 }
 0x936   : > { %v7469_v34 = vsel %vm3183_vm8, %v7451_v27, %v7454_v50 }
 0x937   : > { %v7471_v30 = vsel %vm3250_vm9, %v7469_v34, %v7456_v57  ;;  %v7415_v44 = vpop.permute.xlu0 %7414 }
 0x938   : > { %v7473_v17 = vsel %vm3317_vm10, %v7471_v30, %v7459_v61  ;;  %v7432_v35 = vsel %vm3317_vm10, %v7430_v28, %v7415_v44 }
 0x939   : > { %v7489_v51 = vshll.u32 %v7473_v17, 16  ;;  %v7354_v31 = vpop.permute.xlu1 %7353  ;;  %v7484_v9 = vrot.slane %v7432_v35, 3 }
 0x93a   : > { %v7369_v53 = vsel %vm3317_vm10, %v7367_v56, %v7354_v31 }
 0x93b   : > { %v7496_v33 = vsel %vm13924_vm15, %v7369_v53, %v7479_v52  ;;  %v7491_v3 = vrot.slane %v7489_v51, 1 }
 0x93c   : > { %v7504_v1 = vsel %vm1999_vm4, %v7496_v33, %v7485_v0 }
 0x93d   : > { %v7343_v24 = vpop.permute.xlu1 %7342  ;;  %v7508_v36 = vsel %vm13936_vm1, %v7504_v1, %v7491_v3 }
 0x93e   : > { %v7361_v60 = vsel %vm3317_vm10, %v7359_v2, %v7343_v24  ;;  %7676 = vmatprep.mubr.bf16.mxu1 %v7508_v36 }
 0x93f   : > { %v7495_v7 = vsel %vm13924_vm15, %v7361_v60, %v7476_v14 }
 0x940   : > { %v7500_v47 = vsel %vm1999_vm4, %v7495_v7, %v7484_v9 }
 0x941   : > { %v7507_v12 = vsel %vm13936_vm1, %v7500_v47, %v7488_v32 }
 0x942   : > { %7677 = vmatmul.mubr.bf16.vlgmr.msra.gmra.mrb[240].mxu1 %v7507_v12 }
 0xa15   : > { %v7999_v4 = vpop.f32.mrb[240].mxu1 }
 0xa16   : > { %v8000_v55 = vpop.f32.mrb[241].mxu1 }
 0xa17   : > { %v8001_v54 = vadd.f32 %v8000_v55, %v7999_v4  ;;  %v8002_v42 = vpop.f32.mrb[242].mxu1 }
 0xa18   : > { %v8003_v37 = vpop.f32.mrb[243].mxu1 }
 0xa19   : > { %v7679_v19 = vadd.f32 %v8001_v54, %v7931_v43 }
 0xa1b   : > { %7684 = vst [vmem:[%s330_s19] sm:$0xf] %v7679_v19 }
 0xa1c PF: > { %s19_s30 = sadd.s32 1, %s8687_s30  }
 0xa1d   : > { %p16_p4 = scmp.ge.s32.totalorder %s19_s30, 4  }
 0xa1f   :  { %18 = sbr.rel (!%p16_p4) target bundleno = 1 (0x1), region = 86 }

</bundles_post_ra>
